<compile_context>
chip_gen: v7x
topology: tpu7x:2x2x1
jax: 0.10.0
libtpu: 0.0.40
codegen_flags: <defaults>
</compile_context>

<pallas_src>
import functools

import jax
import jax.numpy as jnp
from jax import lax
from jax.experimental import pallas as pl
from jax.experimental.pallas import tpu as pltpu

Z_DIM = 10
NC = 1
MXU_DTYPE = jnp.bfloat16    # MXU operand dtype; accumulation stays f32.


# ----------------------------------------------------------------------------
# Tiling: full-M tile on single-TC chips, 2-way split on 2-TC chips (v7x / megacore)
# ----------------------------------------------------------------------------
def _num_m_splits():
    try:
        kind = jax.devices()[0].device_kind.lower()
    except Exception:
        return 1
    return 2 if any(t in kind for t in ("v7", "v4", "v5p")) else 1


_M_SPLITS = _num_m_splits()


def _pick_tile(m):
    if _M_SPLITS > 1 and m % (_M_SPLITS * 128) == 0 and m // _M_SPLITS >= 128:
        return m // _M_SPLITS
    return m


# ----------------------------------------------------------------------------
# Pallas kernels
# ----------------------------------------------------------------------------
def _mm_nm_kernel(w_ref, a_ref, b_ref, o_ref, *, relu):
    # out[N, tile_m] = W[N, K] @ A[K, tile_m] + bias[N, 1]   (lane dim = M, dense stores)
    acc = jnp.dot(w_ref[...], a_ref[...], preferred_element_type=jnp.float32)
    acc = acc + b_ref[...]
    if relu:
        acc = jnp.maximum(acc, 0.0)
    o_ref[...] = acc.astype(o_ref.dtype)


def pallas_matmul_nm(w_t, a_t, bias, *, relu, out_dtype=jnp.bfloat16):
    """w_t: (N, K) bf16, a_t: (K, M) bf16, bias: (N,) -> (N, M), fused bias/ReLU."""
    N, K = w_t.shape
    K2, M = a_t.shape
    assert K == K2
    tile_m = _pick_tile(M)
    assert M % tile_m == 0, (M, tile_m)
    grid = (M // tile_m,)
    bias2 = bias.reshape(N, 1).astype(jnp.float32)
    return pl.pallas_call(
        functools.partial(_mm_nm_kernel, relu=relu),
        out_shape=jax.ShapeDtypeStruct((N, M), out_dtype),
        grid=grid,
        in_specs=[
            pl.BlockSpec((N, K), lambda i: (0, 0)),           # weight resident in VMEM
            pl.BlockSpec((K, tile_m), lambda i: (0, i)),
            pl.BlockSpec((N, 1), lambda i: (0, 0)),
        ],
        out_specs=pl.BlockSpec((N, tile_m), lambda i: (0, i)),
        compiler_params=pltpu.CompilerParams(dimension_semantics=("parallel",)),
    )(w_t, a_t, bias2)


def _fused_linear_kernel(a3_ref, eps_ref,
                         w3_ref, b3_ref, w0_ref, b0_ref, w1_ref, b1_ref,
                         wmu_ref, bmu_ref, wlv_ref, blv_ref,
                         dw0_ref, db0_ref, dw1_ref, db1_ref, dw2_ref, db2_ref,
                         mu_ref, logvar_ref, d_ref):
    """Fused: encoder conv3 -> encoder Linear stack -> mu/logvar -> reparametrize ->
    decoder Linear stack.  conv3 + first-linear are decomposed over the 16 output
    spatial positions so the NCHW View is absorbed into the pre-permuted weight."""
    f32 = jnp.float32

    def lin(x, w_ref, b_ref, relu):
        y = jnp.dot(x.astype(MXU_DTYPE), w_ref[...], preferred_element_type=f32)
        y = y + b_ref[...]
        return jnp.maximum(y, 0.0) if relu else y

    w3 = w3_ref[...]                                   # (512, 32) bf16
    b3 = b3_ref[...]                                   # (1, 32) f32
    h1 = b0_ref[...]                                   # (1, 256) f32 (broadcasts over B)
    for hw in range(16):                               # conv3 output positions
        c3 = jnp.dot(a3_ref[hw], w3, preferred_element_type=f32) + b3
        c3 = jnp.maximum(c3, 0.0)                      # (B, 32)
        h1 = h1 + jnp.dot(c3.astype(MXU_DTYPE), w0_ref[hw],
                          preferred_element_type=f32)  # (B, 256)
    h = jnp.maximum(h1, 0.0)
    h = lin(h, w1_ref, b1_ref, True)
    mu = lin(h, wmu_ref, bmu_ref, False)
    lv = lin(h, wlv_ref, blv_ref, False)
    mu_ref[...] = mu
    logvar_ref[...] = lv
    z = mu + jnp.exp(lv * 0.5) * eps_ref[...]
    d = lin(z, dw0_ref, db0_ref, True)
    d = lin(d, dw1_ref, db1_ref, True)
    d = lin(d, dw2_ref, db2_ref, True)
    d_ref[...] = d.astype(d_ref.dtype)


def pallas_linear_reparam(a3, eps, p):
    B = eps.shape[0]
    out_shapes = (
        jax.ShapeDtypeStruct((B, Z_DIM), jnp.float32),
        jax.ShapeDtypeStruct((B, Z_DIM), jnp.float32),
        jax.ShapeDtypeStruct((B, 32 * 4 * 4), jnp.bfloat16),
    )
    return pl.pallas_call(_fused_linear_kernel, out_shape=out_shapes)(
        a3, eps,
        p["e_c3_w"], p["e_c3_b"], p["e_l0_w"], p["e_l0_b"],
        p["e_l1_w"], p["e_l1_b"], p["e_lmu_w"], p["e_lmu_b"],
        p["e_llv_w"], p["e_llv_b"],
        p["d_l0_w"], p["d_l0_b"], p["d_l1_w"], p["d_l1_b"],
        p["d_l2_w"], p["d_l2_b"])


# ----------------------------------------------------------------------------
# Conv / ConvTranspose built on the lane-dense matmul (channel-major CBHW, bf16 patches)
# ----------------------------------------------------------------------------
def _im2col_cm(x_cbhw, k, stride, pad):
    """x: (C, B, H, W) -> A: (k*k*C, B*Ho*Wo), K ordered (kh, kw, c_in).  Built in the
    input's dtype (bf16) so patch-matrix HBM bytes are halved."""
    C, B, H, W = x_cbhw.shape
    xp = jnp.pad(x_cbhw, ((0, 0), (0, 0), (pad, pad), (pad, pad)))
    Hp, Wp = H + 2 * pad, W + 2 * pad
    Ho = (Hp - k) // stride + 1
    Wo = (Wp - k) // stride + 1
    cols = []
    for kh in range(k):
        for kw in range(k):
            cols.append(xp[:, :, kh:kh + stride * Ho:stride, kw:kw + stride * Wo:stride])
    a = jnp.stack(cols, axis=0)                       # (k*k, C, B, Ho, Wo)
    return a.reshape(k * k * C, B * Ho * Wo), Ho, Wo


def conv2d_cm(x_cm, w_t, bias, *, relu):
    """PyTorch-semantics Conv2d(k=4, s=2, p=1), channel-major.  w_t: (O, 16*I)."""
    # TODO(synk): move this tap gather fully in-kernel (VMEM-resident input + f32
    # accumulator) to drop the 4x patch-matrix inflation once batch size grows.
    O = w_t.shape[0]
    B = x_cm.shape[1]
    a, Ho, Wo = _im2col_cm(x_cm, 4, 2, 1)
    out = pallas_matmul_nm(w_t, a, bias, relu=relu)    # (O, B*Ho*Wo) bf16
    return out.reshape(O, B, Ho, Wo)


def conv_transpose2d_cm(x_cm, w_m, bias4, *, relu, out_dtype=jnp.bfloat16):
    """PyTorch-semantics ConvTranspose2d(k=4, s=2, p=1), all 4 sub-pixel phases merged
    into the N dimension: out[(r*2+c)*O + o, bhw] via a single shared stride-1 3x3
    im2col (K = 9*I) against a zero-padded merged weight (4*O, 9*I)."""
    I, B, H, W = x_cm.shape
    O = w_m.shape[0] // 4
    a, _, _ = _im2col_cm(x_cm, 3, 1, 1)                # (9*I, B*H*W) bf16
    out = pallas_matmul_nm(w_m, a, bias4, relu=relu, out_dtype=out_dtype)
    y = out.reshape(2, 2, O, B, H, W)
    # TODO(synk): emit the phase-interleaved output directly from the kernel (strided
    # out index_map) to drop this XLA transpose / extra activation pass.
    y = jnp.transpose(y, (2, 3, 4, 0, 5, 1))           # (O, B, H, r, W, c)
    return y.reshape(O, B, 2 * H, 2 * W)


# ----------------------------------------------------------------------------
# Deterministic parameter init (synthetic; mirrors module __init__ shapes) + prep
# ----------------------------------------------------------------------------
def _kaiming_normal(key, shape, fan_in):
    std = (2.0 / fan_in) ** 0.5
    return (std * jax.random.normal(key, shape, jnp.float32)).astype(jnp.float32)


def init_params(key):
    keys = jax.random.split(key, 14)
    p = {}
    for idx, (ci, co) in enumerate([(NC, 32), (32, 32), (32, 32), (32, 32)]):
        p[f"e_c{idx}_w"] = _kaiming_normal(keys[idx], (co, ci, 4, 4), ci * 16)
        p[f"e_c{idx}_b"] = jnp.zeros((co,), jnp.float32)
    for idx, (fi, fo) in enumerate([(32 * 4 * 4, 256), (256, 256), (256, 2 * Z_DIM)]):
        p[f"e_l{idx}_w"] = _kaiming_normal(keys[4 + idx], (fo, fi), fi)
        p[f"e_l{idx}_b"] = jnp.zeros((fo,), jnp.float32)
    for idx, (fi, fo) in enumerate([(Z_DIM, 256), (256, 256), (256, 32 * 4 * 4)]):
        p[f"d_l{idx}_w"] = _kaiming_normal(keys[7 + idx], (fo, fi), fi)
        p[f"d_l{idx}_b"] = jnp.zeros((fo,), jnp.float32)
    for idx, (ci, co) in enumerate([(32, 32), (32, 32), (32, 32), (32, NC)]):
        p[f"d_t{idx}_w"] = _kaiming_normal(keys[10 + idx], (ci, co, 4, 4), co * 16)
        p[f"d_t{idx}_b"] = jnp.zeros((co,), jnp.float32)
    return p


def _merge_tconv_weight(w):
    """ConvTranspose2d weight (I, O, 4, 4) -> merged-phase matrix (4*O, 9*I).
    Phase (r,c), 3x3 window tap (a,bo): value = w[i,o, 3+r-2a, 3+c-2bo] when
    a in {r,r+1} and bo in {c,c+1}, else 0.  K order (a, bo, i) matches _im2col_cm."""
    I, O, _, _ = w.shape
    rows = []
    for r in range(2):
        for c in range(2):
            blk = jnp.zeros((O, 3, 3, I), jnp.float32)
            for a in (r, r + 1):
                for bo in (c, c + 1):
                    kh = 3 + r - 2 * a
                    kw = 3 + c - 2 * bo
                    blk = blk.at[:, a, bo, :].set(jnp.transpose(w[:, :, kh, kw], (1, 0)))
            rows.append(blk.reshape(O, 9 * I))
    return jnp.concatenate(rows, axis=0)               # (4*O, 9*I)


def prepare_params(p):
    """One-time re-layout of PyTorch-shaped parameters into kernel-ready bf16 matrices."""
    bf = MXU_DTYPE
    f32 = jnp.float32
    q = {}
    # encoder convs 0..2: (O, I, 4, 4) -> (O, 16*I), K order (kh, kw, c_in)
    for i in range(3):
        w = p[f"e_c{i}_w"]
        O, I, kH, kW = w.shape
        q[f"e_c{i}_w"] = jnp.transpose(w, (0, 2, 3, 1)).reshape(O, kH * kW * I).astype(bf)
        q[f"e_c{i}_b"] = p[f"e_c{i}_b"].astype(f32)
    # encoder conv3 (fused into linear kernel): (O, I, 4, 4) -> (16*I, O)
    w3 = p["e_c3_w"]
    q["e_c3_w"] = jnp.transpose(w3, (2, 3, 1, 0)).reshape(16 * w3.shape[1],
                                                          w3.shape[0]).astype(bf)
    q["e_c3_b"] = p["e_c3_b"].reshape(1, -1).astype(f32)
    # first encoder linear pre-permuted per conv3 output position:
    # W0q[hw, c, f] = W0[f, c*16 + hw]   (absorbs the NCHW View)
    w0 = p["e_l0_w"]                                   # (256, 512)
    q["e_l0_w"] = jnp.transpose(w0.T.reshape(32, 16, 256), (1, 0, 2)).astype(bf)
    q["e_l0_b"] = p["e_l0_b"].reshape(1, -1).astype(f32)
    q["e_l1_w"] = p["e_l1_w"].T.astype(bf)
    q["e_l1_b"] = p["e_l1_b"].reshape(1, -1).astype(f32)
    w2, b2 = p["e_l2_w"], p["e_l2_b"]
    q["e_lmu_w"], q["e_llv_w"] = w2[:Z_DIM].T.astype(bf), w2[Z_DIM:].T.astype(bf)
    q["e_lmu_b"] = b2[:Z_DIM].reshape(1, -1).astype(f32)
    q["e_llv_b"] = b2[Z_DIM:].reshape(1, -1).astype(f32)
    for i in range(3):
        q[f"d_l{i}_w"] = p[f"d_l{i}_w"].T.astype(bf)
        q[f"d_l{i}_b"] = p[f"d_l{i}_b"].reshape(1, -1).astype(f32)
    # transposed convs: merged-phase weight + 4x tiled bias
    for i in range(4):
        q[f"d_t{i}_w"] = _merge_tconv_weight(p[f"d_t{i}_w"]).astype(bf)
        q[f"d_t{i}_b"] = jnp.tile(p[f"d_t{i}_b"], 4).astype(f32)
    return q


# ----------------------------------------------------------------------------
# Forward pass (BetaVAE_B.forward)
# ----------------------------------------------------------------------------
def beta_vae_b_forward(params, x_nchw, eps):
    B = x_nchw.shape[0]
    # channel-major (C, B, H, W), bf16 BEFORE im2col so patch matrices are bf16
    h = jnp.transpose(x_nchw, (1, 0, 2, 3)).astype(MXU_DTYPE)
    for i in range(3):
        h = conv2d_cm(h, params[f"e_c{i}_w"], params[f"e_c{i}_b"], relu=True)
    # encoder conv3 is fused into the linear/reparam kernel: build its im2col here
    a3, _, _ = _im2col_cm(h, 4, 2, 1)                  # (512, B*16) bf16
    a3 = a3.T.reshape(B, 16, 512).transpose(1, 0, 2)   # (16, B, 512): [hw, b, k]
    mu, logvar, d = pallas_linear_reparam(a3, eps, params)
    # TODO(synk): also fuse decoder t0 (M = B*16, masked lanes) into the fused kernel;
    # needs an in-kernel spatial un-flatten + pad, left for a follow-up.
    d_cm = jnp.transpose(d.reshape(B, 32, 4, 4), (1, 0, 2, 3))    # NCHW View -> CBHW
    for i in range(3):
        d_cm = conv_transpose2d_cm(d_cm, params[f"d_t{i}_w"], params[f"d_t{i}_b"],
                                   relu=True)
    d_cm = conv_transpose2d_cm(d_cm, params["d_t3_w"], params["d_t3_b"],
                               relu=False, out_dtype=jnp.float32)
    x_recon = jnp.transpose(d_cm, (1, 0, 2, 3)).reshape(x_nchw.shape)   # .view(x.size())
    return x_recon, mu, logvar


# ----------------------------------------------------------------------------
# Pure-JAX reference (same bf16 cast points) for numerical validation
# ----------------------------------------------------------------------------
def reference_forward(raw, x, eps):
    bf = lambda t: t.astype(MXU_DTYPE)
    dn = ("NCHW", "OIHW", "NCHW")
    f32 = jnp.float32
    h = x
    for i in range(4):
        h = lax.conv_general_dilated(bf(h), bf(raw[f"e_c{i}_w"]), (2, 2),
                                     [(1, 1), (1, 1)], dimension_numbers=dn,
                                     preferred_element_type=f32)
        h = jnp.maximum(h + raw[f"e_c{i}_b"].reshape(1, -1, 1, 1), 0.0)
    h = h.reshape(h.shape[0], -1)

    def linear(t, w, b, relu):
        y = jnp.dot(bf(t), bf(w).T, preferred_element_type=f32) + b
        return jnp.maximum(y, 0.0) if relu else y

    h = linear(h, raw["e_l0_w"], raw["e_l0_b"], True)
    h = linear(h, raw["e_l1_w"], raw["e_l1_b"], True)
    dist = linear(h, raw["e_l2_w"], raw["e_l2_b"], False)
    mu, logvar = dist[:, :Z_DIM], dist[:, Z_DIM:]
    z = mu + jnp.exp(logvar * 0.5) * eps
    d = linear(z, raw["d_l0_w"], raw["d_l0_b"], True)
    d = linear(d, raw["d_l1_w"], raw["d_l1_b"], True)
    d = linear(d, raw["d_l2_w"], raw["d_l2_b"], True)
    d = d.reshape(-1, 32, 4, 4)
    for i in range(4):
        w = raw[f"d_t{i}_w"]                            # (I, O, 4, 4)
        rhs = jnp.flip(jnp.transpose(w, (1, 0, 2, 3)), axis=(2, 3))
        d = lax.conv_general_dilated(bf(d), bf(rhs), (1, 1), [(2, 2), (2, 2)],
                                     lhs_dilation=(2, 2), dimension_numbers=dn,
                                     preferred_element_type=f32)
        d = d + raw[f"d_t{i}_b"].reshape(1, -1, 1, 1)
        if i < 3:
            d = jnp.maximum(d, 0.0)
    return d.reshape(x.shape), mu, logvar


if __name__ == "__main__":
    key = jax.random.PRNGKey(0)
    kx, kp, ke = jax.random.split(key, 3)
    # Architecture implies 64x64 inputs (4 stride-2 convs -> 4x4 before View(-1, 512)).
    # Batch kept small per harness; the lane-dense layout scales to larger batches.
    B, H, W = 2, 64, 64
    x = jax.random.normal(kx, (B, NC, H, W), jnp.float32)
    raw = init_params(kp)
    params = prepare_params(raw)
    eps = jax.random.normal(ke, (B, Z_DIM), jnp.float32)

    fwd = jax.jit(beta_vae_b_forward)
    x_recon, mu, logvar = fwd(params, x, eps)
    jax.block_until_ready((x_recon, mu, logvar))

    assert x_recon.shape == x.shape
    assert mu.shape == (B, Z_DIM) and logvar.shape == (B, Z_DIM)
    assert bool(jnp.all(jnp.isfinite(x_recon))) and bool(jnp.all(jnp.isfinite(mu)))

    # numerical reference check (pure-JAX convs with identical bf16 cast discipline)
    xr_ref, mu_ref, lv_ref = jax.jit(reference_forward)(raw, x, eps)
    err_x = float(jnp.max(jnp.abs(x_recon - xr_ref)))
    err_mu = float(jnp.max(jnp.abs(mu - mu_ref)))
    err_lv = float(jnp.max(jnp.abs(logvar - lv_ref)))
    assert err_x < 1e-1 and err_mu < 5e-2 and err_lv < 5e-2, (err_x, err_mu, err_lv)

    print("KERNEL_OK")
</pallas_src>

<mosaic_0001>
module attributes {stable_mosaic.version = 11 : i64} {
  func.func @_mm_nm_kernel(%arg0: i32, %arg1: memref<32x16xbf16, #tpu.memory_space<vmem>>, %arg2: memref<16x2048xbf16, #tpu.memory_space<vmem>>, %arg3: memref<32x1xf32, #tpu.memory_space<vmem>>, %arg4: memref<32x2048xbf16, #tpu.memory_space<vmem>>) attributes {dimension_semantics = [#tpu.dimension_semantics<parallel>], iteration_bounds = array<i64: 1>, scalar_prefetch = 0 : i64, scratch_operands = 0 : i64, tpu.core_type = #tpu.core_type<tc>, window_params = [{pipeline_mode = #tpu.pipeline_mode<synchronous>, transform_indices = @transform_0, window_bounds = array<i64: 32, 16>}, {transform_indices = @transform_1, window_bounds = array<i64: 16, 2048>}, {pipeline_mode = #tpu.pipeline_mode<synchronous>, transform_indices = @transform_2, window_bounds = array<i64: 32, 1>}, {transform_indices = @transform_3, window_bounds = array<i64: 32, 2048>}]} {
    %c0 = arith.constant 0 : index
    %c0_0 = arith.constant 0 : index
    %0 = vector.load %arg1[%c0, %c0_0] : memref<32x16xbf16, #tpu.memory_space<vmem>>, vector<32x16xbf16>
    %c0_1 = arith.constant 0 : index
    %c0_2 = arith.constant 0 : index
    %1 = vector.load %arg2[%c0_1, %c0_2] : memref<16x2048xbf16, #tpu.memory_space<vmem>>, vector<16x2048xbf16>
    %cst = arith.constant dense<0.000000e+00> : vector<32x2048xf32>
    %2 = tpu.matmul %0, %1, %cst {dimension_numbers = #tpu.dot_dimension_numbers<[1], [0], [0], [1], [0, 0, 1, 1], [], []>} : vector<32x16xbf16>, vector<16x2048xbf16>, vector<32x2048xf32> -> vector<32x2048xf32>
    %c0_3 = arith.constant 0 : index
    %c0_4 = arith.constant 0 : index
    %3 = vector.load %arg3[%c0_3, %c0_4] : memref<32x1xf32, #tpu.memory_space<vmem>>, vector<32x1xf32>
    %4 = vector.broadcast %3 : vector<32x1xf32> to vector<32x2048xf32>
    %5 = arith.addf %2, %4 : vector<32x2048xf32>
    %cst_5 = arith.constant 0.000000e+00 : f32
    %6 = vector.broadcast %cst_5 : f32 to vector<32x2048xf32>
    %7 = arith.maximumf %5, %6 : vector<32x2048xf32>
    %8 = arith.truncf %7 : vector<32x2048xf32> to vector<32x2048xbf16>
    %c0_6 = arith.constant 0 : index
    %c0_7 = arith.constant 0 : index
    %9 = vector.load %arg4[%c0_6, %c0_7] : memref<32x2048xbf16, #tpu.memory_space<vmem>>, vector<32x2048xbf16>
    tpu.vector_store %arg4[%c0_6, %c0_7], %8 {strides = array<i32>} : memref<32x2048xbf16, #tpu.memory_space<vmem>>, vector<32x2048xbf16>,
    return
  }
  func.func @transform_0(%arg0: i32) -> (i32, i32) {
    %c0_i32 = arith.constant 0 : i32
    %c0_i32_0 = arith.constant 0 : i32
    %c0_i32_1 = arith.constant 0 : i32
    return %c0_i32, %c0_i32_0 : i32, i32
  }
  func.func @transform_1(%arg0: i32) -> (i32, i32) {
    %c0_i32 = arith.constant 0 : i32
    %c0_i32_0 = arith.constant 0 : i32
    return %c0_i32, %arg0 : i32, i32
  }
  func.func @transform_2(%arg0: i32) -> (i32, i32) {
    %c0_i32 = arith.constant 0 : i32
    %c0_i32_0 = arith.constant 0 : i32
    %c0_i32_1 = arith.constant 0 : i32
    return %c0_i32, %c0_i32_0 : i32, i32
  }
  func.func @transform_3(%arg0: i32) -> (i32, i32) {
    %c0_i32 = arith.constant 0 : i32
    %c0_i32_0 = arith.constant 0 : i32
    return %c0_i32, %arg0 : i32, i32
  }
}

module attributes {stable_mosaic.version = 11 : i64} {
  func.func @_mm_nm_kernel(%arg0: i32, %arg1: memref<32x512xbf16, #tpu.memory_space<vmem>>, %arg2: memref<512x512xbf16, #tpu.memory_space<vmem>>, %arg3: memref<32x1xf32, #tpu.memory_space<vmem>>, %arg4: memref<32x512xbf16, #tpu.memory_space<vmem>>) attributes {dimension_semantics = [#tpu.dimension_semantics<parallel>], iteration_bounds = array<i64: 1>, scalar_prefetch = 0 : i64, scratch_operands = 0 : i64, tpu.core_type = #tpu.core_type<tc>, window_params = [{pipeline_mode = #tpu.pipeline_mode<synchronous>, transform_indices = @transform_0, window_bounds = array<i64: 32, 512>}, {transform_indices = @transform_1, window_bounds = array<i64: 512, 512>}, {pipeline_mode = #tpu.pipeline_mode<synchronous>, transform_indices = @transform_2, window_bounds = array<i64: 32, 1>}, {transform_indices = @transform_3, window_bounds = array<i64: 32, 512>}]} {
    %c0 = arith.constant 0 : index
    %c0_0 = arith.constant 0 : index
    %0 = vector.load %arg1[%c0, %c0_0] : memref<32x512xbf16, #tpu.memory_space<vmem>>, vector<32x512xbf16>
    %c0_1 = arith.constant 0 : index
    %c0_2 = arith.constant 0 : index
    %1 = vector.load %arg2[%c0_1, %c0_2] : memref<512x512xbf16, #tpu.memory_space<vmem>>, vector<512x512xbf16>
    %cst = arith.constant dense<0.000000e+00> : vector<32x512xf32>
    %2 = tpu.matmul %0, %1, %cst {dimension_numbers = #tpu.dot_dimension_numbers<[1], [0], [0], [1], [0, 0, 1, 1], [], []>} : vector<32x512xbf16>, vector<512x512xbf16>, vector<32x512xf32> -> vector<32x512xf32>
    %c0_3 = arith.constant 0 : index
    %c0_4 = arith.constant 0 : index
    %3 = vector.load %arg3[%c0_3, %c0_4] : memref<32x1xf32, #tpu.memory_space<vmem>>, vector<32x1xf32>
    %4 = vector.broadcast %3 : vector<32x1xf32> to vector<32x512xf32>
    %5 = arith.addf %2, %4 : vector<32x512xf32>
    %cst_5 = arith.constant 0.000000e+00 : f32
    %6 = vector.broadcast %cst_5 : f32 to vector<32x512xf32>
    %7 = arith.maximumf %5, %6 : vector<32x512xf32>
    %8 = arith.truncf %7 : vector<32x512xf32> to vector<32x512xbf16>
    %c0_6 = arith.constant 0 : index
    %c0_7 = arith.constant 0 : index
    %9 = vector.load %arg4[%c0_6, %c0_7] : memref<32x512xbf16, #tpu.memory_space<vmem>>, vector<32x512xbf16>
    tpu.vector_store %arg4[%c0_6, %c0_7], %8 {strides = array<i32>} : memref<32x512xbf16, #tpu.memory_space<vmem>>, vector<32x512xbf16>,
    return
  }
  func.func @transform_0(%arg0: i32) -> (i32, i32) {
    %c0_i32 = arith.constant 0 : i32
    %c0_i32_0 = arith.constant 0 : i32
    %c0_i32_1 = arith.constant 0 : i32
    return %c0_i32, %c0_i32_0 : i32, i32
  }
  func.func @transform_1(%arg0: i32) -> (i32, i32) {
    %c0_i32 = arith.constant 0 : i32
    %c0_i32_0 = arith.constant 0 : i32
    return %c0_i32, %arg0 : i32, i32
  }
  func.func @transform_2(%arg0: i32) -> (i32, i32) {
    %c0_i32 = arith.constant 0 : i32
    %c0_i32_0 = arith.constant 0 : i32
    %c0_i32_1 = arith.constant 0 : i32
    return %c0_i32, %c0_i32_0 : i32, i32
  }
  func.func @transform_3(%arg0: i32) -> (i32, i32) {
    %c0_i32 = arith.constant 0 : i32
    %c0_i32_0 = arith.constant 0 : i32
    return %c0_i32, %arg0 : i32, i32
  }
}

module attributes {stable_mosaic.version = 11 : i64} {
  func.func @_mm_nm_kernel(%arg0: i32, %arg1: memref<32x512xbf16, #tpu.memory_space<vmem>>, %arg2: memref<512x128xbf16, #tpu.memory_space<vmem>>, %arg3: memref<32x1xf32, #tpu.memory_space<vmem>>, %arg4: memref<32x128xbf16, #tpu.memory_space<vmem>>) attributes {dimension_semantics = [#tpu.dimension_semantics<parallel>], iteration_bounds = array<i64: 1>, scalar_prefetch = 0 : i64, scratch_operands = 0 : i64, tpu.core_type = #tpu.core_type<tc>, window_params = [{pipeline_mode = #tpu.pipeline_mode<synchronous>, transform_indices = @transform_0, window_bounds = array<i64: 32, 512>}, {transform_indices = @transform_1, window_bounds = array<i64: 512, 128>}, {pipeline_mode = #tpu.pipeline_mode<synchronous>, transform_indices = @transform_2, window_bounds = array<i64: 32, 1>}, {transform_indices = @transform_3, window_bounds = array<i64: 32, 128>}]} {
    %c0 = arith.constant 0 : index
    %c0_0 = arith.constant 0 : index
    %0 = vector.load %arg1[%c0, %c0_0] : memref<32x512xbf16, #tpu.memory_space<vmem>>, vector<32x512xbf16>
    %c0_1 = arith.constant 0 : index
    %c0_2 = arith.constant 0 : index
    %1 = vector.load %arg2[%c0_1, %c0_2] : memref<512x128xbf16, #tpu.memory_space<vmem>>, vector<512x128xbf16>
    %cst = arith.constant dense<0.000000e+00> : vector<32x128xf32>
    %2 = tpu.matmul %0, %1, %cst {dimension_numbers = #tpu.dot_dimension_numbers<[1], [0], [0], [1], [0, 0, 1, 1], [], []>} : vector<32x512xbf16>, vector<512x128xbf16>, vector<32x128xf32> -> vector<32x128xf32>
    %c0_3 = arith.constant 0 : index
    %c0_4 = arith.constant 0 : index
    %3 = vector.load %arg3[%c0_3, %c0_4] : memref<32x1xf32, #tpu.memory_space<vmem>>, vector<32x1xf32>
    %4 = vector.broadcast %3 : vector<32x1xf32> to vector<32x128xf32>
    %5 = arith.addf %2, %4 : vector<32x128xf32>
    %cst_5 = arith.constant 0.000000e+00 : f32
    %6 = vector.broadcast %cst_5 : f32 to vector<32x128xf32>
    %7 = arith.maximumf %5, %6 : vector<32x128xf32>
    %8 = arith.truncf %7 : vector<32x128xf32> to vector<32x128xbf16>
    %c0_6 = arith.constant 0 : index
    %c0_7 = arith.constant 0 : index
    %9 = vector.load %arg4[%c0_6, %c0_7] : memref<32x128xbf16, #tpu.memory_space<vmem>>, vector<32x128xbf16>
    tpu.vector_store %arg4[%c0_6, %c0_7], %8 {strides = array<i32>} : memref<32x128xbf16, #tpu.memory_space<vmem>>, vector<32x128xbf16>,
    return
  }
  func.func @transform_0(%arg0: i32) -> (i32, i32) {
    %c0_i32 = arith.constant 0 : i32
    %c0_i32_0 = arith.constant 0 : i32
    %c0_i32_1 = arith.constant 0 : i32
    return %c0_i32, %c0_i32_0 : i32, i32
  }
  func.func @transform_1(%arg0: i32) -> (i32, i32) {
    %c0_i32 = arith.constant 0 : i32
    %c0_i32_0 = arith.constant 0 : i32
    return %c0_i32, %arg0 : i32, i32
  }
  func.func @transform_2(%arg0: i32) -> (i32, i32) {
    %c0_i32 = arith.constant 0 : i32
    %c0_i32_0 = arith.constant 0 : i32
    %c0_i32_1 = arith.constant 0 : i32
    return %c0_i32, %c0_i32_0 : i32, i32
  }
  func.func @transform_3(%arg0: i32) -> (i32, i32) {
    %c0_i32 = arith.constant 0 : i32
    %c0_i32_0 = arith.constant 0 : i32
    return %c0_i32, %arg0 : i32, i32
  }
}

module attributes {stable_mosaic.version = 11 : i64} {
  func.func @_fused_linear_kernel(%arg0: memref<16x2x512xbf16, #tpu.memory_space<vmem>>, %arg1: memref<2x10xf32, #tpu.memory_space<vmem>>, %arg2: memref<512x32xbf16, #tpu.memory_space<vmem>>, %arg3: memref<1x32xf32, #tpu.memory_space<vmem>>, %arg4: memref<16x32x256xbf16, #tpu.memory_space<vmem>>, %arg5: memref<1x256xf32, #tpu.memory_space<vmem>>, %arg6: memref<256x256xbf16, #tpu.memory_space<vmem>>, %arg7: memref<1x256xf32, #tpu.memory_space<vmem>>, %arg8: memref<256x10xbf16, #tpu.memory_space<vmem>>, %arg9: memref<1x10xf32, #tpu.memory_space<vmem>>, %arg10: memref<256x10xbf16, #tpu.memory_space<vmem>>, %arg11: memref<1x10xf32, #tpu.memory_space<vmem>>, %arg12: memref<10x256xbf16, #tpu.memory_space<vmem>>, %arg13: memref<1x256xf32, #tpu.memory_space<vmem>>, %arg14: memref<256x256xbf16, #tpu.memory_space<vmem>>, %arg15: memref<1x256xf32, #tpu.memory_space<vmem>>, %arg16: memref<256x512xbf16, #tpu.memory_space<vmem>>, %arg17: memref<1x512xf32, #tpu.memory_space<vmem>>, %arg18: memref<2x10xf32, #tpu.memory_space<vmem>>, %arg19: memref<2x10xf32, #tpu.memory_space<vmem>>, %arg20: memref<2x512xbf16, #tpu.memory_space<vmem>>) attributes {dimension_semantics = [], scalar_prefetch = 0 : i64, scratch_operands = 0 : i64, tpu.core_type = #tpu.core_type<tc>} {
    %c0 = arith.constant 0 : index
    %c0_0 = arith.constant 0 : index
    %0 = vector.load %arg2[%c0, %c0_0] : memref<512x32xbf16, #tpu.memory_space<vmem>>, vector<512x32xbf16>
    %c0_1 = arith.constant 0 : index
    %c0_2 = arith.constant 0 : index
    %1 = vector.load %arg3[%c0_1, %c0_2] : memref<1x32xf32, #tpu.memory_space<vmem>>, vector<1x32xf32>
    %c0_3 = arith.constant 0 : index
    %c0_4 = arith.constant 0 : index
    %2 = vector.load %arg5[%c0_3, %c0_4] : memref<1x256xf32, #tpu.memory_space<vmem>>, vector<1x256xf32>
    %c0_5 = arith.constant 0 : index
    %c0_6 = arith.constant 0 : index
    %c0_7 = arith.constant 0 : index
    %3 = vector.load %arg0[%c0_5, %c0_6, %c0_7] : memref<16x2x512xbf16, #tpu.memory_space<vmem>>, vector<1x2x512xbf16>
    %4 = vector.shape_cast %3 : vector<1x2x512xbf16> to vector<2x512xbf16>
    %cst = arith.constant dense<0.000000e+00> : vector<2x32xf32>
    %5 = tpu.matmul %4, %0, %cst {dimension_numbers = #tpu.dot_dimension_numbers<[1], [0], [0], [1], [0, 0, 1, 1], [], []>} : vector<2x512xbf16>, vector<512x32xbf16>, vector<2x32xf32> -> vector<2x32xf32>
    %6 = vector.broadcast %1 : vector<1x32xf32> to vector<2x32xf32>
    %7 = arith.addf %5, %6 : vector<2x32xf32>
    %cst_8 = arith.constant 0.000000e+00 : f32
    %8 = vector.broadcast %cst_8 : f32 to vector<2x32xf32>
    %9 = arith.maximumf %7, %8 : vector<2x32xf32>
    %10 = arith.truncf %9 : vector<2x32xf32> to vector<2x32xbf16>
    %c0_9 = arith.constant 0 : index
    %c0_10 = arith.constant 0 : index
    %c0_11 = arith.constant 0 : index
    %11 = vector.load %arg4[%c0_9, %c0_10, %c0_11] : memref<16x32x256xbf16, #tpu.memory_space<vmem>>, vector<1x32x256xbf16>
    %12 = vector.shape_cast %11 : vector<1x32x256xbf16> to vector<32x256xbf16>
    %cst_12 = arith.constant dense<0.000000e+00> : vector<2x256xf32>
    %13 = tpu.matmul %10, %12, %cst_12 {dimension_numbers = #tpu.dot_dimension_numbers<[1], [0], [0], [1], [0, 0, 1, 1], [], []>} : vector<2x32xbf16>, vector<32x256xbf16>, vector<2x256xf32> -> vector<2x256xf32>
    %14 = vector.broadcast %2 : vector<1x256xf32> to vector<2x256xf32>
    %15 = arith.addf %14, %13 : vector<2x256xf32>
    %c1 = arith.constant 1 : index
    %c0_13 = arith.constant 0 : index
    %c0_14 = arith.constant 0 : index
    %16 = vector.load %arg0[%c1, %c0_13, %c0_14] : memref<16x2x512xbf16, #tpu.memory_space<vmem>>, vector<1x2x512xbf16>
    %17 = vector.shape_cast %16 : vector<1x2x512xbf16> to vector<2x512xbf16>
    %cst_15 = arith.constant dense<0.000000e+00> : vector<2x32xf32>
    %18 = tpu.matmul %17, %0, %cst_15 {dimension_numbers = #tpu.dot_dimension_numbers<[1], [0], [0], [1], [0, 0, 1, 1], [], []>} : vector<2x512xbf16>, vector<512x32xbf16>, vector<2x32xf32> -> vector<2x32xf32>
    %19 = vector.broadcast %1 : vector<1x32xf32> to vector<2x32xf32>
    %20 = arith.addf %18, %19 : vector<2x32xf32>
    %cst_16 = arith.constant 0.000000e+00 : f32
    %21 = vector.broadcast %cst_16 : f32 to vector<2x32xf32>
    %22 = arith.maximumf %20, %21 : vector<2x32xf32>
    %23 = arith.truncf %22 : vector<2x32xf32> to vector<2x32xbf16>
    %c1_17 = arith.constant 1 : index
    %c0_18 = arith.constant 0 : index
    %c0_19 = arith.constant 0 : index
    %24 = vector.load %arg4[%c1_17, %c0_18, %c0_19] : memref<16x32x256xbf16, #tpu.memory_space<vmem>>, vector<1x32x256xbf16>
    %25 = vector.shape_cast %24 : vector<1x32x256xbf16> to vector<32x256xbf16>
    %cst_20 = arith.constant dense<0.000000e+00> : vector<2x256xf32>
    %26 = tpu.matmul %23, %25, %cst_20 {dimension_numbers = #tpu.dot_dimension_numbers<[1], [0], [0], [1], [0, 0, 1, 1], [], []>} : vector<2x32xbf16>, vector<32x256xbf16>, vector<2x256xf32> -> vector<2x256xf32>
    %27 = arith.addf %15, %26 : vector<2x256xf32>
    %c2 = arith.constant 2 : index
    %c0_21 = arith.constant 0 : index
    %c0_22 = arith.constant 0 : index
    %28 = vector.load %arg0[%c2, %c0_21, %c0_22] : memref<16x2x512xbf16, #tpu.memory_space<vmem>>, vector<1x2x512xbf16>
    %29 = vector.shape_cast %28 : vector<1x2x512xbf16> to vector<2x512xbf16>
    %cst_23 = arith.constant dense<0.000000e+00> : vector<2x32xf32>
    %30 = tpu.matmul %29, %0, %cst_23 {dimension_numbers = #tpu.dot_dimension_numbers<[1], [0], [0], [1], [0, 0, 1, 1], [], []>} : vector<2x512xbf16>, vector<512x32xbf16>, vector<2x32xf32> -> vector<2x32xf32>
    %31 = vector.broadcast %1 : vector<1x32xf32> to vector<2x32xf32>
    %32 = arith.addf %30, %31 : vector<2x32xf32>
    %cst_24 = arith.constant 0.000000e+00 : f32
    %33 = vector.broadcast %cst_24 : f32 to vector<2x32xf32>
    %34 = arith.maximumf %32, %33 : vector<2x32xf32>
    %35 = arith.truncf %34 : vector<2x32xf32> to vector<2x32xbf16>
    %c2_25 = arith.constant 2 : index
    %c0_26 = arith.constant 0 : index
    %c0_27 = arith.constant 0 : index
    %36 = vector.load %arg4[%c2_25, %c0_26, %c0_27] : memref<16x32x256xbf16, #tpu.memory_space<vmem>>, vector<1x32x256xbf16>
    %37 = vector.shape_cast %36 : vector<1x32x256xbf16> to vector<32x256xbf16>
    %cst_28 = arith.constant dense<0.000000e+00> : vector<2x256xf32>
    %38 = tpu.matmul %35, %37, %cst_28 {dimension_numbers = #tpu.dot_dimension_numbers<[1], [0], [0], [1], [0, 0, 1, 1], [], []>} : vector<2x32xbf16>, vector<32x256xbf16>, vector<2x256xf32> -> vector<2x256xf32>
    %39 = arith.addf %27, %38 : vector<2x256xf32>
    %c3 = arith.constant 3 : index
    %c0_29 = arith.constant 0 : index
    %c0_30 = arith.constant 0 : index
    %40 = vector.load %arg0[%c3, %c0_29, %c0_30] : memref<16x2x512xbf16, #tpu.memory_space<vmem>>, vector<1x2x512xbf16>
    %41 = vector.shape_cast %40 : vector<1x2x512xbf16> to vector<2x512xbf16>
    %cst_31 = arith.constant dense<0.000000e+00> : vector<2x32xf32>
    %42 = tpu.matmul %41, %0, %cst_31 {dimension_numbers = #tpu.dot_dimension_numbers<[1], [0], [0], [1], [0, 0, 1, 1], [], []>} : vector<2x512xbf16>, vector<512x32xbf16>, vector<2x32xf32> -> vector<2x32xf32>
    %43 = vector.broadcast %1 : vector<1x32xf32> to vector<2x32xf32>
    %44 = arith.addf %42, %43 : vector<2x32xf32>
    %cst_32 = arith.constant 0.000000e+00 : f32
    %45 = vector.broadcast %cst_32 : f32 to vector<2x32xf32>
    %46 = arith.maximumf %44, %45 : vector<2x32xf32>
    %47 = arith.truncf %46 : vector<2x32xf32> to vector<2x32xbf16>
    %c3_33 = arith.constant 3 : index
    %c0_34 = arith.constant 0 : index
    %c0_35 = arith.constant 0 : index
    %48 = vector.load %arg4[%c3_33, %c0_34, %c0_35] : memref<16x32x256xbf16, #tpu.memory_space<vmem>>, vector<1x32x256xbf16>
    %49 = vector.shape_cast %48 : vector<1x32x256xbf16> to vector<32x256xbf16>
    %cst_36 = arith.constant dense<0.000000e+00> : vector<2x256xf32>
    %50 = tpu.matmul %47, %49, %cst_36 {dimension_numbers = #tpu.dot_dimension_numbers<[1], [0], [0], [1], [0, 0, 1, 1], [], []>} : vector<2x32xbf16>, vector<32x256xbf16>, vector<2x256xf32> -> vector<2x256xf32>
    %51 = arith.addf %39, %50 : vector<2x256xf32>
    %c4 = arith.constant 4 : index
    %c0_37 = arith.constant 0 : index
    %c0_38 = arith.constant 0 : index
    %52 = vector.load %arg0[%c4, %c0_37, %c0_38] : memref<16x2x512xbf16, #tpu.memory_space<vmem>>, vector<1x2x512xbf16>
    %53 = vector.shape_cast %52 : vector<1x2x512xbf16> to vector<2x512xbf16>
    %cst_39 = arith.constant dense<0.000000e+00> : vector<2x32xf32>
    %54 = tpu.matmul %53, %0, %cst_39 {dimension_numbers = #tpu.dot_dimension_numbers<[1], [0], [0], [1], [0, 0, 1, 1], [], []>} : vector<2x512xbf16>, vector<512x32xbf16>, vector<2x32xf32> -> vector<2x32xf32>
    %55 = vector.broadcast %1 : vector<1x32xf32> to vector<2x32xf32>
    %56 = arith.addf %54, %55 : vector<2x32xf32>
    %cst_40 = arith.constant 0.000000e+00 : f32
    %57 = vector.broadcast %cst_40 : f32 to vector<2x32xf32>
    %58 = arith.maximumf %56, %57 : vector<2x32xf32>
    %59 = arith.truncf %58 : vector<2x32xf32> to vector<2x32xbf16>
    %c4_41 = arith.constant 4 : index
    %c0_42 = arith.constant 0 : index
    %c0_43 = arith.constant 0 : index
    %60 = vector.load %arg4[%c4_41, %c0_42, %c0_43] : memref<16x32x256xbf16, #tpu.memory_space<vmem>>, vector<1x32x256xbf16>
    %61 = vector.shape_cast %60 : vector<1x32x256xbf16> to vector<32x256xbf16>
    %cst_44 = arith.constant dense<0.000000e+00> : vector<2x256xf32>
    %62 = tpu.matmul %59, %61, %cst_44 {dimension_numbers = #tpu.dot_dimension_numbers<[1], [0], [0], [1], [0, 0, 1, 1], [], []>} : vector<2x32xbf16>, vector<32x256xbf16>, vector<2x256xf32> -> vector<2x256xf32>
    %63 = arith.addf %51, %62 : vector<2x256xf32>
    %c5 = arith.constant 5 : index
    %c0_45 = arith.constant 0 : index
    %c0_46 = arith.constant 0 : index
    %64 = vector.load %arg0[%c5, %c0_45, %c0_46] : memref<16x2x512xbf16, #tpu.memory_space<vmem>>, vector<1x2x512xbf16>
    %65 = vector.shape_cast %64 : vector<1x2x512xbf16> to vector<2x512xbf16>
    %cst_47 = arith.constant dense<0.000000e+00> : vector<2x32xf32>
    %66 = tpu.matmul %65, %0, %cst_47 {dimension_numbers = #tpu.dot_dimension_numbers<[1], [0], [0], [1], [0, 0, 1, 1], [], []>} : vector<2x512xbf16>, vector<512x32xbf16>, vector<2x32xf32> -> vector<2x32xf32>
    %67 = vector.broadcast %1 : vector<1x32xf32> to vector<2x32xf32>
    %68 = arith.addf %66, %67 : vector<2x32xf32>
    %cst_48 = arith.constant 0.000000e+00 : f32
    %69 = vector.broadcast %cst_48 : f32 to vector<2x32xf32>
    %70 = arith.maximumf %68, %69 : vector<2x32xf32>
    %71 = arith.truncf %70 : vector<2x32xf32> to vector<2x32xbf16>
    %c5_49 = arith.constant 5 : index
    %c0_50 = arith.constant 0 : index
    %c0_51 = arith.constant 0 : index
    %72 = vector.load %arg4[%c5_49, %c0_50, %c0_51] : memref<16x32x256xbf16, #tpu.memory_space<vmem>>, vector<1x32x256xbf16>
    %73 = vector.shape_cast %72 : vector<1x32x256xbf16> to vector<32x256xbf16>
    %cst_52 = arith.constant dense<0.000000e+00> : vector<2x256xf32>
    %74 = tpu.matmul %71, %73, %cst_52 {dimension_numbers = #tpu.dot_dimension_numbers<[1], [0], [0], [1], [0, 0, 1, 1], [], []>} : vector<2x32xbf16>, vector<32x256xbf16>, vector<2x256xf32> -> vector<2x256xf32>
    %75 = arith.addf %63, %74 : vector<2x256xf32>
    %c6 = arith.constant 6 : index
    %c0_53 = arith.constant 0 : index
    %c0_54 = arith.constant 0 : index
    %76 = vector.load %arg0[%c6, %c0_53, %c0_54] : memref<16x2x512xbf16, #tpu.memory_space<vmem>>, vector<1x2x512xbf16>
    %77 = vector.shape_cast %76 : vector<1x2x512xbf16> to vector<2x512xbf16>
    %cst_55 = arith.constant dense<0.000000e+00> : vector<2x32xf32>
    %78 = tpu.matmul %77, %0, %cst_55 {dimension_numbers = #tpu.dot_dimension_numbers<[1], [0], [0], [1], [0, 0, 1, 1], [], []>} : vector<2x512xbf16>, vector<512x32xbf16>, vector<2x32xf32> -> vector<2x32xf32>
    %79 = vector.broadcast %1 : vector<1x32xf32> to vector<2x32xf32>
    %80 = arith.addf %78, %79 : vector<2x32xf32>
    %cst_56 = arith.constant 0.000000e+00 : f32
    %81 = vector.broadcast %cst_56 : f32 to vector<2x32xf32>
    %82 = arith.maximumf %80, %81 : vector<2x32xf32>
    %83 = arith.truncf %82 : vector<2x32xf32> to vector<2x32xbf16>
    %c6_57 = arith.constant 6 : index
    %c0_58 = arith.constant 0 : index
    %c0_59 = arith.constant 0 : index
    %84 = vector.load %arg4[%c6_57, %c0_58, %c0_59] : memref<16x32x256xbf16, #tpu.memory_space<vmem>>, vector<1x32x256xbf16>
    %85 = vector.shape_cast %84 : vector<1x32x256xbf16> to vector<32x256xbf16>
    %cst_60 = arith.constant dense<0.000000e+00> : vector<2x256xf32>
    %86 = tpu.matmul %83, %85, %cst_60 {dimension_numbers = #tpu.dot_dimension_numbers<[1], [0], [0], [1], [0, 0, 1, 1], [], []>} : vector<2x32xbf16>, vector<32x256xbf16>, vector<2x256xf32> -> vector<2x256xf32>
    %87 = arith.addf %75, %86 : vector<2x256xf32>
    %c7 = arith.constant 7 : index
    %c0_61 = arith.constant 0 : index
    %c0_62 = arith.constant 0 : index
    %88 = vector.load %arg0[%c7, %c0_61, %c0_62] : memref<16x2x512xbf16, #tpu.memory_space<vmem>>, vector<1x2x512xbf16>
    %89 = vector.shape_cast %88 : vector<1x2x512xbf16> to vector<2x512xbf16>
    %cst_63 = arith.constant dense<0.000000e+00> : vector<2x32xf32>
    %90 = tpu.matmul %89, %0, %cst_63 {dimension_numbers = #tpu.dot_dimension_numbers<[1], [0], [0], [1], [0, 0, 1, 1], [], []>} : vector<2x512xbf16>, vector<512x32xbf16>, vector<2x32xf32> -> vector<2x32xf32>
    %91 = vector.broadcast %1 : vector<1x32xf32> to vector<2x32xf32>
    %92 = arith.addf %90, %91 : vector<2x32xf32>
    %cst_64 = arith.constant 0.000000e+00 : f32
    %93 = vector.broadcast %cst_64 : f32 to vector<2x32xf32>
    %94 = arith.maximumf %92, %93 : vector<2x32xf32>
    %95 = arith.truncf %94 : vector<2x32xf32> to vector<2x32xbf16>
    %c7_65 = arith.constant 7 : index
    %c0_66 = arith.constant 0 : index
    %c0_67 = arith.constant 0 : index
    %96 = vector.load %arg4[%c7_65, %c0_66, %c0_67] : memref<16x32x256xbf16, #tpu.memory_space<vmem>>, vector<1x32x256xbf16>
    %97 = vector.shape_cast %96 : vector<1x32x256xbf16> to vector<32x256xbf16>
    %cst_68 = arith.constant dense<0.000000e+00> : vector<2x256xf32>
    %98 = tpu.matmul %95, %97, %cst_68 {dimension_numbers = #tpu.dot_dimension_numbers<[1], [0], [0], [1], [0, 0, 1, 1], [], []>} : vector<2x32xbf16>, vector<32x256xbf16>, vector<2x256xf32> -> vector<2x256xf32>
    %99 = arith.addf %87, %98 : vector<2x256xf32>
    %c8 = arith.constant 8 : index
    %c0_69 = arith.constant 0 : index
    %c0_70 = arith.constant 0 : index
    %100 = vector.load %arg0[%c8, %c0_69, %c0_70] : memref<16x2x512xbf16, #tpu.memory_space<vmem>>, vector<1x2x512xbf16>
    %101 = vector.shape_cast %100 : vector<1x2x512xbf16> to vector<2x512xbf16>
    %cst_71 = arith.constant dense<0.000000e+00> : vector<2x32xf32>
    %102 = tpu.matmul %101, %0, %cst_71 {dimension_numbers = #tpu.dot_dimension_numbers<[1], [0], [0], [1], [0, 0, 1, 1], [], []>} : vector<2x512xbf16>, vector<512x32xbf16>, vector<2x32xf32> -> vector<2x32xf32>
    %103 = vector.broadcast %1 : vector<1x32xf32> to vector<2x32xf32>
    %104 = arith.addf %102, %103 : vector<2x32xf32>
    %cst_72 = arith.constant 0.000000e+00 : f32
    %105 = vector.broadcast %cst_72 : f32 to vector<2x32xf32>
    %106 = arith.maximumf %104, %105 : vector<2x32xf32>
    %107 = arith.truncf %106 : vector<2x32xf32> to vector<2x32xbf16>
    %c8_73 = arith.constant 8 : index
    %c0_74 = arith.constant 0 : index
    %c0_75 = arith.constant 0 : index
    %108 = vector.load %arg4[%c8_73, %c0_74, %c0_75] : memref<16x32x256xbf16, #tpu.memory_space<vmem>>, vector<1x32x256xbf16>
    %109 = vector.shape_cast %108 : vector<1x32x256xbf16> to vector<32x256xbf16>
    %cst_76 = arith.constant dense<0.000000e+00> : vector<2x256xf32>
    %110 = tpu.matmul %107, %109, %cst_76 {dimension_numbers = #tpu.dot_dimension_numbers<[1], [0], [0], [1], [0, 0, 1, 1], [], []>} : vector<2x32xbf16>, vector<32x256xbf16>, vector<2x256xf32> -> vector<2x256xf32>
    %111 = arith.addf %99, %110 : vector<2x256xf32>
    %c9 = arith.constant 9 : index
    %c0_77 = arith.constant 0 : index
    %c0_78 = arith.constant 0 : index
    %112 = vector.load %arg0[%c9, %c0_77, %c0_78] : memref<16x2x512xbf16, #tpu.memory_space<vmem>>, vector<1x2x512xbf16>
    %113 = vector.shape_cast %112 : vector<1x2x512xbf16> to vector<2x512xbf16>
    %cst_79 = arith.constant dense<0.000000e+00> : vector<2x32xf32>
    %114 = tpu.matmul %113, %0, %cst_79 {dimension_numbers = #tpu.dot_dimension_numbers<[1], [0], [0], [1], [0, 0, 1, 1], [], []>} : vector<2x512xbf16>, vector<512x32xbf16>, vector<2x32xf32> -> vector<2x32xf32>
    %115 = vector.broadcast %1 : vector<1x32xf32> to vector<2x32xf32>
    %116 = arith.addf %114, %115 : vector<2x32xf32>
    %cst_80 = arith.constant 0.000000e+00 : f32
    %117 = vector.broadcast %cst_80 : f32 to vector<2x32xf32>
    %118 = arith.maximumf %116, %117 : vector<2x32xf32>
    %119 = arith.truncf %118 : vector<2x32xf32> to vector<2x32xbf16>
    %c9_81 = arith.constant 9 : index
    %c0_82 = arith.constant 0 : index
    %c0_83 = arith.constant 0 : index
    %120 = vector.load %arg4[%c9_81, %c0_82, %c0_83] : memref<16x32x256xbf16, #tpu.memory_space<vmem>>, vector<1x32x256xbf16>
    %121 = vector.shape_cast %120 : vector<1x32x256xbf16> to vector<32x256xbf16>
    %cst_84 = arith.constant dense<0.000000e+00> : vector<2x256xf32>
    %122 = tpu.matmul %119, %121, %cst_84 {dimension_numbers = #tpu.dot_dimension_numbers<[1], [0], [0], [1], [0, 0, 1, 1], [], []>} : vector<2x32xbf16>, vector<32x256xbf16>, vector<2x256xf32> -> vector<2x256xf32>
    %123 = arith.addf %111, %122 : vector<2x256xf32>
    %c10 = arith.constant 10 : index
    %c0_85 = arith.constant 0 : index
    %c0_86 = arith.constant 0 : index
    %124 = vector.load %arg0[%c10, %c0_85, %c0_86] : memref<16x2x512xbf16, #tpu.memory_space<vmem>>, vector<1x2x512xbf16>
    %125 = vector.shape_cast %124 : vector<1x2x512xbf16> to vector<2x512xbf16>
    %cst_87 = arith.constant dense<0.000000e+00> : vector<2x32xf32>
    %126 = tpu.matmul %125, %0, %cst_87 {dimension_numbers = #tpu.dot_dimension_numbers<[1], [0], [0], [1], [0, 0, 1, 1], [], []>} : vector<2x512xbf16>, vector<512x32xbf16>, vector<2x32xf32> -> vector<2x32xf32>
    %127 = vector.broadcast %1 : vector<1x32xf32> to vector<2x32xf32>
    %128 = arith.addf %126, %127 : vector<2x32xf32>
    %cst_88 = arith.constant 0.000000e+00 : f32
    %129 = vector.broadcast %cst_88 : f32 to vector<2x32xf32>
    %130 = arith.maximumf %128, %129 : vector<2x32xf32>
    %131 = arith.truncf %130 : vector<2x32xf32> to vector<2x32xbf16>
    %c10_89 = arith.constant 10 : index
    %c0_90 = arith.constant 0 : index
    %c0_91 = arith.constant 0 : index
    %132 = vector.load %arg4[%c10_89, %c0_90, %c0_91] : memref<16x32x256xbf16, #tpu.memory_space<vmem>>, vector<1x32x256xbf16>
    %133 = vector.shape_cast %132 : vector<1x32x256xbf16> to vector<32x256xbf16>
    %cst_92 = arith.constant dense<0.000000e+00> : vector<2x256xf32>
    %134 = tpu.matmul %131, %133, %cst_92 {dimension_numbers = #tpu.dot_dimension_numbers<[1], [0], [0], [1], [0, 0, 1, 1], [], []>} : vector<2x32xbf16>, vector<32x256xbf16>, vector<2x256xf32> -> vector<2x256xf32>
    %135 = arith.addf %123, %134 : vector<2x256xf32>
    %c11 = arith.constant 11 : index
    %c0_93 = arith.constant 0 : index
    %c0_94 = arith.constant 0 : index
    %136 = vector.load %arg0[%c11, %c0_93, %c0_94] : memref<16x2x512xbf16, #tpu.memory_space<vmem>>, vector<1x2x512xbf16>
    %137 = vector.shape_cast %136 : vector<1x2x512xbf16> to vector<2x512xbf16>
    %cst_95 = arith.constant dense<0.000000e+00> : vector<2x32xf32>
    %138 = tpu.matmul %137, %0, %cst_95 {dimension_numbers = #tpu.dot_dimension_numbers<[1], [0], [0], [1], [0, 0, 1, 1], [], []>} : vector<2x512xbf16>, vector<512x32xbf16>, vector<2x32xf32> -> vector<2x32xf32>
    %139 = vector.broadcast %1 : vector<1x32xf32> to vector<2x32xf32>
    %140 = arith.addf %138, %139 : vector<2x32xf32>
    %cst_96 = arith.constant 0.000000e+00 : f32
    %141 = vector.broadcast %cst_96 : f32 to vector<2x32xf32>
    %142 = arith.maximumf %140, %141 : vector<2x32xf32>
    %143 = arith.truncf %142 : vector<2x32xf32> to vector<2x32xbf16>
    %c11_97 = arith.constant 11 : index
    %c0_98 = arith.constant 0 : index
    %c0_99 = arith.constant 0 : index
    %144 = vector.load %arg4[%c11_97, %c0_98, %c0_99] : memref<16x32x256xbf16, #tpu.memory_space<vmem>>, vector<1x32x256xbf16>
    %145 = vector.shape_cast %144 : vector<1x32x256xbf16> to vector<32x256xbf16>
    %cst_100 = arith.constant dense<0.000000e+00> : vector<2x256xf32>
    %146 = tpu.matmul %143, %145, %cst_100 {dimension_numbers = #tpu.dot_dimension_numbers<[1], [0], [0], [1], [0, 0, 1, 1], [], []>} : vector<2x32xbf16>, vector<32x256xbf16>, vector<2x256xf32> -> vector<2x256xf32>
    %147 = arith.addf %135, %146 : vector<2x256xf32>
    %c12 = arith.constant 12 : index
    %c0_101 = arith.constant 0 : index
    %c0_102 = arith.constant 0 : index
    %148 = vector.load %arg0[%c12, %c0_101, %c0_102] : memref<16x2x512xbf16, #tpu.memory_space<vmem>>, vector<1x2x512xbf16>
    %149 = vector.shape_cast %148 : vector<1x2x512xbf16> to vector<2x512xbf16>
    %cst_103 = arith.constant dense<0.000000e+00> : vector<2x32xf32>
    %150 = tpu.matmul %149, %0, %cst_103 {dimension_numbers = #tpu.dot_dimension_numbers<[1], [0], [0], [1], [0, 0, 1, 1], [], []>} : vector<2x512xbf16>, vector<512x32xbf16>, vector<2x32xf32> -> vector<2x32xf32>
    %151 = vector.broadcast %1 : vector<1x32xf32> to vector<2x32xf32>
    %152 = arith.addf %150, %151 : vector<2x32xf32>
    %cst_104 = arith.constant 0.000000e+00 : f32
    %153 = vector.broadcast %cst_104 : f32 to vector<2x32xf32>
    %154 = arith.maximumf %152, %153 : vector<2x32xf32>
    %155 = arith.truncf %154 : vector<2x32xf32> to vector<2x32xbf16>
    %c12_105 = arith.constant 12 : index
    %c0_106 = arith.constant 0 : index
    %c0_107 = arith.constant 0 : index
    %156 = vector.load %arg4[%c12_105, %c0_106, %c0_107] : memref<16x32x256xbf16, #tpu.memory_space<vmem>>, vector<1x32x256xbf16>
    %157 = vector.shape_cast %156 : vector<1x32x256xbf16> to vector<32x256xbf16>
    %cst_108 = arith.constant dense<0.000000e+00> : vector<2x256xf32>
    %158 = tpu.matmul %155, %157, %cst_108 {dimension_numbers = #tpu.dot_dimension_numbers<[1], [0], [0], [1], [0, 0, 1, 1], [], []>} : vector<2x32xbf16>, vector<32x256xbf16>, vector<2x256xf32> -> vector<2x256xf32>
    %159 = arith.addf %147, %158 : vector<2x256xf32>
    %c13 = arith.constant 13 : index
    %c0_109 = arith.constant 0 : index
    %c0_110 = arith.constant 0 : index
    %160 = vector.load %arg0[%c13, %c0_109, %c0_110] : memref<16x2x512xbf16, #tpu.memory_space<vmem>>, vector<1x2x512xbf16>
    %161 = vector.shape_cast %160 : vector<1x2x512xbf16> to vector<2x512xbf16>
    %cst_111 = arith.constant dense<0.000000e+00> : vector<2x32xf32>
    %162 = tpu.matmul %161, %0, %cst_111 {dimension_numbers = #tpu.dot_dimension_numbers<[1], [0], [0], [1], [0, 0, 1, 1], [], []>} : vector<2x512xbf16>, vector<512x32xbf16>, vector<2x32xf32> -> vector<2x32xf32>
    %163 = vector.broadcast %1 : vector<1x32xf32> to vector<2x32xf32>
    %164 = arith.addf %162, %163 : vector<2x32xf32>
    %cst_112 = arith.constant 0.000000e+00 : f32
    %165 = vector.broadcast %cst_112 : f32 to vector<2x32xf32>
    %166 = arith.maximumf %164, %165 : vector<2x32xf32>
    %167 = arith.truncf %166 : vector<2x32xf32> to vector<2x32xbf16>
    %c13_113 = arith.constant 13 : index
    %c0_114 = arith.constant 0 : index
    %c0_115 = arith.constant 0 : index
    %168 = vector.load %arg4[%c13_113, %c0_114, %c0_115] : memref<16x32x256xbf16, #tpu.memory_space<vmem>>, vector<1x32x256xbf16>
    %169 = vector.shape_cast %168 : vector<1x32x256xbf16> to vector<32x256xbf16>
    %cst_116 = arith.constant dense<0.000000e+00> : vector<2x256xf32>
    %170 = tpu.matmul %167, %169, %cst_116 {dimension_numbers = #tpu.dot_dimension_numbers<[1], [0], [0], [1], [0, 0, 1, 1], [], []>} : vector<2x32xbf16>, vector<32x256xbf16>, vector<2x256xf32> -> vector<2x256xf32>
    %171 = arith.addf %159, %170 : vector<2x256xf32>
    %c14 = arith.constant 14 : index
    %c0_117 = arith.constant 0 : index
    %c0_118 = arith.constant 0 : index
    %172 = vector.load %arg0[%c14, %c0_117, %c0_118] : memref<16x2x512xbf16, #tpu.memory_space<vmem>>, vector<1x2x512xbf16>
    %173 = vector.shape_cast %172 : vector<1x2x512xbf16> to vector<2x512xbf16>
    %cst_119 = arith.constant dense<0.000000e+00> : vector<2x32xf32>
    %174 = tpu.matmul %173, %0, %cst_119 {dimension_numbers = #tpu.dot_dimension_numbers<[1], [0], [0], [1], [0, 0, 1, 1], [], []>} : vector<2x512xbf16>, vector<512x32xbf16>, vector<2x32xf32> -> vector<2x32xf32>
    %175 = vector.broadcast %1 : vector<1x32xf32> to vector<2x32xf32>
    %176 = arith.addf %174, %175 : vector<2x32xf32>
    %cst_120 = arith.constant 0.000000e+00 : f32
    %177 = vector.broadcast %cst_120 : f32 to vector<2x32xf32>
    %178 = arith.maximumf %176, %177 : vector<2x32xf32>
    %179 = arith.truncf %178 : vector<2x32xf32> to vector<2x32xbf16>
    %c14_121 = arith.constant 14 : index
    %c0_122 = arith.constant 0 : index
    %c0_123 = arith.constant 0 : index
    %180 = vector.load %arg4[%c14_121, %c0_122, %c0_123] : memref<16x32x256xbf16, #tpu.memory_space<vmem>>, vector<1x32x256xbf16>
    %181 = vector.shape_cast %180 : vector<1x32x256xbf16> to vector<32x256xbf16>
    %cst_124 = arith.constant dense<0.000000e+00> : vector<2x256xf32>
    %182 = tpu.matmul %179, %181, %cst_124 {dimension_numbers = #tpu.dot_dimension_numbers<[1], [0], [0], [1], [0, 0, 1, 1], [], []>} : vector<2x32xbf16>, vector<32x256xbf16>, vector<2x256xf32> -> vector<2x256xf32>
    %183 = arith.addf %171, %182 : vector<2x256xf32>
    %c15 = arith.constant 15 : index
    %c0_125 = arith.constant 0 : index
    %c0_126 = arith.constant 0 : index
    %184 = vector.load %arg0[%c15, %c0_125, %c0_126] : memref<16x2x512xbf16, #tpu.memory_space<vmem>>, vector<1x2x512xbf16>
    %185 = vector.shape_cast %184 : vector<1x2x512xbf16> to vector<2x512xbf16>
    %cst_127 = arith.constant dense<0.000000e+00> : vector<2x32xf32>
    %186 = tpu.matmul %185, %0, %cst_127 {dimension_numbers = #tpu.dot_dimension_numbers<[1], [0], [0], [1], [0, 0, 1, 1], [], []>} : vector<2x512xbf16>, vector<512x32xbf16>, vector<2x32xf32> -> vector<2x32xf32>
    %187 = vector.broadcast %1 : vector<1x32xf32> to vector<2x32xf32>
    %188 = arith.addf %186, %187 : vector<2x32xf32>
    %cst_128 = arith.constant 0.000000e+00 : f32
    %189 = vector.broadcast %cst_128 : f32 to vector<2x32xf32>
    %190 = arith.maximumf %188, %189 : vector<2x32xf32>
    %191 = arith.truncf %190 : vector<2x32xf32> to vector<2x32xbf16>
    %c15_129 = arith.constant 15 : index
    %c0_130 = arith.constant 0 : index
    %c0_131 = arith.constant 0 : index
    %192 = vector.load %arg4[%c15_129, %c0_130, %c0_131] : memref<16x32x256xbf16, #tpu.memory_space<vmem>>, vector<1x32x256xbf16>
    %193 = vector.shape_cast %192 : vector<1x32x256xbf16> to vector<32x256xbf16>
    %cst_132 = arith.constant dense<0.000000e+00> : vector<2x256xf32>
    %194 = tpu.matmul %191, %193, %cst_132 {dimension_numbers = #tpu.dot_dimension_numbers<[1], [0], [0], [1], [0, 0, 1, 1], [], []>} : vector<2x32xbf16>, vector<32x256xbf16>, vector<2x256xf32> -> vector<2x256xf32>
    %195 = arith.addf %183, %194 : vector<2x256xf32>
    %cst_133 = arith.constant 0.000000e+00 : f32
    %196 = vector.broadcast %cst_133 : f32 to vector<2x256xf32>
    %197 = arith.maximumf %195, %196 : vector<2x256xf32>
    %198 = arith.truncf %197 : vector<2x256xf32> to vector<2x256xbf16>
    %c0_134 = arith.constant 0 : index
    %c0_135 = arith.constant 0 : index
    %199 = vector.load %arg6[%c0_134, %c0_135] : memref<256x256xbf16, #tpu.memory_space<vmem>>, vector<256x256xbf16>
    %cst_136 = arith.constant dense<0.000000e+00> : vector<2x256xf32>
    %200 = tpu.matmul %198, %199, %cst_136 {dimension_numbers = #tpu.dot_dimension_numbers<[1], [0], [0], [1], [0, 0, 1, 1], [], []>} : vector<2x256xbf16>, vector<256x256xbf16>, vector<2x256xf32> -> vector<2x256xf32>
    %c0_137 = arith.constant 0 : index
    %c0_138 = arith.constant 0 : index
    %201 = vector.load %arg7[%c0_137, %c0_138] : memref<1x256xf32, #tpu.memory_space<vmem>>, vector<1x256xf32>
    %202 = vector.broadcast %201 : vector<1x256xf32> to vector<2x256xf32>
    %203 = arith.addf %200, %202 : vector<2x256xf32>
    %cst_139 = arith.constant 0.000000e+00 : f32
    %204 = vector.broadcast %cst_139 : f32 to vector<2x256xf32>
    %205 = arith.maximumf %203, %204 : vector<2x256xf32>
    %206 = arith.truncf %205 : vector<2x256xf32> to vector<2x256xbf16>
    %c0_140 = arith.constant 0 : index
    %c0_141 = arith.constant 0 : index
    %207 = vector.load %arg8[%c0_140, %c0_141] : memref<256x10xbf16, #tpu.memory_space<vmem>>, vector<256x10xbf16>
    %cst_142 = arith.constant dense<0.000000e+00> : vector<2x10xf32>
    %208 = tpu.matmul %206, %207, %cst_142 {dimension_numbers = #tpu.dot_dimension_numbers<[1], [0], [0], [1], [0, 0, 1, 1], [], []>} : vector<2x256xbf16>, vector<256x10xbf16>, vector<2x10xf32> -> vector<2x10xf32>
    %c0_143 = arith.constant 0 : index
    %c0_144 = arith.constant 0 : index
    %209 = vector.load %arg9[%c0_143, %c0_144] : memref<1x10xf32, #tpu.memory_space<vmem>>, vector<1x10xf32>
    %210 = vector.broadcast %209 : vector<1x10xf32> to vector<2x10xf32>
    %211 = arith.addf %208, %210 : vector<2x10xf32>
    %212 = arith.truncf %205 : vector<2x256xf32> to vector<2x256xbf16>
    %c0_145 = arith.constant 0 : index
    %c0_146 = arith.constant 0 : index
    %213 = vector.load %arg10[%c0_145, %c0_146] : memref<256x10xbf16, #tpu.memory_space<vmem>>, vector<256x10xbf16>
    %cst_147 = arith.constant dense<0.000000e+00> : vector<2x10xf32>
    %214 = tpu.matmul %212, %213, %cst_147 {dimension_numbers = #tpu.dot_dimension_numbers<[1], [0], [0], [1], [0, 0, 1, 1], [], []>} : vector<2x256xbf16>, vector<256x10xbf16>, vector<2x10xf32> -> vector<2x10xf32>
    %c0_148 = arith.constant 0 : index
    %c0_149 = arith.constant 0 : index
    %215 = vector.load %arg11[%c0_148, %c0_149] : memref<1x10xf32, #tpu.memory_space<vmem>>, vector<1x10xf32>
    %216 = vector.broadcast %215 : vector<1x10xf32> to vector<2x10xf32>
    %217 = arith.addf %214, %216 : vector<2x10xf32>
    %c0_150 = arith.constant 0 : index
    %c0_151 = arith.constant 0 : index
    %218 = vector.load %arg18[%c0_150, %c0_151] : memref<2x10xf32, #tpu.memory_space<vmem>>, vector<2x10xf32>
    tpu.vector_store %arg18[%c0_150, %c0_151], %211 {strides = array<i32>} : memref<2x10xf32, #tpu.memory_space<vmem>>, vector<2x10xf32>,
    %c0_152 = arith.constant 0 : index
    %c0_153 = arith.constant 0 : index
    %219 = vector.load %arg19[%c0_152, %c0_153] : memref<2x10xf32, #tpu.memory_space<vmem>>, vector<2x10xf32>
    tpu.vector_store %arg19[%c0_152, %c0_153], %217 {strides = array<i32>} : memref<2x10xf32, #tpu.memory_space<vmem>>, vector<2x10xf32>,
    %cst_154 = arith.constant 5.000000e-01 : f32
    %220 = vector.broadcast %cst_154 : f32 to vector<2x10xf32>
    %221 = arith.mulf %217, %220 : vector<2x10xf32>
    %222 = math.exp %221 : vector<2x10xf32>
    %c0_155 = arith.constant 0 : index
    %c0_156 = arith.constant 0 : index
    %223 = vector.load %arg1[%c0_155, %c0_156] : memref<2x10xf32, #tpu.memory_space<vmem>>, vector<2x10xf32>
    %224 = arith.mulf %222, %223 : vector<2x10xf32>
    %225 = arith.addf %211, %224 : vector<2x10xf32>
    %226 = arith.truncf %225 : vector<2x10xf32> to vector<2x10xbf16>
    %c0_157 = arith.constant 0 : index
    %c0_158 = arith.constant 0 : index
    %227 = vector.load %arg12[%c0_157, %c0_158] : memref<10x256xbf16, #tpu.memory_space<vmem>>, vector<10x256xbf16>
    %cst_159 = arith.constant dense<0.000000e+00> : vector<2x256xf32>
    %228 = tpu.matmul %226, %227, %cst_159 {dimension_numbers = #tpu.dot_dimension_numbers<[1], [0], [0], [1], [0, 0, 1, 1], [], []>} : vector<2x10xbf16>, vector<10x256xbf16>, vector<2x256xf32> -> vector<2x256xf32>
    %c0_160 = arith.constant 0 : index
    %c0_161 = arith.constant 0 : index
    %229 = vector.load %arg13[%c0_160, %c0_161] : memref<1x256xf32, #tpu.memory_space<vmem>>, vector<1x256xf32>
    %230 = vector.broadcast %229 : vector<1x256xf32> to vector<2x256xf32>
    %231 = arith.addf %228, %230 : vector<2x256xf32>
    %cst_162 = arith.constant 0.000000e+00 : f32
    %232 = vector.broadcast %cst_162 : f32 to vector<2x256xf32>
    %233 = arith.maximumf %231, %232 : vector<2x256xf32>
    %234 = arith.truncf %233 : vector<2x256xf32> to vector<2x256xbf16>
    %c0_163 = arith.constant 0 : index
    %c0_164 = arith.constant 0 : index
    %235 = vector.load %arg14[%c0_163, %c0_164] : memref<256x256xbf16, #tpu.memory_space<vmem>>, vector<256x256xbf16>
    %cst_165 = arith.constant dense<0.000000e+00> : vector<2x256xf32>
    %236 = tpu.matmul %234, %235, %cst_165 {dimension_numbers = #tpu.dot_dimension_numbers<[1], [0], [0], [1], [0, 0, 1, 1], [], []>} : vector<2x256xbf16>, vector<256x256xbf16>, vector<2x256xf32> -> vector<2x256xf32>
    %c0_166 = arith.constant 0 : index
    %c0_167 = arith.constant 0 : index
    %237 = vector.load %arg15[%c0_166, %c0_167] : memref<1x256xf32, #tpu.memory_space<vmem>>, vector<1x256xf32>
    %238 = vector.broadcast %237 : vector<1x256xf32> to vector<2x256xf32>
    %239 = arith.addf %236, %238 : vector<2x256xf32>
    %cst_168 = arith.constant 0.000000e+00 : f32
    %240 = vector.broadcast %cst_168 : f32 to vector<2x256xf32>
    %241 = arith.maximumf %239, %240 : vector<2x256xf32>
    %242 = arith.truncf %241 : vector<2x256xf32> to vector<2x256xbf16>
    %c0_169 = arith.constant 0 : index
    %c0_170 = arith.constant 0 : index
    %243 = vector.load %arg16[%c0_169, %c0_170] : memref<256x512xbf16, #tpu.memory_space<vmem>>, vector<256x512xbf16>
    %cst_171 = arith.constant dense<0.000000e+00> : vector<2x512xf32>
    %244 = tpu.matmul %242, %243, %cst_171 {dimension_numbers = #tpu.dot_dimension_numbers<[1], [0], [0], [1], [0, 0, 1, 1], [], []>} : vector<2x256xbf16>, vector<256x512xbf16>, vector<2x512xf32> -> vector<2x512xf32>
    %c0_172 = arith.constant 0 : index
    %c0_173 = arith.constant 0 : index
    %245 = vector.load %arg17[%c0_172, %c0_173] : memref<1x512xf32, #tpu.memory_space<vmem>>, vector<1x512xf32>
    %246 = vector.broadcast %245 : vector<1x512xf32> to vector<2x512xf32>
    %247 = arith.addf %244, %246 : vector<2x512xf32>
    %cst_174 = arith.constant 0.000000e+00 : f32
    %248 = vector.broadcast %cst_174 : f32 to vector<2x512xf32>
    %249 = arith.maximumf %247, %248 : vector<2x512xf32>
    %250 = arith.truncf %249 : vector<2x512xf32> to vector<2x512xbf16>
    %c0_175 = arith.constant 0 : index
    %c0_176 = arith.constant 0 : index
    %251 = vector.load %arg20[%c0_175, %c0_176] : memref<2x512xbf16, #tpu.memory_space<vmem>>, vector<2x512xbf16>
    tpu.vector_store %arg20[%c0_175, %c0_176], %250 {strides = array<i32>} : memref<2x512xbf16, #tpu.memory_space<vmem>>, vector<2x512xbf16>,
    return
  }
}

module attributes {stable_mosaic.version = 11 : i64} {
  func.func @_mm_nm_kernel(%arg0: i32, %arg1: memref<128x288xbf16, #tpu.memory_space<vmem>>, %arg2: memref<288x32xbf16, #tpu.memory_space<vmem>>, %arg3: memref<128x1xf32, #tpu.memory_space<vmem>>, %arg4: memref<128x32xbf16, #tpu.memory_space<vmem>>) attributes {dimension_semantics = [#tpu.dimension_semantics<parallel>], iteration_bounds = array<i64: 1>, scalar_prefetch = 0 : i64, scratch_operands = 0 : i64, tpu.core_type = #tpu.core_type<tc>, window_params = [{pipeline_mode = #tpu.pipeline_mode<synchronous>, transform_indices = @transform_0, window_bounds = array<i64: 128, 288>}, {transform_indices = @transform_1, window_bounds = array<i64: 288, 32>}, {pipeline_mode = #tpu.pipeline_mode<synchronous>, transform_indices = @transform_2, window_bounds = array<i64: 128, 1>}, {transform_indices = @transform_3, window_bounds = array<i64: 128, 32>}]} {
    %c0 = arith.constant 0 : index
    %c0_0 = arith.constant 0 : index
    %0 = vector.load %arg1[%c0, %c0_0] : memref<128x288xbf16, #tpu.memory_space<vmem>>, vector<128x288xbf16>
    %c0_1 = arith.constant 0 : index
    %c0_2 = arith.constant 0 : index
    %1 = vector.load %arg2[%c0_1, %c0_2] : memref<288x32xbf16, #tpu.memory_space<vmem>>, vector<288x32xbf16>
    %cst = arith.constant dense<0.000000e+00> : vector<128x32xf32>
    %2 = tpu.matmul %0, %1, %cst {dimension_numbers = #tpu.dot_dimension_numbers<[1], [0], [0], [1], [0, 0, 1, 1], [], []>} : vector<128x288xbf16>, vector<288x32xbf16>, vector<128x32xf32> -> vector<128x32xf32>
    %c0_3 = arith.constant 0 : index
    %c0_4 = arith.constant 0 : index
    %3 = vector.load %arg3[%c0_3, %c0_4] : memref<128x1xf32, #tpu.memory_space<vmem>>, vector<128x1xf32>
    %4 = vector.broadcast %3 : vector<128x1xf32> to vector<128x32xf32>
    %5 = arith.addf %2, %4 : vector<128x32xf32>
    %cst_5 = arith.constant 0.000000e+00 : f32
    %6 = vector.broadcast %cst_5 : f32 to vector<128x32xf32>
    %7 = arith.maximumf %5, %6 : vector<128x32xf32>
    %8 = arith.truncf %7 : vector<128x32xf32> to vector<128x32xbf16>
    %c0_6 = arith.constant 0 : index
    %c0_7 = arith.constant 0 : index
    %9 = vector.load %arg4[%c0_6, %c0_7] : memref<128x32xbf16, #tpu.memory_space<vmem>>, vector<128x32xbf16>
    tpu.vector_store %arg4[%c0_6, %c0_7], %8 {strides = array<i32>} : memref<128x32xbf16, #tpu.memory_space<vmem>>, vector<128x32xbf16>,
    return
  }
  func.func @transform_0(%arg0: i32) -> (i32, i32) {
    %c0_i32 = arith.constant 0 : i32
    %c0_i32_0 = arith.constant 0 : i32
    %c0_i32_1 = arith.constant 0 : i32
    return %c0_i32, %c0_i32_0 : i32, i32
  }
  func.func @transform_1(%arg0: i32) -> (i32, i32) {
    %c0_i32 = arith.constant 0 : i32
    %c0_i32_0 = arith.constant 0 : i32
    return %c0_i32, %arg0 : i32, i32
  }
  func.func @transform_2(%arg0: i32) -> (i32, i32) {
    %c0_i32 = arith.constant 0 : i32
    %c0_i32_0 = arith.constant 0 : i32
    %c0_i32_1 = arith.constant 0 : i32
    return %c0_i32, %c0_i32_0 : i32, i32
  }
  func.func @transform_3(%arg0: i32) -> (i32, i32) {
    %c0_i32 = arith.constant 0 : i32
    %c0_i32_0 = arith.constant 0 : i32
    return %c0_i32, %arg0 : i32, i32
  }
}

module attributes {stable_mosaic.version = 11 : i64} {
  func.func @_mm_nm_kernel(%arg0: i32, %arg1: memref<128x288xbf16, #tpu.memory_space<vmem>>, %arg2: memref<288x128xbf16, #tpu.memory_space<vmem>>, %arg3: memref<128x1xf32, #tpu.memory_space<vmem>>, %arg4: memref<128x128xbf16, #tpu.memory_space<vmem>>) attributes {dimension_semantics = [#tpu.dimension_semantics<parallel>], iteration_bounds = array<i64: 1>, scalar_prefetch = 0 : i64, scratch_operands = 0 : i64, tpu.core_type = #tpu.core_type<tc>, window_params = [{pipeline_mode = #tpu.pipeline_mode<synchronous>, transform_indices = @transform_0, window_bounds = array<i64: 128, 288>}, {transform_indices = @transform_1, window_bounds = array<i64: 288, 128>}, {pipeline_mode = #tpu.pipeline_mode<synchronous>, transform_indices = @transform_2, window_bounds = array<i64: 128, 1>}, {transform_indices = @transform_3, window_bounds = array<i64: 128, 128>}]} {
    %c0 = arith.constant 0 : index
    %c0_0 = arith.constant 0 : index
    %0 = vector.load %arg1[%c0, %c0_0] : memref<128x288xbf16, #tpu.memory_space<vmem>>, vector<128x288xbf16>
    %c0_1 = arith.constant 0 : index
    %c0_2 = arith.constant 0 : index
    %1 = vector.load %arg2[%c0_1, %c0_2] : memref<288x128xbf16, #tpu.memory_space<vmem>>, vector<288x128xbf16>
    %cst = arith.constant dense<0.000000e+00> : vector<128x128xf32>
    %2 = tpu.matmul %0, %1, %cst {dimension_numbers = #tpu.dot_dimension_numbers<[1], [0], [0], [1], [0, 0, 1, 1], [], []>} : vector<128x288xbf16>, vector<288x128xbf16>, vector<128x128xf32> -> vector<128x128xf32>
    %c0_3 = arith.constant 0 : index
    %c0_4 = arith.constant 0 : index
    %3 = vector.load %arg3[%c0_3, %c0_4] : memref<128x1xf32, #tpu.memory_space<vmem>>, vector<128x1xf32>
    %4 = vector.broadcast %3 : vector<128x1xf32> to vector<128x128xf32>
    %5 = arith.addf %2, %4 : vector<128x128xf32>
    %cst_5 = arith.constant 0.000000e+00 : f32
    %6 = vector.broadcast %cst_5 : f32 to vector<128x128xf32>
    %7 = arith.maximumf %5, %6 : vector<128x128xf32>
    %8 = arith.truncf %7 : vector<128x128xf32> to vector<128x128xbf16>
    %c0_6 = arith.constant 0 : index
    %c0_7 = arith.constant 0 : index
    %9 = vector.load %arg4[%c0_6, %c0_7] : memref<128x128xbf16, #tpu.memory_space<vmem>>, vector<128x128xbf16>
    tpu.vector_store %arg4[%c0_6, %c0_7], %8 {strides = array<i32>} : memref<128x128xbf16, #tpu.memory_space<vmem>>, vector<128x128xbf16>,
    return
  }
  func.func @transform_0(%arg0: i32) -> (i32, i32) {
    %c0_i32 = arith.constant 0 : i32
    %c0_i32_0 = arith.constant 0 : i32
    %c0_i32_1 = arith.constant 0 : i32
    return %c0_i32, %c0_i32_0 : i32, i32
  }
  func.func @transform_1(%arg0: i32) -> (i32, i32) {
    %c0_i32 = arith.constant 0 : i32
    %c0_i32_0 = arith.constant 0 : i32
    return %c0_i32, %arg0 : i32, i32
  }
  func.func @transform_2(%arg0: i32) -> (i32, i32) {
    %c0_i32 = arith.constant 0 : i32
    %c0_i32_0 = arith.constant 0 : i32
    %c0_i32_1 = arith.constant 0 : i32
    return %c0_i32, %c0_i32_0 : i32, i32
  }
  func.func @transform_3(%arg0: i32) -> (i32, i32) {
    %c0_i32 = arith.constant 0 : i32
    %c0_i32_0 = arith.constant 0 : i32
    return %c0_i32, %arg0 : i32, i32
  }
}

module attributes {stable_mosaic.version = 11 : i64} {
  func.func @_mm_nm_kernel(%arg0: i32, %arg1: memref<128x288xbf16, #tpu.memory_space<vmem>>, %arg2: memref<288x512xbf16, #tpu.memory_space<vmem>>, %arg3: memref<128x1xf32, #tpu.memory_space<vmem>>, %arg4: memref<128x512xbf16, #tpu.memory_space<vmem>>) attributes {dimension_semantics = [#tpu.dimension_semantics<parallel>], iteration_bounds = array<i64: 1>, scalar_prefetch = 0 : i64, scratch_operands = 0 : i64, tpu.core_type = #tpu.core_type<tc>, window_params = [{pipeline_mode = #tpu.pipeline_mode<synchronous>, transform_indices = @transform_0, window_bounds = array<i64: 128, 288>}, {transform_indices = @transform_1, window_bounds = array<i64: 288, 512>}, {pipeline_mode = #tpu.pipeline_mode<synchronous>, transform_indices = @transform_2, window_bounds = array<i64: 128, 1>}, {transform_indices = @transform_3, window_bounds = array<i64: 128, 512>}]} {
    %c0 = arith.constant 0 : index
    %c0_0 = arith.constant 0 : index
    %0 = vector.load %arg1[%c0, %c0_0] : memref<128x288xbf16, #tpu.memory_space<vmem>>, vector<128x288xbf16>
    %c0_1 = arith.constant 0 : index
    %c0_2 = arith.constant 0 : index
    %1 = vector.load %arg2[%c0_1, %c0_2] : memref<288x512xbf16, #tpu.memory_space<vmem>>, vector<288x512xbf16>
    %cst = arith.constant dense<0.000000e+00> : vector<128x512xf32>
    %2 = tpu.matmul %0, %1, %cst {dimension_numbers = #tpu.dot_dimension_numbers<[1], [0], [0], [1], [0, 0, 1, 1], [], []>} : vector<128x288xbf16>, vector<288x512xbf16>, vector<128x512xf32> -> vector<128x512xf32>
    %c0_3 = arith.constant 0 : index
    %c0_4 = arith.constant 0 : index
    %3 = vector.load %arg3[%c0_3, %c0_4] : memref<128x1xf32, #tpu.memory_space<vmem>>, vector<128x1xf32>
    %4 = vector.broadcast %3 : vector<128x1xf32> to vector<128x512xf32>
    %5 = arith.addf %2, %4 : vector<128x512xf32>
    %cst_5 = arith.constant 0.000000e+00 : f32
    %6 = vector.broadcast %cst_5 : f32 to vector<128x512xf32>
    %7 = arith.maximumf %5, %6 : vector<128x512xf32>
    %8 = arith.truncf %7 : vector<128x512xf32> to vector<128x512xbf16>
    %c0_6 = arith.constant 0 : index
    %c0_7 = arith.constant 0 : index
    %9 = vector.load %arg4[%c0_6, %c0_7] : memref<128x512xbf16, #tpu.memory_space<vmem>>, vector<128x512xbf16>
    tpu.vector_store %arg4[%c0_6, %c0_7], %8 {strides = array<i32>} : memref<128x512xbf16, #tpu.memory_space<vmem>>, vector<128x512xbf16>,
    return
  }
  func.func @transform_0(%arg0: i32) -> (i32, i32) {
    %c0_i32 = arith.constant 0 : i32
    %c0_i32_0 = arith.constant 0 : i32
    %c0_i32_1 = arith.constant 0 : i32
    return %c0_i32, %c0_i32_0 : i32, i32
  }
  func.func @transform_1(%arg0: i32) -> (i32, i32) {
    %c0_i32 = arith.constant 0 : i32
    %c0_i32_0 = arith.constant 0 : i32
    return %c0_i32, %arg0 : i32, i32
  }
  func.func @transform_2(%arg0: i32) -> (i32, i32) {
    %c0_i32 = arith.constant 0 : i32
    %c0_i32_0 = arith.constant 0 : i32
    %c0_i32_1 = arith.constant 0 : i32
    return %c0_i32, %c0_i32_0 : i32, i32
  }
  func.func @transform_3(%arg0: i32) -> (i32, i32) {
    %c0_i32 = arith.constant 0 : i32
    %c0_i32_0 = arith.constant 0 : i32
    return %c0_i32, %arg0 : i32, i32
  }
}

module attributes {stable_mosaic.version = 11 : i64} {
  func.func @_mm_nm_kernel(%arg0: i32, %arg1: memref<4x288xbf16, #tpu.memory_space<vmem>>, %arg2: memref<288x2048xbf16, #tpu.memory_space<vmem>>, %arg3: memref<4x1xf32, #tpu.memory_space<vmem>>, %arg4: memref<4x2048xf32, #tpu.memory_space<vmem>>) attributes {dimension_semantics = [#tpu.dimension_semantics<parallel>], iteration_bounds = array<i64: 1>, scalar_prefetch = 0 : i64, scratch_operands = 0 : i64, tpu.core_type = #tpu.core_type<tc>, window_params = [{pipeline_mode = #tpu.pipeline_mode<synchronous>, transform_indices = @transform_0, window_bounds = array<i64: 4, 288>}, {transform_indices = @transform_1, window_bounds = array<i64: 288, 2048>}, {pipeline_mode = #tpu.pipeline_mode<synchronous>, transform_indices = @transform_2, window_bounds = array<i64: 4, 1>}, {transform_indices = @transform_3, window_bounds = array<i64: 4, 2048>}]} {
    %c0 = arith.constant 0 : index
    %c0_0 = arith.constant 0 : index
    %0 = vector.load %arg1[%c0, %c0_0] : memref<4x288xbf16, #tpu.memory_space<vmem>>, vector<4x288xbf16>
    %c0_1 = arith.constant 0 : index
    %c0_2 = arith.constant 0 : index
    %1 = vector.load %arg2[%c0_1, %c0_2] : memref<288x2048xbf16, #tpu.memory_space<vmem>>, vector<288x2048xbf16>
    %cst = arith.constant dense<0.000000e+00> : vector<4x2048xf32>
    %2 = tpu.matmul %0, %1, %cst {dimension_numbers = #tpu.dot_dimension_numbers<[1], [0], [0], [1], [0, 0, 1, 1], [], []>} : vector<4x288xbf16>, vector<288x2048xbf16>, vector<4x2048xf32> -> vector<4x2048xf32>
    %c0_3 = arith.constant 0 : index
    %c0_4 = arith.constant 0 : index
    %3 = vector.load %arg3[%c0_3, %c0_4] : memref<4x1xf32, #tpu.memory_space<vmem>>, vector<4x1xf32>
    %4 = vector.broadcast %3 : vector<4x1xf32> to vector<4x2048xf32>
    %5 = arith.addf %2, %4 : vector<4x2048xf32>
    %c0_5 = arith.constant 0 : index
    %c0_6 = arith.constant 0 : index
    %6 = vector.load %arg4[%c0_5, %c0_6] : memref<4x2048xf32, #tpu.memory_space<vmem>>, vector<4x2048xf32>
    tpu.vector_store %arg4[%c0_5, %c0_6], %5 {strides = array<i32>} : memref<4x2048xf32, #tpu.memory_space<vmem>>, vector<4x2048xf32>,
    return
  }
  func.func @transform_0(%arg0: i32) -> (i32, i32) {
    %c0_i32 = arith.constant 0 : i32
    %c0_i32_0 = arith.constant 0 : i32
    %c0_i32_1 = arith.constant 0 : i32
    return %c0_i32, %c0_i32_0 : i32, i32
  }
  func.func @transform_1(%arg0: i32) -> (i32, i32) {
    %c0_i32 = arith.constant 0 : i32
    %c0_i32_0 = arith.constant 0 : i32
    return %c0_i32, %arg0 : i32, i32
  }
  func.func @transform_2(%arg0: i32) -> (i32, i32) {
    %c0_i32 = arith.constant 0 : i32
    %c0_i32_0 = arith.constant 0 : i32
    %c0_i32_1 = arith.constant 0 : i32
    return %c0_i32, %c0_i32_0 : i32, i32
  }
  func.func @transform_3(%arg0: i32) -> (i32, i32) {
    %c0_i32 = arith.constant 0 : i32
    %c0_i32_0 = arith.constant 0 : i32
    return %c0_i32, %arg0 : i32, i32
  }
}

</mosaic_0001>

<bundles_post_ra>
// kernel: beta_vae_b_forward.8
= control target key start
LH: loop header
LB: loop body
LE: loop exit
PB: predicated region body
PF: predicated region fallthrough
CT: control target
= control target key end

     0   :  { %v975_v3 = vmov 0   ;;  %vm149_vm0 = vcmask 130048   ;;  %s1274_s1 = inlined_call_operand.vmem [shape: bf16[16,2048], index: 1, kind: input, shape index: {}]   ;;  %s1275_s0 = inlined_call_operand.vmem [shape: bf16[32,16], index: 0, kind: input, shape index: {}]   ;;  %s1276_s2 = inlined_call_operand.vmem [shape: f32[32,1], index: 2, kind: input, shape index: {}]   ;;  %s1277_s3 = inlined_call_operand.vmem [shape: bf16[32,2048], index: 3, kind: output, shape index: {}]  }
   0x1   :  { %v19_v0 = vld [vmem:[%s1274_s1] sm:$0xff]  ;;  %v20_v2 = vld [vmem:[%s1274_s1 + $0x8] sm:$0xff]  ;;  %188 = vmatprep.mubr.bf16.mxu0 %v975_v3  ;;  %241 = vmatprep.mubr.bf16.mxu1 %v975_v3  ;;  %v21_v10 = vld [vmem:[%s1274_s1 + $0x10] sm:$0xff] }
   0x2   :  { %v27_v1 = vld [vmem:[%s1274_s1 + $0x40] sm:$0xff]  ;;  %v28_v5 = vld [vmem:[%s1274_s1 + $0x48] sm:$0xff]  ;;  %971 = vset.pattern.permute.xlu0 %v975_v3  ;;  %972 = vset.pattern.permute.xlu1 %v975_v3  ;;  %v29_v11 = vld [vmem:[%s1274_s1 + $0x50] sm:$0xff] }
   0x3   :  { %v875_v4 = vcombine.high %v19_v0, %v27_v1  ;;  %v874_v6 = vcombine.low %v19_v0, %v27_v1  ;;  %v877_v7 = vcombine.high %v20_v2, %v28_v5  ;;  %v876_v8 = vcombine.low %v20_v2, %v28_v5  ;;  %v1015_v9 = vld [vmem:[%s1275_s0] sm:$0xff]   ;;  %v22_v13 = vld [vmem:[%s1274_s1 + $0x18] sm:$0xff]  ;;  %v24_v20 = vld [vmem:[%s1274_s1 + $0x28] sm:$0xff] }
   0x4   :  { %v879_v12 = vcombine.high %v21_v10, %v29_v11  ;;  %v30_v14 = vld [vmem:[%s1274_s1 + $0x58] sm:$0xff]  ;;  %v878_v15 = vcombine.low %v21_v10, %v29_v11  ;;  %v23_v17 = vld [vmem:[%s1274_s1 + $0x20] sm:$0xff]  ;;  %v32_v21 = vld [vmem:[%s1274_s1 + $0x68] sm:$0xff] }
   0x5   :  { %156 = vmatprep.subr.bf16.mxu0 %v875_v4  ;;  %209 = vmatprep.subr.bf16.mxu1 %v877_v7  ;;  %v881_v16 = vcombine.high %v22_v13, %v30_v14  ;;  %v880_v18 = vcombine.low %v22_v13, %v30_v14  ;;  %v31_v19 = vld [vmem:[%s1274_s1 + $0x60] sm:$0xff]  ;;  %v885_v23 = vcombine.high %v24_v20, %v32_v21  ;;  %v37_v25 = vld [vmem:[%s1276_s2 + $0x10] sm:$0xff]  ;;  %v974_v26 = vld [vmem:[%s1275_s0 + $0x8] sm:$0xff]  }
   0x6   :  { %157 = vmatpush1.bf16.msra.mxu0 %v874_v6  ;;  %210 = vmatpush1.bf16.msra.mxu1 %v876_v8  ;;  %v883_v22 = vcombine.high %v23_v17, %v31_v19  ;;  %v35_v24 = vld [vmem:[%s1276_s2] sm:$0xff]  ;;  %v36_v27 = vld [vmem:[%s1276_s2 + $0x8] sm:$0xff]  ;;  %v38_v28 = vld [vmem:[%s1276_s2 + $0x18] sm:$0xff]  ;;  %v882_v31 = vcombine.low %v23_v17, %v31_v19  ;;  %v884_v34 = vcombine.low %v24_v20, %v32_v21 }
   0x7   :  { %262 = vmatprep.subr.bf16.mxu0 %v879_v12  ;;  %315 = vmatprep.subr.bf16.mxu1 %v881_v16  ;;  %v25_v29 = vld [vmem:[%s1274_s1 + $0x30] sm:$0xff]  ;;  %v26_v32 = vld [vmem:[%s1274_s1 + $0x38] sm:$0xff] }
   0x8   :  { %41 = vperm.xlu0 %971, %v35_v24   ;;  %51 = vperm.xlu1 %972, %v37_v25   ;;  %v33_v30 = vld [vmem:[%s1274_s1 + $0x70] sm:$0xff]  ;;  %v34_v33 = vld [vmem:[%s1274_s1 + $0x78] sm:$0xff] }
   0x9   :  { %890 = vmatmul.mubr.msk.bf16.vlgmr.msra.gmra.mrb[0].mxu0 %vm149_vm0, %v1015_v9  ;;  %892 = vmatmul.mubr.msk.bf16.vlgmr.msra.gmra.mrb[0].mxu1 %vm149_vm0, %v1015_v9  ;;  %v887_v35 = vcombine.high %v25_v29, %v33_v30  ;;  %v889_v36 = vcombine.high %v26_v32, %v34_v33  ;;  %v886_v37 = vcombine.low %v25_v29, %v33_v30 }
   0xa   :  { %263 = vmatpush1.bf16.msra.mxu0 %v878_v15  ;;  %316 = vmatpush1.bf16.msra.mxu1 %v880_v18  ;;  %v888_v38 = vcombine.low %v26_v32, %v34_v33 }
   0xb   :  { %198 = vmatprep.mubr.bf16.mxu0 %v975_v3  ;;  %251 = vmatprep.mubr.bf16.mxu1 %v975_v3 }
   0xc   :  { %368 = vmatprep.subr.bf16.mxu0 %v883_v22  ;;  %421 = vmatprep.subr.bf16.mxu1 %v885_v23 }
   0xd   :  { %46 = vperm.xlu0 %971, %v36_v27   ;;  %56 = vperm.xlu1 %972, %v38_v28  }
  0x11   :  { %891 = vmatmul.mubr.msk.bf16.gmra.mrb[4].mxu0 %vm149_vm0, %v974_v26  ;;  %893 = vmatmul.mubr.msk.bf16.gmra.mrb[4].mxu1 %vm149_vm0, %v974_v26 }
  0x12   :  { %294 = vmatprep.mubr.bf16.mxu0 %v975_v3  ;;  %347 = vmatprep.mubr.bf16.mxu1 %v975_v3 }
  0x19   :  { %894 = vmatmul.mubr.msk.bf16.vlgmr.msra.gmra.mrb[8].mxu0 %vm149_vm0, %v1015_v9  ;;  %896 = vmatmul.mubr.msk.bf16.vlgmr.msra.gmra.mrb[8].mxu1 %vm149_vm0, %v1015_v9 }
  0x1a   :  { %369 = vmatpush1.bf16.msra.mxu0 %v882_v31  ;;  %422 = vmatpush1.bf16.msra.mxu1 %v884_v34 }
  0x1b   :  { %304 = vmatprep.mubr.bf16.mxu0 %v975_v3  ;;  %357 = vmatprep.mubr.bf16.mxu1 %v975_v3 }
  0x1c   :  { %474 = vmatprep.subr.bf16.mxu0 %v887_v35  ;;  %527 = vmatprep.subr.bf16.mxu1 %v889_v36 }
  0x21   :  { %895 = vmatmul.mubr.msk.bf16.gmra.mrb[12].mxu0 %vm149_vm0, %v974_v26  ;;  %897 = vmatmul.mubr.msk.bf16.gmra.mrb[12].mxu1 %vm149_vm0, %v974_v26 }
  0x22   :  { %400 = vmatprep.mubr.bf16.mxu0 %v975_v3  ;;  %453 = vmatprep.mubr.bf16.mxu1 %v975_v3 }
  0x29   :  { %898 = vmatmul.mubr.msk.bf16.vlgmr.msra.gmra.mrb[16].mxu0 %vm149_vm0, %v1015_v9  ;;  %900 = vmatmul.mubr.msk.bf16.vlgmr.msra.gmra.mrb[16].mxu1 %vm149_vm0, %v1015_v9 }
  0x2a   :  { %475 = vmatpush1.bf16.msra.mxu0 %v886_v37  ;;  %528 = vmatpush1.bf16.msra.mxu1 %v888_v38 }
  0x2b   :  { %410 = vmatprep.mubr.bf16.mxu0 %v975_v3  ;;  %463 = vmatprep.mubr.bf16.mxu1 %v975_v3 }
  0x31   :  { %899 = vmatmul.mubr.msk.bf16.gmra.mrb[20].mxu0 %vm149_vm0, %v974_v26  ;;  %901 = vmatmul.mubr.msk.bf16.gmra.mrb[20].mxu1 %vm149_vm0, %v974_v26 }
  0x32   :  { %506 = vmatprep.mubr.bf16.mxu0 %v975_v3  ;;  %559 = vmatprep.mubr.bf16.mxu1 %v975_v3 }
  0x39   :  { %902 = vmatmul.mubr.msk.bf16.vlgmr.msra.gmra.mrb[24].mxu0 %vm149_vm0, %v1015_v9  ;;  %904 = vmatmul.mubr.msk.bf16.vlgmr.msra.gmra.mrb[24].mxu1 %vm149_vm0, %v1015_v9 }
  0x3a   :  { %516 = vmatprep.mubr.bf16.mxu0 %v975_v3  ;;  %569 = vmatprep.mubr.bf16.mxu1 %v975_v3 }
  0x41   :  { %903 = vmatmul.mubr.msk.bf16.gmra.mrb[28].mxu0 %vm149_vm0, %v974_v26  ;;  %905 = vmatmul.mubr.msk.bf16.gmra.mrb[28].mxu1 %vm149_vm0, %v974_v26 }
  0x87   :  { %v1106_v39 = vpop.permute.xlu0 %41  ;;  %v1108_v40 = vpop.permute.xlu1 %51 }
  0x8c   :  { %v1110_v42 = vpop.permute.xlu0 %46  ;;  %v1123_v6 = vpop.permute.xlu1 %56 }
  0xdc   :  { %v190_v41 = vpop.f32.mrb[0].mxu0  ;;  %v243_v44 = vpop.f32.mrb[0].mxu1 }
  0xdd   :  { %v191_v43 = vadd.f32 %v190_v41, %v1106_v39  ;;  %v192_v45 = vpop.f32.mrb[1].mxu0  ;;  %v244_v46 = vadd.f32 %v243_v44, %v1106_v39  ;;  %v245_v48 = vpop.f32.mrb[1].mxu1 }
  0xde   :  { %v193_v47 = vadd.f32 %v192_v45, %v1106_v39  ;;  %v194_v49 = vpop.f32.mrb[2].mxu0  ;;  %v246_v51 = vadd.f32 %v245_v48, %v1106_v39  ;;  %v247_v53 = vpop.f32.mrb[2].mxu1 }
  0xdf   :  { %v580_v50 = vmax.f32 %v191_v43, 0.0  ;;  %v195_v52 = vadd.f32 %v194_v49, %v1110_v42  ;;  %v196_v54 = vpop.f32.mrb[3].mxu0  ;;  %v582_v55 = vmax.f32 %v244_v46, 0.0  ;;  %v248_v57 = vadd.f32 %v247_v53, %v1110_v42  ;;  %v249_v59 = vpop.f32.mrb[3].mxu1 }
  0xe0   :  { %v581_v56 = vmax.f32 %v193_v47, 0.0  ;;  %v197_v58 = vadd.f32 %v196_v54, %v1110_v42  ;;  %v583_v60 = vmax.f32 %v246_v51, 0.0  ;;  %v250_v62 = vadd.f32 %v249_v59, %v1110_v42 }
  0xe1   :  { %v596_v61 = vmax.f32 %v195_v52, 0.0  ;;  %v598_v0 = vmax.f32 %v248_v57, 0.0 }
  0xe2   :  { %v938_v63 = vpack.c.bf16 %v581_v56, %v580_v50  ;;  %v597_v1 = vmax.f32 %v197_v58, 0.0  ;;  %v939_v2 = vpack.c.bf16 %v583_v60, %v582_v55  ;;  %v599_v3 = vmax.f32 %v250_v62, 0.0 }
  0xe4   :  { %836 = vst [vmem:[%s1277_s3] sm:$0xff] %v938_v63  ;;  %v946_v4 = vpack.c.bf16 %v597_v1, %v596_v61  ;;  %v200_v5 = vpop.f32.mrb[4].mxu0  ;;  %837 = vst [vmem:[%s1277_s3 + $0x8] sm:$0xff] %v939_v2  ;;  %v947_v7 = vpack.c.bf16 %v599_v3, %v598_v0  ;;  %v253_v9 = vpop.f32.mrb[4].mxu1 }
  0xe5   :  { %v201_v8 = vadd.f32 %v200_v5, %v1108_v40  ;;  %v202_v10 = vpop.f32.mrb[5].mxu0  ;;  %v254_v11 = vadd.f32 %v253_v9, %v1108_v40  ;;  %v255_v13 = vpop.f32.mrb[5].mxu1 }
  0xe6   :  { %844 = vst [vmem:[%s1277_s3 + $0x40] sm:$0xff] %v946_v4  ;;  %v203_v12 = vadd.f32 %v202_v10, %v1108_v40  ;;  %v204_v14 = vpop.f32.mrb[6].mxu0  ;;  %845 = vst [vmem:[%s1277_s3 + $0x48] sm:$0xff] %v947_v7  ;;  %v256_v16 = vadd.f32 %v255_v13, %v1108_v40  ;;  %v257_v18 = vpop.f32.mrb[6].mxu1 }
  0xe7   :  { %v612_v15 = vmax.f32 %v201_v8, 0.0  ;;  %v205_v17 = vadd.f32 %v204_v14, %v1123_v6  ;;  %v206_v19 = vpop.f32.mrb[7].mxu0  ;;  %v614_v20 = vmax.f32 %v254_v11, 0.0  ;;  %v258_v22 = vadd.f32 %v257_v18, %v1123_v6  ;;  %v259_v24 = vpop.f32.mrb[7].mxu1 }
  0xe8   :  { %v613_v21 = vmax.f32 %v203_v12, 0.0  ;;  %v207_v23 = vadd.f32 %v206_v19, %v1123_v6  ;;  %v615_v25 = vmax.f32 %v256_v16, 0.0  ;;  %v260_v27 = vadd.f32 %v259_v24, %v1123_v6 }
  0xe9   :  { %v628_v26 = vmax.f32 %v205_v17, 0.0  ;;  %v630_v29 = vmax.f32 %v258_v22, 0.0 }
  0xea   :  { %v954_v28 = vpack.c.bf16 %v613_v21, %v612_v15  ;;  %v629_v30 = vmax.f32 %v207_v23, 0.0  ;;  %v955_v31 = vpack.c.bf16 %v615_v25, %v614_v20  ;;  %v631_v32 = vmax.f32 %v260_v27, 0.0 }
  0xec   :  { %852 = vst [vmem:[%s1277_s3 + $0x80] sm:$0xff] %v954_v28  ;;  %v962_v33 = vpack.c.bf16 %v629_v30, %v628_v26  ;;  %v296_v34 = vpop.f32.mrb[8].mxu0  ;;  %853 = vst [vmem:[%s1277_s3 + $0x88] sm:$0xff] %v955_v31  ;;  %v963_v35 = vpack.c.bf16 %v631_v32, %v630_v29  ;;  %v349_v37 = vpop.f32.mrb[8].mxu1 }
  0xed   :  { %v297_v36 = vadd.f32 %v296_v34, %v1106_v39  ;;  %v298_v38 = vpop.f32.mrb[9].mxu0  ;;  %v350_v41 = vadd.f32 %v349_v37, %v1106_v39  ;;  %v351_v44 = vpop.f32.mrb[9].mxu1 }
  0xee   :  { %860 = vst [vmem:[%s1277_s3 + $0xc0] sm:$0xff] %v962_v33  ;;  %v299_v43 = vadd.f32 %v298_v38, %v1106_v39  ;;  %v300_v45 = vpop.f32.mrb[10].mxu0  ;;  %861 = vst [vmem:[%s1277_s3 + $0xc8] sm:$0xff] %v963_v35  ;;  %v352_v47 = vadd.f32 %v351_v44, %v1106_v39  ;;  %v353_v49 = vpop.f32.mrb[10].mxu1 }
  0xef   :  { %v584_v46 = vmax.f32 %v297_v36, 0.0  ;;  %v301_v48 = vadd.f32 %v300_v45, %v1110_v42  ;;  %v302_v50 = vpop.f32.mrb[11].mxu0  ;;  %v586_v51 = vmax.f32 %v350_v41, 0.0  ;;  %v354_v53 = vadd.f32 %v353_v49, %v1110_v42  ;;  %v355_v55 = vpop.f32.mrb[11].mxu1 }
  0xf0   :  { %v585_v52 = vmax.f32 %v299_v43, 0.0  ;;  %v303_v54 = vadd.f32 %v302_v50, %v1110_v42  ;;  %v587_v56 = vmax.f32 %v352_v47, 0.0  ;;  %v356_v58 = vadd.f32 %v355_v55, %v1110_v42 }
  0xf1   :  { %v600_v57 = vmax.f32 %v301_v48, 0.0  ;;  %v602_v60 = vmax.f32 %v354_v53, 0.0 }
  0xf2   :  { %v940_v59 = vpack.c.bf16 %v585_v52, %v584_v46  ;;  %v601_v61 = vmax.f32 %v303_v54, 0.0  ;;  %v941_v62 = vpack.c.bf16 %v587_v56, %v586_v51  ;;  %v603_v63 = vmax.f32 %v356_v58, 0.0 }
  0xf4   :  { %838 = vst [vmem:[%s1277_s3 + $0x10] sm:$0xff] %v940_v59  ;;  %v948_v0 = vpack.c.bf16 %v601_v61, %v600_v57  ;;  %v306_v1 = vpop.f32.mrb[12].mxu0  ;;  %839 = vst [vmem:[%s1277_s3 + $0x18] sm:$0xff] %v941_v62  ;;  %v949_v2 = vpack.c.bf16 %v603_v63, %v602_v60  ;;  %v359_v4 = vpop.f32.mrb[12].mxu1 }
  0xf5   :  { %v307_v3 = vadd.f32 %v306_v1, %v1108_v40  ;;  %v308_v5 = vpop.f32.mrb[13].mxu0  ;;  %v360_v7 = vadd.f32 %v359_v4, %v1108_v40  ;;  %v361_v9 = vpop.f32.mrb[13].mxu1 }
  0xf6   :  { %846 = vst [vmem:[%s1277_s3 + $0x50] sm:$0xff] %v948_v0  ;;  %v309_v8 = vadd.f32 %v308_v5, %v1108_v40  ;;  %v310_v10 = vpop.f32.mrb[14].mxu0  ;;  %847 = vst [vmem:[%s1277_s3 + $0x58] sm:$0xff] %v949_v2  ;;  %v362_v12 = vadd.f32 %v361_v9, %v1108_v40  ;;  %v363_v14 = vpop.f32.mrb[14].mxu1 }
  0xf7   :  { %v616_v11 = vmax.f32 %v307_v3, 0.0  ;;  %v311_v13 = vadd.f32 %v310_v10, %v1123_v6  ;;  %v312_v15 = vpop.f32.mrb[15].mxu0  ;;  %v618_v16 = vmax.f32 %v360_v7, 0.0  ;;  %v364_v18 = vadd.f32 %v363_v14, %v1123_v6  ;;  %v365_v20 = vpop.f32.mrb[15].mxu1 }
  0xf8   :  { %v617_v17 = vmax.f32 %v309_v8, 0.0  ;;  %v313_v19 = vadd.f32 %v312_v15, %v1123_v6  ;;  %v619_v21 = vmax.f32 %v362_v12, 0.0  ;;  %v366_v23 = vadd.f32 %v365_v20, %v1123_v6 }
  0xf9   :  { %v632_v22 = vmax.f32 %v311_v13, 0.0  ;;  %v634_v25 = vmax.f32 %v364_v18, 0.0 }
  0xfa   :  { %v956_v24 = vpack.c.bf16 %v617_v17, %v616_v11  ;;  %v633_v26 = vmax.f32 %v313_v19, 0.0  ;;  %v957_v27 = vpack.c.bf16 %v619_v21, %v618_v16  ;;  %v635_v28 = vmax.f32 %v366_v23, 0.0 }
  0xfc   :  { %854 = vst [vmem:[%s1277_s3 + $0x90] sm:$0xff] %v956_v24  ;;  %v964_v29 = vpack.c.bf16 %v633_v26, %v632_v22  ;;  %v402_v30 = vpop.f32.mrb[16].mxu0  ;;  %855 = vst [vmem:[%s1277_s3 + $0x98] sm:$0xff] %v957_v27  ;;  %v965_v31 = vpack.c.bf16 %v635_v28, %v634_v25  ;;  %v455_v33 = vpop.f32.mrb[16].mxu1 }
  0xfd   :  { %v403_v32 = vadd.f32 %v402_v30, %v1106_v39  ;;  %v404_v34 = vpop.f32.mrb[17].mxu0  ;;  %v456_v35 = vadd.f32 %v455_v33, %v1106_v39  ;;  %v457_v37 = vpop.f32.mrb[17].mxu1 }
  0xfe   :  { %862 = vst [vmem:[%s1277_s3 + $0xd0] sm:$0xff] %v964_v29  ;;  %v405_v36 = vadd.f32 %v404_v34, %v1106_v39  ;;  %v406_v38 = vpop.f32.mrb[18].mxu0  ;;  %863 = vst [vmem:[%s1277_s3 + $0xd8] sm:$0xff] %v965_v31  ;;  %v458_v43 = vadd.f32 %v457_v37, %v1106_v39  ;;  %v459_v45 = vpop.f32.mrb[18].mxu1 }
  0xff   :  { %v588_v41 = vmax.f32 %v403_v32, 0.0  ;;  %v407_v44 = vadd.f32 %v406_v38, %v1110_v42  ;;  %v408_v46 = vpop.f32.mrb[19].mxu0  ;;  %v590_v47 = vmax.f32 %v456_v35, 0.0  ;;  %v460_v49 = vadd.f32 %v459_v45, %v1110_v42  ;;  %v461_v51 = vpop.f32.mrb[19].mxu1 }
 0x100   :  { %v589_v48 = vmax.f32 %v405_v36, 0.0  ;;  %v409_v50 = vadd.f32 %v408_v46, %v1110_v42  ;;  %v591_v52 = vmax.f32 %v458_v43, 0.0  ;;  %v462_v54 = vadd.f32 %v461_v51, %v1110_v42 }
 0x101   :  { %v604_v53 = vmax.f32 %v407_v44, 0.0  ;;  %v606_v56 = vmax.f32 %v460_v49, 0.0 }
 0x102   :  { %v942_v55 = vpack.c.bf16 %v589_v48, %v588_v41  ;;  %v605_v57 = vmax.f32 %v409_v50, 0.0  ;;  %v943_v58 = vpack.c.bf16 %v591_v52, %v590_v47  ;;  %v607_v59 = vmax.f32 %v462_v54, 0.0 }
 0x104   :  { %840 = vst [vmem:[%s1277_s3 + $0x20] sm:$0xff] %v942_v55  ;;  %v950_v60 = vpack.c.bf16 %v605_v57, %v604_v53  ;;  %v412_v61 = vpop.f32.mrb[20].mxu0  ;;  %841 = vst [vmem:[%s1277_s3 + $0x28] sm:$0xff] %v943_v58  ;;  %v951_v62 = vpack.c.bf16 %v607_v59, %v606_v56  ;;  %v465_v0 = vpop.f32.mrb[20].mxu1 }
 0x105   :  { %v413_v63 = vadd.f32 %v412_v61, %v1108_v40  ;;  %v414_v1 = vpop.f32.mrb[21].mxu0  ;;  %v466_v2 = vadd.f32 %v465_v0, %v1108_v40  ;;  %v467_v4 = vpop.f32.mrb[21].mxu1 }
 0x106   :  { %848 = vst [vmem:[%s1277_s3 + $0x60] sm:$0xff] %v950_v60  ;;  %v415_v3 = vadd.f32 %v414_v1, %v1108_v40  ;;  %v416_v5 = vpop.f32.mrb[22].mxu0  ;;  %849 = vst [vmem:[%s1277_s3 + $0x68] sm:$0xff] %v951_v62  ;;  %v468_v8 = vadd.f32 %v467_v4, %v1108_v40  ;;  %v469_v10 = vpop.f32.mrb[22].mxu1 }
 0x107   :  { %v620_v7 = vmax.f32 %v413_v63, 0.0  ;;  %v417_v9 = vadd.f32 %v416_v5, %v1123_v6  ;;  %v418_v11 = vpop.f32.mrb[23].mxu0  ;;  %v622_v12 = vmax.f32 %v466_v2, 0.0  ;;  %v470_v14 = vadd.f32 %v469_v10, %v1123_v6  ;;  %v471_v16 = vpop.f32.mrb[23].mxu1 }
 0x108   :  { %v621_v13 = vmax.f32 %v415_v3, 0.0  ;;  %v419_v15 = vadd.f32 %v418_v11, %v1123_v6  ;;  %v623_v17 = vmax.f32 %v468_v8, 0.0  ;;  %v472_v19 = vadd.f32 %v471_v16, %v1123_v6 }
 0x109   :  { %v636_v18 = vmax.f32 %v417_v9, 0.0  ;;  %v638_v21 = vmax.f32 %v470_v14, 0.0 }
 0x10a   :  { %v958_v20 = vpack.c.bf16 %v621_v13, %v620_v7  ;;  %v637_v22 = vmax.f32 %v419_v15, 0.0  ;;  %v959_v23 = vpack.c.bf16 %v623_v17, %v622_v12  ;;  %v639_v24 = vmax.f32 %v472_v19, 0.0 }
 0x10c   :  { %856 = vst [vmem:[%s1277_s3 + $0xa0] sm:$0xff] %v958_v20  ;;  %v966_v25 = vpack.c.bf16 %v637_v22, %v636_v18  ;;  %v508_v26 = vpop.f32.mrb[24].mxu0  ;;  %857 = vst [vmem:[%s1277_s3 + $0xa8] sm:$0xff] %v959_v23  ;;  %v967_v27 = vpack.c.bf16 %v639_v24, %v638_v21  ;;  %v561_v29 = vpop.f32.mrb[24].mxu1 }
 0x10d   :  { %v509_v28 = vadd.f32 %v508_v26, %v1106_v39  ;;  %v510_v30 = vpop.f32.mrb[25].mxu0  ;;  %v562_v31 = vadd.f32 %v561_v29, %v1106_v39  ;;  %v563_v33 = vpop.f32.mrb[25].mxu1 }
 0x10e   :  { %864 = vst [vmem:[%s1277_s3 + $0xe0] sm:$0xff] %v966_v25  ;;  %v511_v32 = vadd.f32 %v510_v30, %v1106_v39  ;;  %v512_v34 = vpop.f32.mrb[26].mxu0  ;;  %865 = vst [vmem:[%s1277_s3 + $0xe8] sm:$0xff] %v967_v27  ;;  %v564_v36 = vadd.f32 %v563_v33, %v1106_v39  ;;  %v565_v38 = vpop.f32.mrb[26].mxu1 }
 0x10f   :  { %v592_v35 = vmax.f32 %v509_v28, 0.0  ;;  %v513_v37 = vadd.f32 %v512_v34, %v1110_v42  ;;  %v514_v41 = vpop.f32.mrb[27].mxu0  ;;  %v594_v43 = vmax.f32 %v562_v31, 0.0  ;;  %v566_v45 = vadd.f32 %v565_v38, %v1110_v42  ;;  %v567_v47 = vpop.f32.mrb[27].mxu1 }
 0x110   :  { %v593_v44 = vmax.f32 %v511_v32, 0.0  ;;  %v515_v46 = vadd.f32 %v514_v41, %v1110_v42  ;;  %v595_v48 = vmax.f32 %v564_v36, 0.0  ;;  %v568_v50 = vadd.f32 %v567_v47, %v1110_v42 }
 0x111   :  { %v608_v49 = vmax.f32 %v513_v37, 0.0  ;;  %v610_v52 = vmax.f32 %v566_v45, 0.0 }
 0x112   :  { %v944_v51 = vpack.c.bf16 %v593_v44, %v592_v35  ;;  %v609_v53 = vmax.f32 %v515_v46, 0.0  ;;  %v945_v54 = vpack.c.bf16 %v595_v48, %v594_v43  ;;  %v611_v39 = vmax.f32 %v568_v50, 0.0 }
 0x114   :  { %842 = vst [vmem:[%s1277_s3 + $0x30] sm:$0xff] %v944_v51  ;;  %v952_v55 = vpack.c.bf16 %v609_v53, %v608_v49  ;;  %v518_v56 = vpop.f32.mrb[28].mxu0  ;;  %843 = vst [vmem:[%s1277_s3 + $0x38] sm:$0xff] %v945_v54  ;;  %v953_v57 = vpack.c.bf16 %v611_v39, %v610_v52  ;;  %v571_v59 = vpop.f32.mrb[28].mxu1 }
 0x115   :  { %v519_v58 = vadd.f32 %v518_v56, %v1108_v40  ;;  %v520_v42 = vpop.f32.mrb[29].mxu0  ;;  %v572_v60 = vadd.f32 %v571_v59, %v1108_v40  ;;  %v573_v62 = vpop.f32.mrb[29].mxu1 }
 0x116   :  { %850 = vst [vmem:[%s1277_s3 + $0x70] sm:$0xff] %v952_v55  ;;  %v521_v61 = vadd.f32 %v520_v42, %v1108_v40  ;;  %v522_v63 = vpop.f32.mrb[30].mxu0  ;;  %851 = vst [vmem:[%s1277_s3 + $0x78] sm:$0xff] %v953_v57  ;;  %v574_v1 = vadd.f32 %v573_v62, %v1108_v40  ;;  %v575_v3 = vpop.f32.mrb[30].mxu1 }
 0x117   :  { %v624_v0 = vmax.f32 %v519_v58, 0.0  ;;  %v523_v2 = vadd.f32 %v522_v63, %v1123_v6  ;;  %v524_v4 = vpop.f32.mrb[31].mxu0  ;;  %v626_v5 = vmax.f32 %v572_v60, 0.0  ;;  %v576_v8 = vadd.f32 %v575_v3, %v1123_v6  ;;  %v577_v10 = vpop.f32.mrb[31].mxu1 }
 0x118   :  { %v625_v7 = vmax.f32 %v521_v61, 0.0  ;;  %v525_v9 = vadd.f32 %v524_v4, %v1123_v6  ;;  %v627_v11 = vmax.f32 %v574_v1, 0.0  ;;  %v578_v13 = vadd.f32 %v577_v10, %v1123_v6 }
 0x119   :  { %v640_v12 = vmax.f32 %v523_v2, 0.0  ;;  %v642_v15 = vmax.f32 %v576_v8, 0.0 }
 0x11a   :  { %v960_v14 = vpack.c.bf16 %v625_v7, %v624_v0  ;;  %v641_v16 = vmax.f32 %v525_v9, 0.0  ;;  %v961_v17 = vpack.c.bf16 %v627_v11, %v626_v5  ;;  %v643_v40 = vmax.f32 %v578_v13, 0.0 }
 0x11c   :  { %858 = vst [vmem:[%s1277_s3 + $0xb0] sm:$0xff] %v960_v14  ;;  %v968_v18 = vpack.c.bf16 %v641_v16, %v640_v12  ;;  %859 = vst [vmem:[%s1277_s3 + $0xb8] sm:$0xff] %v961_v17  ;;  %v969_v19 = vpack.c.bf16 %v643_v40, %v642_v15 }
 0x11e   :  { %866 = vst [vmem:[%s1277_s3 + $0xf0] sm:$0xff] %v968_v18  ;;  %867 = vst [vmem:[%s1277_s3 + $0xf8] sm:$0xff] %v969_v19 }

// kernel: beta_vae_b_forward.9
= control target key start
LH: loop header
LB: loop body
LE: loop exit
PB: predicated region body
PF: predicated region fallthrough
CT: control target
= control target key end

     0   :  { %v1533_v18 = vmov 0   ;;  %s1998_s1 = inlined_call_operand.vmem [shape: bf16[512,512], index: 1, kind: input, shape index: {}]   ;;  %s1999_s0 = inlined_call_operand.vmem [shape: bf16[32,512], index: 0, kind: input, shape index: {}]   ;;  %s2000_s2 = inlined_call_operand.vmem [shape: f32[32,1], index: 2, kind: input, shape index: {}]   ;;  %s2001_s3 = inlined_call_operand.vmem [shape: bf16[32,512], index: 3, kind: output, shape index: {}]  }
   0x1   :  { %v1329_v0 = vld [vmem:[%s1998_s1 + $0x4] ss:$16 sps:$4 sm:$0xff]   ;;  %v1331_v1 = vld [vmem:[%s1998_s1 + $0xc] ss:$16 sps:$4 sm:$0xff]   ;;  %v1333_v2 = vld [vmem:[%s1998_s1] ss:$16 sps:$4 sm:$0xff]   ;;  %1327 = vset.pattern.permute.xlu0 %v1533_v18  ;;  %1328 = vset.pattern.permute.xlu1 %v1533_v18 }
   0x2   :  { %854 = vmatprep.subr.bf16.mxu0 %v1329_v0  ;;  %v1334_v3 = vld [vmem:[%s1998_s1 + $0x8] ss:$16 sps:$4 sm:$0xff]   ;;  %960 = vmatprep.subr.bf16.mxu1 %v1331_v1  ;;  %v1335_v4 = vld [vmem:[%s1998_s1 + $0x24] ss:$16 sps:$4 sm:$0xff]   ;;  %v1337_v5 = vld [vmem:[%s1998_s1 + $0x2c] ss:$16 sps:$4 sm:$0xff]  }
   0x3   :  { %855 = vmatpush1.bf16.msra.mxu0 %v1333_v2  ;;  %961 = vmatpush1.bf16.msra.mxu1 %v1334_v3  ;;  %v1339_v6 = vld [vmem:[%s1998_s1 + $0x20] ss:$16 sps:$4 sm:$0xff]   ;;  %v1340_v7 = vld [vmem:[%s1998_s1 + $0x28] ss:$16 sps:$4 sm:$0xff]   ;;  %v1341_v8 = vld [vmem:[%s1998_s1 + $0x44] ss:$16 sps:$4 sm:$0xff]  }
   0x4   :  { %856 = vmatprep.subr.bf16.mxu0 %v1335_v4  ;;  %962 = vmatprep.subr.bf16.mxu1 %v1337_v5  ;;  %v1343_v9 = vld [vmem:[%s1998_s1 + $0x4c] ss:$16 sps:$4 sm:$0xff]   ;;  %v1345_v10 = vld [vmem:[%s1998_s1 + $0x40] ss:$16 sps:$4 sm:$0xff]   ;;  %v1346_v11 = vld [vmem:[%s1998_s1 + $0x48] ss:$16 sps:$4 sm:$0xff]  }
   0x5   :  { %v1347_v12 = vld [vmem:[%s1998_s1 + $0x64] ss:$16 sps:$4 sm:$0xff]   ;;  %v1349_v13 = vld [vmem:[%s1998_s1 + $0x6c] ss:$16 sps:$4 sm:$0xff]   ;;  %v1351_v14 = vld [vmem:[%s1998_s1 + $0x60] ss:$16 sps:$4 sm:$0xff]  }
   0x6   :  { %v1352_v15 = vld [vmem:[%s1998_s1 + $0x68] ss:$16 sps:$4 sm:$0xff]   ;;  %v1353_v16 = vld [vmem:[%s1998_s1 + $0x84] ss:$16 sps:$4 sm:$0xff]   ;;  %v1355_v17 = vld [vmem:[%s1998_s1 + $0x8c] ss:$16 sps:$4 sm:$0xff]  }
   0x7   :  { %857 = vmatpush1.bf16.msra.mxu0 %v1339_v6  ;;  %963 = vmatpush1.bf16.msra.mxu1 %v1340_v7  ;;  %v1357_v19 = vld [vmem:[%s1998_s1 + $0x80] ss:$16 sps:$4 sm:$0xff]   ;;  %v1358_v20 = vld [vmem:[%s1998_s1 + $0x88] ss:$16 sps:$4 sm:$0xff]   ;;  %v1359_v21 = vld [vmem:[%s1998_s1 + $0xa4] ss:$16 sps:$4 sm:$0xff]  }
   0x8   :  { %858 = vmatprep.subr.bf16.mxu0 %v1341_v8  ;;  %964 = vmatprep.subr.bf16.mxu1 %v1343_v9  ;;  %v1361_v22 = vld [vmem:[%s1998_s1 + $0xac] ss:$16 sps:$4 sm:$0xff]   ;;  %v1363_v23 = vld [vmem:[%s1998_s1 + $0xa0] ss:$16 sps:$4 sm:$0xff]   ;;  %v1364_v24 = vld [vmem:[%s1998_s1 + $0xa8] ss:$16 sps:$4 sm:$0xff]  }
   0x9   :  { %v1365_v25 = vld [vmem:[%s1998_s1 + $0xc4] ss:$16 sps:$4 sm:$0xff]   ;;  %v1367_v26 = vld [vmem:[%s1998_s1 + $0xcc] ss:$16 sps:$4 sm:$0xff]   ;;  %v1369_v27 = vld [vmem:[%s1998_s1 + $0xc0] ss:$16 sps:$4 sm:$0xff]  }
   0xa   :  { %v1370_v28 = vld [vmem:[%s1998_s1 + $0xc8] ss:$16 sps:$4 sm:$0xff]   ;;  %v1371_v29 = vld [vmem:[%s1998_s1 + $0xe4] ss:$16 sps:$4 sm:$0xff]   ;;  %v1373_v30 = vld [vmem:[%s1998_s1 + $0xec] ss:$16 sps:$4 sm:$0xff]  }
   0xb   :  { %859 = vmatpush1.bf16.msra.mxu0 %v1345_v10  ;;  %965 = vmatpush1.bf16.msra.mxu1 %v1346_v11  ;;  %v1375_v31 = vld [vmem:[%s1998_s1 + $0xe0] ss:$16 sps:$4 sm:$0xff]   ;;  %v1376_v32 = vld [vmem:[%s1998_s1 + $0xe8] ss:$16 sps:$4 sm:$0xff]   ;;  %v1377_v33 = vld [vmem:[%s1998_s1 + $0x104] ss:$16 sps:$4 sm:$0xff]  }
   0xc   :  { %860 = vmatprep.subr.bf16.mxu0 %v1347_v12  ;;  %966 = vmatprep.subr.bf16.mxu1 %v1349_v13  ;;  %v1379_v34 = vld [vmem:[%s1998_s1 + $0x10c] ss:$16 sps:$4 sm:$0xff]   ;;  %v1381_v35 = vld [vmem:[%s1998_s1 + $0x100] ss:$16 sps:$4 sm:$0xff]   ;;  %v1382_v36 = vld [vmem:[%s1998_s1 + $0x108] ss:$16 sps:$4 sm:$0xff]  }
   0xd   :  { %v1383_v37 = vld [vmem:[%s1998_s1 + $0x124] ss:$16 sps:$4 sm:$0xff]   ;;  %v1385_v38 = vld [vmem:[%s1998_s1 + $0x12c] ss:$16 sps:$4 sm:$0xff]   ;;  %v1387_v39 = vld [vmem:[%s1998_s1 + $0x120] ss:$16 sps:$4 sm:$0xff]  }
   0xe   :  { %v1388_v40 = vld [vmem:[%s1998_s1 + $0x128] ss:$16 sps:$4 sm:$0xff]   ;;  %v1389_v41 = vld [vmem:[%s1998_s1 + $0x144] ss:$16 sps:$4 sm:$0xff]   ;;  %v1391_v42 = vld [vmem:[%s1998_s1 + $0x14c] ss:$16 sps:$4 sm:$0xff]  }
   0xf   :  { %861 = vmatpush1.bf16.msra.mxu0 %v1351_v14  ;;  %967 = vmatpush1.bf16.msra.mxu1 %v1352_v15  ;;  %v1393_v43 = vld [vmem:[%s1998_s1 + $0x140] ss:$16 sps:$4 sm:$0xff]   ;;  %v1394_v44 = vld [vmem:[%s1998_s1 + $0x148] ss:$16 sps:$4 sm:$0xff]   ;;  %v1395_v45 = vld [vmem:[%s1998_s1 + $0x164] ss:$16 sps:$4 sm:$0xff]  }
  0x10   :  { %862 = vmatprep.subr.bf16.mxu0 %v1353_v16  ;;  %968 = vmatprep.subr.bf16.mxu1 %v1355_v17  ;;  %v1397_v46 = vld [vmem:[%s1998_s1 + $0x16c] ss:$16 sps:$4 sm:$0xff]   ;;  %v1399_v47 = vld [vmem:[%s1998_s1 + $0x160] ss:$16 sps:$4 sm:$0xff]   ;;  %v1400_v48 = vld [vmem:[%s1998_s1 + $0x168] ss:$16 sps:$4 sm:$0xff]  }
  0x11   :  { %v1427_v49 = vld [vmem:[%s1999_s0 + $0x4] ss:$16 sps:$4 sm:$0xff]   ;;  %v1403_v51 = vld [vmem:[%s1998_s1 + $0x18c] ss:$16 sps:$4 sm:$0xff]   ;;  %v1405_v52 = vld [vmem:[%s1998_s1 + $0x180] ss:$16 sps:$4 sm:$0xff]  }
  0x12   :  { %v1401_v50 = vld [vmem:[%s1998_s1 + $0x184] ss:$16 sps:$4 sm:$0xff]   ;;  %886 = vmatprep.mubr.bf16.mxu0 %v1427_v49  ;;  %992 = vmatprep.mubr.bf16.mxu1 %v1427_v49  ;;  %v1406_v53 = vld [vmem:[%s1998_s1 + $0x188] ss:$16 sps:$4 sm:$0xff]   ;;  %v1409_v55 = vld [vmem:[%s1998_s1 + $0x1ac] ss:$16 sps:$4 sm:$0xff]  }
  0x13   :  { %863 = vmatpush1.bf16.msra.mxu0 %v1357_v19  ;;  %969 = vmatpush1.bf16.msra.mxu1 %v1358_v20  ;;  %v1407_v54 = vld [vmem:[%s1998_s1 + $0x1a4] ss:$16 sps:$4 sm:$0xff]   ;;  %v1411_v56 = vld [vmem:[%s1998_s1 + $0x1a0] ss:$16 sps:$4 sm:$0xff]   ;;  %v1412_v57 = vld [vmem:[%s1998_s1 + $0x1a8] ss:$16 sps:$4 sm:$0xff]  }
  0x14   :  { %864 = vmatprep.subr.bf16.mxu0 %v1359_v21  ;;  %970 = vmatprep.subr.bf16.mxu1 %v1361_v22  ;;  %v1413_v58 = vld [vmem:[%s1998_s1 + $0x1c4] ss:$16 sps:$4 sm:$0xff]   ;;  %v1415_v59 = vld [vmem:[%s1998_s1 + $0x1cc] ss:$16 sps:$4 sm:$0xff]   ;;  %v1417_v60 = vld [vmem:[%s1998_s1 + $0x1c0] ss:$16 sps:$4 sm:$0xff]  }
  0x15   :  { %v1418_v61 = vld [vmem:[%s1998_s1 + $0x1c8] ss:$16 sps:$4 sm:$0xff]   ;;  %v1419_v62 = vld [vmem:[%s1998_s1 + $0x1e4] ss:$16 sps:$4 sm:$0xff]   ;;  %v1421_v63 = vld [vmem:[%s1998_s1 + $0x1ec] ss:$16 sps:$4 sm:$0xff]  }
  0x16   :  { %v1423_v0 = vld [vmem:[%s1998_s1 + $0x1e0] ss:$16 sps:$4 sm:$0xff]   ;;  %v1424_v1 = vld [vmem:[%s1998_s1 + $0x1e8] ss:$16 sps:$4 sm:$0xff]   ;;  %v1430_v2 = vld [vmem:[%s1998_s1 + $0x204] ss:$16 sps:$4 sm:$0xff]  }
  0x17   :  { %865 = vmatpush1.bf16.msra.mxu0 %v1363_v23  ;;  %971 = vmatpush1.bf16.msra.mxu1 %v1364_v24  ;;  %v1433_v3 = vld [vmem:[%s1998_s1 + $0x20c] ss:$16 sps:$4 sm:$0xff]   ;;  %v1425_v4 = vld [vmem:[%s1999_s0] ss:$16 sps:$4 sm:$0xff]   ;;  %v1431_v6 = vld [vmem:[%s1998_s1 + $0x208] ss:$16 sps:$4 sm:$0xff]  }
  0x18   :  { %866 = vmatprep.subr.bf16.mxu0 %v1365_v25  ;;  %972 = vmatprep.subr.bf16.mxu1 %v1367_v26  ;;  %v1428_v5 = vld [vmem:[%s1998_s1 + $0x200] ss:$16 sps:$4 sm:$0xff]   ;;  %v1436_v7 = vld [vmem:[%s1998_s1 + $0x224] ss:$16 sps:$4 sm:$0xff]   ;;  %v1439_v8 = vld [vmem:[%s1998_s1 + $0x22c] ss:$16 sps:$4 sm:$0xff]  }
  0x19   :  { %v1434_v9 = vld [vmem:[%s1998_s1 + $0x220] ss:$16 sps:$4 sm:$0xff]   ;;  %v1437_v10 = vld [vmem:[%s1998_s1 + $0x228] ss:$16 sps:$4 sm:$0xff]   ;;  %v1442_v11 = vld [vmem:[%s1998_s1 + $0x244] ss:$16 sps:$4 sm:$0xff]  }
  0x1a   :  { %v1445_v12 = vld [vmem:[%s1998_s1 + $0x24c] ss:$16 sps:$4 sm:$0xff]   ;;  %v1440_v13 = vld [vmem:[%s1998_s1 + $0x240] ss:$16 sps:$4 sm:$0xff]   ;;  %v1443_v14 = vld [vmem:[%s1998_s1 + $0x248] ss:$16 sps:$4 sm:$0xff]  }
  0x1b   :  { %867 = vmatpush1.bf16.msra.mxu0 %v1369_v27  ;;  %973 = vmatpush1.bf16.msra.mxu1 %v1370_v28  ;;  %v1448_v15 = vld [vmem:[%s1998_s1 + $0x264] ss:$16 sps:$4 sm:$0xff]   ;;  %v1451_v16 = vld [vmem:[%s1998_s1 + $0x26c] ss:$16 sps:$4 sm:$0xff]   ;;  %v1446_v17 = vld [vmem:[%s1998_s1 + $0x260] ss:$16 sps:$4 sm:$0xff]  }
  0x1c   :  { %868 = vmatprep.subr.bf16.mxu0 %v1371_v29  ;;  %974 = vmatprep.subr.bf16.mxu1 %v1373_v30  ;;  %v1449_v18 = vld [vmem:[%s1998_s1 + $0x268] ss:$16 sps:$4 sm:$0xff]   ;;  %v1454_v19 = vld [vmem:[%s1998_s1 + $0x284] ss:$16 sps:$4 sm:$0xff]   ;;  %v1457_v20 = vld [vmem:[%s1998_s1 + $0x28c] ss:$16 sps:$4 sm:$0xff]  }
  0x1d   :  { %v1452_v21 = vld [vmem:[%s1998_s1 + $0x280] ss:$16 sps:$4 sm:$0xff]   ;;  %v1455_v22 = vld [vmem:[%s1998_s1 + $0x288] ss:$16 sps:$4 sm:$0xff]   ;;  %v1460_v23 = vld [vmem:[%s1998_s1 + $0x2a4] ss:$16 sps:$4 sm:$0xff]  }
  0x1e   :  { %v1463_v24 = vld [vmem:[%s1998_s1 + $0x2ac] ss:$16 sps:$4 sm:$0xff]   ;;  %v1458_v25 = vld [vmem:[%s1998_s1 + $0x2a0] ss:$16 sps:$4 sm:$0xff]   ;;  %v1512_v26 = vld [vmem:[%s1999_s0 + $0x24] ss:$16 sps:$4 sm:$0xff]  }
  0x1f   :  { %869 = vmatpush1.bf16.msra.mxu0 %v1375_v31  ;;  %975 = vmatpush1.bf16.msra.mxu1 %v1376_v32  ;;  %v1461_v27 = vld [vmem:[%s1998_s1 + $0x2a8] ss:$16 sps:$4 sm:$0xff]   ;;  %v1514_v28 = vld [vmem:[%s1999_s0 + $0x20] ss:$16 sps:$4 sm:$0xff]   ;;  %v1466_v29 = vld [vmem:[%s1998_s1 + $0x2c4] ss:$16 sps:$4 sm:$0xff]  }
  0x20   :  { %870 = vmatprep.subr.bf16.mxu0 %v1377_v33  ;;  %976 = vmatprep.subr.bf16.mxu1 %v1379_v34  ;;  %v1469_v30 = vld [vmem:[%s1998_s1 + $0x2cc] ss:$16 sps:$4 sm:$0xff]   ;;  %v1464_v31 = vld [vmem:[%s1998_s1 + $0x2c0] ss:$16 sps:$4 sm:$0xff]   ;;  %v1467_v32 = vld [vmem:[%s1998_s1 + $0x2c8] ss:$16 sps:$4 sm:$0xff]  }
  0x21   :  { %v1472_v33 = vld [vmem:[%s1998_s1 + $0x2e4] ss:$16 sps:$4 sm:$0xff]   ;;  %v1475_v34 = vld [vmem:[%s1998_s1 + $0x2ec] ss:$16 sps:$4 sm:$0xff]   ;;  %v1485_v49 = vld [vmem:[%s1998_s1 + $0x328] ss:$16 sps:$4 sm:$0xff]  }
  0x23   :  { %871 = vmatpush1.bf16.msra.mxu0 %v1381_v35  ;;  %977 = vmatpush1.bf16.msra.mxu1 %v1382_v36  ;;  %v1529_v35 = vld [vmem:[%s1999_s0 + $0xc] ss:$16 sps:$4 sm:$0xff]   ;;  %v150_v36 = vld [vmem:[%s2000_s2] sm:$0xff] }
  0x24   :  { %872 = vmatprep.subr.bf16.mxu0 %v1383_v37  ;;  %978 = vmatprep.subr.bf16.mxu1 %v1385_v38  ;;  %v152_v37 = vld [vmem:[%s2000_s2 + $0x10] sm:$0xff] }
  0x25   :  { %v1470_v38 = vld [vmem:[%s1998_s1 + $0x2e0] ss:$16 sps:$4 sm:$0xff]   ;;  %156 = vperm.xlu0 %1327, %v150_v36   ;;  %166 = vperm.xlu1 %1328, %v152_v37  }
  0x27   :  { %873 = vmatpush1.bf16.msra.mxu0 %v1387_v39  ;;  %979 = vmatpush1.bf16.msra.mxu1 %v1388_v40  ;;  %v1473_v39 = vld [vmem:[%s1998_s1 + $0x2e8] ss:$16 sps:$4 sm:$0xff]   ;;  %v1478_v40 = vld [vmem:[%s1998_s1 + $0x304] ss:$16 sps:$4 sm:$0xff]  }
  0x28   :  { %874 = vmatprep.subr.bf16.mxu0 %v1389_v41  ;;  %980 = vmatprep.subr.bf16.mxu1 %v1391_v42  ;;  %v1481_v41 = vld [vmem:[%s1998_s1 + $0x30c] ss:$16 sps:$4 sm:$0xff]  }
  0x29   :  { %v151_v42 = vld [vmem:[%s2000_s2 + $0x8] sm:$0xff] }
  0x2a   :  { %161 = vperm.xlu0 %1327, %v151_v42  }
  0x2b   :  { %875 = vmatpush1.bf16.msra.mxu0 %v1393_v43  ;;  %981 = vmatpush1.bf16.msra.mxu1 %v1394_v44  ;;  %v153_v43 = vld [vmem:[%s2000_s2 + $0x18] sm:$0xff]  ;;  %v1476_v44 = vld [vmem:[%s1998_s1 + $0x300] ss:$16 sps:$4 sm:$0xff]  }
  0x2c   :  { %876 = vmatprep.subr.bf16.mxu0 %v1395_v45  ;;  %982 = vmatprep.subr.bf16.mxu1 %v1397_v46  ;;  %v1479_v45 = vld [vmem:[%s1998_s1 + $0x308] ss:$16 sps:$4 sm:$0xff]   ;;  %v1484_v46 = vld [vmem:[%s1998_s1 + $0x324] ss:$16 sps:$4 sm:$0xff]  }
  0x2d   :  { %171 = vperm.xlu1 %1328, %v153_v43  }
  0x2f   :  { %877 = vmatpush1.bf16.msra.mxu0 %v1399_v47  ;;  %983 = vmatpush1.bf16.msra.mxu1 %v1400_v48  ;;  %v1487_v47 = vld [vmem:[%s1998_s1 + $0x32c] ss:$16 sps:$4 sm:$0xff]   ;;  %v1482_v48 = vld [vmem:[%s1998_s1 + $0x320] ss:$16 sps:$4 sm:$0xff]  }
  0x30   :  { %878 = vmatprep.subr.bf16.mxu0 %v1401_v50  ;;  %984 = vmatprep.subr.bf16.mxu1 %v1403_v51  ;;  %v1490_v50 = vld [vmem:[%s1998_s1 + $0x344] ss:$16 sps:$4 sm:$0xff]   ;;  %v1493_v51 = vld [vmem:[%s1998_s1 + $0x34c] ss:$16 sps:$4 sm:$0xff]  }
  0x33   :  { %879 = vmatpush1.bf16.msra.mxu0 %v1405_v52  ;;  %985 = vmatpush1.bf16.msra.mxu1 %v1406_v53  ;;  %v1488_v52 = vld [vmem:[%s1998_s1 + $0x340] ss:$16 sps:$4 sm:$0xff]   ;;  %v1491_v53 = vld [vmem:[%s1998_s1 + $0x348] ss:$16 sps:$4 sm:$0xff]  }
  0x34   :  { %880 = vmatprep.subr.bf16.mxu0 %v1407_v54  ;;  %986 = vmatprep.subr.bf16.mxu1 %v1409_v55  ;;  %v1496_v54 = vld [vmem:[%s1998_s1 + $0x364] ss:$16 sps:$4 sm:$0xff]   ;;  %v1499_v55 = vld [vmem:[%s1998_s1 + $0x36c] ss:$16 sps:$4 sm:$0xff]  }
  0x37   :  { %881 = vmatpush1.bf16.msra.mxu0 %v1411_v56  ;;  %987 = vmatpush1.bf16.msra.mxu1 %v1412_v57  ;;  %v1494_v56 = vld [vmem:[%s1998_s1 + $0x360] ss:$16 sps:$4 sm:$0xff]   ;;  %v1497_v57 = vld [vmem:[%s1998_s1 + $0x368] ss:$16 sps:$4 sm:$0xff]  }
  0x38   :  { %882 = vmatprep.subr.bf16.mxu0 %v1413_v58  ;;  %988 = vmatprep.subr.bf16.mxu1 %v1415_v59  ;;  %v1502_v58 = vld [vmem:[%s1998_s1 + $0x384] ss:$16 sps:$4 sm:$0xff]   ;;  %v1505_v59 = vld [vmem:[%s1998_s1 + $0x38c] ss:$16 sps:$4 sm:$0xff]  }
  0x3b   :  { %883 = vmatpush1.bf16.msra.mxu0 %v1417_v60  ;;  %989 = vmatpush1.bf16.msra.mxu1 %v1418_v61  ;;  %v1500_v60 = vld [vmem:[%s1998_s1 + $0x380] ss:$16 sps:$4 sm:$0xff]   ;;  %v1503_v61 = vld [vmem:[%s1998_s1 + $0x388] ss:$16 sps:$4 sm:$0xff]  }
  0x3c   :  { %884 = vmatprep.subr.bf16.mxu0 %v1419_v62  ;;  %990 = vmatprep.subr.bf16.mxu1 %v1421_v63  ;;  %v1508_v62 = vld [vmem:[%s1998_s1 + $0x3a4] ss:$16 sps:$4 sm:$0xff]   ;;  %v1511_v63 = vld [vmem:[%s1998_s1 + $0x3ac] ss:$16 sps:$4 sm:$0xff]  }
  0x3f   :  { %885 = vmatpush1.bf16.msra.mxu0 %v1423_v0  ;;  %991 = vmatpush1.bf16.msra.mxu1 %v1424_v1  ;;  %v1506_v0 = vld [vmem:[%s1998_s1 + $0x3a0] ss:$16 sps:$4 sm:$0xff]   ;;  %v1509_v1 = vld [vmem:[%s1998_s1 + $0x3a8] ss:$16 sps:$4 sm:$0xff]  }
  0x40   :  { %907 = vmatprep.subr.bf16.mxu0 %v1430_v2  ;;  %1013 = vmatprep.subr.bf16.mxu1 %v1433_v3  ;;  %v1517_v2 = vld [vmem:[%s1998_s1 + $0x3c4] ss:$16 sps:$4 sm:$0xff]   ;;  %v1520_v3 = vld [vmem:[%s1998_s1 + $0x3cc] ss:$16 sps:$4 sm:$0xff]  }
  0x42   :  { %887 = vmatmul.mubr.bf16.vlgmr.msra.gmra.mrb[0].mxu0 %v1425_v4  ;;  %993 = vmatmul.mubr.bf16.vlgmr.msra.gmra.mrb[0].mxu1 %v1425_v4  ;;  %v1515_v4 = vld [vmem:[%s1998_s1 + $0x3c0] ss:$16 sps:$4 sm:$0xff]  }
  0x43   :  { %908 = vmatpush1.bf16.msra.mxu0 %v1428_v5  ;;  %1014 = vmatpush1.bf16.msra.mxu1 %v1431_v6  ;;  %v1518_v5 = vld [vmem:[%s1998_s1 + $0x3c8] ss:$16 sps:$4 sm:$0xff]   ;;  %v1523_v6 = vld [vmem:[%s1998_s1 + $0x3e4] ss:$16 sps:$4 sm:$0xff]  }
  0x44   :  { %909 = vmatprep.subr.bf16.mxu0 %v1436_v7  ;;  %1015 = vmatprep.subr.bf16.mxu1 %v1439_v8  ;;  %v1526_v7 = vld [vmem:[%s1998_s1 + $0x3ec] ss:$16 sps:$4 sm:$0xff]   ;;  %v1521_v8 = vld [vmem:[%s1998_s1 + $0x3e0] ss:$16 sps:$4 sm:$0xff]  }
  0x45   :  { %896 = vmatprep.mubr.bf16.mxu0 %v1512_v26  ;;  %1002 = vmatprep.mubr.bf16.mxu1 %v1512_v26 }
  0x47   :  { %910 = vmatpush1.bf16.msra.mxu0 %v1434_v9  ;;  %1016 = vmatpush1.bf16.msra.mxu1 %v1437_v10  ;;  %v1524_v9 = vld [vmem:[%s1998_s1 + $0x3e8] ss:$16 sps:$4 sm:$0xff]  }
  0x48   :  { %911 = vmatprep.subr.bf16.mxu0 %v1442_v11  ;;  %1017 = vmatprep.subr.bf16.mxu1 %v1445_v12  ;;  %v1527_v10 = vld [vmem:[%s1999_s0 + $0x8] ss:$16 sps:$4 sm:$0xff]   ;;  %v1530_v11 = vld [vmem:[%s1999_s0 + $0x2c] ss:$16 sps:$4 sm:$0xff]  }
  0x49   :  { %v1532_v12 = vld [vmem:[%s1999_s0 + $0x28] ss:$16 sps:$4 sm:$0xff]  }
  0x4a   :  { %897 = vmatmul.mubr.bf16.gmra.mrb[4].mxu0 %v1514_v28  ;;  %1003 = vmatmul.mubr.bf16.gmra.mrb[4].mxu1 %v1514_v28 }
  0x4b   :  { %912 = vmatpush1.bf16.msra.mxu0 %v1440_v13  ;;  %1018 = vmatpush1.bf16.msra.mxu1 %v1443_v14 }
  0x4c   :  { %913 = vmatprep.subr.bf16.mxu0 %v1448_v15  ;;  %1019 = vmatprep.subr.bf16.mxu1 %v1451_v16 }
  0x4d   :  { %939 = vmatprep.mubr.bf16.mxu0 %v1529_v35  ;;  %1045 = vmatprep.mubr.bf16.mxu1 %v1529_v35 }
  0x4f   :  { %914 = vmatpush1.bf16.msra.mxu0 %v1446_v17  ;;  %1020 = vmatpush1.bf16.msra.mxu1 %v1449_v18 }
  0x50   :  { %915 = vmatprep.subr.bf16.mxu0 %v1454_v19  ;;  %1021 = vmatprep.subr.bf16.mxu1 %v1457_v20 }
  0x53   :  { %916 = vmatpush1.bf16.msra.mxu0 %v1452_v21  ;;  %1022 = vmatpush1.bf16.msra.mxu1 %v1455_v22 }
  0x54   :  { %917 = vmatprep.subr.bf16.mxu0 %v1460_v23  ;;  %1023 = vmatprep.subr.bf16.mxu1 %v1463_v24 }
  0x57   :  { %918 = vmatpush1.bf16.msra.mxu0 %v1458_v25  ;;  %1024 = vmatpush1.bf16.msra.mxu1 %v1461_v27 }
  0x58   :  { %919 = vmatprep.subr.bf16.mxu0 %v1466_v29  ;;  %1025 = vmatprep.subr.bf16.mxu1 %v1469_v30 }
  0x5b   :  { %920 = vmatpush1.bf16.msra.mxu0 %v1464_v31  ;;  %1026 = vmatpush1.bf16.msra.mxu1 %v1467_v32 }
  0x5c   :  { %921 = vmatprep.subr.bf16.mxu0 %v1472_v33  ;;  %1027 = vmatprep.subr.bf16.mxu1 %v1475_v34 }
  0x5f   :  { %922 = vmatpush1.bf16.msra.mxu0 %v1470_v38  ;;  %1028 = vmatpush1.bf16.msra.mxu1 %v1473_v39 }
  0x60   :  { %923 = vmatprep.subr.bf16.mxu0 %v1478_v40  ;;  %1029 = vmatprep.subr.bf16.mxu1 %v1481_v41 }
  0x63   :  { %924 = vmatpush1.bf16.msra.mxu0 %v1476_v44  ;;  %1030 = vmatpush1.bf16.msra.mxu1 %v1479_v45 }
  0x64   :  { %925 = vmatprep.subr.bf16.mxu0 %v1484_v46  ;;  %1031 = vmatprep.subr.bf16.mxu1 %v1487_v47 }
  0x67   :  { %926 = vmatpush1.bf16.msra.mxu0 %v1482_v48  ;;  %1032 = vmatpush1.bf16.msra.mxu1 %v1485_v49 }
  0x68   :  { %927 = vmatprep.subr.bf16.mxu0 %v1490_v50  ;;  %1033 = vmatprep.subr.bf16.mxu1 %v1493_v51 }
  0x6b   :  { %928 = vmatpush1.bf16.msra.mxu0 %v1488_v52  ;;  %1034 = vmatpush1.bf16.msra.mxu1 %v1491_v53 }
  0x6c   :  { %929 = vmatprep.subr.bf16.mxu0 %v1496_v54  ;;  %1035 = vmatprep.subr.bf16.mxu1 %v1499_v55 }
  0x6f   :  { %930 = vmatpush1.bf16.msra.mxu0 %v1494_v56  ;;  %1036 = vmatpush1.bf16.msra.mxu1 %v1497_v57 }
  0x70   :  { %931 = vmatprep.subr.bf16.mxu0 %v1502_v58  ;;  %1037 = vmatprep.subr.bf16.mxu1 %v1505_v59 }
  0x73   :  { %932 = vmatpush1.bf16.msra.mxu0 %v1500_v60  ;;  %1038 = vmatpush1.bf16.msra.mxu1 %v1503_v61 }
  0x74   :  { %933 = vmatprep.subr.bf16.mxu0 %v1508_v62  ;;  %1039 = vmatprep.subr.bf16.mxu1 %v1511_v63 }
  0x77   :  { %934 = vmatpush1.bf16.msra.mxu0 %v1506_v0  ;;  %1040 = vmatpush1.bf16.msra.mxu1 %v1509_v1 }
  0x78   :  { %935 = vmatprep.subr.bf16.mxu0 %v1517_v2  ;;  %1041 = vmatprep.subr.bf16.mxu1 %v1520_v3 }
  0x7b   :  { %936 = vmatpush1.bf16.msra.mxu0 %v1515_v4  ;;  %1042 = vmatpush1.bf16.msra.mxu1 %v1518_v5 }
  0x7c   :  { %937 = vmatprep.subr.bf16.mxu0 %v1523_v6  ;;  %1043 = vmatprep.subr.bf16.mxu1 %v1526_v7 }
  0x7f   :  { %938 = vmatpush1.bf16.msra.mxu0 %v1521_v8  ;;  %1044 = vmatpush1.bf16.msra.mxu1 %v1524_v9 }
  0x82   :  { %940 = vmatmul.mubr.bf16.vlgmr.msra.gmra.mrb[0].mxu0 %v1527_v10  ;;  %1046 = vmatmul.mubr.bf16.vlgmr.msra.gmra.mrb[0].mxu1 %v1527_v10 }
  0x83   :  { %949 = vmatprep.mubr.bf16.mxu0 %v1530_v11  ;;  %1055 = vmatprep.mubr.bf16.mxu1 %v1530_v11 }
  0x8a   :  { %950 = vmatmul.mubr.bf16.gmra.mrb[4].mxu0 %v1532_v12  ;;  %1056 = vmatmul.mubr.bf16.gmra.mrb[4].mxu1 %v1532_v12 }
  0xa4   :  { %v157_v13 = vpop.permute.xlu0 %156  ;;  %v167_v15 = vpop.permute.xlu1 %166 }
  0xa9   :  { %v162_v14 = vpop.permute.xlu0 %161 }
  0xac   :  { %v172_v42 = vpop.permute.xlu1 %171 }
 0x155   :  { %v941_v16 = vpop.f32.mrb[0].mxu0  ;;  %v1047_v17 = vpop.f32.mrb[0].mxu1 }
 0x156   :  { %v1294_v18 = vadd.f32 %v941_v16, %v157_v13  ;;  %v1302_v19 = vadd.f32 %v1047_v17, %v157_v13  ;;  %v943_v20 = vpop.f32.mrb[1].mxu0  ;;  %v1049_v21 = vpop.f32.mrb[1].mxu1 }
 0x157   :  { %v1295_v22 = vadd.f32 %v943_v20, %v157_v13  ;;  %v1303_v23 = vadd.f32 %v1049_v21, %v157_v13  ;;  %v945_v24 = vpop.f32.mrb[2].mxu0  ;;  %v1051_v25 = vpop.f32.mrb[2].mxu1 }
 0x158   :  { %v1066_v26 = vmax.f32 %v1294_v18, 0.0  ;;  %v1068_v27 = vmax.f32 %v1302_v19, 0.0  ;;  %v1296_v28 = vadd.f32 %v945_v24, %v162_v14  ;;  %v1304_v29 = vadd.f32 %v1051_v25, %v162_v14  ;;  %v947_v30 = vpop.f32.mrb[3].mxu0  ;;  %v1053_v31 = vpop.f32.mrb[3].mxu1 }
 0x159   :  { %v1067_v32 = vmax.f32 %v1295_v22, 0.0  ;;  %v1069_v33 = vmax.f32 %v1303_v23, 0.0  ;;  %v1297_v34 = vadd.f32 %v947_v30, %v162_v14  ;;  %v1305_v35 = vadd.f32 %v1053_v31, %v162_v14 }
 0x15a   :  { %v1070_v36 = vmax.f32 %v1296_v28, 0.0  ;;  %v1072_v37 = vmax.f32 %v1304_v29, 0.0 }
 0x15b   :  { %v1286_v38 = vpack.c.bf16 %v1067_v32, %v1066_v26  ;;  %v1287_v39 = vpack.c.bf16 %v1069_v33, %v1068_v27  ;;  %v1071_v40 = vmax.f32 %v1297_v34, 0.0  ;;  %v1073_v41 = vmax.f32 %v1305_v35, 0.0 }
 0x15d   :  { %1130 = vst [vmem:[%s2001_s3] sm:$0xff] %v1286_v38  ;;  %1131 = vst [vmem:[%s2001_s3 + $0x8] sm:$0xff] %v1287_v39  ;;  %v1288_v43 = vpack.c.bf16 %v1071_v40, %v1070_v36  ;;  %v1289_v44 = vpack.c.bf16 %v1073_v41, %v1072_v37  ;;  %v951_v45 = vpop.f32.mrb[4].mxu0  ;;  %v1057_v46 = vpop.f32.mrb[4].mxu1 }
 0x15e   :  { %v1298_v47 = vadd.f32 %v951_v45, %v167_v15  ;;  %v1306_v48 = vadd.f32 %v1057_v46, %v167_v15  ;;  %v953_v49 = vpop.f32.mrb[5].mxu0  ;;  %v1059_v50 = vpop.f32.mrb[5].mxu1 }
 0x15f   :  { %1132 = vst [vmem:[%s2001_s3 + $0x10] sm:$0xff] %v1288_v43  ;;  %1133 = vst [vmem:[%s2001_s3 + $0x18] sm:$0xff] %v1289_v44  ;;  %v1299_v51 = vadd.f32 %v953_v49, %v167_v15  ;;  %v1307_v52 = vadd.f32 %v1059_v50, %v167_v15  ;;  %v955_v53 = vpop.f32.mrb[6].mxu0  ;;  %v1061_v54 = vpop.f32.mrb[6].mxu1 }
 0x160   :  { %v1074_v55 = vmax.f32 %v1298_v47, 0.0  ;;  %v1076_v56 = vmax.f32 %v1306_v48, 0.0  ;;  %v1300_v57 = vadd.f32 %v955_v53, %v172_v42  ;;  %v1308_v58 = vadd.f32 %v1061_v54, %v172_v42  ;;  %v957_v59 = vpop.f32.mrb[7].mxu0  ;;  %v1063_v60 = vpop.f32.mrb[7].mxu1 }
 0x161   :  { %v1075_v61 = vmax.f32 %v1299_v51, 0.0  ;;  %v1077_v62 = vmax.f32 %v1307_v52, 0.0  ;;  %v1301_v63 = vadd.f32 %v957_v59, %v172_v42  ;;  %v1309_v0 = vadd.f32 %v1063_v60, %v172_v42 }
 0x162   :  { %v1078_v1 = vmax.f32 %v1300_v57, 0.0  ;;  %v1080_v2 = vmax.f32 %v1308_v58, 0.0 }
 0x163   :  { %v1290_v3 = vpack.c.bf16 %v1075_v61, %v1074_v55  ;;  %v1291_v4 = vpack.c.bf16 %v1077_v62, %v1076_v56  ;;  %v1079_v5 = vmax.f32 %v1301_v63, 0.0  ;;  %v1081_v6 = vmax.f32 %v1309_v0, 0.0 }
 0x165   :  { %1134 = vst [vmem:[%s2001_s3 + $0x20] sm:$0xff] %v1290_v3  ;;  %1135 = vst [vmem:[%s2001_s3 + $0x28] sm:$0xff] %v1291_v4  ;;  %v1292_v7 = vpack.c.bf16 %v1079_v5, %v1078_v1  ;;  %v1293_v8 = vpack.c.bf16 %v1081_v6, %v1080_v2 }
 0x167   :  { %1136 = vst [vmem:[%s2001_s3 + $0x30] sm:$0xff] %v1292_v7  ;;  %1137 = vst [vmem:[%s2001_s3 + $0x38] sm:$0xff] %v1293_v8 }

// kernel: beta_vae_b_forward.10
= control target key start
LH: loop header
LB: loop body
LE: loop exit
PB: predicated region body
PF: predicated region fallthrough
CT: control target
= control target key end

     0   :  { %v631_v1 = vmov 0   ;;  %s790_s1 = inlined_call_operand.vmem [shape: bf16[512,128], index: 1, kind: input, shape index: {}]   ;;  %s791_s0 = inlined_call_operand.vmem [shape: bf16[32,512], index: 0, kind: input, shape index: {}]   ;;  %s792_s2 = inlined_call_operand.vmem [shape: f32[32,1], index: 2, kind: input, shape index: {}]   ;;  %s793_s3 = inlined_call_operand.vmem [shape: bf16[32,128], index: 3, kind: output, shape index: {}]  }
   0x1   :  { %v587_v0 = vld [vmem:[%s790_s1 + $0x40] sm:$0xff]   ;;  %585 = vset.pattern.permute.xlu0 %v631_v1  ;;  %586 = vset.pattern.permute.xlu1 %v631_v1  ;;  %v591_v5 = vld [vmem:[%s790_s1 + $0x48] sm:$0xff]   ;;  %v595_v9 = vld [vmem:[%s790_s1 + $0x50] sm:$0xff]  }
   0x2   :  { %v588_v2 = vld [vmem:[%s790_s1 + $0xc0] sm:$0xff]   ;;  %528 = vmatprep.subr.bf16.mxu0 %v587_v0  ;;  %v592_v6 = vld [vmem:[%s790_s1 + $0xc8] sm:$0xff]   ;;  %v596_v10 = vld [vmem:[%s790_s1 + $0xd0] sm:$0xff]  }
   0x3   :  { %v589_v3 = vld [vmem:[%s790_s1] sm:$0xff]   ;;  %556 = vmatprep.subr.bf16.mxu1 %v588_v2  ;;  %v593_v7 = vld [vmem:[%s790_s1 + $0x8] sm:$0xff]   ;;  %v597_v11 = vld [vmem:[%s790_s1 + $0x10] sm:$0xff]  }
   0x4   :  { %v590_v4 = vld [vmem:[%s790_s1 + $0x80] sm:$0xff]   ;;  %529 = vmatpush3.bf16.msra.mxu0 %v589_v3  ;;  %v594_v8 = vld [vmem:[%s790_s1 + $0x88] sm:$0xff]   ;;  %v598_v12 = vld [vmem:[%s790_s1 + $0x90] sm:$0xff]  }
   0x5   :  { %557 = vmatpush3.bf16.msra.mxu1 %v590_v4  ;;  %530 = vmatprep.subr.bf16.mxu0 %v591_v5  ;;  %v599_v13 = vld [vmem:[%s790_s1 + $0x58] sm:$0xff]   ;;  %v603_v17 = vld [vmem:[%s790_s1 + $0x60] sm:$0xff]   ;;  %v607_v21 = vld [vmem:[%s790_s1 + $0x68] sm:$0xff]  }
   0x6   :  { %558 = vmatprep.subr.bf16.mxu1 %v592_v6  ;;  %v600_v14 = vld [vmem:[%s790_s1 + $0xd8] sm:$0xff]   ;;  %v604_v18 = vld [vmem:[%s790_s1 + $0xe0] sm:$0xff]   ;;  %v608_v22 = vld [vmem:[%s790_s1 + $0xe8] sm:$0xff]  }
   0x7   :  { %v601_v15 = vld [vmem:[%s790_s1 + $0x18] sm:$0xff]   ;;  %v605_v19 = vld [vmem:[%s790_s1 + $0x20] sm:$0xff]   ;;  %v609_v23 = vld [vmem:[%s790_s1 + $0x28] sm:$0xff]  }
   0x8   :  { %531 = vmatpush3.bf16.msra.mxu0 %v593_v7  ;;  %v602_v16 = vld [vmem:[%s790_s1 + $0x98] sm:$0xff]   ;;  %v606_v20 = vld [vmem:[%s790_s1 + $0xa0] sm:$0xff]   ;;  %v610_v24 = vld [vmem:[%s790_s1 + $0xa8] sm:$0xff]  }
   0x9   :  { %559 = vmatpush3.bf16.msra.mxu1 %v594_v8  ;;  %532 = vmatprep.subr.bf16.mxu0 %v595_v9  ;;  %v611_v25 = vld [vmem:[%s790_s1 + $0x70] sm:$0xff]   ;;  %v615_v29 = vld [vmem:[%s790_s1 + $0x78] sm:$0xff]   ;;  %v87_v39 = vld [vmem:[%s792_s2] sm:$0xff] }
   0xa   :  { %560 = vmatprep.subr.bf16.mxu1 %v596_v10  ;;  %v612_v26 = vld [vmem:[%s790_s1 + $0xf0] sm:$0xff]   ;;  %v616_v30 = vld [vmem:[%s790_s1 + $0xf8] sm:$0xff]   ;;  %93 = vperm.xlu0 %585, %v87_v39   ;;  %v88_v41 = vld [vmem:[%s792_s2 + $0x8] sm:$0xff] }
   0xb   :  { %v613_v27 = vld [vmem:[%s790_s1 + $0x30] sm:$0xff]   ;;  %v617_v31 = vld [vmem:[%s790_s1 + $0x38] sm:$0xff]  }
   0xc   :  { %533 = vmatpush3.bf16.msra.mxu0 %v597_v11  ;;  %v614_v28 = vld [vmem:[%s790_s1 + $0xb0] sm:$0xff]   ;;  %v618_v32 = vld [vmem:[%s790_s1 + $0xb8] sm:$0xff]  }
   0xd   :  { %561 = vmatpush3.bf16.msra.mxu1 %v598_v12  ;;  %534 = vmatprep.subr.bf16.mxu0 %v599_v13  ;;  %v619_v33 = vld [vmem:[%s791_s0] ss:$16 sps:$4 sm:$0xff]   ;;  %v621_v34 = vld [vmem:[%s791_s0 + $0x4] ss:$16 sps:$4 sm:$0xff]   ;;  %v622_v35 = vld [vmem:[%s791_s0 + $0x8] ss:$16 sps:$4 sm:$0xff]  }
   0xe   :  { %562 = vmatprep.subr.bf16.mxu1 %v600_v14  ;;  %v624_v36 = vld [vmem:[%s791_s0 + $0xc] ss:$16 sps:$4 sm:$0xff]   ;;  %375 = vmatprep.mubr.bf16.mxu0 %v621_v34  ;;  %v625_v37 = vld [vmem:[%s791_s0 + $0x24] ss:$16 sps:$4 sm:$0xff]   ;;  %v629_v42 = vld [vmem:[%s791_s0 + $0x20] ss:$16 sps:$4 sm:$0xff]  }
   0xf   :  { %424 = vmatprep.mubr.bf16.mxu1 %v624_v36  ;;  %v627_v38 = vld [vmem:[%s791_s0 + $0x2c] ss:$16 sps:$4 sm:$0xff]   ;;  %v89_v40 = vld [vmem:[%s792_s2 + $0x10] sm:$0xff]  ;;  %v630_v44 = vld [vmem:[%s791_s0 + $0x28] ss:$16 sps:$4 sm:$0xff]   ;;  %98 = vperm.xlu0 %585, %v88_v41  }
  0x10   :  { %535 = vmatpush3.bf16.msra.mxu0 %v601_v15  ;;  %103 = vperm.xlu1 %586, %v89_v40   ;;  %v90_v43 = vld [vmem:[%s792_s2 + $0x18] sm:$0xff] }
  0x11   :  { %563 = vmatpush3.bf16.msra.mxu1 %v602_v16  ;;  %536 = vmatprep.subr.bf16.mxu0 %v603_v17 }
  0x12   :  { %564 = vmatprep.subr.bf16.mxu1 %v604_v18 }
  0x14   :  { %537 = vmatpush3.bf16.msra.mxu0 %v605_v19  ;;  %108 = vperm.xlu1 %586, %v90_v43  }
  0x15   :  { %565 = vmatpush3.bf16.msra.mxu1 %v606_v20  ;;  %538 = vmatprep.subr.bf16.mxu0 %v607_v21 }
  0x16   :  { %566 = vmatprep.subr.bf16.mxu1 %v608_v22 }
  0x18   :  { %539 = vmatpush3.bf16.msra.mxu0 %v609_v23 }
  0x19   :  { %567 = vmatpush3.bf16.msra.mxu1 %v610_v24  ;;  %540 = vmatprep.subr.bf16.mxu0 %v611_v25 }
  0x1a   :  { %568 = vmatprep.subr.bf16.mxu1 %v612_v26 }
  0x1c   :  { %541 = vmatpush3.bf16.msra.mxu0 %v613_v27 }
  0x1d   :  { %569 = vmatpush3.bf16.msra.mxu1 %v614_v28  ;;  %542 = vmatprep.subr.bf16.mxu0 %v615_v29 }
  0x1e   :  { %570 = vmatprep.subr.bf16.mxu1 %v616_v30 }
  0x20   :  { %543 = vmatpush3.bf16.msra.mxu0 %v617_v31 }
  0x21   :  { %571 = vmatpush3.bf16.msra.mxu1 %v618_v32 }
  0x23   :  { %376 = vmatmul.mubr.bf16.vlgmr.msra.gmra.mrb[0].mxu0 %v619_v33 }
  0x24   :  { %425 = vmatmul.mubr.bf16.vlgmr.msra.gmra.mrb[0].mxu1 %v622_v35  ;;  %383 = vmatprep.mubr.bf16.mxu0 %v625_v37 }
  0x25   :  { %432 = vmatprep.mubr.bf16.mxu1 %v627_v38 }
  0x2b   :  { %384 = vmatmul.mubr.bf16.gmra.mrb[4].mxu0 %v629_v42 }
  0x2c   :  { %433 = vmatmul.mubr.bf16.gmra.mrb[4].mxu1 %v630_v44 }
  0x89   :  { %v94_v45 = vpop.permute.xlu0 %93 }
  0x8e   :  { %v99_v47 = vpop.permute.xlu0 %98 }
  0x8f   :  { %v104_v62 = vpop.permute.xlu1 %103 }
  0x93   :  { %v109_v15 = vpop.permute.xlu1 %108 }
  0xf6   :  { %v544_v46 = vpop.f32.mrb[0].mxu0 }
  0xf7   :  { %v572_v48 = vpop.f32.mrb[0].mxu1  ;;  %v545_v49 = vpop.f32.mrb[1].mxu0 }
  0xf8   :  { %v546_v50 = vadd.f32 %v545_v49, %v544_v46  ;;  %v573_v51 = vpop.f32.mrb[1].mxu1  ;;  %v547_v52 = vpop.f32.mrb[2].mxu0 }
  0xf9   :  { %v574_v53 = vadd.f32 %v573_v51, %v572_v48  ;;  %v575_v54 = vpop.f32.mrb[2].mxu1  ;;  %v548_v55 = vpop.f32.mrb[3].mxu0 }
  0xfa   :  { %v378_v56 = vadd.f32 %v546_v50, %v94_v45  ;;  %v549_v57 = vadd.f32 %v548_v55, %v547_v52  ;;  %v576_v58 = vpop.f32.mrb[3].mxu1 }
  0xfb   :  { %v577_v59 = vadd.f32 %v576_v58, %v575_v54 }
  0xfc   :  { %v427_v60 = vadd.f32 %v574_v53, %v378_v56  ;;  %v381_v61 = vadd.f32 %v549_v57, %v99_v47 }
  0xfe   :  { %v430_v63 = vadd.f32 %v577_v59, %v381_v61  ;;  %v550_v0 = vpop.f32.mrb[4].mxu0  ;;  %v441_v3 = vmax.f32 %v427_v60, 0.0 }
  0xff   :  { %v578_v1 = vpop.f32.mrb[4].mxu1  ;;  %v551_v2 = vpop.f32.mrb[5].mxu0 }
 0x100   :  { %v442_v4 = vmax.f32 %v430_v63, 0.0  ;;  %v552_v5 = vadd.f32 %v551_v2, %v550_v0  ;;  %v579_v6 = vpop.f32.mrb[5].mxu1  ;;  %v553_v7 = vpop.f32.mrb[6].mxu0 }
 0x101   :  { %v580_v8 = vadd.f32 %v579_v6, %v578_v1  ;;  %v581_v9 = vpop.f32.mrb[6].mxu1  ;;  %v554_v10 = vpop.f32.mrb[7].mxu0 }
 0x102   :  { %v520_v11 = vpack.c.bf16 %v442_v4, %v441_v3  ;;  %v386_v12 = vadd.f32 %v552_v5, %v104_v62  ;;  %v555_v13 = vadd.f32 %v554_v10, %v553_v7  ;;  %v582_v14 = vpop.f32.mrb[7].mxu1 }
 0x103   :  { %v583_v16 = vadd.f32 %v582_v14, %v581_v9 }
 0x104   :  { %521 = vst [vmem:[%s793_s3] sm:$0xff] %v520_v11   ;;  %v435_v17 = vadd.f32 %v580_v8, %v386_v12  ;;  %v389_v18 = vadd.f32 %v555_v13, %v109_v15 }
 0x106   :  { %v438_v19 = vadd.f32 %v583_v16, %v389_v18  ;;  %v443_v20 = vmax.f32 %v435_v17, 0.0 }
 0x108   :  { %v444_v21 = vmax.f32 %v438_v19, 0.0 }
 0x10a   :  { %v525_v22 = vpack.c.bf16 %v444_v21, %v443_v20 }
 0x10c   :  { %527 = vst [vmem:[%s793_s3 + $0x8] sm:$0xff] %v525_v22  }

// kernel: beta_vae_b_forward.12
= control target key start
LH: loop header
LB: loop body
LE: loop exit
PB: predicated region body
PF: predicated region fallthrough
CT: control target
= control target key end

     0   :  { %v972_v1 = vmov 0   ;;  %vm407_vm0 = vcmask 261120   ;;  %vm706_vm1 = vcmask 257024   ;;  %s1272_s1 = inlined_call_operand.vmem [shape: bf16[288,32], index: 1, kind: input, shape index: {}]   ;;  %s1273_s0 = inlined_call_operand.vmem [shape: bf16[128,288], index: 0, kind: input, shape index: {}]   ;;  %s1274_s2 = inlined_call_operand.vmem [shape: f32[128,1], index: 2, kind: input, shape index: {}]   ;;  %s1275_s3 = inlined_call_operand.vmem [shape: bf16[128,32], index: 3, kind: output, shape index: {}]  }
   0x1   :  { %v922_v0 = vld [vmem:[%s1272_s1 + $0x40] sm:$0xff]   ;;  %921 = vset.pattern.permute.xlu1 %v972_v1  ;;  %920 = vset.pattern.permute.xlu0 %v972_v1  ;;  %v924_v3 = vld [vmem:[%s1272_s1 + $0x48] sm:$0xff]   ;;  %v926_v5 = vld [vmem:[%s1272_s1 + $0x50] sm:$0xff]  }
   0x2   :  { %v923_v2 = vld [vmem:[%s1272_s1] sm:$0xff]   ;;  %809 = vmatprep.subr.bf16.mxu0 %v922_v0  ;;  %903 = vmatprep.subr.bf16.mxu1 %v922_v0  ;;  %v925_v4 = vld [vmem:[%s1272_s1 + $0x8] sm:$0xff]   ;;  %v927_v6 = vld [vmem:[%s1272_s1 + $0x10] sm:$0xff]  }
   0x3   :  { %810 = vmatpush3.bf16.msra.mxu0 %v923_v2  ;;  %911 = vmatpush3.bf16.msra.mxu1 %v923_v2  ;;  %v928_v7 = vld [vmem:[%s1272_s1 + $0x58] sm:$0xff]   ;;  %v930_v9 = vld [vmem:[%s1272_s1 + $0x60] sm:$0xff]   ;;  %v932_v11 = vld [vmem:[%s1272_s1 + $0x68] sm:$0xff]  }
   0x4   :  { %811 = vmatprep.subr.bf16.mxu0 %v924_v3  ;;  %904 = vmatprep.subr.bf16.mxu1 %v924_v3  ;;  %v929_v8 = vld [vmem:[%s1272_s1 + $0x18] sm:$0xff]   ;;  %v931_v10 = vld [vmem:[%s1272_s1 + $0x20] sm:$0xff]   ;;  %v933_v14 = vld [vmem:[%s1272_s1 + $0x28] sm:$0xff]  }
   0x5   :  { %v940_v12 = vld [vmem:[%s1273_s0 + $0x4] ss:$12 sps:$4 sm:$0xff]   ;;  %v943_v13 = vld [vmem:[%s1273_s0 + $0x94] ss:$12 sps:$4 sm:$0xff]   ;;  %v936_v17 = vld [vmem:[%s1272_s1 + $0x78] sm:$0xff]  }
   0x6   :  { %v934_v15 = vld [vmem:[%s1272_s1 + $0x70] sm:$0xff]   ;;  %464 = vmatprep.mubr.bf16.mxu0 %v940_v12  ;;  %512 = vmatprep.mubr.bf16.mxu1 %v943_v13  ;;  %v937_v18 = vld [vmem:[%s1272_s1 + $0x38] sm:$0xff]   ;;  %v938_v19 = vld [vmem:[%s1273_s0] ss:$12 sps:$4 sm:$0xff]  }
   0x7   :  { %812 = vmatpush3.bf16.msra.mxu0 %v925_v4  ;;  %912 = vmatpush3.bf16.msra.mxu1 %v925_v4  ;;  %v935_v16 = vld [vmem:[%s1272_s1 + $0x30] sm:$0xff]   ;;  %v944_v20 = vld [vmem:[%s1272_s1 + $0x80] sm:$0xff]   ;;  %v945_v22 = vld [vmem:[%s1273_s0 + $0x1c] ss:$12 sps:$4 sm:$0xff]  }
   0x8   :  { %813 = vmatprep.subr.bf16.mxu0 %v926_v5  ;;  %905 = vmatprep.subr.bf16.mxu1 %v926_v5  ;;  %v941_v21 = vld [vmem:[%s1273_s0 + $0x90] ss:$12 sps:$4 sm:$0xff]   ;;  %v947_v23 = vld [vmem:[%s1273_s0 + $0xac] ss:$12 sps:$4 sm:$0xff]   ;;  %v83_v26 = vld [vmem:[%s1274_s2] sm:$0xff] }
   0x9   :  { %v951_v24 = vld [vmem:[%s1272_s1 + $0x88] sm:$0xff]   ;;  %v85_v25 = vld [vmem:[%s1274_s2 + $0x10] sm:$0xff]  ;;  %v949_v27 = vld [vmem:[%s1273_s0 + $0x18] ss:$12 sps:$4 sm:$0xff]   ;;  %101 = vperm.xlu0 %920, %v83_v26  }
   0xa   :  { %111 = vperm.xlu1 %921, %v85_v25   ;;  %v950_v28 = vld [vmem:[%s1273_s0 + $0xa8] ss:$12 sps:$4 sm:$0xff]   ;;  %v86_v29 = vld [vmem:[%s1274_s2 + $0x18] sm:$0xff]  ;;  %v87_v34 = vld [vmem:[%s1274_s2 + $0x20] sm:$0xff] }
   0xb   :  { %814 = vmatpush3.bf16.msra.mxu0 %v927_v6  ;;  %913 = vmatpush3.bf16.msra.mxu1 %v927_v6  ;;  %v952_v30 = vld [vmem:[%s1273_s0 + $0x34] ss:$12 sps:$4 sm:$0xff]   ;;  %v84_v32 = vld [vmem:[%s1274_s2 + $0x8] sm:$0xff]  ;;  %v955_v35 = vld [vmem:[%s1273_s0 + $0x30] ss:$12 sps:$4 sm:$0xff]  }
   0xc   :  { %815 = vmatprep.subr.bf16.mxu0 %v928_v7  ;;  %906 = vmatprep.subr.bf16.mxu1 %v928_v7  ;;  %v954_v31 = vld [vmem:[%s1273_s0 + $0x8] ss:$12 sps:$4 sm:$0xff]   ;;  %v956_v36 = vld [vmem:[%s1273_s0 + $0x20] ss:$12 sps:$4 sm:$0xff]   ;;  %v90_v37 = vld [vmem:[%s1274_s2 + $0x38] sm:$0xff] }
   0xd   :  { %v88_v33 = vld [vmem:[%s1274_s2 + $0x28] sm:$0xff]  ;;  %106 = vperm.xlu0 %920, %v84_v32   ;;  %v959_v39 = vld [vmem:[%s1273_s0 + $0x38] ss:$12 sps:$4 sm:$0xff]   ;;  %v89_v40 = vld [vmem:[%s1274_s2 + $0x30] sm:$0xff] }
   0xe   :  { %116 = vperm.xlu1 %921, %v86_v29   ;;  %v957_v38 = vld [vmem:[%s1273_s0 + $0x4c] ss:$12 sps:$4 sm:$0xff]   ;;  %v91_v42 = vld [vmem:[%s1274_s2 + $0x40] sm:$0xff]  ;;  %v960_v43 = vld [vmem:[%s1273_s0 + $0x48] ss:$12 sps:$4 sm:$0xff]  }
   0xf   :  { %816 = vmatpush3.bf16.msra.mxu0 %v929_v8  ;;  %914 = vmatpush3.bf16.msra.mxu1 %v929_v8  ;;  %v92_v41 = vld [vmem:[%s1274_s2 + $0x48] sm:$0xff]  ;;  %v961_v44 = vld [vmem:[%s1273_s0 + $0x50] ss:$12 sps:$4 sm:$0xff]   ;;  %v95_v50 = vld [vmem:[%s1274_s2 + $0x60] sm:$0xff] }
  0x10   :  { %817 = vmatprep.subr.bf16.mxu0 %v930_v9  ;;  %907 = vmatprep.subr.bf16.mxu1 %v930_v9  ;;  %v94_v45 = vld [vmem:[%s1274_s2 + $0x58] sm:$0xff]  ;;  %v962_v46 = vld [vmem:[%s1273_s0 + $0x64] ss:$12 sps:$4 sm:$0xff]   ;;  %v964_v47 = vld [vmem:[%s1273_s0 + $0x68] ss:$12 sps:$4 sm:$0xff]  }
  0x11   :  { %121 = vperm.xlu0 %920, %v87_v34   ;;  %v93_v48 = vld [vmem:[%s1274_s2 + $0x50] sm:$0xff]  ;;  %v96_v49 = vld [vmem:[%s1274_s2 + $0x68] sm:$0xff]  ;;  %v98_v53 = vld [vmem:[%s1274_s2 + $0x78] sm:$0xff] }
  0x12   :  { %126 = vperm.xlu1 %921, %v88_v33   ;;  %v965_v51 = vld [vmem:[%s1273_s0 + $0x60] ss:$12 sps:$4 sm:$0xff]   ;;  %v967_v54 = vld [vmem:[%s1273_s0 + $0x7c] ss:$12 sps:$4 sm:$0xff]   ;;  %v969_v55 = vld [vmem:[%s1273_s0 + $0x98] ss:$12 sps:$4 sm:$0xff]  }
  0x13   :  { %818 = vmatpush3.bf16.msra.mxu0 %v931_v10  ;;  %915 = vmatpush3.bf16.msra.mxu1 %v931_v10  ;;  %v966_v52 = vld [vmem:[%s1273_s0 + $0x80] ss:$12 sps:$4 sm:$0xff]   ;;  %v97_v56 = vld [vmem:[%s1274_s2 + $0x70] sm:$0xff]  ;;  %v970_v57 = vld [vmem:[%s1273_s0 + $0x78] ss:$12 sps:$4 sm:$0xff]  }
  0x14   :  { %819 = vmatprep.subr.bf16.mxu0 %v932_v11  ;;  %908 = vmatprep.subr.bf16.mxu1 %v932_v11  ;;  %v971_v58 = vld [vmem:[%s1273_s0 + $0xb0] ss:$12 sps:$4 sm:$0xff]  }
  0x15   :  { %131 = vperm.xlu0 %920, %v89_v40  }
  0x16   :  { %136 = vperm.xlu1 %921, %v90_v37  }
  0x17   :  { %820 = vmatpush3.bf16.msra.mxu0 %v933_v14  ;;  %916 = vmatpush3.bf16.msra.mxu1 %v933_v14 }
  0x18   :  { %821 = vmatprep.subr.bf16.mxu0 %v934_v15  ;;  %909 = vmatprep.subr.bf16.mxu1 %v934_v15 }
  0x19   :  { %141 = vperm.xlu0 %920, %v91_v42  }
  0x1a   :  { %146 = vperm.xlu1 %921, %v92_v41  }
  0x1b   :  { %822 = vmatpush3.bf16.msra.mxu0 %v935_v16  ;;  %917 = vmatpush3.bf16.msra.mxu1 %v935_v16 }
  0x1c   :  { %823 = vmatprep.subr.bf16.mxu0 %v936_v17  ;;  %910 = vmatprep.subr.bf16.mxu1 %v936_v17 }
  0x1d   :  { %151 = vperm.xlu0 %920, %v93_v48  }
  0x1e   :  { %156 = vperm.xlu1 %921, %v94_v45  }
  0x1f   :  { %824 = vmatpush3.bf16.msra.mxu0 %v937_v18  ;;  %918 = vmatpush3.bf16.msra.mxu1 %v937_v18 }
  0x20   :  { %883 = vmatprep.subr.bf16.mxu1 %v944_v20 }
  0x21   :  { %161 = vperm.xlu0 %920, %v95_v50  }
  0x22   :  { %465 = vmatmul.mubr.bf16.vlgmr.msra.gmra.mrb[0].mxu0 %v938_v19  ;;  %513 = vmatmul.mubr.bf16.vlgmr.msra.gmra.mrb[0].mxu1 %v941_v21 }
  0x23   :  { %884 = vmatpush3.bf16.msra.mxu1 %v944_v20  ;;  %472 = vmatprep.mubr.bf16.mxu0 %v945_v22 }
  0x24   :  { %520 = vmatprep.mubr.bf16.mxu1 %v947_v23  ;;  %885 = vmatprep.subr.bf16.mxu1 %v951_v24 }
  0x25   :  { %166 = vperm.xlu1 %921, %v96_v49   ;;  %171 = vperm.xlu0 %920, %v97_v56  }
  0x27   :  { %886 = vmatpush3.bf16.msra.mxu1 %v951_v24 }
  0x29   :  { %176 = vperm.xlu1 %921, %v98_v53  }
  0x2a   :  { %473 = vmatmul.mubr.bf16.gmra.mrb[4].mxu0 %v949_v27  ;;  %521 = vmatmul.mubr.bf16.gmra.mrb[4].mxu1 %v950_v28 }
  0x2b   :  { %480 = vmatprep.mubr.bf16.mxu0 %v952_v30  ;;  %887 = vmatprep.mubr.msk.bf16.mxu1 %vm407_vm0, %v954_v31 }
  0x32   :  { %481 = vmatmul.mubr.bf16.gmra.mrb[8].mxu0 %v955_v35  ;;  %888 = vmatmul.mubr.msk.bf16.vlgmr.msra.gmra.mrb[8].mxu1 %vm407_vm0, %v956_v36 }
  0x33   :  { %488 = vmatprep.mubr.bf16.mxu0 %v957_v38  ;;  %891 = vmatprep.mubr.msk.bf16.mxu1 %vm407_vm0, %v959_v39 }
  0x3a   :  { %489 = vmatmul.mubr.bf16.gmra.mrb[12].mxu0 %v960_v43  ;;  %892 = vmatmul.mubr.msk.bf16.gmra.mrb[12].mxu1 %vm407_vm0, %v961_v44 }
  0x3b   :  { %496 = vmatprep.mubr.bf16.mxu0 %v962_v46  ;;  %895 = vmatprep.mubr.msk.bf16.mxu1 %vm407_vm0, %v964_v47 }
  0x42   :  { %497 = vmatmul.mubr.bf16.gmra.mrb[16].mxu0 %v965_v51  ;;  %896 = vmatmul.mubr.msk.bf16.gmra.mrb[16].mxu1 %vm407_vm0, %v966_v52 }
  0x43   :  { %504 = vmatprep.mubr.bf16.mxu0 %v967_v54  ;;  %899 = vmatprep.mubr.msk.bf16.mxu1 %vm407_vm0, %v969_v55 }
  0x4a   :  { %505 = vmatmul.mubr.bf16.gmra.mrb[20].mxu0 %v970_v57  ;;  %900 = vmatmul.mubr.msk.bf16.gmra.mrb[20].mxu1 %vm407_vm0, %v971_v58 }
  0x88   :  { %v102_v60 = vpop.permute.xlu0 %101 }
  0x89   :  { %v112_v59 = vpop.permute.xlu1 %111 }
  0x8c   :  { %v107_v62 = vpop.permute.xlu0 %106 }
  0x8d   :  { %v117_v61 = vpop.permute.xlu1 %116 }
  0x90   :  { %v1177_v0 = vpop.permute.xlu0 %121 }
  0x91   :  { %v1175_v63 = vpop.permute.xlu1 %126 }
  0x94   :  { %v132_v14 = vpop.permute.xlu0 %131 }
  0x95   :  { %v1183_v13 = vpop.permute.xlu1 %136 }
  0x98   :  { %v1191_v28 = vpop.permute.xlu0 %141 }
  0x99   :  { %v1189_v27 = vpop.permute.xlu1 %146 }
  0x9c   :  { %v1195_v54 = vpop.permute.xlu0 %151 }
  0x9d   :  { %v1193_v53 = vpop.permute.xlu1 %156 }
  0xf5   :  { %v825_v1 = vpop.f32.mrb[0].mxu0  ;;  %v861_v2 = vpop.f32.mrb[0].mxu1 }
  0xf6   :  { %v826_v3 = vpop.f32.mrb[1].mxu0  ;;  %v862_v4 = vpop.f32.mrb[1].mxu1 }
  0xf7   :  { %v827_v5 = vadd.f32 %v826_v3, %v825_v1  ;;  %v828_v6 = vpop.f32.mrb[2].mxu0  ;;  %v1179_v7 = vadd.f32 %v862_v4, %v861_v2  ;;  %v864_v8 = vpop.f32.mrb[2].mxu1 }
  0xf8   :  { %v829_v9 = vpop.f32.mrb[3].mxu0  ;;  %v865_v10 = vpop.f32.mrb[3].mxu1 }
  0xf9   :  { %v830_v11 = vadd.f32 %v829_v9, %v828_v6  ;;  %v1181_v12 = vadd.f32 %v865_v10, %v864_v8  ;;  %v467_v32 = vadd.f32 %v827_v5, %v102_v60 }
  0xfb   :  { %v470_v41 = vadd.f32 %v830_v11, %v107_v62 }
  0xfd   :  { %v831_v15 = vpop.f32.mrb[4].mxu0  ;;  %v867_v16 = vpop.f32.mrb[4].mxu1 }
  0xfe   :  { %v832_v17 = vpop.f32.mrb[5].mxu0  ;;  %v868_v18 = vpop.f32.mrb[5].mxu1 }
  0xff   :  { %v833_v19 = vadd.f32 %v832_v17, %v831_v15  ;;  %v834_v20 = vpop.f32.mrb[6].mxu0  ;;  %v1185_v21 = vadd.f32 %v868_v18, %v867_v16  ;;  %v870_v22 = vpop.f32.mrb[6].mxu1 }
 0x100   :  { %v835_v23 = vpop.f32.mrb[7].mxu0  ;;  %v871_v24 = vpop.f32.mrb[7].mxu1 }
 0x101   :  { %v836_v25 = vadd.f32 %v835_v23, %v834_v20  ;;  %v1187_v26 = vadd.f32 %v871_v24, %v870_v22  ;;  %v475_v29 = vadd.f32 %v833_v19, %v112_v59  ;;  %v167_v18 = vpop.permute.xlu1 %166  ;;  %v162_v19 = vpop.permute.xlu0 %161 }
 0x103   :  { %v478_v36 = vadd.f32 %v836_v25, %v117_v61 }
 0x105   :  { %v837_v30 = vpop.f32.mrb[8].mxu0  ;;  %v889_v31 = vpop.f32.mrb[8].mxu1 }
 0x106   :  { %v572_v33 = vadd.f32 %v889_v31, %v475_v29  ;;  %v838_v34 = vpop.f32.mrb[9].mxu0  ;;  %v563_v35 = vpop.f32.mrb[9].mxu1 }
 0x107   :  { %v839_v37 = vadd.f32 %v838_v34, %v837_v30  ;;  %v564_v38 = vadd.f32 %v563_v35, %v467_v32  ;;  %v840_v39 = vpop.f32.mrb[10].mxu0  ;;  %v890_v40 = vpop.f32.mrb[10].mxu1 }
 0x108   :  { %v628_v42 = vmax.f32 %v572_v33, 0.0  ;;  %v575_v43 = vadd.f32 %v890_v40, %v478_v36  ;;  %v841_v44 = vpop.f32.mrb[11].mxu0  ;;  %v566_v45 = vpop.f32.mrb[11].mxu1 }
 0x109   :  { %v626_v46 = vmax.f32 %v564_v38, 0.0  ;;  %v842_v47 = vadd.f32 %v841_v44, %v840_v39  ;;  %v567_v48 = vadd.f32 %v566_v45, %v470_v41  ;;  %v483_v59 = vadd.f32 %v839_v37, %v1177_v0  ;;  %v172_v35 = vpop.permute.xlu0 %171  ;;  %v177_v39 = vpop.permute.xlu1 %176 }
 0x10a   :  { %v795_v49 = vpack.c.bf16 %v628_v42, %v628_v42  ;;  %v629_v50 = vmax.f32 %v575_v43, 0.0  ;;  %v523_v42 = vadd.f32 %v1185_v21, %v172_v35  ;;  %v515_v43 = vadd.f32 %v1179_v7, %v162_v19 }
 0x10b   :  { %v793_v51 = vpack.c.bf16 %v626_v46, %v626_v46  ;;  %v627_v52 = vmax.f32 %v567_v48, 0.0  ;;  %v486_v4 = vadd.f32 %v842_v47, %v1175_v63 }
 0x10c   :  { %709 = vst.msk [vmem:[%s1275_s3 + $0x8] sm:$0xf] %vm706_vm1, %v795_v49  ;;  %v796_v55 = vpack.c.bf16 %v629_v50, %v629_v50 }
 0x10d   :  { %707 = vst.msk [vmem:[%s1275_s3] sm:$0xf] %vm706_vm1, %v793_v51  ;;  %v794_v56 = vpack.c.bf16 %v627_v52, %v627_v52  ;;  %v843_v57 = vpop.f32.mrb[12].mxu0  ;;  %v893_v58 = vpop.f32.mrb[12].mxu1 }
 0x10e   :  { %710 = vst.msk [vmem:[%s1275_s3 + $0xc] sm:$0xf] %vm706_vm1, %v796_v55  ;;  %v844_v60 = vpop.f32.mrb[13].mxu0  ;;  %v579_v61 = vpop.f32.mrb[13].mxu1 }
 0x10f   :  { %708 = vst.msk [vmem:[%s1275_s3 + $0x4] sm:$0xf] %vm706_vm1, %v794_v56  ;;  %v845_v62 = vadd.f32 %v844_v60, %v843_v57  ;;  %v580_v1 = vadd.f32 %v579_v61, %v483_v59  ;;  %v846_v2 = vpop.f32.mrb[14].mxu0  ;;  %v894_v3 = vpop.f32.mrb[14].mxu1 }
 0x110   :  { %v847_v5 = vpop.f32.mrb[15].mxu0  ;;  %v582_v0 = vpop.f32.mrb[15].mxu1 }
 0x111   :  { %v491_v6 = vadd.f32 %v845_v62, %v132_v14  ;;  %v630_v8 = vmax.f32 %v580_v1, 0.0  ;;  %v848_v9 = vadd.f32 %v847_v5, %v846_v2  ;;  %v583_v10 = vadd.f32 %v582_v0, %v486_v4 }
 0x113   :  { %v588_v11 = vadd.f32 %v893_v58, %v491_v6  ;;  %v797_v15 = vpack.c.bf16 %v630_v8, %v630_v8  ;;  %v494_v16 = vadd.f32 %v848_v9, %v1183_v13  ;;  %v631_v17 = vmax.f32 %v583_v10, 0.0 }
 0x115   :  { %v632_v20 = vmax.f32 %v588_v11, 0.0  ;;  %711 = vst.msk [vmem:[%s1275_s3 + $0x10] sm:$0xf] %vm706_vm1, %v797_v15  ;;  %v591_v63 = vadd.f32 %v894_v3, %v494_v16  ;;  %v798_v22 = vpack.c.bf16 %v631_v17, %v631_v17  ;;  %v849_v23 = vpop.f32.mrb[16].mxu0  ;;  %v897_v14 = vpop.f32.mrb[16].mxu1 }
 0x116   :  { %v850_v24 = vpop.f32.mrb[17].mxu0  ;;  %v595_v25 = vpop.f32.mrb[17].mxu1 }
 0x117   :  { %v799_v29 = vpack.c.bf16 %v632_v20, %v632_v20  ;;  %v633_v30 = vmax.f32 %v591_v63, 0.0  ;;  %712 = vst.msk [vmem:[%s1275_s3 + $0x14] sm:$0xf] %vm706_vm1, %v798_v22  ;;  %v851_v13 = vadd.f32 %v850_v24, %v849_v23  ;;  %v852_v31 = vpop.f32.mrb[18].mxu0  ;;  %v898_v32 = vpop.f32.mrb[18].mxu1 }
 0x118   :  { %v853_v33 = vpop.f32.mrb[19].mxu0  ;;  %v598_v34 = vpop.f32.mrb[19].mxu1 }
 0x119   :  { %713 = vst.msk [vmem:[%s1275_s3 + $0x18] sm:$0xf] %vm706_vm1, %v799_v29  ;;  %v800_v36 = vpack.c.bf16 %v633_v30, %v633_v30  ;;  %v499_v37 = vadd.f32 %v851_v13, %v1191_v28  ;;  %v854_v38 = vadd.f32 %v853_v33, %v852_v31  ;;  %v526_v28 = vadd.f32 %v1187_v26, %v177_v39 }
 0x11b   :  { %714 = vst.msk [vmem:[%s1275_s3 + $0x1c] sm:$0xf] %vm706_vm1, %v800_v36  ;;  %v596_v40 = vadd.f32 %v595_v25, %v499_v37  ;;  %v502_v41 = vadd.f32 %v854_v38, %v1189_v27  ;;  %v518_v27 = vadd.f32 %v1181_v12, %v167_v18 }
 0x11d   :  { %v634_v44 = vmax.f32 %v596_v40, 0.0  ;;  %v599_v45 = vadd.f32 %v598_v34, %v502_v41  ;;  %v855_v46 = vpop.f32.mrb[20].mxu0  ;;  %v901_v47 = vpop.f32.mrb[20].mxu1 }
 0x11e   :  { %v620_v48 = vadd.f32 %v901_v47, %v523_v42  ;;  %v856_v49 = vpop.f32.mrb[21].mxu0  ;;  %v611_v50 = vpop.f32.mrb[21].mxu1 }
 0x11f   :  { %v801_v51 = vpack.c.bf16 %v634_v44, %v634_v44  ;;  %v635_v52 = vmax.f32 %v599_v45, 0.0  ;;  %v857_v55 = vadd.f32 %v856_v49, %v855_v46  ;;  %v612_v56 = vadd.f32 %v611_v50, %v515_v43  ;;  %v858_v57 = vpop.f32.mrb[22].mxu0  ;;  %v902_v58 = vpop.f32.mrb[22].mxu1 }
 0x120   :  { %v640_v21 = vmax.f32 %v620_v48, 0.0  ;;  %v623_v59 = vadd.f32 %v902_v58, %v526_v28  ;;  %v859_v7 = vpop.f32.mrb[23].mxu0  ;;  %v614_v60 = vpop.f32.mrb[23].mxu1 }
 0x121   :  { %715 = vst.msk [vmem:[%s1275_s3 + $0x20] sm:$0xf] %vm706_vm1, %v801_v51  ;;  %v802_v26 = vpack.c.bf16 %v635_v52, %v635_v52  ;;  %v507_v61 = vadd.f32 %v857_v55, %v1195_v54  ;;  %v638_v62 = vmax.f32 %v612_v56, 0.0  ;;  %v860_v1 = vadd.f32 %v859_v7, %v858_v57 }
 0x122   :  { %v807_v2 = vpack.c.bf16 %v640_v21, %v640_v21  ;;  %v641_v3 = vmax.f32 %v623_v59, 0.0  ;;  %v615_v4 = vadd.f32 %v614_v60, %v518_v27 }
 0x123   :  { %716 = vst.msk [vmem:[%s1275_s3 + $0x24] sm:$0xf] %vm706_vm1, %v802_v26  ;;  %v604_v12 = vadd.f32 %v897_v14, %v507_v61  ;;  %v805_v5 = vpack.c.bf16 %v638_v62, %v638_v62  ;;  %v510_v0 = vadd.f32 %v860_v1, %v1193_v53 }
 0x124   :  { %721 = vst.msk [vmem:[%s1275_s3 + $0x38] sm:$0xf] %vm706_vm1, %v807_v2  ;;  %v808_v54 = vpack.c.bf16 %v641_v3, %v641_v3  ;;  %v639_v6 = vmax.f32 %v615_v4, 0.0 }
 0x125   :  { %v636_v8 = vmax.f32 %v604_v12, 0.0  ;;  %719 = vst.msk [vmem:[%s1275_s3 + $0x30] sm:$0xf] %vm706_vm1, %v805_v5  ;;  %v607_v9 = vadd.f32 %v898_v32, %v510_v0 }
 0x126   :  { %722 = vst.msk [vmem:[%s1275_s3 + $0x3c] sm:$0xf] %vm706_vm1, %v808_v54  ;;  %v806_v53 = vpack.c.bf16 %v639_v6, %v639_v6 }
 0x127   :  { %v803_v10 = vpack.c.bf16 %v636_v8, %v636_v8  ;;  %v637_v11 = vmax.f32 %v607_v9, 0.0 }
 0x128   :  { %720 = vst.msk [vmem:[%s1275_s3 + $0x34] sm:$0xf] %vm706_vm1, %v806_v53 }
 0x129   :  { %717 = vst.msk [vmem:[%s1275_s3 + $0x28] sm:$0xf] %vm706_vm1, %v803_v10  ;;  %v804_v15 = vpack.c.bf16 %v637_v11, %v637_v11 }
 0x12b   :  { %718 = vst.msk [vmem:[%s1275_s3 + $0x2c] sm:$0xf] %vm706_vm1, %v804_v15 }

// kernel: beta_vae_b_forward.11
= control target key start
LH: loop header
LB: loop body
LE: loop exit
PB: predicated region body
PF: predicated region fallthrough
CT: control target
= control target key end

     0   :  { %s8481_s0 = inlined_call_operand.vmem [shape: bf16[16,2,512], index: 0, kind: input, shape index: {}]   ;;  %s8482_s1 = inlined_call_operand.vmem [shape: f32[2,10], index: 1, kind: input, shape index: {}]   ;;  %s8483_s2 = inlined_call_operand.vmem [shape: bf16[512,32], index: 2, kind: input, shape index: {}]   ;;  %s8484_s3 = inlined_call_operand.vmem [shape: f32[1,32], index: 3, kind: input, shape index: {}]   ;;  %s8485_s4 = inlined_call_operand.vmem [shape: bf16[16,32,256], index: 4, kind: input, shape index: {}]   ;;  %s8486_s5 = inlined_call_operand.vmem [shape: f32[1,256], index: 5, kind: input, shape index: {}]   ;;  %s8487_s6 = inlined_call_operand.vmem [shape: bf16[256,256], index: 6, kind: input, shape index: {}]   ;;  %s8488_s7 = inlined_call_operand.vmem [shape: f32[1,256], index: 7, kind: input, shape index: {}]   ;;  %s8489_s8 = inlined_call_operand.vmem [shape: bf16[256,10], index: 8, kind: input, shape index: {}]   ;;  %s8490_s9 = inlined_call_operand.vmem [shape: f32[1,10], index: 9, kind: input, shape index: {}]   ;;  %s8491_s10 = inlined_call_operand.vmem [shape: bf16[256,10], index: 10, kind: input, shape index: {}]   ;;  %s8492_s11 = inlined_call_operand.vmem [shape: f32[1,10], index: 11, kind: input, shape index: {}]   ;;  %s8493_s12 = inlined_call_operand.vmem [shape: bf16[10,256], index: 12, kind: input, shape index: {}]   ;;  %s8494_s13 = inlined_call_operand.vmem [shape: f32[1,256], index: 13, kind: input, shape index: {}]   ;;  %s8495_s14 = inlined_call_operand.vmem [shape: bf16[256,256], index: 14, kind: input, shape index: {}]   ;;  %s8496_s15 = inlined_call_operand.vmem [shape: f32[1,256], index: 15, kind: input, shape index: {}]   ;;  %s8497_s16 = inlined_call_operand.vmem [shape: bf16[256,512], index: 16, kind: input, shape index: {}]   ;;  %s8498_s17 = inlined_call_operand.vmem [shape: f32[1,512], index: 17, kind: input, shape index: {}]   ;;  %s8499_s18 = inlined_call_operand.hbm [shape: f32[2,10], index: 18, kind: output, shape index: {0}]   ;;  %s8500_s19 = inlined_call_operand.hbm [shape: f32[2,10], index: 19, kind: output, shape index: {1}]   ;;  %s8501_s20 = inlined_call_operand.vmem [shape: bf16[2,512], index: 20, kind: output, shape index: {2}]  }
   0x1   :  { %8506 = sst [smem:[#allocation8_spill]] %s8481_s0 }
   0x2   :  { %8507 = sst [smem:[#allocation9_spill]] %s8482_s1 }
   0x3   :  { %8508 = sst [smem:[#allocation10_spill]] %s8483_s2 }
   0x4   :  { %8509 = sst [smem:[#allocation11_spill]] %s8484_s3 }
   0x5   :  { %8510 = sst [smem:[#allocation12_spill]] %s8485_s4 }
   0x6   :  { %26 = vsyncpa [#allocation3], 0  ;;  %s8511_s23 = sld [smem:[#allocation10_spill]]  ;;  %v150_v9 = vlaneseq  ;;  %s8512_s29 = sld [smem:[#allocation8_spill]]  ;;  %v6438_v13 = vmov 1966171168  }
   0x7   :  { %v148_v14 = vunpack.c.l.s4 %v6438_v13 }
   0x8   :  { %v6623_v15 = vshrl.u32 %v150_v9, 7 }
   0x9   :  { %v149_v18 = vunpack.c.0.s8 %v148_v14 }
   0xb   :  { %v6640_v20 = vsub.s32 %v149_v18, %v6623_v15 }
   0xc   :  { %v6550_v0 = vld [vmem:[%s8511_s23 + $0x40] sm:$0xff]   ;;  %v6561_v2 = vld [vmem:[%s8511_s23 + $0x48] sm:$0xff]   ;;  %v6575_v4 = vld [vmem:[%s8511_s23 + $0x50] sm:$0xff]  }
   0xd   :  { %v6555_v1 = vld [vmem:[%s8511_s23] sm:$0xff]   ;;  %5154 = vmatprep.subr.bf16.mxu0 %v6550_v0  ;;  %5198 = vmatprep.subr.bf16.mxu1 %v6550_v0  ;;  %v6568_v3 = vld [vmem:[%s8511_s23 + $0x8] sm:$0xff]   ;;  %v6582_v5 = vld [vmem:[%s8511_s23 + $0x10] sm:$0xff]  }
   0xe   :  { %5155 = vmatpush3.bf16.msra.mxu0 %v6555_v1  ;;  %5199 = vmatpush3.bf16.msra.mxu1 %v6555_v1  ;;  %v6589_v6 = vld [vmem:[%s8511_s23 + $0x58] sm:$0xff]   ;;  %v6603_v8 = vld [vmem:[%s8511_s23 + $0x60] sm:$0xff]   ;;  %v6615_v11 = vld [vmem:[%s8511_s23 + $0x68] sm:$0xff]  }
   0xf   :  { %5156 = vmatprep.subr.bf16.mxu0 %v6561_v2  ;;  %5200 = vmatprep.subr.bf16.mxu1 %v6561_v2  ;;  %v6596_v7 = vld [vmem:[%s8511_s23 + $0x18] sm:$0xff]   ;;  %v6609_v10 = vld [vmem:[%s8511_s23 + $0x20] sm:$0xff]   ;;  %v6629_v16 = vld [vmem:[%s8511_s23 + $0x28] sm:$0xff]  }
  0x10   :  { %v4782_v12 = vld.sshfl [vmem:[%s8512_s29] sm:$0x33 pattern:$0x75316420]  ;;  %v6636_v19 = vld [vmem:[%s8511_s23 + $0x70] sm:$0xff]   ;;  %v6654_v23 = vld [vmem:[%s8511_s23 + $0x78] sm:$0xff]  }
  0x11   :  { %v146_v17 = vcombine.high %v4782_v12, %v4782_v12  ;;  %v6646_v21 = vld [vmem:[%s8511_s23 + $0x30] sm:$0xff]   ;;  %v6661_v24 = vld [vmem:[%s8511_s23 + $0x38] sm:$0xff]   ;;  %v6668_v25 = vld [vmem:[%s8511_s23 + $0xc0] sm:$0xff]   ;;  %v153_v26 = vrot.slane %v4782_v12, %v6640_v20 }
  0x12   :  { %5157 = vmatpush3.bf16.msra.mxu0 %v6568_v3  ;;  %5201 = vmatpush3.bf16.msra.mxu1 %v6568_v3  ;;  %v6676_v28 = vld [vmem:[%s8511_s23 + $0x80] sm:$0xff]   ;;  %v6683_v29 = vld [vmem:[%s8511_s23 + $0xc8] sm:$0xff]   ;;  %v6694_v31 = vld [vmem:[%s8511_s23 + $0xd0] sm:$0xff]  }
  0x13   :  { %5158 = vmatprep.subr.bf16.mxu0 %v6575_v4  ;;  %5202 = vmatprep.subr.bf16.mxu1 %v6575_v4  ;;  %v160_v22 = vrot.slane %v146_v17, %v6640_v20  ;;  %v6689_v30 = vld [vmem:[%s8511_s23 + $0x88] sm:$0xff]   ;;  %v6701_v32 = vld [vmem:[%s8511_s23 + $0x90] sm:$0xff]   ;;  %v6706_v33 = vld [vmem:[%s8511_s23 + $0xd8] sm:$0xff]   ;;  %v161_v43 = vcombine.high %v153_v26, %v153_v26 }
  0x14   :  { %v6713_v34 = vld [vmem:[%s8511_s23 + $0x98] sm:$0xff]   ;;  %v6718_v35 = vld [vmem:[%s8511_s23 + $0xe0] sm:$0xff]   ;;  %v6730_v37 = vld [vmem:[%s8511_s23 + $0xe8] sm:$0xff]  }
  0x15   :  { %391 = vmatprep.mubr.bf16.mxu0 %v160_v22  ;;  %v162_v27 = vcombine.high %v160_v22, %v160_v22  ;;  %v6725_v36 = vld [vmem:[%s8511_s23 + $0xa0] sm:$0xff]   ;;  %v6737_v38 = vld [vmem:[%s8511_s23 + $0xa8] sm:$0xff]   ;;  %v6742_v39 = vld [vmem:[%s8511_s23 + $0xf0] sm:$0xff]  }
  0x16   :  { %5159 = vmatpush3.bf16.msra.mxu0 %v6582_v5  ;;  %5203 = vmatpush3.bf16.msra.mxu1 %v6582_v5  ;;  %v6749_v40 = vld [vmem:[%s8511_s23 + $0xb0] sm:$0xff]   ;;  %v6754_v41 = vld [vmem:[%s8511_s23 + $0xf8] sm:$0xff]  }
  0x17   :  { %5160 = vmatprep.subr.bf16.mxu0 %v6589_v6  ;;  %5204 = vmatprep.subr.bf16.mxu1 %v6589_v6  ;;  %v6761_v42 = vld [vmem:[%s8511_s23 + $0xb8] sm:$0xff]  }
  0x1a   :  { %5161 = vmatpush3.bf16.msra.mxu0 %v6596_v7  ;;  %5205 = vmatpush3.bf16.msra.mxu1 %v6596_v7 }
  0x1b   :  { %5162 = vmatprep.subr.bf16.mxu0 %v6603_v8  ;;  %5206 = vmatprep.subr.bf16.mxu1 %v6603_v8 }
  0x1e   :  { %5163 = vmatpush3.bf16.msra.mxu0 %v6609_v10  ;;  %5207 = vmatpush3.bf16.msra.mxu1 %v6609_v10 }
  0x1f   :  { %5164 = vmatprep.subr.bf16.mxu0 %v6615_v11  ;;  %5208 = vmatprep.subr.bf16.mxu1 %v6615_v11 }
  0x22   :  { %5165 = vmatpush3.bf16.msra.mxu0 %v6629_v16  ;;  %5209 = vmatpush3.bf16.msra.mxu1 %v6629_v16 }
  0x23   :  { %5166 = vmatprep.subr.bf16.mxu0 %v6636_v19  ;;  %5210 = vmatprep.subr.bf16.mxu1 %v6636_v19 }
  0x26   :  { %5167 = vmatpush3.bf16.msra.mxu0 %v6646_v21  ;;  %5211 = vmatpush3.bf16.msra.mxu1 %v6646_v21 }
  0x27   :  { %5168 = vmatprep.subr.bf16.mxu0 %v6654_v23  ;;  %5212 = vmatprep.subr.bf16.mxu1 %v6654_v23 }
  0x2a   :  { %5169 = vmatpush3.bf16.msra.mxu0 %v6661_v24  ;;  %5213 = vmatpush3.bf16.msra.mxu1 %v6661_v24 }
  0x2b   :  { %5176 = vmatprep.subr.bf16.mxu0 %v6668_v25  ;;  %5242 = vmatprep.subr.bf16.mxu1 %v6550_v0 }
  0x2d   :  { %392 = vmatmul.mubr.bf16.vlgmr.msra.gmra.mrb[0].mxu0 %v153_v26 }
  0x2e   :  { %5177 = vmatpush3.bf16.msra.mxu0 %v6676_v28  ;;  %431 = vmatprep.mubr.bf16.mxu0 %v162_v27 }
  0x2f   :  { %5178 = vmatprep.subr.bf16.mxu0 %v6683_v29 }
  0x32   :  { %5179 = vmatpush3.bf16.msra.mxu0 %v6689_v30 }
  0x33   :  { %5180 = vmatprep.subr.bf16.mxu0 %v6694_v31 }
  0x36   :  { %5181 = vmatpush3.bf16.msra.mxu0 %v6701_v32 }
  0x37   :  { %5182 = vmatprep.subr.bf16.mxu0 %v6706_v33 }
  0x3a   :  { %5183 = vmatpush3.bf16.msra.mxu0 %v6713_v34 }
  0x3b   :  { %5184 = vmatprep.subr.bf16.mxu0 %v6718_v35 }
  0x3e   :  { %5185 = vmatpush3.bf16.msra.mxu0 %v6725_v36 }
  0x3f   :  { %5186 = vmatprep.subr.bf16.mxu0 %v6730_v37 }
  0x42   :  { %5187 = vmatpush3.bf16.msra.mxu0 %v6737_v38 }
  0x43   :  { %5188 = vmatprep.subr.bf16.mxu0 %v6742_v39 }
  0x46   :  { %5189 = vmatpush3.bf16.msra.mxu0 %v6749_v40 }
  0x47   :  { %5190 = vmatprep.subr.bf16.mxu0 %v6754_v41 }
  0x4a   :  { %5191 = vmatpush3.bf16.msra.mxu0 %v6761_v42 }
  0x4d   :  { %432 = vmatmul.mubr.bf16.vlgmr.msra.gmra.mrb[4].mxu0 %v161_v43 }
  0x4e   :  { %27 = vsyncpa [#allocation5], 0  ;;  %s8513_s24 = sld [smem:[#allocation12_spill]]  ;;  %v6439_v48 = vmov 0   ;;  %s8514_s1 = sld [smem:[#allocation11_spill]]  ;;  %vm465_vm0 = vcmask 261120  }
  0x4f   :  { %501 = vmatprep.mubr.bf16.mxu0 %v6439_v48  ;;  %v4821_v49 = vld.sshfl [vmem:[%s8512_s29 + $0x4] sm:$0x33 pattern:$0x75316420]  ;;  %vm3922_vm1 = vcmask 1044480   ;;  %vm3886_vm2 = vcmask 74752  }
  0x50   :  { %v533_v50 = vcombine.high %v4821_v49, %v4821_v49  ;;  %v540_v52 = vrot.slane %v4821_v49, %v6640_v20  ;;  %v4832_v49 = vld.sshfl [vmem:[%s8512_s29 + $0x8] sm:$0x33 pattern:$0x75316420]  ;;  %vm3918_vm3 = vcmask 80896   ;;  %s6441_s0 = smov [#allocation4]  }
  0x51   :  { %s4765_s21 = sshll.u32 %s6441_s0, 4  ;;  %s4766_s21 = int_to_ptr.vmem [resolvable:$true] %s4765_s21 }
  0x52   :  { %v547_v51 = vrot.slane %v533_v50, %v6640_v20  ;;  %v548_v17 = vcombine.high %v540_v52, %v540_v52  ;;  %v717_v50 = vcombine.high %v4832_v49, %v4832_v49 }
  0x54   :  { %v6002_v44 = vld [vmem:[%s8513_s24 + $0x4] ss:$8 sps:$4 sm:$0xff]   ;;  %v6000_v45 = vld [vmem:[%s8513_s24] ss:$8 sps:$4 sm:$0xff]   ;;  %v6005_v46 = vld [vmem:[%s8513_s24 + $0x14] ss:$8 sps:$4 sm:$0xff]   ;;  %586 = vmatprep.mubr.bf16.mxu1 %v547_v51 }
  0x55   :  { %469 = vmatprep.subr.bf16.mxu0 %v6002_v44  ;;  %v6003_v47 = vld [vmem:[%s8513_s24 + $0x10] ss:$8 sps:$4 sm:$0xff]   ;;  %587 = vmatmul.mubr.bf16.vlgmr.msra.gmra.mrb[0].mxu1 %v540_v52  ;;  %v6804_v58 = vld [vmem:[%s8514_s1] ss:$0 sm:$0xff]  ;;  %v6008_v44 = vld [vmem:[%s8513_s24 + $0x24] ss:$8 sps:$4 sm:$0xff]   ;;  %v724_v52 = vrot.slane %v4832_v49, %v6640_v20 }
  0x56   :  { %470 = vmatpush1.bf16.msra.mxu0 %v6000_v45  ;;  %5243 = vmatpush3.bf16.msra.mxu1 %v6555_v1  ;;  %v6006_v45 = vld [vmem:[%s8513_s24 + $0x20] ss:$8 sps:$4 sm:$0xff]  }
  0x57   :  { %471 = vmatprep.subr.bf16.mxu0 %v6005_v46  ;;  %5244 = vmatprep.subr.bf16.mxu1 %v6561_v2  ;;  %v6011_v46 = vld [vmem:[%s8513_s24 + $0x34] ss:$8 sps:$4 sm:$0xff]   ;;  %v6971_v49 = vld [vmem:[%s8511_s23 + $0x68] sm:$0xff]  }
  0x5a   :  { %472 = vmatpush1.bf16.msra.mxu0 %v6003_v47  ;;  %5245 = vmatpush3.bf16.msra.mxu1 %v6568_v3  ;;  %v6009_v47 = vld [vmem:[%s8513_s24 + $0x30] ss:$8 sps:$4 sm:$0xff]  }
  0x5b   :  { %5220 = vmatprep.subr.bf16.mxu0 %v6668_v25  ;;  %5246 = vmatprep.subr.bf16.mxu1 %v6575_v4 }
  0x5e   :  { %5247 = vmatpush3.bf16.msra.mxu1 %v6582_v5 }
  0x5f   :  { %5248 = vmatprep.subr.bf16.mxu1 %v6589_v6 }
  0x62   :  { %5249 = vmatpush3.bf16.msra.mxu1 %v6596_v7 }
  0x63   :  { %5250 = vmatprep.subr.bf16.mxu1 %v6603_v8 }
  0x66   :  { %5251 = vmatpush3.bf16.msra.mxu1 %v6609_v10 }
  0x67   :  { %5252 = vmatprep.subr.bf16.mxu1 %v6615_v11 }
  0x6a   :  { %5253 = vmatpush3.bf16.msra.mxu1 %v6629_v16 }
  0x6b   :  { %5254 = vmatprep.subr.bf16.mxu1 %v6636_v19 }
  0x6e   :  { %5255 = vmatpush3.bf16.msra.mxu1 %v6646_v21 }
  0x6f   :  { %5256 = vmatprep.subr.bf16.mxu1 %v6654_v23 }
  0x72   :  { %5257 = vmatpush3.bf16.msra.mxu1 %v6661_v24 }
  0x73   :  { %5286 = vmatprep.subr.bf16.mxu1 %v6550_v0  ;;  %v549_v0 = vcombine.high %v547_v51, %v547_v51  ;;  %v731_v51 = vrot.slane %v717_v50, %v6640_v20  ;;  %v6977_v50 = vld [vmem:[%s8511_s23 + $0x28] sm:$0xff]  }
  0x75   :  { %770 = vmatprep.mubr.bf16.mxu1 %v731_v51 }
  0x76   :  { %771 = vmatmul.mubr.bf16.vlgmr.msra.gmra.mrb[4].mxu1 %v724_v52 }
  0x77   :  { %5287 = vmatpush3.bf16.msra.mxu1 %v6555_v1  ;;  %v6860_v1 = vld [vmem:[%s8511_s23 + $0x40] sm:$0xff]  }
  0x78   :  { %5288 = vmatprep.subr.bf16.mxu1 %v6561_v2 }
  0x7b   :  { %5289 = vmatpush3.bf16.msra.mxu1 %v6568_v3 }
  0x7c   :  { %5290 = vmatprep.subr.bf16.mxu1 %v6575_v4 }
  0x7f   :  { %5291 = vmatpush3.bf16.msra.mxu1 %v6582_v5 }
  0x80   :  { %5292 = vmatprep.subr.bf16.mxu1 %v6589_v6 }
  0x83   :  { %5293 = vmatpush3.bf16.msra.mxu1 %v6596_v7 }
  0x84   :  { %5294 = vmatprep.subr.bf16.mxu1 %v6603_v8 }
  0x87   :  { %5295 = vmatpush3.bf16.msra.mxu1 %v6609_v10 }
  0x88   :  { %5296 = vmatprep.subr.bf16.mxu1 %v6615_v11  ;;  %v733_v11 = vcombine.high %v731_v51, %v731_v51  ;;  %v6983_v51 = vld [vmem:[%s8511_s23 + $0x70] sm:$0xff]  }
  0x8b   :  { %5297 = vmatpush3.bf16.msra.mxu1 %v6629_v16 }
  0x8c   :  { %5298 = vmatprep.subr.bf16.mxu1 %v6636_v19  ;;  %v732_v19 = vcombine.high %v724_v52, %v724_v52  ;;  %v4865_v52 = vld.sshfl [vmem:[%s8512_s29 + $0x14] sm:$0x33 pattern:$0x75316420] }
  0x8f   :  { %5299 = vmatpush3.bf16.msra.mxu1 %v6646_v21 }
  0x90   :  { %5300 = vmatprep.subr.bf16.mxu1 %v6654_v23 }
  0x93   :  { %5301 = vmatpush3.bf16.msra.mxu1 %v6661_v24 }
  0x94   :  { %5330 = vmatprep.subr.bf16.mxu1 %v6860_v1 }
 0x100   :  { %v5170_v53 = vpop.f32.mrb[0].mxu0 }
 0x101   :  { %v5171_v54 = vpop.f32.mrb[1].mxu0 }
 0x102   :  { %v5172_v55 = vadd.f32 %v5171_v54, %v5170_v53  ;;  %v5173_v56 = vpop.f32.mrb[2].mxu0 }
 0x103   :  { %v5174_v57 = vpop.f32.mrb[3].mxu0 }
 0x104   :  { %v394_v61 = vadd.f32 %v5172_v55, %v6804_v58 }
 0x120   :  { %v5192_v59 = vpop.f32.mrb[4].mxu0 }
 0x121   :  { %v5193_v60 = vpop.f32.mrb[5].mxu0 }
 0x122   :  { %v5194_v62 = vadd.f32 %v5193_v60, %v5192_v59  ;;  %v5195_v63 = vpop.f32.mrb[6].mxu0  ;;  %v6014_v59 = vld [vmem:[%s8513_s24 + $0x44] ss:$8 sps:$4 sm:$0xff]   ;;  %v6012_v60 = vld [vmem:[%s8513_s24 + $0x40] ss:$8 sps:$4 sm:$0xff]  }
 0x123   :  { %v5196_v9 = vpop.f32.mrb[7].mxu0  ;;  %v4843_v63 = vld.sshfl [vmem:[%s8512_s29 + $0xc] sm:$0x33 pattern:$0x75316420] }
 0x124   :  { %v434_v12 = vadd.f32 %v5194_v62, %v394_v61  ;;  %v6017_v61 = vld [vmem:[%s8513_s24 + $0x54] ss:$8 sps:$4 sm:$0xff]   ;;  %v6015_v62 = vld [vmem:[%s8513_s24 + $0x50] ss:$8 sps:$4 sm:$0xff]   ;;  %v901_v9 = vcombine.high %v4843_v63, %v4843_v63 }
 0x126   :  { %v439_v13 = vmax.f32 %v434_v12, 0.0  ;;  %v6900_v12 = vrot.slane %v901_v9, %v6640_v20  ;;  %v7124_v9 = vld [vmem:[%s8511_s23 + $0x90] sm:$0xff]  }
 0x128   :  { %v440_v14 = vpack.c.bf16 %v439_v13, %v439_v13  ;;  %v5214_v18 = vpop.f32.mrb[0].mxu1  ;;  %v6903_v13 = vrot.slane %v4843_v63, %v6640_v20  ;;  %954 = vmatprep.mubr.bf16.mxu1 %v6900_v12 }
 0x129   :  { %v5215_v22 = vpop.f32.mrb[1].mxu1 }
 0x12a   :  { %4819 = vmatmul.mubr.msk.bf16.vlgmr.msra.gmra.mrb[8].mxu0 %vm465_vm0, %v440_v14  ;;  %v5216_v26 = vadd.f32 %v5215_v22, %v5214_v18  ;;  %v5217_v27 = vpop.f32.mrb[2].mxu1  ;;  %955 = vmatmul.mubr.bf16.vlgmr.msra.gmra.mrb[8].mxu1 %v6903_v13  ;;  %v6916_v14 = vld [vmem:[%s8511_s23 + $0x48] sm:$0xff]   ;;  %v4854_v18 = vld.sshfl [vmem:[%s8512_s29 + $0x10] sm:$0x33 pattern:$0x75316420] }
 0x12b   :  { %5221 = vmatpush3.bf16.msra.mxu0 %v6676_v28  ;;  %626 = vmatprep.mubr.bf16.mxu0 %v549_v0  ;;  %v5218_v43 = vpop.f32.mrb[3].mxu1  ;;  %v6910_v0 = vld [vmem:[%s8511_s23] sm:$0xff]   ;;  %v6931_v22 = vld [vmem:[%s8511_s23 + $0x50] sm:$0xff]  }
 0x12c   :  { %5222 = vmatprep.subr.bf16.mxu0 %v6683_v29  ;;  %v589_v2 = vadd.f32 %v5216_v26, %v6804_v58  ;;  %5331 = vmatpush3.bf16.msra.mxu1 %v6910_v0  ;;  %v1085_v26 = vcombine.high %v4854_v18, %v4854_v18  ;;  %v6940_v43 = vld [vmem:[%s8511_s23 + $0x10] sm:$0xff]  }
 0x12d   :  { %5332 = vmatprep.subr.bf16.mxu1 %v6916_v14 }
 0x12e   :  { %v6935_v27 = vrot.slane %v1085_v26, %v6640_v20  ;;  %v7148_v26 = vld [vmem:[%s8511_s23 + $0xa0] sm:$0xff]  }
 0x12f   :  { %5223 = vmatpush3.bf16.msra.mxu0 %v6689_v30 }
 0x130   :  { %5224 = vmatprep.subr.bf16.mxu0 %v6694_v31  ;;  %1138 = vmatprep.mubr.bf16.mxu1 %v6935_v27 }
 0x133   :  { %5225 = vmatpush3.bf16.msra.mxu0 %v6701_v32 }
 0x134   :  { %5226 = vmatprep.subr.bf16.mxu0 %v6706_v33 }
 0x137   :  { %5227 = vmatpush3.bf16.msra.mxu0 %v6713_v34 }
 0x138   :  { %5228 = vmatprep.subr.bf16.mxu0 %v6718_v35 }
 0x13b   :  { %5229 = vmatpush3.bf16.msra.mxu0 %v6725_v36 }
 0x13c   :  { %5230 = vmatprep.subr.bf16.mxu0 %v6730_v37 }
 0x13f   :  { %5231 = vmatpush3.bf16.msra.mxu0 %v6737_v38 }
 0x140   :  { %5232 = vmatprep.subr.bf16.mxu0 %v6742_v39 }
 0x143   :  { %5233 = vmatpush3.bf16.msra.mxu0 %v6749_v40 }
 0x144   :  { %5234 = vmatprep.subr.bf16.mxu0 %v6754_v41 }
 0x147   :  { %5235 = vmatpush3.bf16.msra.mxu0 %v6761_v42 }
 0x148   :  { %664 = vmatprep.subr.bf16.mxu0 %v6008_v44  ;;  %v6946_v44 = vld [vmem:[%s8511_s23 + $0x58] sm:$0xff]  }
 0x149   :  { %v5258_v53 = vpop.f32.mrb[4].mxu1 }
 0x14a   :  { %627 = vmatmul.mubr.bf16.vlgmr.msra.gmra.mrb[12].mxu0 %v548_v17  ;;  %v5259_v54 = vpop.f32.mrb[5].mxu1  ;;  %v6922_v17 = vld [vmem:[%s8511_s23 + $0x8] sm:$0xff]  }
 0x14b   :  { %696 = vmatprep.mubr.bf16.mxu0 %v6439_v48  ;;  %665 = vmatpush1.bf16.msra.mxu0 %v6006_v45  ;;  %v6881_v55 = vadd.f32 %v5259_v54, %v5258_v53  ;;  %v5261_v56 = vpop.f32.mrb[6].mxu1  ;;  %v6953_v45 = vld [vmem:[%s8511_s23 + $0x18] sm:$0xff]   ;;  %v7071_v53 = vld [vmem:[%s8511_s23 + $0xc8] sm:$0xff]  }
 0x14c   :  { %666 = vmatprep.subr.bf16.mxu0 %v6011_v46  ;;  %v5262_v57 = vpop.f32.mrb[7].mxu1  ;;  %5333 = vmatpush3.bf16.msra.mxu1 %v6922_v17  ;;  %v6959_v46 = vld [vmem:[%s8511_s23 + $0x60] sm:$0xff]   ;;  %v7077_v54 = vld [vmem:[%s8511_s23 + $0x88] sm:$0xff]  }
 0x14d   :  { %5334 = vmatprep.subr.bf16.mxu1 %v6931_v22  ;;  %v6020_v57 = vld [vmem:[%s8513_s24 + $0x64] ss:$8 sps:$4 sm:$0xff]  }
 0x14f   :  { %667 = vmatpush1.bf16.msra.mxu0 %v6009_v47  ;;  %v6965_v47 = vld [vmem:[%s8511_s23 + $0x20] sm:$0xff]  }
 0x150   :  { %5264 = vmatprep.subr.bf16.mxu0 %v6668_v25  ;;  %5335 = vmatpush3.bf16.msra.mxu1 %v6940_v43 }
 0x151   :  { %5336 = vmatprep.subr.bf16.mxu1 %v6946_v44 }
 0x154   :  { %5337 = vmatpush3.bf16.msra.mxu1 %v6953_v45 }
 0x155   :  { %5338 = vmatprep.subr.bf16.mxu1 %v6959_v46 }
 0x158   :  { %5339 = vmatpush3.bf16.msra.mxu1 %v6965_v47 }
 0x159   :  { %5340 = vmatprep.subr.bf16.mxu1 %v6971_v49 }
 0x15c   :  { %5341 = vmatpush3.bf16.msra.mxu1 %v6977_v50 }
 0x15d   :  { %5342 = vmatprep.subr.bf16.mxu1 %v6983_v51 }
 0x160   :  { %5343 = vmatpush3.bf16.msra.mxu1 %v6646_v21  ;;  %v7016_v21 = vld [vmem:[%s8511_s23 + $0x30] sm:$0xff]  }
 0x161   :  { %5344 = vmatprep.subr.bf16.mxu1 %v6654_v23  ;;  %v7022_v23 = vld [vmem:[%s8511_s23 + $0x78] sm:$0xff]  }
 0x164   :  { %5345 = vmatpush3.bf16.msra.mxu1 %v6661_v24  ;;  %v7026_v24 = vrot.slane %v4865_v52, %v6640_v20 }
 0x165   :  { %5374 = vmatprep.subr.bf16.mxu1 %v6860_v1 }
 0x166   :  { %v1284_v63 = vcombine.high %v7026_v24, %v7026_v24 }
 0x21d   :  { %v5236_v3 = vpop.f32.mrb[12].mxu0 }
 0x21e   :  { %v5237_v4 = vpop.f32.mrb[13].mxu0 }
 0x21f   :  { %v5238_v5 = vadd.f32 %v5237_v4, %v5236_v3  ;;  %v5239_v6 = vpop.f32.mrb[14].mxu0  ;;  %v6992_v3 = vrot.slane %v4854_v18, %v6640_v20  ;;  %v7142_v18 = vld [vmem:[%s8511_s23 + $0xe0] sm:$0xff]  }
 0x220   :  { %v5240_v7 = vpop.f32.mrb[15].mxu0 }
 0x221   :  { %v629_v8 = vadd.f32 %v5238_v5, %v589_v2  ;;  %v1269_v2 = vcombine.high %v4865_v52, %v4865_v52  ;;  %1139 = vmatmul.mubr.bf16.vlgmr.msra.gmra.mrb[12].mxu1 %v6992_v3  ;;  %v7031_v5 = vld [vmem:[%s8511_s23 + $0x38] sm:$0xff]   ;;  %v7056_v7 = vld [vmem:[%s8511_s23 + $0xc0] sm:$0xff]  }
 0x222   :  { %5375 = vmatpush3.bf16.msra.mxu1 %v6910_v0 }
 0x223   :  { %v634_v10 = vmax.f32 %v629_v8, 0.0  ;;  %v6996_v4 = vrot.slane %v1269_v2, %v6640_v20  ;;  %5376 = vmatprep.subr.bf16.mxu1 %v6916_v14 }
 0x225   :  { %v635_v16 = vpack.c.bf16 %v634_v10, %v634_v10  ;;  %1322 = vmatprep.mubr.bf16.mxu1 %v6996_v4 }
 0x226   :  { %5377 = vmatpush3.bf16.msra.mxu1 %v6922_v17 }
 0x227   :  { %4830 = vmatmul.mubr.msk.bf16.vlgmr.msra.gmra.mrb[8].mxu0 %vm465_vm0, %v635_v16  ;;  %5378 = vmatprep.subr.bf16.mxu1 %v6931_v22 }
 0x228   :  { %5265 = vmatpush3.bf16.msra.mxu0 %v6676_v28  ;;  %810 = vmatprep.mubr.bf16.mxu0 %v733_v11  ;;  %v917_v11 = vcombine.high %v6900_v12, %v6900_v12  ;;  %v7130_v12 = vld [vmem:[%s8511_s23 + $0xd8] sm:$0xff]  }
 0x229   :  { %5266 = vmatprep.subr.bf16.mxu0 %v6683_v29 }
 0x22a   :  { %5379 = vmatpush3.bf16.msra.mxu1 %v6940_v43 }
 0x22b   :  { %5380 = vmatprep.subr.bf16.mxu1 %v6946_v44 }
 0x22c   :  { %5267 = vmatpush3.bf16.msra.mxu0 %v6689_v30 }
 0x22d   :  { %5268 = vmatprep.subr.bf16.mxu0 %v6694_v31 }
 0x22e   :  { %5381 = vmatpush3.bf16.msra.mxu1 %v6953_v45 }
 0x22f   :  { %5382 = vmatprep.subr.bf16.mxu1 %v6959_v46 }
 0x230   :  { %5269 = vmatpush3.bf16.msra.mxu0 %v6701_v32 }
 0x231   :  { %5270 = vmatprep.subr.bf16.mxu0 %v6706_v33 }
 0x232   :  { %5383 = vmatpush3.bf16.msra.mxu1 %v6965_v47 }
 0x233   :  { %5384 = vmatprep.subr.bf16.mxu1 %v6971_v49 }
 0x234   :  { %5271 = vmatpush3.bf16.msra.mxu0 %v6713_v34 }
 0x235   :  { %5272 = vmatprep.subr.bf16.mxu0 %v6718_v35 }
 0x236   :  { %5385 = vmatpush3.bf16.msra.mxu1 %v6977_v50 }
 0x237   :  { %5386 = vmatprep.subr.bf16.mxu1 %v6983_v51 }
 0x238   :  { %5273 = vmatpush3.bf16.msra.mxu0 %v6725_v36 }
 0x239   :  { %5274 = vmatprep.subr.bf16.mxu0 %v6730_v37 }
 0x23a   :  { %5387 = vmatpush3.bf16.msra.mxu1 %v7016_v21 }
 0x23b   :  { %5388 = vmatprep.subr.bf16.mxu1 %v7022_v23 }
 0x23c   :  { %5275 = vmatpush3.bf16.msra.mxu0 %v6737_v38 }
 0x23d   :  { %5276 = vmatprep.subr.bf16.mxu0 %v6742_v39 }
 0x23e   :  { %5389 = vmatpush3.bf16.msra.mxu1 %v7031_v5 }
 0x23f   :  { %5396 = vmatprep.subr.bf16.mxu1 %v6668_v25 }
 0x240   :  { %5277 = vmatpush3.bf16.msra.mxu0 %v6749_v40 }
 0x241   :  { %5278 = vmatprep.subr.bf16.mxu0 %v6754_v41  ;;  %1323 = vmatmul.mubr.bf16.vlgmr.msra.gmra.mrb[16].mxu1 %v7026_v24 }
 0x242   :  { %5397 = vmatpush3.bf16.msra.mxu1 %v6676_v28 }
 0x243   :  { %5398 = vmatprep.subr.bf16.mxu1 %v6683_v29 }
 0x244   :  { %5279 = vmatpush3.bf16.msra.mxu0 %v6761_v42 }
 0x245   :  { %848 = vmatprep.subr.bf16.mxu0 %v6014_v59  ;;  %v6018_v59 = vld [vmem:[%s8513_s24 + $0x60] ss:$8 sps:$4 sm:$0xff]  }
 0x246   :  { %5399 = vmatpush3.bf16.msra.mxu1 %v6689_v30 }
 0x247   :  { %811 = vmatmul.mubr.bf16.vlgmr.msra.gmra.mrb[16].mxu0 %v732_v19  ;;  %5400 = vmatprep.subr.bf16.mxu1 %v6694_v31  ;;  %v7065_v19 = vld [vmem:[%s8511_s23 + $0x80] sm:$0xff]  }
 0x248   :  { %880 = vmatprep.mubr.bf16.mxu0 %v6439_v48  ;;  %849 = vmatpush1.bf16.msra.mxu0 %v6012_v60  ;;  %v6023_v60 = vld [vmem:[%s8513_s24 + $0x74] ss:$8 sps:$4 sm:$0xff]  }
 0x249   :  { %850 = vmatprep.subr.bf16.mxu0 %v6017_v61  ;;  %v6021_v61 = vld [vmem:[%s8513_s24 + $0x70] ss:$8 sps:$4 sm:$0xff]  }
 0x24a   :  { %5401 = vmatpush3.bf16.msra.mxu1 %v6701_v32 }
 0x24b   :  { %5402 = vmatprep.subr.bf16.mxu1 %v6706_v33 }
 0x24c   :  { %851 = vmatpush1.bf16.msra.mxu0 %v6015_v62  ;;  %v1285_v62 = vcombine.high %v6996_v4, %v6996_v4 }
 0x24d   :  { %5308 = vmatprep.subr.bf16.mxu0 %v6668_v25  ;;  %v773_v25 = vadd.f32 %v6881_v55, %v6804_v58  ;;  %v7083_v55 = vld [vmem:[%s8511_s23 + $0xd0] sm:$0xff]  }
 0x24e   :  { %5403 = vmatpush3.bf16.msra.mxu1 %v6713_v34  ;;  %1362 = vmatprep.mubr.bf16.mxu1 %v1285_v62 }
 0x24f   :  { %5404 = vmatprep.subr.bf16.mxu1 %v6718_v35 }
 0x252   :  { %5405 = vmatpush3.bf16.msra.mxu1 %v6725_v36 }
 0x253   :  { %5406 = vmatprep.subr.bf16.mxu1 %v6730_v37 }
 0x256   :  { %5407 = vmatpush3.bf16.msra.mxu1 %v6737_v38 }
 0x257   :  { %5408 = vmatprep.subr.bf16.mxu1 %v6742_v39 }
 0x25a   :  { %5409 = vmatpush3.bf16.msra.mxu1 %v6749_v40 }
 0x25b   :  { %5410 = vmatprep.subr.bf16.mxu1 %v6754_v41 }
 0x25e   :  { %5411 = vmatpush3.bf16.msra.mxu1 %v6761_v42 }
 0x25f   :  { %5440 = vmatprep.subr.bf16.mxu1 %v7056_v7 }
 0x261   :  { %1363 = vmatmul.mubr.bf16.vlgmr.msra.gmra.mrb[20].mxu1 %v1284_v63 }
 0x262   :  { %5441 = vmatpush3.bf16.msra.mxu1 %v7065_v19 }
 0x263   :  { %5442 = vmatprep.subr.bf16.mxu1 %v7071_v53 }
 0x266   :  { %5443 = vmatpush3.bf16.msra.mxu1 %v7077_v54 }
 0x267   :  { %5444 = vmatprep.subr.bf16.mxu1 %v7083_v55 }
 0x26a   :  { %5445 = vmatpush3.bf16.msra.mxu1 %v7124_v9 }
 0x26b   :  { %5446 = vmatprep.subr.bf16.mxu1 %v7130_v12 }
 0x31a   :  { %v5280_v28 = vpop.f32.mrb[16].mxu0 }
 0x31b   :  { %v5281_v29 = vpop.f32.mrb[17].mxu0 }
 0x31c   :  { %v5282_v30 = vadd.f32 %v5281_v29, %v5280_v28  ;;  %v5283_v31 = vpop.f32.mrb[18].mxu0 }
 0x31d   :  { %v5284_v6 = vpop.f32.mrb[19].mxu0 }
 0x31e   :  { %v813_v8 = vadd.f32 %v5282_v30, %v773_v25 }
 0x320   :  { %v818_v10 = vmax.f32 %v813_v8, 0.0 }
 0x322   :  { %v819_v16 = vpack.c.bf16 %v818_v10, %v818_v10 }
 0x324   :  { %4841 = vmatmul.mubr.msk.bf16.vlgmr.msra.gmra.mrb[8].mxu0 %vm465_vm0, %v819_v16 }
 0x325   :  { %5309 = vmatpush3.bf16.msra.mxu0 %v7065_v19  ;;  %994 = vmatprep.mubr.bf16.mxu0 %v917_v11 }
 0x326   :  { %5310 = vmatprep.subr.bf16.mxu0 %v7071_v53 }
 0x329   :  { %5311 = vmatpush3.bf16.msra.mxu0 %v7077_v54 }
 0x32a   :  { %5312 = vmatprep.subr.bf16.mxu0 %v7083_v55 }
 0x32d   :  { %5313 = vmatpush3.bf16.msra.mxu0 %v6701_v32  ;;  %v916_v32 = vcombine.high %v6903_v13, %v6903_v13  ;;  %v7136_v13 = vld [vmem:[%s8511_s23 + $0x98] sm:$0xff]  }
 0x32e   :  { %5314 = vmatprep.subr.bf16.mxu0 %v6706_v33  ;;  %v5302_v33 = vpop.f32.mrb[8].mxu1  ;;  %5447 = vmatpush3.bf16.msra.mxu1 %v7136_v13 }
 0x32f   :  { %5448 = vmatprep.subr.bf16.mxu1 %v7142_v18 }
 0x331   :  { %5315 = vmatpush3.bf16.msra.mxu0 %v6713_v34  ;;  %v5303_v34 = vpop.f32.mrb[9].mxu1 }
 0x332   :  { %5316 = vmatprep.subr.bf16.mxu0 %v6718_v35  ;;  %v5304_v35 = vadd.f32 %v5303_v34, %v5302_v33  ;;  %5449 = vmatpush3.bf16.msra.mxu1 %v7148_v26  ;;  %v7182_v33 = vld [vmem:[%s8511_s23 + $0xa8] sm:$0xff]   ;;  %v7188_v34 = vld [vmem:[%s8511_s23 + $0xf0] sm:$0xff]  }
 0x333   :  { %5450 = vmatprep.subr.bf16.mxu1 %v6730_v37 }
 0x334   :  { %v957_v6 = vadd.f32 %v5304_v35, %v6804_v58  ;;  %v7194_v35 = vld [vmem:[%s8511_s23 + $0xb0] sm:$0xff]  }
 0x335   :  { %5317 = vmatpush3.bf16.msra.mxu0 %v6725_v36  ;;  %v5305_v36 = vpop.f32.mrb[10].mxu1 }
 0x336   :  { %5318 = vmatprep.subr.bf16.mxu0 %v6730_v37  ;;  %v5306_v56 = vpop.f32.mrb[11].mxu1  ;;  %5451 = vmatpush3.bf16.msra.mxu1 %v6737_v38  ;;  %v7200_v36 = vld [vmem:[%s8511_s23 + $0xf8] sm:$0xff]  }
 0x337   :  { %v5346_v52 = vpop.f32.mrb[12].mxu1  ;;  %5452 = vmatprep.subr.bf16.mxu1 %v6742_v39  ;;  %v1100_v56 = vcombine.high %v6992_v3, %v6992_v3  ;;  %v6024_v3 = vld [vmem:[%s8513_s24 + $0x80] ss:$8 sps:$4 sm:$0xff]  }
 0x338   :  { %v5347_v2 = vpop.f32.mrb[13].mxu1 }
 0x339   :  { %5319 = vmatpush3.bf16.msra.mxu0 %v6737_v38  ;;  %v7152_v4 = vadd.f32 %v5347_v2, %v5346_v52  ;;  %v5349_v24 = vpop.f32.mrb[14].mxu1  ;;  %v6026_v2 = vld [vmem:[%s8513_s24 + $0x84] ss:$8 sps:$4 sm:$0xff]  }
 0x33a   :  { %5320 = vmatprep.subr.bf16.mxu0 %v6742_v39  ;;  %v5350_v25 = vpop.f32.mrb[15].mxu1  ;;  %5453 = vmatpush3.bf16.msra.mxu1 %v6749_v40  ;;  %v6027_v24 = vld [vmem:[%s8513_s24 + $0x90] ss:$8 sps:$4 sm:$0xff]  }
 0x33b   :  { %5454 = vmatprep.subr.bf16.mxu1 %v6754_v41  ;;  %v5390_v28 = vpop.f32.mrb[16].mxu1  ;;  %v6032_v25 = vld [vmem:[%s8513_s24 + $0xa4] ss:$8 sps:$4 sm:$0xff]  }
 0x33c   :  { %v5391_v29 = vpop.f32.mrb[17].mxu1 }
 0x33d   :  { %5321 = vmatpush3.bf16.msra.mxu0 %v6749_v40  ;;  %v5392_v37 = vadd.f32 %v5391_v29, %v5390_v28  ;;  %v5393_v30 = vpop.f32.mrb[18].mxu1  ;;  %v4876_v28 = vld.sshfl [vmem:[%s8512_s29 + $0x18] sm:$0x33 pattern:$0x75316420] }
 0x33e   :  { %5322 = vmatprep.subr.bf16.mxu0 %v6754_v41  ;;  %5455 = vmatpush3.bf16.msra.mxu1 %v6761_v42  ;;  %v5394_v31 = vpop.f32.mrb[19].mxu1  ;;  %v1101_v41 = vcombine.high %v6935_v27, %v6935_v27  ;;  %v7176_v27 = vld [vmem:[%s8511_s23 + $0xe8] sm:$0xff]   ;;  %v1453_v29 = vcombine.high %v4876_v28, %v4876_v28  ;;  %v1460_v30 = vrot.slane %v4876_v28, %v6640_v20  ;;  %v6039_v28 = vld [vmem:[%s8513_s24 + $0xd0] ss:$8 sps:$4 sm:$0xff]  }
 0x33f   :  { %5484 = vmatprep.subr.bf16.mxu1 %v7056_v7 }
 0x341   :  { %5323 = vmatpush3.bf16.msra.mxu0 %v6761_v42 }
 0x342   :  { %1032 = vmatprep.subr.bf16.mxu0 %v6020_v57  ;;  %v1325_v57 = vadd.f32 %v5392_v37, %v6804_v58  ;;  %v1467_v37 = vrot.slane %v1453_v29, %v6640_v20  ;;  %v4887_v29 = vld.sshfl [vmem:[%s8512_s29 + $0x1c] sm:$0x33 pattern:$0x75316420] }
 0x344   :  { %995 = vmatmul.mubr.bf16.vlgmr.msra.gmra.mrb[20].mxu0 %v916_v32  ;;  %v1469_v31 = vcombine.high %v1467_v37, %v1467_v37 }
 0x345   :  { %1064 = vmatprep.mubr.bf16.mxu0 %v6439_v48  ;;  %1033 = vmatpush1.bf16.msra.mxu0 %v6018_v59  ;;  %v5412_v59 = vpop.f32.mrb[20].mxu1 }
 0x346   :  { %1034 = vmatprep.subr.bf16.mxu0 %v6023_v60  ;;  %v5413_v60 = vpop.f32.mrb[21].mxu1  ;;  %1546 = vmatprep.mubr.bf16.mxu1 %v1469_v31  ;;  %v1644_v31 = vrot.slane %v4887_v29, %v6640_v20 }
 0x347   :  { %v5415_v62 = vpop.f32.mrb[22].mxu1 }
 0x348   :  { %v5416_v63 = vpop.f32.mrb[23].mxu1 }
 0x349   :  { %1035 = vmatpush1.bf16.msra.mxu0 %v6021_v61  ;;  %v5414_v61 = vadd.f32 %v5413_v60, %v5412_v59  ;;  %v6035_v59 = vld [vmem:[%s8513_s24 + $0xb4] ss:$8 sps:$4 sm:$0xff]  }
 0x34a   :  { %5352 = vmatprep.subr.bf16.mxu0 %v7056_v7 }
 0x34b   :  { %v1365_v52 = vadd.f32 %v5414_v61, %v1325_v57 }
 0x34d   :  { %v1370_v60 = vmax.f32 %v1365_v52, 0.0 }
 0x34f   :  { %v1371_v61 = vpack.c.bf16 %v1370_v60, %v1370_v60 }
 0x417   :  { %v5324_v8 = vpop.f32.mrb[20].mxu0 }
 0x418   :  { %v5325_v10 = vpop.f32.mrb[21].mxu0 }
 0x419   :  { %v5326_v38 = vadd.f32 %v5325_v10, %v5324_v8  ;;  %v5327_v11 = vpop.f32.mrb[22].mxu0  ;;  %v7245_v8 = vld [vmem:[%s8511_s23 + $0xb8] sm:$0xff]  }
 0x41a   :  { %v5328_v39 = vpop.f32.mrb[23].mxu0  ;;  %v1141_v11 = vadd.f32 %v7152_v4, %v6804_v58  ;;  %v6033_v4 = vld [vmem:[%s8513_s24 + $0xb0] ss:$8 sps:$4 sm:$0xff]  }
 0x41b   :  { %v997_v16 = vadd.f32 %v5326_v38, %v957_v6  ;;  %v1468_v6 = vcombine.high %v1460_v30, %v1460_v30 }
 0x41d   :  { %v1002_v40 = vmax.f32 %v997_v16, 0.0  ;;  %1547 = vmatmul.mubr.bf16.vlgmr.msra.gmra.mrb[24].mxu1 %v1468_v6 }
 0x41e   :  { %5485 = vmatpush3.bf16.msra.mxu1 %v7065_v19 }
 0x41f   :  { %v1003_v32 = vpack.c.bf16 %v1002_v40, %v1002_v40  ;;  %5486 = vmatprep.subr.bf16.mxu1 %v7071_v53 }
 0x421   :  { %4852 = vmatmul.mubr.msk.bf16.vlgmr.msra.gmra.mrb[8].mxu0 %vm465_vm0, %v1003_v32 }
 0x422   :  { %5353 = vmatpush3.bf16.msra.mxu0 %v7065_v19  ;;  %1178 = vmatprep.mubr.bf16.mxu0 %v1101_v41 }
 0x423   :  { %5354 = vmatprep.subr.bf16.mxu0 %v7071_v53  ;;  %5487 = vmatpush3.bf16.msra.mxu1 %v7077_v54 }
 0x424   :  { %5488 = vmatprep.subr.bf16.mxu1 %v7083_v55 }
 0x426   :  { %5355 = vmatpush3.bf16.msra.mxu0 %v7077_v54 }
 0x427   :  { %5356 = vmatprep.subr.bf16.mxu0 %v7083_v55  ;;  %5489 = vmatpush3.bf16.msra.mxu1 %v7124_v9 }
 0x428   :  { %5490 = vmatprep.subr.bf16.mxu1 %v7130_v12 }
 0x42a   :  { %5357 = vmatpush3.bf16.msra.mxu0 %v7124_v9 }
 0x42b   :  { %5358 = vmatprep.subr.bf16.mxu0 %v7130_v12  ;;  %5491 = vmatpush3.bf16.msra.mxu1 %v7136_v13 }
 0x42c   :  { %5492 = vmatprep.subr.bf16.mxu1 %v7142_v18 }
 0x42e   :  { %5359 = vmatpush3.bf16.msra.mxu0 %v7136_v13 }
 0x42f   :  { %5360 = vmatprep.subr.bf16.mxu0 %v7142_v18  ;;  %5493 = vmatpush3.bf16.msra.mxu1 %v7148_v26 }
 0x430   :  { %5494 = vmatprep.subr.bf16.mxu1 %v7176_v27 }
 0x432   :  { %5361 = vmatpush3.bf16.msra.mxu0 %v7148_v26 }
 0x433   :  { %5362 = vmatprep.subr.bf16.mxu0 %v7176_v27  ;;  %5495 = vmatpush3.bf16.msra.mxu1 %v7182_v33 }
 0x434   :  { %5496 = vmatprep.subr.bf16.mxu1 %v7188_v34 }
 0x436   :  { %5363 = vmatpush3.bf16.msra.mxu0 %v7182_v33 }
 0x437   :  { %5364 = vmatprep.subr.bf16.mxu0 %v7188_v34  ;;  %5497 = vmatpush3.bf16.msra.mxu1 %v7194_v35 }
 0x438   :  { %5498 = vmatprep.subr.bf16.mxu1 %v7200_v36 }
 0x43a   :  { %5365 = vmatpush3.bf16.msra.mxu0 %v7194_v35 }
 0x43b   :  { %5366 = vmatprep.subr.bf16.mxu0 %v7200_v36  ;;  %5499 = vmatpush3.bf16.msra.mxu1 %v7245_v8 }
 0x43c   :  { %5528 = vmatprep.subr.bf16.mxu1 %v7056_v7 }
 0x43e   :  { %5367 = vmatpush3.bf16.msra.mxu0 %v6761_v42  ;;  %v6029_v42 = vld [vmem:[%s8513_s24 + $0x94] ss:$8 sps:$4 sm:$0xff]  }
 0x43f   :  { %1216 = vmatprep.subr.bf16.mxu0 %v6026_v2 }
 0x441   :  { %1179 = vmatmul.mubr.bf16.vlgmr.msra.gmra.mrb[24].mxu0 %v1100_v56  ;;  %v6030_v56 = vld [vmem:[%s8513_s24 + $0xa0] ss:$8 sps:$4 sm:$0xff]  }
 0x442   :  { %1248 = vmatprep.mubr.bf16.mxu0 %v6439_v48  ;;  %1217 = vmatpush1.bf16.msra.mxu0 %v6024_v3  ;;  %v6038_v3 = vld [vmem:[%s8513_s24 + $0xc4] ss:$8 sps:$4 sm:$0xff]  }
 0x443   :  { %1218 = vmatprep.subr.bf16.mxu0 %v6029_v42 }
 0x446   :  { %1219 = vmatpush1.bf16.msra.mxu0 %v6027_v24  ;;  %v6036_v24 = vld [vmem:[%s8513_s24 + $0xc0] ss:$8 sps:$4 sm:$0xff]  }
 0x447   :  { %1400 = vmatprep.subr.bf16.mxu0 %v6032_v25  ;;  %v6041_v25 = vld [vmem:[%s8513_s24 + $0xd4] ss:$8 sps:$4 sm:$0xff]  }
 0x4f0   :  { %v5456_v62 = vpop.f32.mrb[24].mxu1 }
 0x4f1   :  { %v5457_v63 = vpop.f32.mrb[25].mxu1 }
 0x4f2   :  { %v5458_v52 = vadd.f32 %v5457_v63, %v5456_v62  ;;  %v5459_v2 = vpop.f32.mrb[26].mxu1  ;;  %v6044_v62 = vld [vmem:[%s8513_s24 + $0xe4] ss:$8 sps:$4 sm:$0xff]  }
 0x4f3   :  { %v5460_v42 = vpop.f32.mrb[27].mxu1  ;;  %v6047_v2 = vld [vmem:[%s8513_s24 + $0xf4] ss:$8 sps:$4 sm:$0xff]  }
 0x4f4   :  { %v4898_v42 = vld.sshfl [vmem:[%s8512_s29 + $0x20] sm:$0x33 pattern:$0x75316420] }
 0x514   :  { %v5368_v10 = vpop.f32.mrb[24].mxu0 }
 0x515   :  { %v5369_v38 = vpop.f32.mrb[25].mxu0 }
 0x516   :  { %v5370_v39 = vadd.f32 %v5369_v38, %v5368_v10  ;;  %v5371_v16 = vpop.f32.mrb[26].mxu0  ;;  %v1652_v10 = vcombine.high %v1644_v31, %v1644_v31 }
 0x517   :  { %v5372_v40 = vpop.f32.mrb[27].mxu0 }
 0x518   :  { %v1181_v41 = vadd.f32 %v5370_v39, %v1141_v11 }
 0x51a   :  { %v1186_v32 = vmax.f32 %v1181_v41, 0.0 }
 0x51c   :  { %v1187_v57 = vpack.c.bf16 %v1186_v32, %v1186_v32 }
 0x51e   :  { %4863 = vmatmul.mubr.msk.bf16.vlgmr.msra.gmra.mrb[8].mxu0 %vm465_vm0, %v1187_v57 }
 0x51f   :  { %1401 = vmatpush1.bf16.msra.mxu0 %v6030_v56  ;;  %1432 = vmatprep.mubr.bf16.mxu0 %v6439_v48 }
 0x520   :  { %1402 = vmatprep.subr.bf16.mxu0 %v6035_v59 }
 0x523   :  { %1403 = vmatpush1.bf16.msra.mxu0 %v6033_v4 }
 0x524   :  { %5418 = vmatprep.subr.bf16.mxu0 %v6860_v1 }
 0x52a   :  { %4874 = vmatmul.mubr.msk.bf16.vlgmr.msra.gmra.mrb[8].mxu0 %vm465_vm0, %v1371_v61 }
 0x52b   :  { %5419 = vmatpush3.bf16.msra.mxu0 %v6910_v0  ;;  %1506 = vmatprep.mubr.bf16.mxu0 %v1467_v37  ;;  %v1637_v37 = vcombine.high %v4887_v29, %v4887_v29 }
 0x52c   :  { %5420 = vmatprep.subr.bf16.mxu0 %v6916_v14 }
 0x52f   :  { %5421 = vmatpush3.bf16.msra.mxu0 %v6922_v17 }
 0x530   :  { %5422 = vmatprep.subr.bf16.mxu0 %v6931_v22 }
 0x533   :  { %5423 = vmatpush3.bf16.msra.mxu0 %v6940_v43 }
 0x534   :  { %5424 = vmatprep.subr.bf16.mxu0 %v6946_v44 }
 0x537   :  { %5425 = vmatpush3.bf16.msra.mxu0 %v6953_v45 }
 0x538   :  { %5426 = vmatprep.subr.bf16.mxu0 %v6959_v46 }
 0x53b   :  { %5427 = vmatpush3.bf16.msra.mxu0 %v6965_v47 }
 0x53c   :  { %5428 = vmatprep.subr.bf16.mxu0 %v6971_v49 }
 0x53f   :  { %5429 = vmatpush3.bf16.msra.mxu0 %v6977_v50 }
 0x540   :  { %5430 = vmatprep.subr.bf16.mxu0 %v6983_v51 }
 0x543   :  { %5431 = vmatpush3.bf16.msra.mxu0 %v7016_v21 }
 0x544   :  { %5432 = vmatprep.subr.bf16.mxu0 %v7022_v23 }
 0x547   :  { %5433 = vmatpush3.bf16.msra.mxu0 %v7031_v5 }
 0x548   :  { %1584 = vmatprep.subr.bf16.mxu0 %v6038_v3  ;;  %v6045_v3 = vld [vmem:[%s8513_s24 + $0xf0] ss:$8 sps:$4 sm:$0xff]  }
 0x54a   :  { %1507 = vmatmul.mubr.bf16.vlgmr.msra.gmra.mrb[28].mxu0 %v1460_v30  ;;  %v1651_v30 = vrot.slane %v1637_v37, %v6640_v20 }
 0x54b   :  { %1616 = vmatprep.mubr.bf16.mxu0 %v6439_v48  ;;  %1585 = vmatpush1.bf16.msra.mxu0 %v6036_v24  ;;  %v1821_v24 = vcombine.high %v4898_v42, %v4898_v42 }
 0x54c   :  { %1586 = vmatprep.subr.bf16.mxu0 %v6041_v25  ;;  %v1653_v6 = vcombine.high %v1651_v30, %v1651_v30 }
 0x54d   :  { %v1835_v25 = vrot.slane %v1821_v24, %v6640_v20 }
 0x54e   :  { %1730 = vmatprep.mubr.bf16.mxu1 %v1653_v6 }
 0x54f   :  { %1587 = vmatpush1.bf16.msra.mxu0 %v6039_v28  ;;  %1731 = vmatmul.mubr.bf16.vlgmr.msra.gmra.mrb[28].mxu1 %v1652_v10  ;;  %v1828_v28 = vrot.slane %v4898_v42, %v6640_v20  ;;  %v1837_v29 = vcombine.high %v1835_v25, %v1835_v25 }
 0x550   :  { %5462 = vmatprep.subr.bf16.mxu0 %v6860_v1  ;;  %5529 = vmatpush3.bf16.msra.mxu1 %v7065_v19 }
 0x551   :  { %5530 = vmatprep.subr.bf16.mxu1 %v7071_v53  ;;  %v1836_v37 = vcombine.high %v1828_v28, %v1828_v28  ;;  %1914 = vmatprep.mubr.bf16.mxu1 %v1837_v29  ;;  %v7421_v29 = vld [vmem:[%s8514_s1] ss:$0 sm:$0xff]  ;;  %s8515_s1 = sld [smem:[#allocation9_spill]] }
 0x554   :  { %5531 = vmatpush3.bf16.msra.mxu1 %v7077_v54 }
 0x555   :  { %5532 = vmatprep.subr.bf16.mxu1 %v7083_v55 }
 0x558   :  { %5533 = vmatpush3.bf16.msra.mxu1 %v7124_v9 }
 0x559   :  { %5534 = vmatprep.subr.bf16.mxu1 %v7130_v12 }
 0x55c   :  { %5535 = vmatpush3.bf16.msra.mxu1 %v7136_v13 }
 0x55d   :  { %5536 = vmatprep.subr.bf16.mxu1 %v7142_v18 }
 0x560   :  { %5537 = vmatpush3.bf16.msra.mxu1 %v7148_v26 }
 0x561   :  { %5538 = vmatprep.subr.bf16.mxu1 %v7176_v27 }
 0x564   :  { %5539 = vmatpush3.bf16.msra.mxu1 %v7182_v33 }
 0x565   :  { %5540 = vmatprep.subr.bf16.mxu1 %v7188_v34 }
 0x568   :  { %5541 = vmatpush3.bf16.msra.mxu1 %v7194_v35 }
 0x569   :  { %5542 = vmatprep.subr.bf16.mxu1 %v7200_v36 }
 0x56c   :  { %5543 = vmatpush3.bf16.msra.mxu1 %v7245_v8 }
 0x56d   :  { %5550 = vmatprep.subr.bf16.mxu1 %v6860_v1 }
 0x56f   :  { %1915 = vmatmul.mubr.bf16.vlgmr.msra.gmra.mrb[32].mxu1 %v1836_v37 }
 0x570   :  { %5551 = vmatpush3.bf16.msra.mxu1 %v6910_v0 }
 0x571   :  { %5552 = vmatprep.subr.bf16.mxu1 %v6916_v14 }
 0x574   :  { %5553 = vmatpush3.bf16.msra.mxu1 %v6922_v17 }
 0x575   :  { %5554 = vmatprep.subr.bf16.mxu1 %v6931_v22 }
 0x578   :  { %5555 = vmatpush3.bf16.msra.mxu1 %v6940_v43 }
 0x579   :  { %5556 = vmatprep.subr.bf16.mxu1 %v6946_v44 }
 0x57c   :  { %5557 = vmatpush3.bf16.msra.mxu1 %v6953_v45 }
 0x57d   :  { %5558 = vmatprep.subr.bf16.mxu1 %v6959_v46 }
 0x580   :  { %5559 = vmatpush3.bf16.msra.mxu1 %v6965_v47 }
 0x581   :  { %5560 = vmatprep.subr.bf16.mxu1 %v6971_v49 }
 0x584   :  { %5561 = vmatpush3.bf16.msra.mxu1 %v6977_v50 }
 0x585   :  { %5562 = vmatprep.subr.bf16.mxu1 %v6983_v51 }
 0x588   :  { %5563 = vmatpush3.bf16.msra.mxu1 %v7016_v21 }
 0x589   :  { %5564 = vmatprep.subr.bf16.mxu1 %v7022_v23 }
 0x58c   :  { %5565 = vmatpush3.bf16.msra.mxu1 %v7031_v5 }
 0x58d   :  { %5594 = vmatprep.subr.bf16.mxu1 %v6860_v1 }
 0x61d   :  { %v5434_v38 = vpop.f32.mrb[28].mxu0 }
 0x61e   :  { %v5435_v11 = vpop.f32.mrb[29].mxu0 }
 0x61f   :  { %v5436_v39 = vadd.f32 %v5435_v11, %v5434_v38  ;;  %v5437_v16 = vpop.f32.mrb[30].mxu0 }
 0x620   :  { %v5438_v40 = vpop.f32.mrb[31].mxu0 }
 0x621   :  { %v1509_v41 = vadd.f32 %v5436_v39, %v6804_v58 }
 0x622   :  { %v5500_v59 = vpop.f32.mrb[28].mxu1 }
 0x623   :  { %v1549_v32 = vadd.f32 %v5458_v52, %v1509_v41  ;;  %v5501_v4 = vpop.f32.mrb[29].mxu1  ;;  %v6042_v52 = vld [vmem:[%s8513_s24 + $0xe0] ss:$8 sps:$4 sm:$0xff]  }
 0x624   :  { %v5502_v60 = vadd.f32 %v5501_v4, %v5500_v59  ;;  %v5503_v61 = vpop.f32.mrb[30].mxu1  ;;  %v6048_v4 = vld [vmem:[%s8513_s24 + $0x100] ss:$8 sps:$4 sm:$0xff]  }
 0x625   :  { %v1554_v56 = vmax.f32 %v1549_v32, 0.0  ;;  %v5504_v63 = vpop.f32.mrb[31].mxu1  ;;  %v6051_v61 = vld [vmem:[%s8513_s24 + $0x110] ss:$8 sps:$4 sm:$0xff]  }
 0x627   :  { %v1555_v57 = vpack.c.bf16 %v1554_v56, %v1554_v56 }
 0x629   :  { %4885 = vmatmul.mubr.msk.bf16.vlgmr.msra.gmra.mrb[8].mxu0 %vm465_vm0, %v1555_v57  ;;  %v6050_v57 = vld [vmem:[%s8513_s24 + $0x104] ss:$8 sps:$4 sm:$0xff]  }
 0x62a   :  { %5463 = vmatpush3.bf16.msra.mxu0 %v6910_v0  ;;  %1690 = vmatprep.mubr.bf16.mxu0 %v1651_v30 }
 0x62b   :  { %5464 = vmatprep.subr.bf16.mxu0 %v6916_v14 }
 0x62e   :  { %5465 = vmatpush3.bf16.msra.mxu0 %v6922_v17 }
 0x62f   :  { %5466 = vmatprep.subr.bf16.mxu0 %v6931_v22 }
 0x632   :  { %5467 = vmatpush3.bf16.msra.mxu0 %v6940_v43 }
 0x633   :  { %5468 = vmatprep.subr.bf16.mxu0 %v6946_v44 }
 0x636   :  { %5469 = vmatpush3.bf16.msra.mxu0 %v6953_v45 }
 0x637   :  { %5470 = vmatprep.subr.bf16.mxu0 %v6959_v46 }
 0x63a   :  { %5471 = vmatpush3.bf16.msra.mxu0 %v6965_v47 }
 0x63b   :  { %5472 = vmatprep.subr.bf16.mxu0 %v6971_v49 }
 0x63e   :  { %5473 = vmatpush3.bf16.msra.mxu0 %v6977_v50 }
 0x63f   :  { %5474 = vmatprep.subr.bf16.mxu0 %v6983_v51 }
 0x642   :  { %5475 = vmatpush3.bf16.msra.mxu0 %v7016_v21 }
 0x643   :  { %5476 = vmatprep.subr.bf16.mxu0 %v7022_v23 }
 0x646   :  { %5477 = vmatpush3.bf16.msra.mxu0 %v7031_v5 }
 0x647   :  { %1768 = vmatprep.subr.bf16.mxu0 %v6044_v62  ;;  %v4909_v62 = vld.sshfl [vmem:[%s8512_s29 + $0x24] sm:$0x33 pattern:$0x75316420] }
 0x648   :  { %v2005_v63 = vcombine.high %v4909_v62, %v4909_v62 }
 0x649   :  { %1691 = vmatmul.mubr.bf16.vlgmr.msra.gmra.mrb[32].mxu0 %v1644_v31 }
 0x64a   :  { %1800 = vmatprep.mubr.bf16.mxu0 %v6439_v48  ;;  %1769 = vmatpush1.bf16.msra.mxu0 %v6042_v52  ;;  %v2019_v52 = vrot.slane %v2005_v63, %v6640_v20 }
 0x64b   :  { %1770 = vmatprep.subr.bf16.mxu0 %v6047_v2  ;;  %v2012_v2 = vrot.slane %v4909_v62, %v6640_v20 }
 0x64c   :  { %2058 = vmatprep.mubr.bf16.mxu1 %v2019_v52 }
 0x64d   :  { %2059 = vmatmul.mubr.bf16.vlgmr.msra.gmra.mrb[36].mxu1 %v2012_v2 }
 0x64e   :  { %1771 = vmatpush1.bf16.msra.mxu0 %v6045_v3  ;;  %5595 = vmatpush3.bf16.msra.mxu1 %v6910_v0 }
 0x64f   :  { %5506 = vmatprep.subr.bf16.mxu0 %v6860_v1  ;;  %5596 = vmatprep.subr.bf16.mxu1 %v6916_v14 }
 0x652   :  { %5597 = vmatpush3.bf16.msra.mxu1 %v6922_v17 }
 0x653   :  { %5598 = vmatprep.subr.bf16.mxu1 %v6931_v22 }
 0x656   :  { %5599 = vmatpush3.bf16.msra.mxu1 %v6940_v43 }
 0x657   :  { %5600 = vmatprep.subr.bf16.mxu1 %v6946_v44 }
 0x65a   :  { %5601 = vmatpush3.bf16.msra.mxu1 %v6953_v45 }
 0x65b   :  { %5602 = vmatprep.subr.bf16.mxu1 %v6959_v46 }
 0x65e   :  { %5603 = vmatpush3.bf16.msra.mxu1 %v6965_v47 }
 0x65f   :  { %5604 = vmatprep.subr.bf16.mxu1 %v6971_v49 }
 0x662   :  { %5605 = vmatpush3.bf16.msra.mxu1 %v6977_v50 }
 0x663   :  { %5606 = vmatprep.subr.bf16.mxu1 %v6983_v51 }
 0x666   :  { %5607 = vmatpush3.bf16.msra.mxu1 %v7016_v21 }
 0x667   :  { %5608 = vmatprep.subr.bf16.mxu1 %v7022_v23 }
 0x66a   :  { %5609 = vmatpush3.bf16.msra.mxu1 %v7031_v5 }
 0x66b   :  { %5638 = vmatprep.subr.bf16.mxu1 %v6860_v1  ;;  %v2020_v1 = vcombine.high %v2012_v2, %v2012_v2 }
 0x71c   :  { %v5478_v30 = vpop.f32.mrb[32].mxu0 }
 0x71d   :  { %v5479_v31 = vpop.f32.mrb[33].mxu0 }
 0x71e   :  { %v5480_v6 = vadd.f32 %v5479_v31, %v5478_v30  ;;  %v5481_v10 = vpop.f32.mrb[34].mxu0 }
 0x71f   :  { %v5482_v38 = vpop.f32.mrb[35].mxu0 }
 0x720   :  { %v1693_v11 = vadd.f32 %v5480_v6, %v6804_v58  ;;  %v5544_v58 = vpop.f32.mrb[32].mxu1  ;;  %v2021_v6 = vcombine.high %v2019_v52, %v2019_v52 }
 0x721   :  { %v5545_v41 = vpop.f32.mrb[33].mxu1 }
 0x722   :  { %v1733_v39 = vadd.f32 %v5502_v60, %v1693_v11  ;;  %v5546_v32 = vadd.f32 %v5545_v41, %v5544_v58  ;;  %v5547_v56 = vpop.f32.mrb[34].mxu1  ;;  %v6053_v60 = vld [vmem:[%s8513_s24 + $0x114] ss:$8 sps:$4 sm:$0xff]   ;;  %v6056_v58 = vld [vmem:[%s8513_s24 + $0x124] ss:$8 sps:$4 sm:$0xff]  }
 0x723   :  { %v5548_v59 = vpop.f32.mrb[35].mxu1  ;;  %v6054_v41 = vld [vmem:[%s8513_s24 + $0x120] ss:$8 sps:$4 sm:$0xff]   ;;  %v6057_v56 = vld [vmem:[%s8513_s24 + $0x130] ss:$8 sps:$4 sm:$0xff]  }
 0x724   :  { %v1738_v16 = vmax.f32 %v1733_v39, 0.0  ;;  %v5566_v38 = vpop.f32.mrb[36].mxu1 }
 0x725   :  { %v5567_v11 = vpop.f32.mrb[37].mxu1 }
 0x726   :  { %v1739_v40 = vpack.c.bf16 %v1738_v16, %v1738_v16  ;;  %v5568_v39 = vadd.f32 %v5567_v11, %v5566_v38  ;;  %v5569_v16 = vpop.f32.mrb[38].mxu1  ;;  %v4942_v38 = vld.sshfl [vmem:[%s8512_s29 + $0x30] sm:$0x33 pattern:$0x75316420] }
 0x727   :  { %v7548_v11 = vld [vmem:[%s8511_s23 + $0x50] sm:$0xff]  }
 0x728   :  { %4896 = vmatmul.mubr.msk.bf16.vlgmr.msra.gmra.mrb[8].mxu0 %vm465_vm0, %v1739_v40  ;;  %v5570_v40 = vpop.f32.mrb[39].mxu1 }
 0x729   :  { %5507 = vmatpush3.bf16.msra.mxu0 %v6910_v0  ;;  %1874 = vmatprep.mubr.bf16.mxu0 %v1835_v25  ;;  %v7557_v40 = vld [vmem:[%s8511_s23 + $0x10] sm:$0xff]  }
 0x72a   :  { %5508 = vmatprep.subr.bf16.mxu0 %v6916_v14 }
 0x72d   :  { %5509 = vmatpush3.bf16.msra.mxu0 %v6922_v17 }
 0x72e   :  { %5510 = vmatprep.subr.bf16.mxu0 %v6931_v22 }
 0x731   :  { %5511 = vmatpush3.bf16.msra.mxu0 %v6940_v43 }
 0x732   :  { %5512 = vmatprep.subr.bf16.mxu0 %v6946_v44 }
 0x735   :  { %5513 = vmatpush3.bf16.msra.mxu0 %v6953_v45 }
 0x736   :  { %5514 = vmatprep.subr.bf16.mxu0 %v6959_v46 }
 0x739   :  { %5515 = vmatpush3.bf16.msra.mxu0 %v6965_v47 }
 0x73a   :  { %5516 = vmatprep.subr.bf16.mxu0 %v6971_v49 }
 0x73d   :  { %5517 = vmatpush3.bf16.msra.mxu0 %v6977_v50 }
 0x73e   :  { %5518 = vmatprep.subr.bf16.mxu0 %v6983_v51 }
 0x741   :  { %5519 = vmatpush3.bf16.msra.mxu0 %v7016_v21 }
 0x742   :  { %5520 = vmatprep.subr.bf16.mxu0 %v7022_v23 }
 0x745   :  { %5521 = vmatpush3.bf16.msra.mxu0 %v7031_v5 }
 0x746   :  { %1952 = vmatprep.subr.bf16.mxu0 %v6050_v57  ;;  %v4920_v57 = vld.sshfl [vmem:[%s8512_s29 + $0x28] sm:$0x33 pattern:$0x75316420] }
 0x747   :  { %v2189_v59 = vcombine.high %v4920_v57, %v4920_v57 }
 0x748   :  { %1875 = vmatmul.mubr.bf16.vlgmr.msra.gmra.mrb[36].mxu0 %v1828_v28 }
 0x749   :  { %1984 = vmatprep.mubr.bf16.mxu0 %v6439_v48  ;;  %1953 = vmatpush1.bf16.msra.mxu0 %v6048_v4  ;;  %v2203_v4 = vrot.slane %v2189_v59, %v6640_v20  ;;  %v7594_v59 = vld [vmem:[%s8511_s23 + $0x28] sm:$0xff]  }
 0x74a   :  { %1954 = vmatprep.subr.bf16.mxu0 %v6053_v60  ;;  %v2196_v60 = vrot.slane %v4920_v57, %v6640_v20  ;;  %v7588_v57 = vld [vmem:[%s8511_s23 + $0x68] sm:$0xff]  }
 0x74b   :  { %2242 = vmatprep.mubr.bf16.mxu1 %v2203_v4 }
 0x74c   :  { %2243 = vmatmul.mubr.bf16.vlgmr.msra.gmra.mrb[40].mxu1 %v2196_v60 }
 0x74d   :  { %1955 = vmatpush1.bf16.msra.mxu0 %v6051_v61  ;;  %5639 = vmatpush3.bf16.msra.mxu1 %v6910_v0  ;;  %v7477_v0 = vld [vmem:[%s8511_s23 + $0x40] sm:$0xff]  }
 0x74e   :  { %5572 = vmatprep.subr.bf16.mxu0 %v7056_v7  ;;  %5640 = vmatprep.subr.bf16.mxu1 %v6916_v14  ;;  %v2061_v14 = vadd.f32 %v7421_v29, %v5568_v39  ;;  %v2557_v39 = vcombine.high %v4942_v38, %v4942_v38 }
 0x750   :  { %v7552_v16 = vrot.slane %v2557_v39, %v6640_v20  ;;  %v7765_v39 = vld [vmem:[%s8511_s23 + $0xa0] sm:$0xff]  }
 0x751   :  { %5641 = vmatpush3.bf16.msra.mxu1 %v6922_v17 }
 0x752   :  { %5642 = vmatprep.subr.bf16.mxu1 %v6931_v22 }
 0x755   :  { %5643 = vmatpush3.bf16.msra.mxu1 %v6940_v43 }
 0x756   :  { %5644 = vmatprep.subr.bf16.mxu1 %v6946_v44 }
 0x759   :  { %5645 = vmatpush3.bf16.msra.mxu1 %v6953_v45 }
 0x75a   :  { %5646 = vmatprep.subr.bf16.mxu1 %v6959_v46 }
 0x75d   :  { %5647 = vmatpush3.bf16.msra.mxu1 %v6965_v47 }
 0x75e   :  { %5648 = vmatprep.subr.bf16.mxu1 %v6971_v49  ;;  %v2205_v49 = vcombine.high %v2203_v4, %v2203_v4  ;;  %v7600_v4 = vld [vmem:[%s8511_s23 + $0x70] sm:$0xff]  }
 0x761   :  { %5649 = vmatpush3.bf16.msra.mxu1 %v6977_v50 }
 0x762   :  { %5650 = vmatprep.subr.bf16.mxu1 %v6983_v51  ;;  %v2204_v51 = vcombine.high %v2196_v60, %v2196_v60  ;;  %v4953_v60 = vld.sshfl [vmem:[%s8512_s29 + $0x34] sm:$0x33 pattern:$0x75316420] }
 0x765   :  { %5651 = vmatpush3.bf16.msra.mxu1 %v7016_v21 }
 0x766   :  { %5652 = vmatprep.subr.bf16.mxu1 %v7022_v23 }
 0x769   :  { %5653 = vmatpush3.bf16.msra.mxu1 %v7031_v5 }
 0x76a   :  { %5682 = vmatprep.subr.bf16.mxu1 %v7477_v0 }
 0x81b   :  { %v5522_v3 = vpop.f32.mrb[36].mxu0 }
 0x81c   :  { %v5523_v42 = vpop.f32.mrb[37].mxu0 }
 0x81d   :  { %v5524_v24 = vadd.f32 %v5523_v42, %v5522_v3  ;;  %v5525_v25 = vpop.f32.mrb[38].mxu0  ;;  %v6062_v3 = vld [vmem:[%s8513_s24 + $0x144] ss:$8 sps:$4 sm:$0xff]   ;;  %v6060_v42 = vld [vmem:[%s8513_s24 + $0x140] ss:$8 sps:$4 sm:$0xff]  }
 0x81e   :  { %v5526_v28 = vpop.f32.mrb[39].mxu0  ;;  %v6063_v25 = vld [vmem:[%s8513_s24 + $0x150] ss:$8 sps:$4 sm:$0xff]  }
 0x81f   :  { %v1877_v37 = vadd.f32 %v7421_v29, %v5524_v24  ;;  %v5610_v61 = vpop.f32.mrb[40].mxu1  ;;  %v6065_v24 = vld [vmem:[%s8513_s24 + $0x154] ss:$8 sps:$4 sm:$0xff]  }
 0x820   :  { %v5611_v62 = vpop.f32.mrb[41].mxu1  ;;  %v4931_v28 = vld.sshfl [vmem:[%s8512_s29 + $0x2c] sm:$0x33 pattern:$0x75316420] }
 0x821   :  { %v1917_v30 = vadd.f32 %v5546_v32, %v1877_v37  ;;  %v6059_v32 = vld [vmem:[%s8513_s24 + $0x134] ss:$8 sps:$4 sm:$0xff]   ;;  %v7498_v63 = vadd.f32 %v5611_v62, %v5610_v61  ;;  %v5613_v52 = vpop.f32.mrb[42].mxu1  ;;  %v2373_v37 = vcombine.high %v4931_v28, %v4931_v28  ;;  %v7688_v61 = vld [vmem:[%s8511_s23 + $0xc8] sm:$0xff]  }
 0x822   :  { %v5614_v2 = vpop.f32.mrb[43].mxu1  ;;  %v7694_v62 = vld [vmem:[%s8511_s23 + $0x88] sm:$0xff]  }
 0x823   :  { %v1922_v31 = vmax.f32 %v1917_v30, 0.0  ;;  %v7517_v30 = vrot.slane %v2373_v37, %v6640_v20  ;;  %v6068_v2 = vld [vmem:[%s8513_s24 + $0x164] ss:$8 sps:$4 sm:$0xff]   ;;  %v7741_v37 = vld [vmem:[%s8511_s23 + $0x90] sm:$0xff]  }
 0x825   :  { %v1923_v10 = vpack.c.bf16 %v1922_v31, %v1922_v31  ;;  %v7520_v31 = vrot.slane %v4931_v28, %v6640_v20  ;;  %2426 = vmatprep.mubr.bf16.mxu1 %v7517_v30 }
 0x827   :  { %4907 = vmatmul.mubr.msk.bf16.vlgmr.msra.gmra.mrb[8].mxu0 %vm465_vm0, %v1923_v10  ;;  %2427 = vmatmul.mubr.bf16.vlgmr.msra.gmra.mrb[44].mxu1 %v7520_v31  ;;  %v7533_v10 = vld [vmem:[%s8511_s23 + $0x48] sm:$0xff]  }
 0x828   :  { %5573 = vmatpush3.bf16.msra.mxu0 %v7065_v19  ;;  %2098 = vmatprep.mubr.bf16.mxu0 %v2021_v6  ;;  %v7527_v6 = vld [vmem:[%s8511_s23] sm:$0xff]  }
 0x829   :  { %5574 = vmatprep.subr.bf16.mxu0 %v7071_v53  ;;  %5683 = vmatpush3.bf16.msra.mxu1 %v7527_v6 }
 0x82a   :  { %5684 = vmatprep.subr.bf16.mxu1 %v7533_v10  ;;  %2610 = vmatprep.mubr.bf16.mxu1 %v7552_v16 }
 0x82c   :  { %5575 = vmatpush3.bf16.msra.mxu0 %v7077_v54 }
 0x82d   :  { %5576 = vmatprep.subr.bf16.mxu0 %v7083_v55 }
 0x830   :  { %5577 = vmatpush3.bf16.msra.mxu0 %v7124_v9 }
 0x831   :  { %5578 = vmatprep.subr.bf16.mxu0 %v7130_v12 }
 0x834   :  { %5579 = vmatpush3.bf16.msra.mxu0 %v7136_v13 }
 0x835   :  { %5580 = vmatprep.subr.bf16.mxu0 %v7142_v18 }
 0x838   :  { %5581 = vmatpush3.bf16.msra.mxu0 %v7148_v26 }
 0x839   :  { %5582 = vmatprep.subr.bf16.mxu0 %v7176_v27 }
 0x83c   :  { %5583 = vmatpush3.bf16.msra.mxu0 %v7182_v33 }
 0x83d   :  { %5584 = vmatprep.subr.bf16.mxu0 %v7188_v34 }
 0x840   :  { %5585 = vmatpush3.bf16.msra.mxu0 %v7194_v35 }
 0x841   :  { %5586 = vmatprep.subr.bf16.mxu0 %v7200_v36 }
 0x844   :  { %5587 = vmatpush3.bf16.msra.mxu0 %v7245_v8 }
 0x845   :  { %2136 = vmatprep.subr.bf16.mxu0 %v6056_v58  ;;  %v7563_v58 = vld [vmem:[%s8511_s23 + $0x58] sm:$0xff]  }
 0x847   :  { %2099 = vmatmul.mubr.bf16.vlgmr.msra.gmra.mrb[40].mxu0 %v2020_v1  ;;  %v7539_v1 = vld [vmem:[%s8511_s23 + $0x8] sm:$0xff]  }
 0x848   :  { %2168 = vmatprep.mubr.bf16.mxu0 %v6439_v48  ;;  %2137 = vmatpush1.bf16.msra.mxu0 %v6054_v41  ;;  %v7570_v41 = vld [vmem:[%s8511_s23 + $0x18] sm:$0xff]  }
 0x849   :  { %2138 = vmatprep.subr.bf16.mxu0 %v6059_v32  ;;  %5685 = vmatpush3.bf16.msra.mxu1 %v7539_v1  ;;  %v7576_v32 = vld [vmem:[%s8511_s23 + $0x60] sm:$0xff]  }
 0x84a   :  { %5686 = vmatprep.subr.bf16.mxu1 %v7548_v11 }
 0x84c   :  { %2139 = vmatpush1.bf16.msra.mxu0 %v6057_v56  ;;  %v7582_v56 = vld [vmem:[%s8511_s23 + $0x20] sm:$0xff]  }
 0x84d   :  { %5616 = vmatprep.subr.bf16.mxu0 %v7056_v7  ;;  %5687 = vmatpush3.bf16.msra.mxu1 %v7557_v40 }
 0x84e   :  { %5688 = vmatprep.subr.bf16.mxu1 %v7563_v58 }
 0x851   :  { %5689 = vmatpush3.bf16.msra.mxu1 %v7570_v41 }
 0x852   :  { %5690 = vmatprep.subr.bf16.mxu1 %v7576_v32 }
 0x855   :  { %5691 = vmatpush3.bf16.msra.mxu1 %v7582_v56 }
 0x856   :  { %5692 = vmatprep.subr.bf16.mxu1 %v7588_v57 }
 0x859   :  { %5693 = vmatpush3.bf16.msra.mxu1 %v7594_v59 }
 0x85a   :  { %5694 = vmatprep.subr.bf16.mxu1 %v7600_v4 }
 0x85d   :  { %5695 = vmatpush3.bf16.msra.mxu1 %v7016_v21  ;;  %v7633_v21 = vld [vmem:[%s8511_s23 + $0x30] sm:$0xff]  }
 0x85e   :  { %5696 = vmatprep.subr.bf16.mxu1 %v7022_v23  ;;  %v7639_v23 = vld [vmem:[%s8511_s23 + $0x78] sm:$0xff]  }
 0x861   :  { %5697 = vmatpush3.bf16.msra.mxu1 %v7031_v5  ;;  %v7643_v5 = vrot.slane %v4953_v60, %v6640_v20 }
 0x862   :  { %5726 = vmatprep.subr.bf16.mxu1 %v7477_v0 }
 0x863   :  { %v2756_v28 = vcombine.high %v7643_v5, %v7643_v5 }
 0x91a   :  { %v5588_v17 = vpop.f32.mrb[40].mxu0 }
 0x91b   :  { %v5589_v22 = vpop.f32.mrb[41].mxu0 }
 0x91c   :  { %v5590_v43 = vadd.f32 %v5589_v22, %v5588_v17  ;;  %v5591_v44 = vpop.f32.mrb[42].mxu0  ;;  %v7609_v17 = vrot.slane %v4942_v38, %v6640_v20  ;;  %v7759_v38 = vld [vmem:[%s8511_s23 + $0xe0] sm:$0xff]  }
 0x91d   :  { %v5592_v45 = vpop.f32.mrb[43].mxu0 }
 0x91e   :  { %v2101_v46 = vadd.f32 %v5590_v43, %v2061_v14  ;;  %v2741_v14 = vcombine.high %v4953_v60, %v4953_v60  ;;  %2611 = vmatmul.mubr.bf16.vlgmr.msra.gmra.mrb[48].mxu1 %v7609_v17  ;;  %v7648_v43 = vld [vmem:[%s8511_s23 + $0x38] sm:$0xff]   ;;  %v7673_v45 = vld [vmem:[%s8511_s23 + $0xc0] sm:$0xff]  }
 0x91f   :  { %5727 = vmatpush3.bf16.msra.mxu1 %v7527_v6 }
 0x920   :  { %v2106_v47 = vmax.f32 %v2101_v46, 0.0  ;;  %v7613_v22 = vrot.slane %v2741_v14, %v6640_v20  ;;  %5728 = vmatprep.subr.bf16.mxu1 %v7533_v10 }
 0x922   :  { %v2107_v50 = vpack.c.bf16 %v2106_v47, %v2106_v47  ;;  %2794 = vmatprep.mubr.bf16.mxu1 %v7613_v22 }
 0x923   :  { %5729 = vmatpush3.bf16.msra.mxu1 %v7539_v1 }
 0x924   :  { %4918 = vmatmul.mubr.msk.bf16.vlgmr.msra.gmra.mrb[8].mxu0 %vm465_vm0, %v2107_v50  ;;  %5730 = vmatprep.subr.bf16.mxu1 %v7548_v11 }
 0x925   :  { %5617 = vmatpush3.bf16.msra.mxu0 %v7065_v19  ;;  %2282 = vmatprep.mubr.bf16.mxu0 %v2205_v49  ;;  %v2389_v49 = vcombine.high %v7517_v30, %v7517_v30  ;;  %v7747_v30 = vld [vmem:[%s8511_s23 + $0xd8] sm:$0xff]  }
 0x926   :  { %5618 = vmatprep.subr.bf16.mxu0 %v7071_v53 }
 0x927   :  { %5731 = vmatpush3.bf16.msra.mxu1 %v7557_v40 }
 0x928   :  { %5732 = vmatprep.subr.bf16.mxu1 %v7563_v58 }
 0x929   :  { %5619 = vmatpush3.bf16.msra.mxu0 %v7077_v54 }
 0x92a   :  { %5620 = vmatprep.subr.bf16.mxu0 %v7083_v55 }
 0x92b   :  { %5733 = vmatpush3.bf16.msra.mxu1 %v7570_v41 }
 0x92c   :  { %5734 = vmatprep.subr.bf16.mxu1 %v7576_v32 }
 0x92d   :  { %5621 = vmatpush3.bf16.msra.mxu0 %v7124_v9 }
 0x92e   :  { %5622 = vmatprep.subr.bf16.mxu0 %v7130_v12 }
 0x92f   :  { %5735 = vmatpush3.bf16.msra.mxu1 %v7582_v56 }
 0x930   :  { %5736 = vmatprep.subr.bf16.mxu1 %v7588_v57 }
 0x931   :  { %5623 = vmatpush3.bf16.msra.mxu0 %v7136_v13 }
 0x932   :  { %5624 = vmatprep.subr.bf16.mxu0 %v7142_v18 }
 0x933   :  { %5737 = vmatpush3.bf16.msra.mxu1 %v7594_v59 }
 0x934   :  { %5738 = vmatprep.subr.bf16.mxu1 %v7600_v4 }
 0x935   :  { %5625 = vmatpush3.bf16.msra.mxu0 %v7148_v26 }
 0x936   :  { %5626 = vmatprep.subr.bf16.mxu0 %v7176_v27 }
 0x937   :  { %5739 = vmatpush3.bf16.msra.mxu1 %v7633_v21 }
 0x938   :  { %5740 = vmatprep.subr.bf16.mxu1 %v7639_v23 }
 0x939   :  { %5627 = vmatpush3.bf16.msra.mxu0 %v7182_v33 }
 0x93a   :  { %5628 = vmatprep.subr.bf16.mxu0 %v7188_v34 }
 0x93b   :  { %5741 = vmatpush3.bf16.msra.mxu1 %v7648_v43 }
 0x93c   :  { %5748 = vmatprep.subr.bf16.mxu1 %v7056_v7 }
 0x93d   :  { %5629 = vmatpush3.bf16.msra.mxu0 %v7194_v35 }
 0x93e   :  { %5630 = vmatprep.subr.bf16.mxu0 %v7200_v36  ;;  %2795 = vmatmul.mubr.bf16.vlgmr.msra.gmra.mrb[52].mxu1 %v7643_v5 }
 0x93f   :  { %5749 = vmatpush3.bf16.msra.mxu1 %v7065_v19 }
 0x940   :  { %5750 = vmatprep.subr.bf16.mxu1 %v7071_v53 }
 0x941   :  { %5631 = vmatpush3.bf16.msra.mxu0 %v7245_v8 }
 0x942   :  { %2320 = vmatprep.subr.bf16.mxu0 %v6062_v3  ;;  %v6066_v3 = vld [vmem:[%s8513_s24 + $0x160] ss:$8 sps:$4 sm:$0xff]  }
 0x943   :  { %5751 = vmatpush3.bf16.msra.mxu1 %v7077_v54 }
 0x944   :  { %2283 = vmatmul.mubr.bf16.vlgmr.msra.gmra.mrb[44].mxu0 %v2204_v51  ;;  %5752 = vmatprep.subr.bf16.mxu1 %v7083_v55  ;;  %v7682_v51 = vld [vmem:[%s8511_s23 + $0x80] sm:$0xff]  }
 0x945   :  { %2352 = vmatprep.mubr.bf16.mxu0 %v6439_v48  ;;  %2321 = vmatpush1.bf16.msra.mxu0 %v6060_v42  ;;  %v6071_v42 = vld [vmem:[%s8513_s24 + $0x174] ss:$8 sps:$4 sm:$0xff]  }
 0x946   :  { %2322 = vmatprep.subr.bf16.mxu0 %v6065_v24  ;;  %v6069_v24 = vld [vmem:[%s8513_s24 + $0x170] ss:$8 sps:$4 sm:$0xff]  }
 0x947   :  { %5753 = vmatpush3.bf16.msra.mxu1 %v7124_v9 }
 0x948   :  { %5754 = vmatprep.subr.bf16.mxu1 %v7130_v12 }
 0x949   :  { %2323 = vmatpush1.bf16.msra.mxu0 %v6063_v25  ;;  %v2757_v25 = vcombine.high %v7613_v22, %v7613_v22 }
 0x94a   :  { %5660 = vmatprep.subr.bf16.mxu0 %v7056_v7  ;;  %v2245_v7 = vadd.f32 %v7421_v29, %v7498_v63  ;;  %v7700_v63 = vld [vmem:[%s8511_s23 + $0xd0] sm:$0xff]  }
 0x94b   :  { %5755 = vmatpush3.bf16.msra.mxu1 %v7136_v13  ;;  %2834 = vmatprep.mubr.bf16.mxu1 %v2757_v25 }
 0x94c   :  { %5756 = vmatprep.subr.bf16.mxu1 %v7142_v18 }
 0x94f   :  { %5757 = vmatpush3.bf16.msra.mxu1 %v7148_v26 }
 0x950   :  { %5758 = vmatprep.subr.bf16.mxu1 %v7176_v27 }
 0x953   :  { %5759 = vmatpush3.bf16.msra.mxu1 %v7182_v33 }
 0x954   :  { %5760 = vmatprep.subr.bf16.mxu1 %v7188_v34 }
 0x957   :  { %5761 = vmatpush3.bf16.msra.mxu1 %v7194_v35 }
 0x958   :  { %5762 = vmatprep.subr.bf16.mxu1 %v7200_v36 }
 0x95b   :  { %5763 = vmatpush3.bf16.msra.mxu1 %v7245_v8 }
 0x95c   :  { %5792 = vmatprep.subr.bf16.mxu1 %v7673_v45 }
 0x95e   :  { %2835 = vmatmul.mubr.bf16.vlgmr.msra.gmra.mrb[56].mxu1 %v2756_v28 }
 0x95f   :  { %5793 = vmatpush3.bf16.msra.mxu1 %v7682_v51 }
 0x960   :  { %5794 = vmatprep.subr.bf16.mxu1 %v7688_v61 }
 0x963   :  { %5795 = vmatpush3.bf16.msra.mxu1 %v7694_v62 }
 0x964   :  { %5796 = vmatprep.subr.bf16.mxu1 %v7700_v63 }
 0x967   :  { %5797 = vmatpush3.bf16.msra.mxu1 %v7741_v37 }
 0x968   :  { %5798 = vmatprep.subr.bf16.mxu1 %v7747_v30 }
 0xa17   :  { %v5632_v19 = vpop.f32.mrb[44].mxu0 }
 0xa18   :  { %v5633_v53 = vpop.f32.mrb[45].mxu0 }
 0xa19   :  { %v5634_v54 = vadd.f32 %v5633_v53, %v5632_v19  ;;  %v5635_v55 = vpop.f32.mrb[46].mxu0 }
 0xa1a   :  { %v5636_v44 = vpop.f32.mrb[47].mxu0 }
 0xa1b   :  { %v2285_v46 = vadd.f32 %v5634_v54, %v2245_v7 }
 0xa1d   :  { %v2290_v47 = vmax.f32 %v2285_v46, 0.0 }
 0xa1f   :  { %v2291_v50 = vpack.c.bf16 %v2290_v47, %v2290_v47 }
 0xa21   :  { %4929 = vmatmul.mubr.msk.bf16.vlgmr.msra.gmra.mrb[8].mxu0 %vm465_vm0, %v2291_v50 }
 0xa22   :  { %5661 = vmatpush3.bf16.msra.mxu0 %v7682_v51  ;;  %2466 = vmatprep.mubr.bf16.mxu0 %v2389_v49 }
 0xa23   :  { %5662 = vmatprep.subr.bf16.mxu0 %v7688_v61 }
 0xa26   :  { %5663 = vmatpush3.bf16.msra.mxu0 %v7694_v62 }
 0xa27   :  { %5664 = vmatprep.subr.bf16.mxu0 %v7700_v63 }
 0xa2a   :  { %5665 = vmatpush3.bf16.msra.mxu0 %v7124_v9  ;;  %v2388_v9 = vcombine.high %v7520_v31, %v7520_v31  ;;  %v7753_v31 = vld [vmem:[%s8511_s23 + $0x98] sm:$0xff]  }
 0xa2b   :  { %5666 = vmatprep.subr.bf16.mxu0 %v7130_v12  ;;  %v5654_v12 = vpop.f32.mrb[44].mxu1  ;;  %5799 = vmatpush3.bf16.msra.mxu1 %v7753_v31 }
 0xa2c   :  { %5800 = vmatprep.subr.bf16.mxu1 %v7759_v38 }
 0xa2e   :  { %5667 = vmatpush3.bf16.msra.mxu0 %v7136_v13  ;;  %v5655_v13 = vpop.f32.mrb[45].mxu1 }
 0xa2f   :  { %5668 = vmatprep.subr.bf16.mxu0 %v7142_v18  ;;  %v5656_v18 = vadd.f32 %v5655_v13, %v5654_v12  ;;  %5801 = vmatpush3.bf16.msra.mxu1 %v7765_v39  ;;  %v6386_v12 = vld [vmem:[%s8511_s23 + $0xf0] sm:$0xff]  }
 0xa30   :  { %5802 = vmatprep.subr.bf16.mxu1 %v7176_v27  ;;  %v6387_v13 = vld [vmem:[%s8511_s23 + $0xb0] sm:$0xff]  }
 0xa31   :  { %v2429_v44 = vadd.f32 %v7421_v29, %v5656_v18  ;;  %v6388_v18 = vld [vmem:[%s8511_s23 + $0xf8] sm:$0xff]  }
 0xa32   :  { %5669 = vmatpush3.bf16.msra.mxu0 %v7148_v26  ;;  %v5657_v26 = vpop.f32.mrb[46].mxu1 }
 0xa33   :  { %5670 = vmatprep.subr.bf16.mxu0 %v7176_v27  ;;  %v5658_v52 = vpop.f32.mrb[47].mxu1  ;;  %5803 = vmatpush3.bf16.msra.mxu1 %v7182_v33  ;;  %v2572_v26 = vcombine.high %v7609_v17, %v7609_v17  ;;  %v6072_v17 = vld [vmem:[%s8513_s24 + $0x180] ss:$8 sps:$4 sm:$0xff]  }
 0xa34   :  { %v5698_v60 = vpop.f32.mrb[48].mxu1  ;;  %5804 = vmatprep.subr.bf16.mxu1 %v7188_v34 }
 0xa35   :  { %v5699_v14 = vpop.f32.mrb[49].mxu1 }
 0xa36   :  { %5671 = vmatpush3.bf16.msra.mxu0 %v7182_v33  ;;  %v7769_v22 = vadd.f32 %v5699_v14, %v5698_v60  ;;  %v5701_v5 = vpop.f32.mrb[50].mxu1  ;;  %v6074_v60 = vld [vmem:[%s8513_s24 + $0x184] ss:$8 sps:$4 sm:$0xff]   ;;  %v6075_v14 = vld [vmem:[%s8513_s24 + $0x190] ss:$8 sps:$4 sm:$0xff]  }
 0xa37   :  { %5672 = vmatprep.subr.bf16.mxu0 %v7188_v34  ;;  %v5702_v7 = vpop.f32.mrb[51].mxu1  ;;  %5805 = vmatpush3.bf16.msra.mxu1 %v7194_v35  ;;  %v6080_v5 = vld [vmem:[%s8513_s24 + $0x1a4] ss:$8 sps:$4 sm:$0xff]  }
 0xa38   :  { %5806 = vmatprep.subr.bf16.mxu1 %v7200_v36  ;;  %v5742_v19 = vpop.f32.mrb[52].mxu1  ;;  %v4964_v7 = vld.sshfl [vmem:[%s8512_s29 + $0x38] sm:$0x33 pattern:$0x75316420] }
 0xa39   :  { %v5743_v53 = vpop.f32.mrb[53].mxu1 }
 0xa3a   :  { %5673 = vmatpush3.bf16.msra.mxu0 %v7194_v35  ;;  %v5744_v27 = vadd.f32 %v5743_v53, %v5742_v19  ;;  %v5745_v54 = vpop.f32.mrb[54].mxu1  ;;  %v2925_v19 = vcombine.high %v4964_v7, %v4964_v7 }
 0xa3b   :  { %5674 = vmatprep.subr.bf16.mxu0 %v7200_v36  ;;  %5807 = vmatpush3.bf16.msra.mxu1 %v7245_v8  ;;  %v5746_v55 = vpop.f32.mrb[55].mxu1  ;;  %v2573_v36 = vcombine.high %v7552_v16, %v7552_v16  ;;  %v6384_v16 = vld [vmem:[%s8511_s23 + $0xe8] sm:$0xff]  }
 0xa3c   :  { %5836 = vmatprep.subr.bf16.mxu1 %v7673_v45  ;;  %v2797_v52 = vadd.f32 %v7421_v29, %v5744_v27  ;;  %v2939_v53 = vrot.slane %v2925_v19, %v6640_v20  ;;  %v2932_v27 = vrot.slane %v4964_v7, %v6640_v20 }
 0xa3e   :  { %5675 = vmatpush3.bf16.msra.mxu0 %v7245_v8  ;;  %v2941_v54 = vcombine.high %v2939_v53, %v2939_v53  ;;  %v2940_v55 = vcombine.high %v2932_v27, %v2932_v27 }
 0xa3f   :  { %2504 = vmatprep.subr.bf16.mxu0 %v6068_v2  ;;  %v5764_v2 = vpop.f32.mrb[56].mxu1 }
 0xa40   :  { %3018 = vmatprep.mubr.bf16.mxu1 %v2941_v54 }
 0xa41   :  { %2467 = vmatmul.mubr.bf16.vlgmr.msra.gmra.mrb[48].mxu0 %v2388_v9  ;;  %3019 = vmatmul.mubr.bf16.vlgmr.msra.gmra.mrb[60].mxu1 %v2940_v55  ;;  %v6101_v55 = vld [vmem:[%s8487_s6 + $0x14] ss:$8 sps:$4 sm:$0xff]  }
 0xa42   :  { %2536 = vmatprep.mubr.bf16.mxu0 %v6439_v48  ;;  %2505 = vmatpush1.bf16.msra.mxu0 %v6066_v3  ;;  %v5765_v3 = vpop.f32.mrb[57].mxu1 }
 0xa43   :  { %2506 = vmatprep.subr.bf16.mxu0 %v6071_v42  ;;  %v5766_v42 = vadd.f32 %v5765_v3, %v5764_v2  ;;  %5837 = vmatpush3.bf16.msra.mxu1 %v7682_v51 }
 0xa44   :  { %5838 = vmatprep.subr.bf16.mxu1 %v7688_v61 }
 0xa45   :  { %v2837_v28 = vadd.f32 %v5766_v42, %v2797_v52 }
 0xa46   :  { %2507 = vmatpush1.bf16.msra.mxu0 %v6069_v24  ;;  %v5767_v24 = vpop.f32.mrb[58].mxu1 }
 0xa47   :  { %5704 = vmatprep.subr.bf16.mxu0 %v7673_v45  ;;  %v6385_v45 = vld [vmem:[%s8511_s23 + $0xa8] sm:$0xff]   ;;  %v5768_v25 = vpop.f32.mrb[59].mxu1  ;;  %5839 = vmatpush3.bf16.msra.mxu1 %v7694_v62 }
 0xa48   :  { %5840 = vmatprep.subr.bf16.mxu1 %v7700_v63 }
 0xa4b   :  { %5841 = vmatpush3.bf16.msra.mxu1 %v7741_v37 }
 0xa4c   :  { %5842 = vmatprep.subr.bf16.mxu1 %v7747_v30 }
 0xa4f   :  { %5843 = vmatpush3.bf16.msra.mxu1 %v7753_v31 }
 0xa50   :  { %5844 = vmatprep.subr.bf16.mxu1 %v7759_v38 }
 0xa53   :  { %5845 = vmatpush3.bf16.msra.mxu1 %v7765_v39 }
 0xa54   :  { %5846 = vmatprep.subr.bf16.mxu1 %v6384_v16 }
 0xa57   :  { %5847 = vmatpush3.bf16.msra.mxu1 %v6385_v45 }
 0xa58   :  { %5848 = vmatprep.subr.bf16.mxu1 %v6386_v12 }
 0xa5b   :  { %5849 = vmatpush3.bf16.msra.mxu1 %v6387_v13 }
 0xa5c   :  { %5850 = vmatprep.subr.bf16.mxu1 %v6388_v18 }
 0xb14   :  { %v5676_v46 = vpop.f32.mrb[48].mxu0 }
 0xb15   :  { %v5677_v47 = vpop.f32.mrb[49].mxu0 }
 0xb16   :  { %v5678_v33 = vadd.f32 %v5677_v47, %v5676_v46  ;;  %v5679_v49 = vpop.f32.mrb[50].mxu0  ;;  %v6083_v47 = vld [vmem:[%s8513_s24 + $0x1b4] ss:$8 sps:$4 sm:$0xff]  }
 0xb17   :  { %v5680_v34 = vpop.f32.mrb[51].mxu0 }
 0xb18   :  { %v2469_v50 = vadd.f32 %v5678_v33, %v2429_v44  ;;  %v6078_v44 = vld [vmem:[%s8513_s24 + $0x1a0] ss:$8 sps:$4 sm:$0xff]   ;;  %v2842_v33 = vmax.f32 %v2837_v28, 0.0  ;;  %v5808_v34 = vpop.f32.mrb[60].mxu1 }
 0xb1a   :  { %v2474_v35 = vmax.f32 %v2469_v50, 0.0  ;;  %v2843_v49 = vpack.c.bf16 %v2842_v33, %v2842_v33  ;;  %v5809_v50 = vpop.f32.mrb[61].mxu1  ;;  %v6120_v33 = vld [vmem:[%s8487_s6 + $0x80] ss:$8 sps:$4 sm:$0xff]  }
 0xb1c   :  { %v2475_v9 = vpack.c.bf16 %v2474_v35, %v2474_v35  ;;  %v5810_v35 = vadd.f32 %v5809_v50, %v5808_v34  ;;  %v6123_v34 = vld [vmem:[%s8487_s6 + $0x90] ss:$8 sps:$4 sm:$0xff]   ;;  %v6128_v50 = vld [vmem:[%s8487_s6 + $0xa4] ss:$8 sps:$4 sm:$0xff]  }
 0xb1e   :  { %4940 = vmatmul.mubr.msk.bf16.vlgmr.msra.gmra.mrb[8].mxu0 %vm465_vm0, %v2475_v9  ;;  %v6086_v9 = vld [vmem:[%s8513_s24 + $0x1c4] ss:$8 sps:$4 sm:$0xff]  }
 0xb1f   :  { %5705 = vmatpush3.bf16.msra.mxu0 %v7682_v51  ;;  %2650 = vmatprep.mubr.bf16.mxu0 %v2573_v36  ;;  %v6389_v51 = vld [vmem:[%s8511_s23 + $0xb8] sm:$0xff]   ;;  %v5811_v36 = vpop.f32.mrb[62].mxu1 }
 0xb20   :  { %5706 = vmatprep.subr.bf16.mxu0 %v7688_v61  ;;  %5851 = vmatpush3.bf16.msra.mxu1 %v6389_v51  ;;  %v6099_v51 = vld [vmem:[%s8487_s6 + $0x10] ss:$8 sps:$4 sm:$0xff]   ;;  %v6131_v36 = vld [vmem:[%s8487_s6 + $0xb4] ss:$8 sps:$4 sm:$0xff]  }
 0xb23   :  { %5707 = vmatpush3.bf16.msra.mxu0 %v7694_v62 }
 0xb24   :  { %5708 = vmatprep.subr.bf16.mxu0 %v7700_v63  ;;  %v2613_v63 = vadd.f32 %v7421_v29, %v7769_v22  ;;  %v6081_v22 = vld [vmem:[%s8513_s24 + $0x1b0] ss:$8 sps:$4 sm:$0xff]  }
 0xb27   :  { %5709 = vmatpush3.bf16.msra.mxu0 %v7741_v37 }
 0xb28   :  { %5710 = vmatprep.subr.bf16.mxu0 %v7747_v30 }
 0xb2b   :  { %5711 = vmatpush3.bf16.msra.mxu0 %v7753_v31 }
 0xb2c   :  { %5712 = vmatprep.subr.bf16.mxu0 %v7759_v38 }
 0xb2f   :  { %5713 = vmatpush3.bf16.msra.mxu0 %v7765_v39 }
 0xb30   :  { %5714 = vmatprep.subr.bf16.mxu0 %v6384_v16  ;;  %v5812_v16 = vpop.f32.mrb[63].mxu1 }
 0xb31   :  { %v6134_v16 = vld [vmem:[%s8487_s6 + $0xc4] ss:$8 sps:$4 sm:$0xff]  }
 0xb33   :  { %5715 = vmatpush3.bf16.msra.mxu0 %v6385_v45  ;;  %v6084_v45 = vld [vmem:[%s8513_s24 + $0x1c0] ss:$8 sps:$4 sm:$0xff]  }
 0xb34   :  { %5716 = vmatprep.subr.bf16.mxu0 %v6386_v12  ;;  %v6089_v12 = vld [vmem:[%s8513_s24 + $0x1d4] ss:$8 sps:$4 sm:$0xff]  }
 0xb37   :  { %5717 = vmatpush3.bf16.msra.mxu0 %v6387_v13  ;;  %v6087_v13 = vld [vmem:[%s8513_s24 + $0x1d0] ss:$8 sps:$4 sm:$0xff]  }
 0xb38   :  { %5718 = vmatprep.subr.bf16.mxu0 %v6388_v18  ;;  %v4975_v18 = vld.sshfl [vmem:[%s8512_s29 + $0x3c] sm:$0x33 pattern:$0x75316420] }
 0xb39   :  { %v3116_v2 = vrot.slane %v4975_v18, %v6640_v20 }
 0xb3b   :  { %5719 = vmatpush3.bf16.msra.mxu0 %v7245_v8  ;;  %v6077_v8 = vld [vmem:[%s8513_s24 + $0x194] ss:$8 sps:$4 sm:$0xff]   ;;  %v3124_v42 = vcombine.high %v3116_v2, %v3116_v2 }
 0xb3c   :  { %2688 = vmatprep.subr.bf16.mxu0 %v6074_v60 }
 0xb3e   :  { %2651 = vmatmul.mubr.bf16.vlgmr.msra.gmra.mrb[52].mxu0 %v2572_v26  ;;  %v3109_v26 = vcombine.high %v4975_v18, %v4975_v18  ;;  %v6140_v18 = vld [vmem:[%s8487_s6 + $0xe4] ss:$8 sps:$4 sm:$0xff]  }
 0xb3f   :  { %2720 = vmatprep.mubr.bf16.mxu0 %v6439_v48  ;;  %2689 = vmatpush1.bf16.msra.mxu0 %v6072_v17 }
 0xb40   :  { %2690 = vmatprep.subr.bf16.mxu0 %v6077_v8  ;;  %v3123_v52 = vrot.slane %v3109_v26, %v6640_v20  ;;  %v6138_v26 = vld [vmem:[%s8487_s6 + $0xe0] ss:$8 sps:$4 sm:$0xff]  }
 0xb42   :  { %v3125_v3 = vcombine.high %v3123_v52, %v3123_v52 }
 0xb43   :  { %2691 = vmatpush1.bf16.msra.mxu0 %v6075_v14 }
 0xb44   :  { %2872 = vmatprep.subr.bf16.mxu0 %v6080_v5  ;;  %3202 = vmatprep.mubr.bf16.mxu1 %v3125_v3  ;;  %v6144_v3 = vld [vmem:[%s8489_s8 + $0x40] sm:$0xff]  }
 0xb45   :  { %3203 = vmatmul.mubr.bf16.vlgmr.msra.gmra.mrb[64].mxu1 %v3124_v42  ;;  %v6145_v42 = vld [vmem:[%s8489_s8] sm:$0xff]   ;;  %5858 = vmatprep.subr.bf16.mxu1 %v6144_v3 }
 0xb46   :  { %5859 = vmatpush3.bf16.msra.mxu1 %v6145_v42  ;;  %v6179_v42 = vld [vmem:[%s8495_s14] ss:$8 sps:$4 sm:$0xff]  }
 0xc11   :  { %v5720_v61 = vpop.f32.mrb[52].mxu0 }
 0xc12   :  { %v5721_v62 = vpop.f32.mrb[53].mxu0 }
 0xc13   :  { %v5722_v37 = vadd.f32 %v5721_v62, %v5720_v61  ;;  %v5723_v30 = vpop.f32.mrb[54].mxu0  ;;  %v6102_v61 = vld [vmem:[%s8487_s6 + $0x20] ss:$8 sps:$4 sm:$0xff]   ;;  %v6107_v62 = vld [vmem:[%s8487_s6 + $0x34] ss:$8 sps:$4 sm:$0xff]  }
 0xc14   :  { %v5724_v31 = vpop.f32.mrb[55].mxu0  ;;  %v6108_v30 = vld [vmem:[%s8487_s6 + $0x40] ss:$8 sps:$4 sm:$0xff]  }
 0xc15   :  { %v2653_v38 = vadd.f32 %v5722_v37, %v2613_v63  ;;  %v6105_v63 = vld [vmem:[%s8487_s6 + $0x30] ss:$8 sps:$4 sm:$0xff]   ;;  %v6110_v37 = vld [vmem:[%s8487_s6 + $0x44] ss:$8 sps:$4 sm:$0xff]   ;;  %v6113_v31 = vld [vmem:[%s8487_s6 + $0x54] ss:$8 sps:$4 sm:$0xff]  }
 0xc17   :  { %v2658_v39 = vmax.f32 %v2653_v38, 0.0  ;;  %v6111_v38 = vld [vmem:[%s8487_s6 + $0x50] ss:$8 sps:$4 sm:$0xff]  }
 0xc19   :  { %v2659_v46 = vpack.c.bf16 %v2658_v39, %v2658_v39  ;;  %v6116_v39 = vld [vmem:[%s8487_s6 + $0x64] ss:$8 sps:$4 sm:$0xff]  }
 0xc1b   :  { %4951 = vmatmul.mubr.msk.bf16.vlgmr.msra.gmra.mrb[8].mxu0 %vm465_vm0, %v2659_v46  ;;  %v6119_v46 = vld [vmem:[%s8487_s6 + $0x74] ss:$8 sps:$4 sm:$0xff]  }
 0xc1c   :  { %2873 = vmatpush1.bf16.msra.mxu0 %v6078_v44  ;;  %2904 = vmatprep.mubr.bf16.mxu0 %v6439_v48  ;;  %v6114_v44 = vld [vmem:[%s8487_s6 + $0x60] ss:$8 sps:$4 sm:$0xff]  }
 0xc1d   :  { %2874 = vmatprep.subr.bf16.mxu0 %v6083_v47  ;;  %v6117_v47 = vld [vmem:[%s8487_s6 + $0x70] ss:$8 sps:$4 sm:$0xff]  }
 0xc20   :  { %2875 = vmatpush1.bf16.msra.mxu0 %v6081_v22  ;;  %v6122_v22 = vld [vmem:[%s8487_s6 + $0x84] ss:$8 sps:$4 sm:$0xff]  }
 0xc21   :  { %5770 = vmatprep.subr.bf16.mxu0 %v7477_v0 }
 0xc27   :  { %4962 = vmatmul.mubr.msk.bf16.vlgmr.msra.gmra.mrb[8].mxu0 %vm465_vm0, %v2843_v49  ;;  %v6125_v49 = vld [vmem:[%s8487_s6 + $0x94] ss:$8 sps:$4 sm:$0xff]  }
 0xc28   :  { %5771 = vmatpush3.bf16.msra.mxu0 %v7527_v6  ;;  %2978 = vmatprep.mubr.bf16.mxu0 %v2939_v53 }
 0xc29   :  { %5772 = vmatprep.subr.bf16.mxu0 %v7533_v10 }
 0xc2c   :  { %5773 = vmatpush3.bf16.msra.mxu0 %v7539_v1 }
 0xc2d   :  { %5774 = vmatprep.subr.bf16.mxu0 %v7548_v11 }
 0xc30   :  { %5775 = vmatpush3.bf16.msra.mxu0 %v7557_v40 }
 0xc31   :  { %5776 = vmatprep.subr.bf16.mxu0 %v7563_v58 }
 0xc34   :  { %5777 = vmatpush3.bf16.msra.mxu0 %v7570_v41 }
 0xc35   :  { %5778 = vmatprep.subr.bf16.mxu0 %v7576_v32 }
 0xc38   :  { %5779 = vmatpush3.bf16.msra.mxu0 %v7582_v56 }
 0xc39   :  { %5780 = vmatprep.subr.bf16.mxu0 %v7588_v57 }
 0xc3c   :  { %5781 = vmatpush3.bf16.msra.mxu0 %v7594_v59 }
 0xc3d   :  { %5782 = vmatprep.subr.bf16.mxu0 %v7600_v4 }
 0xc40   :  { %5783 = vmatpush3.bf16.msra.mxu0 %v7633_v21 }
 0xc41   :  { %5784 = vmatprep.subr.bf16.mxu0 %v7639_v23 }
 0xc44   :  { %5785 = vmatpush3.bf16.msra.mxu0 %v7648_v43 }
 0xc45   :  { %3056 = vmatprep.subr.bf16.mxu0 %v6086_v9  ;;  %v6129_v9 = vld [vmem:[%s8487_s6 + $0xb0] ss:$8 sps:$4 sm:$0xff]  }
 0xc47   :  { %2979 = vmatmul.mubr.bf16.vlgmr.msra.gmra.mrb[56].mxu0 %v2932_v27  ;;  %v6096_v27 = vld [vmem:[%s8487_s6] ss:$8 sps:$4 sm:$0xff]  }
 0xc48   :  { %3088 = vmatprep.mubr.bf16.mxu0 %v6439_v48  ;;  %3057 = vmatpush1.bf16.msra.mxu0 %v6084_v45  ;;  %v6132_v45 = vld [vmem:[%s8487_s6 + $0xc0] ss:$8 sps:$4 sm:$0xff]  }
 0xc49   :  { %3058 = vmatprep.subr.bf16.mxu0 %v6089_v12  ;;  %v6137_v12 = vld [vmem:[%s8487_s6 + $0xd4] ss:$8 sps:$4 sm:$0xff]  }
 0xc4c   :  { %3059 = vmatpush1.bf16.msra.mxu0 %v6087_v13  ;;  %v6135_v13 = vld [vmem:[%s8487_s6 + $0xd0] ss:$8 sps:$4 sm:$0xff]  }
 0xc4d   :  { %5814 = vmatprep.subr.bf16.mxu0 %v7477_v0 }
 0xd1a   :  { %v5786_v24 = vpop.f32.mrb[56].mxu0 }
 0xd1b   :  { %v5787_v25 = vpop.f32.mrb[57].mxu0 }
 0xd1c   :  { %v5788_v28 = vadd.f32 %v5787_v25, %v5786_v24  ;;  %v5789_v60 = vpop.f32.mrb[58].mxu0  ;;  %v6146_v24 = vld [vmem:[%s8489_s8 + $0x48] sm:$0xff]  }
 0xd1d   :  { %v5790_v17 = vpop.f32.mrb[59].mxu0  ;;  %v6147_v25 = vld [vmem:[%s8489_s8 + $0x8] sm:$0xff]   ;;  %5860 = vmatprep.subr.bf16.mxu1 %v6146_v24  ;;  %v6149_v60 = vld [vmem:[%s8489_s8 + $0x10] sm:$0xff]  }
 0xd1e   :  { %v2981_v0 = vadd.f32 %v7421_v29, %v5788_v28  ;;  %v6148_v28 = vld [vmem:[%s8489_s8 + $0x50] sm:$0xff]   ;;  %5861 = vmatpush3.bf16.msra.mxu1 %v6147_v25  ;;  %v6150_v17 = vld [vmem:[%s8489_s8 + $0x58] sm:$0xff]   ;;  %v6181_v24 = vld [vmem:[%s8495_s14 + $0x4] ss:$8 sps:$4 sm:$0xff]  }
 0xd1f   :  { %5862 = vmatprep.subr.bf16.mxu1 %v6148_v28  ;;  %v6184_v25 = vld [vmem:[%s8495_s14 + $0x14] ss:$8 sps:$4 sm:$0xff]   ;;  %v6182_v28 = vld [vmem:[%s8495_s14 + $0x10] ss:$8 sps:$4 sm:$0xff]  }
 0xd20   :  { %v3021_v8 = vadd.f32 %v5810_v35, %v2981_v0  ;;  %v6126_v35 = vld [vmem:[%s8487_s6 + $0xa0] ss:$8 sps:$4 sm:$0xff]   ;;  %v6151_v0 = vld [vmem:[%s8489_s8 + $0x18] sm:$0xff]  }
 0xd22   :  { %v3026_v14 = vmax.f32 %v3021_v8, 0.0  ;;  %5863 = vmatpush3.bf16.msra.mxu1 %v6149_v60  ;;  %v6152_v8 = vld [vmem:[%s8489_s8 + $0x60] sm:$0xff]  }
 0xd23   :  { %5864 = vmatprep.subr.bf16.mxu1 %v6150_v17  ;;  %v6187_v60 = vld [vmem:[%s8495_s14 + $0x24] ss:$8 sps:$4 sm:$0xff]   ;;  %v6185_v17 = vld [vmem:[%s8495_s14 + $0x20] ss:$8 sps:$4 sm:$0xff]  }
 0xd24   :  { %v3027_v5 = vpack.c.bf16 %v3026_v14, %v3026_v14  ;;  %v6153_v14 = vld [vmem:[%s8489_s8 + $0x20] sm:$0xff]  }
 0xd26   :  { %4973 = vmatmul.mubr.msk.bf16.vlgmr.msra.gmra.mrb[8].mxu0 %vm465_vm0, %v3027_v5  ;;  %5865 = vmatpush3.bf16.msra.mxu1 %v6151_v0  ;;  %v6154_v5 = vld [vmem:[%s8489_s8 + $0x68] sm:$0xff]   ;;  %v6190_v0 = vld [vmem:[%s8495_s14 + $0x34] ss:$8 sps:$4 sm:$0xff]  }
 0xd27   :  { %5815 = vmatpush3.bf16.msra.mxu0 %v7527_v6  ;;  %3162 = vmatprep.mubr.bf16.mxu0 %v3123_v52  ;;  %v5852_v6 = vpop.f32.mrb[64].mxu1  ;;  %v6143_v52 = vld [vmem:[%s8487_s6 + $0xf4] ss:$8 sps:$4 sm:$0xff]  }
 0xd28   :  { %5816 = vmatprep.subr.bf16.mxu0 %v7533_v10  ;;  %v5853_v10 = vpop.f32.mrb[65].mxu1  ;;  %5866 = vmatprep.subr.bf16.mxu1 %v6152_v8  ;;  %v6188_v8 = vld [vmem:[%s8495_s14 + $0x30] ss:$8 sps:$4 sm:$0xff]  }
 0xd2a   :  { %5867 = vmatpush3.bf16.msra.mxu1 %v6153_v14  ;;  %v6193_v14 = vld [vmem:[%s8495_s14 + $0x44] ss:$8 sps:$4 sm:$0xff]  }
 0xd2b   :  { %5817 = vmatpush3.bf16.msra.mxu0 %v7539_v1  ;;  %v5854_v1 = vadd.f32 %v5853_v10, %v5852_v6  ;;  %v6155_v6 = vld [vmem:[%s8489_s8 + $0x28] sm:$0xff]   ;;  %5868 = vmatprep.subr.bf16.mxu1 %v6154_v5  ;;  %v8056_v10 = vsub.s32 0, %v6623_v15 }
 0xd2c   :  { %5818 = vmatprep.subr.bf16.mxu0 %v7548_v11  ;;  %v5855_v11 = vpop.f32.mrb[66].mxu1  ;;  %v6191_v5 = vld [vmem:[%s8495_s14 + $0x40] ss:$8 sps:$4 sm:$0xff]  }
 0xd2d   :  { %v8062_v11 = vsub.s32 1, %v6623_v15 }
 0xd2e   :  { %5869 = vmatpush3.bf16.msra.mxu1 %v6155_v6  ;;  %v6196_v6 = vld [vmem:[%s8495_s14 + $0x54] ss:$8 sps:$4 sm:$0xff]  }
 0xd2f   :  { %5819 = vmatpush3.bf16.msra.mxu0 %v7557_v40  ;;  %v5856_v40 = vpop.f32.mrb[67].mxu1 }
 0xd30   :  { %5820 = vmatprep.subr.bf16.mxu0 %v7563_v58  ;;  %v6092_v58 = vld [vmem:[%s8513_s24 + $0x1e4] ss:$8 sps:$4 sm:$0xff]  }
 0xd33   :  { %5821 = vmatpush3.bf16.msra.mxu0 %v7570_v41  ;;  %v6090_v41 = vld [vmem:[%s8513_s24 + $0x1e0] ss:$8 sps:$4 sm:$0xff]  }
 0xd34   :  { %5822 = vmatprep.subr.bf16.mxu0 %v7576_v32  ;;  %v6095_v32 = vld [vmem:[%s8513_s24 + $0x1f4] ss:$8 sps:$4 sm:$0xff]  }
 0xd37   :  { %5823 = vmatpush3.bf16.msra.mxu0 %v7582_v56  ;;  %v6093_v56 = vld [vmem:[%s8513_s24 + $0x1f0] ss:$8 sps:$4 sm:$0xff]  }
 0xd38   :  { %5824 = vmatprep.subr.bf16.mxu0 %v7588_v57  ;;  %v6098_v57 = vld [vmem:[%s8487_s6 + $0x4] ss:$8 sps:$4 sm:$0xff]  }
 0xd3b   :  { %5825 = vmatpush3.bf16.msra.mxu0 %v7594_v59 }
 0xd3c   :  { %5826 = vmatprep.subr.bf16.mxu0 %v7600_v4 }
 0xd3f   :  { %5827 = vmatpush3.bf16.msra.mxu0 %v7633_v21 }
 0xd40   :  { %5828 = vmatprep.subr.bf16.mxu0 %v7639_v23 }
 0xd43   :  { %5829 = vmatpush3.bf16.msra.mxu0 %v7648_v43 }
 0xd44   :  { %3240 = vmatprep.subr.bf16.mxu0 %v6092_v58 }
 0xd46   :  { %3163 = vmatmul.mubr.bf16.vlgmr.msra.gmra.mrb[60].mxu0 %v3116_v2  ;;  %v6141_v2 = vld [vmem:[%s8487_s6 + $0xf0] ss:$8 sps:$4 sm:$0xff]  }
 0xd47   :  { %3272 = vmatprep.mubr.bf16.mxu0 %v6439_v48  ;;  %3241 = vmatpush1.bf16.msra.mxu0 %v6090_v41 }
 0xd48   :  { %3242 = vmatprep.subr.bf16.mxu0 %v6095_v32 }
 0xd4b   :  { %3243 = vmatpush1.bf16.msra.mxu0 %v6093_v56 }
 0xd4c   :  { %3491 = vmatprep.subr.bf16.mxu0 %v6098_v57 }
 0xe19   :  { %v5830_v59 = vpop.f32.mrb[60].mxu0 }
 0xe1a   :  { %v5831_v4 = vpop.f32.mrb[61].mxu0 }
 0xe1b   :  { %v5832_v21 = vadd.f32 %v5831_v4, %v5830_v59  ;;  %v5833_v23 = vpop.f32.mrb[62].mxu0 }
 0xe1c   :  { %v5834_v43 = vpop.f32.mrb[63].mxu0 }
 0xe1d   :  { %v3165_v7 = vadd.f32 %v7421_v29, %v5832_v21  ;;  %v6104_v29 = vld [vmem:[%s8487_s6 + $0x24] ss:$8 sps:$4 sm:$0xff]  }
 0xe1f   :  { %v3205_v19 = vadd.f32 %v5854_v1, %v3165_v7  ;;  %v130_v1 = vld [vmem:[%s8486_s5] sm:$0x3] }
 0xe20   :  { %v514_v40 = vrot.slane %v130_v1, %v8056_v10  ;;  %v518_v58 = vrot.slane %v130_v1, %v8062_v11  ;;  %v6194_v1 = vld [vmem:[%s8495_s14 + $0x50] ss:$8 sps:$4 sm:$0xff]  }
 0xe21   :  { %v3210_v53 = vmax.f32 %v3205_v19, 0.0  ;;  %v6156_v19 = vld [vmem:[%s8489_s8 + $0x70] sm:$0xff]  }
 0xe22   :  { %5870 = vmatprep.subr.bf16.mxu1 %v6156_v19  ;;  %v6217_v19 = vld [vmem:[%s8495_s14 + $0xc4] ss:$8 sps:$4 sm:$0xff]  }
 0xe23   :  { %v3211_v54 = vpack.c.bf16 %v3210_v53, %v3210_v53  ;;  %v6157_v53 = vld [vmem:[%s8489_s8 + $0x30] sm:$0xff]  }
 0xe24   :  { %5871 = vmatpush3.bf16.msra.mxu1 %v6157_v53  ;;  %v6215_v53 = vld [vmem:[%s8495_s14 + $0xc0] ss:$8 sps:$4 sm:$0xff]  }
 0xe25   :  { %4984 = vmatmul.mubr.msk.bf16.vlgmr.msra.gmra.mrb[8].mxu0 %vm465_vm0, %v3211_v54  ;;  %v6159_v54 = vld [vmem:[%s8489_s8 + $0x38] sm:$0xff]  }
 0xe26   :  { %3492 = vmatpush1.bf16.msra.mxu0 %v6096_v27  ;;  %v6158_v27 = vld [vmem:[%s8489_s8 + $0x78] sm:$0xff]  }
 0xe27   :  { %3493 = vmatprep.subr.bf16.mxu0 %v6101_v55  ;;  %5872 = vmatprep.subr.bf16.mxu1 %v6158_v27  ;;  %v3319_v55 = vld [vmem:[%s8488_s7] sm:$0x3]  ;;  %v6220_v27 = vld [vmem:[%s8495_s14 + $0xd4] ss:$8 sps:$4 sm:$0xff]  }
 0xe28   :  { %5873 = vmatpush3.bf16.msra.mxu1 %v6159_v54  ;;  %v6218_v54 = vld [vmem:[%s8495_s14 + $0xd0] ss:$8 sps:$4 sm:$0xff]  }
 0xe2a   :  { %3494 = vmatpush1.bf16.msra.mxu0 %v6099_v51  ;;  %v3324_v51 = vrot.slane %v3319_v55, %v8056_v10 }
 0xe2b   :  { %3495 = vmatprep.subr.bf16.mxu0 %v6104_v29  ;;  %v3328_v29 = vrot.slane %v3319_v55, %v8062_v11  ;;  %v5017_v55 = vld [vmem:[%s8490_s9] ss:$0 sm:$0xff] }
 0xe2e   :  { %3496 = vmatpush1.bf16.msra.mxu0 %v6102_v61 }
 0xe2f   :  { %3497 = vmatprep.subr.bf16.mxu0 %v6107_v62 }
 0xe32   :  { %3498 = vmatpush1.bf16.msra.mxu0 %v6105_v63 }
 0xe33   :  { %3499 = vmatprep.subr.bf16.mxu0 %v6110_v37 }
 0xe36   :  { %3500 = vmatpush1.bf16.msra.mxu0 %v6108_v30 }
 0xe37   :  { %3501 = vmatprep.subr.bf16.mxu0 %v6113_v31 }
 0xe3a   :  { %3502 = vmatpush1.bf16.msra.mxu0 %v6111_v38 }
 0xe3b   :  { %3503 = vmatprep.subr.bf16.mxu0 %v6116_v39 }
 0xe3e   :  { %3504 = vmatpush1.bf16.msra.mxu0 %v6114_v44 }
 0xe3f   :  { %3505 = vmatprep.subr.bf16.mxu0 %v6119_v46  ;;  %v6161_v46 = vld [vmem:[%s8491_s10] sm:$0xff]  }
 0xe42   :  { %3506 = vmatpush1.bf16.msra.mxu0 %v6117_v47 }
 0xe43   :  { %3507 = vmatprep.subr.bf16.mxu0 %v6122_v22  ;;  %v6162_v22 = vld [vmem:[%s8491_s10 + $0x48] sm:$0xff]  }
 0xe46   :  { %3508 = vmatpush1.bf16.msra.mxu0 %v6120_v33  ;;  %v6163_v33 = vld [vmem:[%s8491_s10 + $0x8] sm:$0xff]  }
 0xe47   :  { %3509 = vmatprep.subr.bf16.mxu0 %v6125_v49  ;;  %v6164_v49 = vld [vmem:[%s8491_s10 + $0x50] sm:$0xff]  }
 0xe4a   :  { %3510 = vmatpush1.bf16.msra.mxu0 %v6123_v34  ;;  %v6165_v34 = vld [vmem:[%s8491_s10 + $0x10] sm:$0xff]  }
 0xe4b   :  { %3511 = vmatprep.subr.bf16.mxu0 %v6128_v50  ;;  %v6166_v50 = vld [vmem:[%s8491_s10 + $0x58] sm:$0xff]  }
 0xe4e   :  { %3512 = vmatpush1.bf16.msra.mxu0 %v6126_v35  ;;  %v6167_v35 = vld [vmem:[%s8491_s10 + $0x18] sm:$0xff]  }
 0xe4f   :  { %3513 = vmatprep.subr.bf16.mxu0 %v6131_v36  ;;  %v6168_v36 = vld [vmem:[%s8491_s10 + $0x60] sm:$0xff]  }
 0xe52   :  { %3514 = vmatpush1.bf16.msra.mxu0 %v6129_v9  ;;  %v6169_v9 = vld [vmem:[%s8491_s10 + $0x20] sm:$0xff]  }
 0xe53   :  { %3515 = vmatprep.subr.bf16.mxu0 %v6134_v16  ;;  %v6170_v16 = vld [vmem:[%s8491_s10 + $0x68] sm:$0xff]  }
 0xe56   :  { %3516 = vmatpush1.bf16.msra.mxu0 %v6132_v45  ;;  %v6171_v45 = vld [vmem:[%s8491_s10 + $0x28] sm:$0xff]  }
 0xe57   :  { %3517 = vmatprep.subr.bf16.mxu0 %v6137_v12  ;;  %v6172_v12 = vld [vmem:[%s8491_s10 + $0x70] sm:$0xff]  }
 0xe5a   :  { %3518 = vmatpush1.bf16.msra.mxu0 %v6135_v13  ;;  %v6173_v13 = vld [vmem:[%s8491_s10 + $0x30] sm:$0xff]  }
 0xe5b   :  { %3519 = vmatprep.subr.bf16.mxu0 %v6140_v18  ;;  %v6174_v18 = vld [vmem:[%s8491_s10 + $0x78] sm:$0xff]  }
 0xe5e   :  { %3520 = vmatpush1.bf16.msra.mxu0 %v6138_v26  ;;  %v6175_v26 = vld [vmem:[%s8491_s10 + $0x38] sm:$0xff]  }
 0xe5f   :  { %3521 = vmatprep.subr.bf16.mxu0 %v6143_v52  ;;  %v6176_v52 = vld [vmem:[%s8493_s12 + $0x4] ss:$8 sps:$4 sm:$0x1f]  }
 0xe62   :  { %3522 = vmatpush1.bf16.msra.mxu0 %v6141_v2  ;;  %v6178_v2 = vld [vmem:[%s8493_s12] ss:$8 sps:$4 sm:$0x1f]  }
 0xe63   :  { %5053 = vmatprep.subr.msk.bf16.mxu0 %vm3922_vm1, %v6176_v52  ;;  %v3924_v3 = vsel %vm3922_vm1, %v6178_v2, 0  ;;  %v6233_v52 = vld [vmem:[%s8497_s16 + $0x20] ss:$16 sps:$4 sm:$0xff]   ;;  %v6241_v2 = vld [vmem:[%s8497_s16 + $0x44] ss:$16 sps:$4 sm:$0xff]  }
 0xef8   :  { %v3274_v41 = vpop.f32.mrb[8].mxu0 }
 0xef9   :  { %v5902_v32 = vadd.f32 %v3274_v41, %v514_v40  ;;  %v3276_v56 = vpop.f32.mrb[9].mxu0  ;;  %v6199_v40 = vld [vmem:[%s8495_s14 + $0x64] ss:$8 sps:$4 sm:$0xff]   ;;  %v6202_v41 = vld [vmem:[%s8495_s14 + $0x74] ss:$8 sps:$4 sm:$0xff]  }
 0xefa   :  { %v5903_v57 = vadd.f32 %v3276_v56, %v518_v58  ;;  %v3278_v59 = vpop.f32.mrb[10].mxu0  ;;  %v6197_v58 = vld [vmem:[%s8495_s14 + $0x60] ss:$8 sps:$4 sm:$0xff]   ;;  %v6205_v56 = vld [vmem:[%s8495_s14 + $0x84] ss:$8 sps:$4 sm:$0xff]  }
 0xefb   :  { %v3283_v4 = vmax.f32 %v5902_v32, 0.0  ;;  %v3279_v21 = vpop.f32.mrb[11].mxu0  ;;  %v6200_v32 = vld [vmem:[%s8495_s14 + $0x70] ss:$8 sps:$4 sm:$0xff]   ;;  %v6208_v59 = vld [vmem:[%s8495_s14 + $0x94] ss:$8 sps:$4 sm:$0xff]  }
 0xefc   :  { %v3284_v23 = vmax.f32 %v5903_v57, 0.0  ;;  %v6203_v57 = vld [vmem:[%s8495_s14 + $0x80] ss:$8 sps:$4 sm:$0xff]   ;;  %v6211_v21 = vld [vmem:[%s8495_s14 + $0xa4] ss:$8 sps:$4 sm:$0xff]  }
 0xefd   :  { %v3285_v7 = vpack.c.bf16 %v3283_v4, %v3283_v4  ;;  %v6206_v4 = vld [vmem:[%s8495_s14 + $0x90] ss:$8 sps:$4 sm:$0xff]  }
 0xefe   :  { %v3286_v43 = vpack.c.bf16 %v3284_v23, %v3284_v23  ;;  %v6209_v23 = vld [vmem:[%s8495_s14 + $0xa0] ss:$8 sps:$4 sm:$0xff]  }
 0xf00   :  { %3523 = vmatprep.mubr.bf16.mxu0 %v3286_v43  ;;  %v6214_v43 = vld [vmem:[%s8495_s14 + $0xb4] ss:$8 sps:$4 sm:$0xff]  }
 0xf01   :  { %3524 = vmatmul.mubr.bf16.vlgmr.msra.gmra.mrb[64].mxu0 %v3285_v7  ;;  %v6212_v7 = vld [vmem:[%s8495_s14 + $0xb0] ss:$8 sps:$4 sm:$0xff]  }
 0xf02   :  { %3961 = vmatprep.mubr.bf16.mxu0 %v6439_v48  ;;  %v6160_v48 = vld [vmem:[%s8491_s10 + $0x40] sm:$0xff]   ;;  %3930 = vmatpush1.bf16.msra.mxu0 %v3924_v3 }
 0xf03   :  { %5880 = vmatprep.subr.bf16.mxu1 %v6160_v48  ;;  %v6239_v3 = vld [vmem:[%s8497_s16 + $0x40] ss:$16 sps:$4 sm:$0xff]  }
 0xfd4   :  { %v3525_v61 = vpop.f32.mrb[64].mxu0 }
 0xfd5   :  { %v3526_v62 = vadd.f32 %v3525_v61, %v3324_v51  ;;  %v3527_v63 = vpop.f32.mrb[65].mxu0 }
 0xfd6   :  { %v3528_v37 = vadd.f32 %v3527_v63, %v3328_v29  ;;  %v3529_v30 = vpop.f32.mrb[66].mxu0 }
 0xfd7   :  { %v3532_v31 = vmax.f32 %v3526_v62, 0.0  ;;  %v3530_v38 = vpop.f32.mrb[67].mxu0  ;;  %v5034_v30 = vld [vmem:[%s8492_s11] ss:$0 sm:$0xff] }
 0xfd8   :  { %v3533_v39 = vmax.f32 %v3528_v37, 0.0 }
 0xfd9   :  { %v3534_v47 = vpack.c.bf16 %v3532_v31, %v3532_v31 }
 0xfda   :  { %v3535_v44 = vpack.c.bf16 %v3533_v39, %v3533_v39 }
 0xfdc   :  { %3703 = vmatprep.mubr.bf16.mxu1 %v3535_v44 }
 0xfdd   :  { %3704 = vmatmul.mubr.bf16.vlgmr.msra.gmra.mrb[68].mxu1 %v3534_v47 }
 0xfde   :  { %5881 = vmatpush3.bf16.msra.mxu1 %v6161_v46  ;;  %3878 = vmatprep.mubr.bf16.mxu1 %v3535_v44 }
 0xfdf   :  { %5882 = vmatprep.subr.bf16.mxu1 %v6162_v22 }
 0xfe2   :  { %5883 = vmatpush3.bf16.msra.mxu1 %v6163_v33  ;;  %v3892_v33 = vld [vmem:[%s8515_s1] sm:$0x3] }
 0xfe3   :  { %5884 = vmatprep.subr.bf16.mxu1 %v6164_v49 }
 0xfe6   :  { %5885 = vmatpush3.bf16.msra.mxu1 %v6165_v34 }
 0xfe7   :  { %5886 = vmatprep.subr.bf16.mxu1 %v6166_v50 }
 0xfea   :  { %5887 = vmatpush3.bf16.msra.mxu1 %v6167_v35 }
 0xfeb   :  { %5888 = vmatprep.subr.bf16.mxu1 %v6168_v36  ;;  %v6223_v36 = vld [vmem:[%s8495_s14 + $0xe4] ss:$8 sps:$4 sm:$0xff]  }
 0xfee   :  { %5889 = vmatpush3.bf16.msra.mxu1 %v6169_v9  ;;  %v6221_v9 = vld [vmem:[%s8495_s14 + $0xe0] ss:$8 sps:$4 sm:$0xff]  }
 0xfef   :  { %5890 = vmatprep.subr.bf16.mxu1 %v6170_v16  ;;  %v6226_v16 = vld [vmem:[%s8495_s14 + $0xf4] ss:$8 sps:$4 sm:$0xff]  }
 0xff2   :  { %5891 = vmatpush3.bf16.msra.mxu1 %v6171_v45  ;;  %v6224_v45 = vld [vmem:[%s8495_s14 + $0xf0] ss:$8 sps:$4 sm:$0xff]  }
 0xff3   :  { %5892 = vmatprep.subr.bf16.mxu1 %v6172_v12  ;;  %v6227_v12 = vld [vmem:[%s8497_s16] ss:$16 sps:$4 sm:$0xff]  }
 0xff6   :  { %5893 = vmatpush3.bf16.msra.mxu1 %v6173_v13  ;;  %v6229_v13 = vld [vmem:[%s8497_s16 + $0x4] ss:$16 sps:$4 sm:$0xff]  }
 0xff7   :  { %5894 = vmatprep.subr.bf16.mxu1 %v6174_v18  ;;  %v6232_v18 = vld [vmem:[%s8497_s16 + $0xc] ss:$16 sps:$4 sm:$0xff]   ;;  %4629 = vmatprep.subr.bf16.mxu0 %v6229_v13 }
 0xff8   :  { %v6292_v13 = vld [vmem:[%s8497_s16 + $0x14c] ss:$16 sps:$4 sm:$0xff]  }
 0xffa   :  { %5895 = vmatpush3.bf16.msra.mxu1 %v6175_v26  ;;  %v6235_v26 = vld [vmem:[%s8497_s16 + $0x24] ss:$16 sps:$4 sm:$0xff]  }
 0xffb   :  { %4178 = vmatprep.subr.bf16.mxu1 %v6181_v24  ;;  %v6245_v24 = vld [vmem:[%s8497_s16 + $0x60] ss:$16 sps:$4 sm:$0xff]  }
 0xffd   :  { %3879 = vmatmul.mubr.bf16.vlgmr.msra.gmra.mrb[72].mxu1 %v3534_v47 }
 0xffe   :  { %4179 = vmatpush1.bf16.msra.mxu1 %v6179_v42  ;;  %v6247_v42 = vld [vmem:[%s8497_s16 + $0x64] ss:$16 sps:$4 sm:$0xff]  }
 0xfff   :  { %4180 = vmatprep.subr.bf16.mxu1 %v6184_v25  ;;  %v6253_v25 = vld [vmem:[%s8497_s16 + $0x84] ss:$16 sps:$4 sm:$0xff]  }
0x1002   :  { %4181 = vmatpush1.bf16.msra.mxu1 %v6182_v28  ;;  %v6251_v28 = vld [vmem:[%s8497_s16 + $0x80] ss:$16 sps:$4 sm:$0xff]  }
0x1003   :  { %4182 = vmatprep.subr.bf16.mxu1 %v6187_v60  ;;  %v6259_v60 = vld [vmem:[%s8497_s16 + $0xa4] ss:$16 sps:$4 sm:$0xff]  }
0x1006   :  { %4183 = vmatpush1.bf16.msra.mxu1 %v6185_v17  ;;  %v6257_v17 = vld [vmem:[%s8497_s16 + $0xa0] ss:$16 sps:$4 sm:$0xff]  }
0x1007   :  { %4184 = vmatprep.subr.bf16.mxu1 %v6190_v0  ;;  %v6265_v0 = vld [vmem:[%s8497_s16 + $0xc4] ss:$16 sps:$4 sm:$0xff]  }
0x100a   :  { %4185 = vmatpush1.bf16.msra.mxu1 %v6188_v8  ;;  %v6263_v8 = vld [vmem:[%s8497_s16 + $0xc0] ss:$16 sps:$4 sm:$0xff]  }
0x100b   :  { %4186 = vmatprep.subr.bf16.mxu1 %v6193_v14  ;;  %v6271_v14 = vld [vmem:[%s8497_s16 + $0xe4] ss:$16 sps:$4 sm:$0xff]  }
0x100e   :  { %4187 = vmatpush1.bf16.msra.mxu1 %v6191_v5  ;;  %v6269_v5 = vld [vmem:[%s8497_s16 + $0xe0] ss:$16 sps:$4 sm:$0xff]  }
0x100f   :  { %4188 = vmatprep.subr.bf16.mxu1 %v6196_v6  ;;  %v6277_v6 = vld [vmem:[%s8497_s16 + $0x104] ss:$16 sps:$4 sm:$0xff]  }
0x1012   :  { %4189 = vmatpush1.bf16.msra.mxu1 %v6194_v1  ;;  %v6275_v1 = vld [vmem:[%s8497_s16 + $0x100] ss:$16 sps:$4 sm:$0xff]  }
0x1013   :  { %4190 = vmatprep.subr.bf16.mxu1 %v6199_v40  ;;  %v6283_v40 = vld [vmem:[%s8497_s16 + $0x124] ss:$16 sps:$4 sm:$0xff]  }
0x1016   :  { %4191 = vmatpush1.bf16.msra.mxu1 %v6197_v58  ;;  %v6281_v58 = vld [vmem:[%s8497_s16 + $0x120] ss:$16 sps:$4 sm:$0xff]  }
0x1017   :  { %4192 = vmatprep.subr.bf16.mxu1 %v6202_v41  ;;  %v6289_v41 = vld [vmem:[%s8497_s16 + $0x144] ss:$16 sps:$4 sm:$0xff]  }
0x101a   :  { %4193 = vmatpush1.bf16.msra.mxu1 %v6200_v32  ;;  %v6287_v32 = vld [vmem:[%s8497_s16 + $0x140] ss:$16 sps:$4 sm:$0xff]  }
0x101b   :  { %4194 = vmatprep.subr.bf16.mxu1 %v6205_v56  ;;  %v6295_v56 = vld [vmem:[%s8497_s16 + $0x164] ss:$16 sps:$4 sm:$0xff]  }
0x101e   :  { %4195 = vmatpush1.bf16.msra.mxu1 %v6203_v57  ;;  %v6293_v57 = vld [vmem:[%s8497_s16 + $0x160] ss:$16 sps:$4 sm:$0xff]  }
0x101f   :  { %4196 = vmatprep.subr.bf16.mxu1 %v6208_v59  ;;  %v6301_v59 = vld [vmem:[%s8497_s16 + $0x184] ss:$16 sps:$4 sm:$0xff]  }
0x1022   :  { %4197 = vmatpush1.bf16.msra.mxu1 %v6206_v4  ;;  %v6299_v4 = vld [vmem:[%s8497_s16 + $0x180] ss:$16 sps:$4 sm:$0xff]  }
0x1023   :  { %4198 = vmatprep.subr.bf16.mxu1 %v6211_v21  ;;  %v6307_v21 = vld [vmem:[%s8497_s16 + $0x1a4] ss:$16 sps:$4 sm:$0xff]  }
0x1026   :  { %4199 = vmatpush1.bf16.msra.mxu1 %v6209_v23  ;;  %v6305_v23 = vld [vmem:[%s8497_s16 + $0x1a0] ss:$16 sps:$4 sm:$0xff]  }
0x1027   :  { %4200 = vmatprep.subr.bf16.mxu1 %v6214_v43  ;;  %v3898_v43 = vld [vmem:[%s8494_s13] sm:$0x3] }
0x102a   :  { %4201 = vmatpush1.bf16.msra.mxu1 %v6212_v7  ;;  %v3903_v7 = vrot.slane %v3898_v43, %v8056_v10 }
0x102b   :  { %4202 = vmatprep.subr.bf16.mxu1 %v6217_v19  ;;  %v3907_v19 = vrot.slane %v3898_v43, %v8062_v11 }
0x102e   :  { %4203 = vmatpush1.bf16.msra.mxu1 %v6215_v53 }
0x102f   :  { %4204 = vmatprep.subr.bf16.mxu1 %v6220_v27 }
0x1032   :  { %4205 = vmatpush1.bf16.msra.mxu1 %v6218_v54 }
0x1033   :  { %4206 = vmatprep.subr.bf16.mxu1 %v6223_v36  ;;  %v6272_v36 = vld [vmem:[%s8497_s16 + $0xe8] ss:$16 sps:$4 sm:$0xff]  }
0x1036   :  { %4207 = vmatpush1.bf16.msra.mxu1 %v6221_v9  ;;  %v6280_v9 = vld [vmem:[%s8497_s16 + $0x10c] ss:$16 sps:$4 sm:$0xff]  }
0x1037   :  { %4208 = vmatprep.subr.bf16.mxu1 %v6226_v16  ;;  %v6278_v16 = vld [vmem:[%s8497_s16 + $0x108] ss:$16 sps:$4 sm:$0xff]  }
0x103a   :  { %4209 = vmatpush1.bf16.msra.mxu1 %v6224_v45  ;;  %v6286_v45 = vld [vmem:[%s8497_s16 + $0x12c] ss:$16 sps:$4 sm:$0xff]  }
0x103b   :  { %4670 = vmatprep.subr.bf16.mxu1 %v6232_v18  ;;  %v6290_v18 = vld [vmem:[%s8497_s16 + $0x148] ss:$16 sps:$4 sm:$0xff]  }
0x10b0   :  { %v5874_v48 = vpop.f32.mrb[68].mxu1 }
0x10b1   :  { %v5875_v51 = vpop.f32.mrb[69].mxu1 }
0x10b2   :  { %v5876_v29 = vadd.f32 %v5875_v51, %v5874_v48  ;;  %v5877_v61 = vpop.f32.mrb[70].mxu1 }
0x10b3   :  { %v5878_v62 = vpop.f32.mrb[71].mxu1 }
0x10b4   :  { %v3706_v63 = vadd.f32 %v5876_v29, %v5017_v55 }
0x10b6   :  { %3887 = vst.msk [vmem:[#allocation2] sm:$0x3] %vm3886_vm2, %v3706_v63 }
0x10d0   :  { %v5896_v37 = vpop.f32.mrb[72].mxu1 }
0x10d1   :  { %v5897_v31 = vpop.f32.mrb[73].mxu1 }
0x10d2   :  { %v5898_v38 = vadd.f32 %v5897_v31, %v5896_v37  ;;  %v5899_v39 = vpop.f32.mrb[74].mxu1  ;;  %v6236_v31 = vld [vmem:[%s8497_s16 + $0x28] ss:$16 sps:$4 sm:$0xff]  }
0x10d3   :  { %v5900_v44 = vpop.f32.mrb[75].mxu1  ;;  %v6242_v39 = vld [vmem:[%s8497_s16 + $0x48] ss:$16 sps:$4 sm:$0xff]  }
0x10d4   :  { %v3881_v46 = vadd.f32 %v5898_v38, %v5034_v30  ;;  %v6238_v30 = vld [vmem:[%s8497_s16 + $0x2c] ss:$16 sps:$4 sm:$0xff]  }
0x10d5   :  { %v6244_v38 = vld [vmem:[%s8497_s16 + $0x4c] ss:$16 sps:$4 sm:$0xff]  }
0x10d6   :  { %v3889_v47 = vmul.f32 0.5, %v3881_v46  ;;  %3888 = vst.msk [vmem:[#allocation4] sm:$0x3] %vm3886_vm2, %v3881_v46  ;;  %v6250_v44 = vld [vmem:[%s8497_s16 + $0x6c] ss:$16 sps:$4 sm:$0xff]  }
0x10d7   :  { %v6248_v46 = vld [vmem:[%s8497_s16 + $0x68] ss:$16 sps:$4 sm:$0xff]  }
0x10d8   :  { %v3890_v22 = vmul.f32 1.442695, %v3889_v47  ;;  %v6256_v47 = vld [vmem:[%s8497_s16 + $0x8c] ss:$16 sps:$4 sm:$0xff]  }
0x10da   :  { %6323 = vpow2.f32 %v3890_v22  ;;  %v6254_v22 = vld [vmem:[%s8497_s16 + $0x88] ss:$16 sps:$4 sm:$0xff]  }
0x10e4   :  { %v6324_v49 = vpop.eup %6323 }
0x10e5   :  { %v3893_v34 = vmul.f32 %v6324_v49, %v3892_v33  ;;  %v6262_v33 = vld [vmem:[%s8497_s16 + $0xac] ss:$16 sps:$4 sm:$0xff]   ;;  %v6260_v49 = vld [vmem:[%s8497_s16 + $0xa8] ss:$16 sps:$4 sm:$0xff]  }
0x10e7   :  { %v3894_v50 = vadd.f32 %v3893_v34, %v3706_v63  ;;  %v6230_v63 = vld [vmem:[%s8497_s16 + $0x8] ss:$16 sps:$4 sm:$0xff]   ;;  %v6268_v34 = vld [vmem:[%s8497_s16 + $0xcc] ss:$16 sps:$4 sm:$0xff]  }
0x10e9   :  { %v3895_v35 = vpack.c.bf16 %v3894_v50, %v3894_v50  ;;  %v6266_v50 = vld [vmem:[%s8497_s16 + $0xc8] ss:$16 sps:$4 sm:$0xff]  }
0x10eb   :  { %5054 = vmatmul.mubr.msk.bf16.vlgmr.msra.gmra.mrb[68].mxu0 %vm3918_vm3, %v3895_v35  ;;  %v6274_v35 = vld [vmem:[%s8497_s16 + $0xec] ss:$16 sps:$4 sm:$0xff]  }
0x10ec   :  { %4630 = vmatpush1.bf16.msra.mxu0 %v6227_v12  ;;  %v6284_v12 = vld [vmem:[%s8497_s16 + $0x128] ss:$16 sps:$4 sm:$0xff]  }
0x10ed   :  { %4631 = vmatprep.subr.bf16.mxu0 %v6235_v26  ;;  %v6298_v26 = vld [vmem:[%s8497_s16 + $0x16c] ss:$16 sps:$4 sm:$0xff]  }
0x10f0   :  { %4632 = vmatpush1.bf16.msra.mxu0 %v6233_v52  ;;  %v6296_v52 = vld [vmem:[%s8497_s16 + $0x168] ss:$16 sps:$4 sm:$0xff]  }
0x10f1   :  { %4633 = vmatprep.subr.bf16.mxu0 %v6241_v2  ;;  %v6304_v2 = vld [vmem:[%s8497_s16 + $0x18c] ss:$16 sps:$4 sm:$0xff]  }
0x10f4   :  { %4634 = vmatpush1.bf16.msra.mxu0 %v6239_v3  ;;  %v6302_v3 = vld [vmem:[%s8497_s16 + $0x188] ss:$16 sps:$4 sm:$0xff]  }
0x10f5   :  { %4635 = vmatprep.subr.bf16.mxu0 %v6247_v42  ;;  %v6310_v42 = vld [vmem:[%s8497_s16 + $0x1ac] ss:$16 sps:$4 sm:$0xff]  }
0x10f8   :  { %4636 = vmatpush1.bf16.msra.mxu0 %v6245_v24  ;;  %v6308_v24 = vld [vmem:[%s8497_s16 + $0x1a8] ss:$16 sps:$4 sm:$0xff]  }
0x10f9   :  { %4637 = vmatprep.subr.bf16.mxu0 %v6253_v25  ;;  %v6313_v25 = vld [vmem:[%s8497_s16 + $0x1c4] ss:$16 sps:$4 sm:$0xff]  }
0x10fc   :  { %4638 = vmatpush1.bf16.msra.mxu0 %v6251_v28  ;;  %v6316_v28 = vld [vmem:[%s8497_s16 + $0x1cc] ss:$16 sps:$4 sm:$0xff]  }
0x10fd   :  { %4639 = vmatprep.subr.bf16.mxu0 %v6259_v60  ;;  %v6311_v60 = vld [vmem:[%s8497_s16 + $0x1c0] ss:$16 sps:$4 sm:$0xff]  }
0x1100   :  { %4640 = vmatpush1.bf16.msra.mxu0 %v6257_v17  ;;  %v6314_v17 = vld [vmem:[%s8497_s16 + $0x1c8] ss:$16 sps:$4 sm:$0xff]  }
0x1101   :  { %4641 = vmatprep.subr.bf16.mxu0 %v6265_v0  ;;  %v6319_v0 = vld [vmem:[%s8497_s16 + $0x1e4] ss:$16 sps:$4 sm:$0xff]  }
0x1104   :  { %4642 = vmatpush1.bf16.msra.mxu0 %v6263_v8  ;;  %v6322_v8 = vld [vmem:[%s8497_s16 + $0x1ec] ss:$16 sps:$4 sm:$0xff]  }
0x1105   :  { %4643 = vmatprep.subr.bf16.mxu0 %v6271_v14  ;;  %v6317_v14 = vld [vmem:[%s8497_s16 + $0x1e0] ss:$16 sps:$4 sm:$0xff]  }
0x1108   :  { %4644 = vmatpush1.bf16.msra.mxu0 %v6269_v5  ;;  %v6320_v5 = vld [vmem:[%s8497_s16 + $0x1e8] ss:$16 sps:$4 sm:$0xff]   ;;  %s6440_s16 = smov [#allocation2]  }
0x1109   :  { %4645 = vmatprep.subr.bf16.mxu0 %v6277_v6  ;;  %v4006_v6 = vld [vmem:[%s8496_s15] sm:$0x3]  ;;  %s4755_s15 = sshll.u32 %s6440_s16, 4  ;;  %s4756_s15 = int_to_ptr.vmem [resolvable:$true] %s4755_s15 }
0x110a   :  { %s6390_s22 = scalar_lea.vmem %s4756_s15, 32  ;;  %p6395_p1 = scmp.lt.s32.totalorder %s4756_s15, %s4756_s15 }
0x110b   :  { %p6391_p0 = scmp.ne.s32.totalorder %s4756_s15, %s6390_s22  ;;  %p6396_p2 = scmp.lt.s32.totalorder %s6390_s22, %s6390_s22 }
0x110c   :  { %4646 = vmatpush1.bf16.msra.mxu0 %v6275_v1  ;;  %v4011_v1 = vrot.slane %v4006_v6, %v8056_v10 }
0x110d   :  { %4647 = vmatprep.subr.bf16.mxu0 %v6283_v40  ;;  %v4015_v40 = vrot.slane %v4006_v6, %v8062_v11  ;;  %p6397_p3 = por %p6396_p2, %p6395_p1 }
0x110f   :  { %p6398_p4 = pnand %p6397_p3, %p6391_p0 }
0x1110   :  { %4648 = vmatpush1.bf16.msra.mxu0 %v6281_v58 }
0x1111   :  { %4649 = vmatprep.subr.bf16.mxu0 %v6289_v41 }
0x1114   :  { %4650 = vmatpush1.bf16.msra.mxu0 %v6287_v32 }
0x1115   :  { %4651 = vmatprep.subr.bf16.mxu0 %v6295_v56 }
0x1118   :  { %4652 = vmatpush1.bf16.msra.mxu0 %v6293_v57 }
0x1119   :  { %4653 = vmatprep.subr.bf16.mxu0 %v6301_v59 }
0x111c   :  { %4654 = vmatpush1.bf16.msra.mxu0 %v6299_v4 }
0x111d   :  { %4655 = vmatprep.subr.bf16.mxu0 %v6307_v21 }
0x1120   :  { %4656 = vmatpush1.bf16.msra.mxu0 %v6305_v23 }
0x1121   :  { %4657 = vmatprep.subr.bf16.mxu0 %v6313_v25 }
0x1124   :  { %4658 = vmatpush1.bf16.msra.mxu0 %v6311_v60 }
0x1125   :  { %4659 = vmatprep.subr.bf16.mxu0 %v6319_v0 }
0x1128   :  { %4660 = vmatpush1.bf16.msra.mxu0 %v6317_v14 }
0x11be   :  { %v3963_v53 = vpop.f32.mrb[68].mxu0 }
0x11bf   :  { %v3964_v27 = vadd.f32 %v3963_v53, %v3903_v7  ;;  %v3965_v54 = vpop.f32.mrb[69].mxu0 }
0x11c0   :  { %v3966_v48 = vadd.f32 %v3965_v54, %v3907_v19  ;;  %v3967_v55 = vpop.f32.mrb[70].mxu0 }
0x11c1   :  { %v3970_v51 = vmax.f32 %v3964_v27, 0.0  ;;  %v3968_v29 = vpop.f32.mrb[71].mxu0 }
0x11c2   :  { %v3971_v61 = vmax.f32 %v3966_v48, 0.0 }
0x11c3   :  { %v3972_v37 = vpack.c.bf16 %v3970_v51, %v3970_v51 }
0x11c4   :  { %v3973_v62 = vpack.c.bf16 %v3971_v61, %v3971_v61 }
0x11c6   :  { %4210 = vmatprep.mubr.bf16.mxu1 %v3973_v62 }
0x11c7   :  { %4211 = vmatmul.mubr.bf16.vlgmr.msra.gmra.mrb[76].mxu1 %v3972_v37 }
0x11c8   :  { %4671 = vmatpush1.bf16.msra.mxu1 %v6230_v63 }
0x11c9   :  { %4672 = vmatprep.subr.bf16.mxu1 %v6238_v30 }
0x11cc   :  { %4673 = vmatpush1.bf16.msra.mxu1 %v6236_v31 }
0x11cd   :  { %4674 = vmatprep.subr.bf16.mxu1 %v6244_v38 }
0x11d0   :  { %4675 = vmatpush1.bf16.msra.mxu1 %v6242_v39 }
0x11d1   :  { %4676 = vmatprep.subr.bf16.mxu1 %v6250_v44 }
0x11d4   :  { %4677 = vmatpush1.bf16.msra.mxu1 %v6248_v46 }
0x11d5   :  { %4678 = vmatprep.subr.bf16.mxu1 %v6256_v47 }
0x11d8   :  { %4679 = vmatpush1.bf16.msra.mxu1 %v6254_v22 }
0x11d9   :  { %4680 = vmatprep.subr.bf16.mxu1 %v6262_v33 }
0x11dc   :  { %4681 = vmatpush1.bf16.msra.mxu1 %v6260_v49 }
0x11dd   :  { %4682 = vmatprep.subr.bf16.mxu1 %v6268_v34 }
0x11e0   :  { %4683 = vmatpush1.bf16.msra.mxu1 %v6266_v50 }
0x11e1   :  { %4684 = vmatprep.subr.bf16.mxu1 %v6274_v35 }
0x11e4   :  { %4685 = vmatpush1.bf16.msra.mxu1 %v6272_v36 }
0x11e5   :  { %4686 = vmatprep.subr.bf16.mxu1 %v6280_v9 }
0x11e8   :  { %4687 = vmatpush1.bf16.msra.mxu1 %v6278_v16 }
0x11e9   :  { %4688 = vmatprep.subr.bf16.mxu1 %v6286_v45 }
0x11ec   :  { %4689 = vmatpush1.bf16.msra.mxu1 %v6284_v12 }
0x11ed   :  { %4690 = vmatprep.subr.bf16.mxu1 %v6292_v13 }
0x11f0   :  { %4691 = vmatpush1.bf16.msra.mxu1 %v6290_v18 }
0x11f1   :  { %4692 = vmatprep.subr.bf16.mxu1 %v6298_v26 }
0x11f4   :  { %4693 = vmatpush1.bf16.msra.mxu1 %v6296_v52 }
0x11f5   :  { %4694 = vmatprep.subr.bf16.mxu1 %v6304_v2 }
0x11f8   :  { %4695 = vmatpush1.bf16.msra.mxu1 %v6302_v3 }
0x11f9   :  { %4696 = vmatprep.subr.bf16.mxu1 %v6310_v42 }
0x11fc   :  { %4697 = vmatpush1.bf16.msra.mxu1 %v6308_v24 }
0x11fd   :  { %4698 = vmatprep.subr.bf16.mxu1 %v6316_v28 }
0x1200   :  { %4699 = vmatpush1.bf16.msra.mxu1 %v6314_v17 }
0x1201   :  { %4700 = vmatprep.subr.bf16.mxu1 %v6322_v8 }
0x1204   :  { %4701 = vmatpush1.bf16.msra.mxu1 %v6320_v5 }
0x129a   :  { %v4212_v58 = vpop.f32.mrb[76].mxu1 }
0x129b   :  { %v4213_v41 = vadd.f32 %v4212_v58, %v4011_v1  ;;  %v4214_v32 = vpop.f32.mrb[77].mxu1 }
0x129c   :  { %v4215_v56 = vadd.f32 %v4214_v32, %v4015_v40  ;;  %v4216_v57 = vpop.f32.mrb[78].mxu1 }
0x129d   :  { %v4219_v59 = vmax.f32 %v4213_v41, 0.0  ;;  %v4217_v4 = vpop.f32.mrb[79].mxu1 }
0x129e   :  { %v4220_v21 = vmax.f32 %v4215_v56, 0.0 }
0x129f   :  { %v4221_v43 = vpack.c.bf16 %v4219_v59, %v4219_v59 }
0x12a0   :  { %v4222_v23 = vpack.c.bf16 %v4220_v21, %v4220_v21 }
0x12a2   :  { %4661 = vmatprep.mubr.bf16.mxu0 %v4222_v23  ;;  %4702 = vmatprep.mubr.bf16.mxu1 %v4222_v23 }
0x12a3   :  { %4662 = vmatmul.mubr.bf16.vlgmr.msra.gmra.mrb[72].mxu0 %v4221_v43  ;;  %4703 = vmatmul.mubr.bf16.vlgmr.msra.gmra.mrb[80].mxu1 %v4221_v43 }
0x12a4   :  { %6401 = shalt.err (!%p6398_p4)
}
0x12a5   :  { %s6402_s25 = scalar_lea.hbm %s8499_s18, 32 }
0x12a6   :  { %p6403_p5 = scmp.ne.s32.totalorder %s8499_s18, %s6402_s25  ;;  %p6406_p6 = scmp.lt.u32.totalorder %s6402_s25, %s8499_s18 }
0x12a8   :  { %p6408_p7 = pnand %p6406_p6, %p6403_p5 }
0x12aa   :  { %6411 = shalt.err (!%p6408_p7)
}
0x12ab   :  { %4758 = dma.vmem_to_hbm [thread:$0]  %s4756_s15, 32, %s8499_s18, [#allocation3]  }
0x12ac   :  { %s6412_s10 = scalar_lea.vmem %s4766_s21, 32  ;;  %p6417_p9 = scmp.lt.s32.totalorder %s4766_s21, %s4766_s21 }
0x12ad   :  { %p6413_p8 = scmp.ne.s32.totalorder %s4766_s21, %s6412_s10  ;;  %p6418_p10 = scmp.lt.s32.totalorder %s6412_s10, %s6412_s10 }
0x12af   :  { %p6419_p11 = por %p6418_p10, %p6417_p9 }
0x12b1   :  { %p6420_p12 = pnand %p6419_p11, %p6413_p8 }
0x12b3   :  { %6423 = shalt.err (!%p6420_p12)
}
0x12b4   :  { %s6424_s8 = scalar_lea.hbm %s8500_s19, 32 }
0x12b5   :  { %p6425_p13 = scmp.ne.s32.totalorder %s8500_s19, %s6424_s8  ;;  %p6428_p0 = scmp.lt.u32.totalorder %s6424_s8, %s8500_s19 }
0x12b7   :  { %p6430_p1 = pnand %p6428_p0, %p6425_p13 }
0x12b9   :  { %6433 = shalt.err (!%p6430_p1)
}
0x12ba   :  { %4768 = dma.vmem_to_hbm [thread:$0]  %s4766_s21, 32, %s8500_s19, [#allocation5]   ;;  %v4299_v7 = vsub.s32 2, %v6623_v15  ;;  %v4287_v19 = vld [vmem:[%s8498_s17] sm:$0xf]  ;;  %v4303_v53 = vsub.s32 3, %v6623_v15 }
0x12bb   :  { %v4292_v27 = vrot.slane %v4287_v19, %v8056_v10  ;;  %v4296_v48 = vrot.slane %v4287_v19, %v8062_v11 }
0x12bc   :  { %v4300_v54 = vrot.slane %v4287_v19, %v4299_v7  ;;  %v4304_v55 = vrot.slane %v4287_v19, %v4303_v53 }
0x1376   :  { %v4663_v51 = vpop.f32.mrb[72].mxu0  ;;  %v4704_v29 = vpop.f32.mrb[80].mxu1 }
0x1377   :  { %v4664_v61 = vadd.f32 %v4663_v51, %v4292_v27  ;;  %v4705_v62 = vadd.f32 %v4704_v29, %v4300_v54  ;;  %v4665_v63 = vpop.f32.mrb[73].mxu0  ;;  %v4706_v37 = vpop.f32.mrb[81].mxu1 }
0x1378   :  { %v4666_v30 = vadd.f32 %v4665_v63, %v4296_v48  ;;  %v4707_v31 = vadd.f32 %v4706_v37, %v4304_v55  ;;  %v4667_v38 = vpop.f32.mrb[74].mxu0  ;;  %v4708_v39 = vpop.f32.mrb[82].mxu1 }
0x1379   :  { %v4711_v44 = vmax.f32 %v4664_v61, 0.0  ;;  %v4713_v46 = vmax.f32 %v4705_v62, 0.0  ;;  %v4668_v47 = vpop.f32.mrb[75].mxu0  ;;  %v4709_v15 = vpop.f32.mrb[83].mxu1 }
0x137a   :  { %v4712_v22 = vmax.f32 %v4666_v30, 0.0  ;;  %v4714_v10 = vmax.f32 %v4707_v31, 0.0 }
0x137c   :  { %v5151_v33 = vpack.c.bf16 %v4712_v22, %v4711_v44  ;;  %v5152_v49 = vpack.c.bf16 %v4714_v10, %v4713_v46 }
0x137e   :  { %v4731_v11 = vrot.slane %v5151_v33, %v6640_v20  ;;  %v4738_v34 = vrot.slane %v5152_v49, %v6640_v20 }
0x1380   :  { %v4739_v50 = vcombine.low %v4731_v11, %v4738_v34 }
0x1382   :  { %5153 = vst.sshfl [vmem:[%s8501_s20] sm:$0x55 pattern:$0x73625140] %v4739_v50 }
0x1383   :  { %6434 = dma.done.wait [#allocation3], 32  }
0x1384   :  { %6435 = vsyncadd [#allocation3], 4294967264 }
0x1385   :  { %6436 = dma.done.wait [#allocation5], 32  }
0x1386   :  { %6437 = vsyncadd [#allocation5], 4294967264 }
0x1387   :  { %4779 = vsyncpa [#allocation3], 1 }
0x1388   :  { %4780 = vsyncpa [#allocation5], 1 }

// kernel: beta_vae_b_forward.13
= control target key start
LH: loop header
LB: loop body
LE: loop exit
PB: predicated region body
PF: predicated region fallthrough
CT: control target
= control target key end

     0   :  { %v1018_v1 = vmov 0   ;;  %vm407_vm0 = vcmask 261120   ;;  %s1272_s1 = inlined_call_operand.vmem [shape: bf16[288,128], index: 1, kind: input, shape index: {}]   ;;  %s1273_s0 = inlined_call_operand.vmem [shape: bf16[128,288], index: 0, kind: input, shape index: {}]   ;;  %s1274_s2 = inlined_call_operand.vmem [shape: f32[128,1], index: 2, kind: input, shape index: {}]   ;;  %s1275_s3 = inlined_call_operand.vmem [shape: bf16[128,128], index: 3, kind: output, shape index: {}]  }
   0x1   :  { %v968_v0 = vld [vmem:[%s1272_s1 + $0x40] sm:$0xff]   ;;  %967 = vset.pattern.permute.xlu1 %v1018_v1  ;;  %966 = vset.pattern.permute.xlu0 %v1018_v1  ;;  %v970_v3 = vld [vmem:[%s1272_s1 + $0x48] sm:$0xff]   ;;  %v972_v5 = vld [vmem:[%s1272_s1 + $0x50] sm:$0xff]  }
   0x2   :  { %v969_v2 = vld [vmem:[%s1272_s1] sm:$0xff]   ;;  %855 = vmatprep.subr.bf16.mxu0 %v968_v0  ;;  %949 = vmatprep.subr.bf16.mxu1 %v968_v0  ;;  %v971_v4 = vld [vmem:[%s1272_s1 + $0x8] sm:$0xff]   ;;  %v973_v6 = vld [vmem:[%s1272_s1 + $0x10] sm:$0xff]  }
   0x3   :  { %856 = vmatpush3.bf16.msra.mxu0 %v969_v2  ;;  %957 = vmatpush3.bf16.msra.mxu1 %v969_v2  ;;  %v974_v7 = vld [vmem:[%s1272_s1 + $0x58] sm:$0xff]   ;;  %v976_v9 = vld [vmem:[%s1272_s1 + $0x60] sm:$0xff]   ;;  %v978_v11 = vld [vmem:[%s1272_s1 + $0x68] sm:$0xff]  }
   0x4   :  { %857 = vmatprep.subr.bf16.mxu0 %v970_v3  ;;  %950 = vmatprep.subr.bf16.mxu1 %v970_v3  ;;  %v975_v8 = vld [vmem:[%s1272_s1 + $0x18] sm:$0xff]   ;;  %v977_v10 = vld [vmem:[%s1272_s1 + $0x20] sm:$0xff]   ;;  %v979_v14 = vld [vmem:[%s1272_s1 + $0x28] sm:$0xff]  }
   0x5   :  { %v986_v12 = vld [vmem:[%s1273_s0 + $0x4] ss:$12 sps:$4 sm:$0xff]   ;;  %v989_v13 = vld [vmem:[%s1273_s0 + $0x94] ss:$12 sps:$4 sm:$0xff]   ;;  %v982_v17 = vld [vmem:[%s1272_s1 + $0x78] sm:$0xff]  }
   0x6   :  { %v980_v15 = vld [vmem:[%s1272_s1 + $0x70] sm:$0xff]   ;;  %464 = vmatprep.mubr.bf16.mxu0 %v986_v12  ;;  %512 = vmatprep.mubr.bf16.mxu1 %v989_v13  ;;  %v983_v18 = vld [vmem:[%s1272_s1 + $0x38] sm:$0xff]   ;;  %v984_v19 = vld [vmem:[%s1273_s0] ss:$12 sps:$4 sm:$0xff]  }
   0x7   :  { %858 = vmatpush3.bf16.msra.mxu0 %v971_v4  ;;  %958 = vmatpush3.bf16.msra.mxu1 %v971_v4  ;;  %v981_v16 = vld [vmem:[%s1272_s1 + $0x30] sm:$0xff]   ;;  %v990_v20 = vld [vmem:[%s1272_s1 + $0x80] sm:$0xff]   ;;  %v991_v22 = vld [vmem:[%s1273_s0 + $0x1c] ss:$12 sps:$4 sm:$0xff]  }
   0x8   :  { %859 = vmatprep.subr.bf16.mxu0 %v972_v5  ;;  %951 = vmatprep.subr.bf16.mxu1 %v972_v5  ;;  %v987_v21 = vld [vmem:[%s1273_s0 + $0x90] ss:$12 sps:$4 sm:$0xff]   ;;  %v993_v23 = vld [vmem:[%s1273_s0 + $0xac] ss:$12 sps:$4 sm:$0xff]   ;;  %v83_v26 = vld [vmem:[%s1274_s2] sm:$0xff] }
   0x9   :  { %v997_v24 = vld [vmem:[%s1272_s1 + $0x88] sm:$0xff]   ;;  %v85_v25 = vld [vmem:[%s1274_s2 + $0x10] sm:$0xff]  ;;  %v995_v27 = vld [vmem:[%s1273_s0 + $0x18] ss:$12 sps:$4 sm:$0xff]   ;;  %101 = vperm.xlu0 %966, %v83_v26  }
   0xa   :  { %111 = vperm.xlu1 %967, %v85_v25   ;;  %v996_v28 = vld [vmem:[%s1273_s0 + $0xa8] ss:$12 sps:$4 sm:$0xff]   ;;  %v86_v29 = vld [vmem:[%s1274_s2 + $0x18] sm:$0xff]  ;;  %v87_v34 = vld [vmem:[%s1274_s2 + $0x20] sm:$0xff] }
   0xb   :  { %860 = vmatpush3.bf16.msra.mxu0 %v973_v6  ;;  %959 = vmatpush3.bf16.msra.mxu1 %v973_v6  ;;  %v998_v30 = vld [vmem:[%s1273_s0 + $0x34] ss:$12 sps:$4 sm:$0xff]   ;;  %v84_v32 = vld [vmem:[%s1274_s2 + $0x8] sm:$0xff]  ;;  %v1001_v35 = vld [vmem:[%s1273_s0 + $0x30] ss:$12 sps:$4 sm:$0xff]  }
   0xc   :  { %861 = vmatprep.subr.bf16.mxu0 %v974_v7  ;;  %952 = vmatprep.subr.bf16.mxu1 %v974_v7  ;;  %v1000_v31 = vld [vmem:[%s1273_s0 + $0x8] ss:$12 sps:$4 sm:$0xff]   ;;  %v1002_v36 = vld [vmem:[%s1273_s0 + $0x20] ss:$12 sps:$4 sm:$0xff]   ;;  %v90_v37 = vld [vmem:[%s1274_s2 + $0x38] sm:$0xff] }
   0xd   :  { %v88_v33 = vld [vmem:[%s1274_s2 + $0x28] sm:$0xff]  ;;  %106 = vperm.xlu0 %966, %v84_v32   ;;  %v1005_v39 = vld [vmem:[%s1273_s0 + $0x38] ss:$12 sps:$4 sm:$0xff]   ;;  %v89_v40 = vld [vmem:[%s1274_s2 + $0x30] sm:$0xff] }
   0xe   :  { %116 = vperm.xlu1 %967, %v86_v29   ;;  %v1003_v38 = vld [vmem:[%s1273_s0 + $0x4c] ss:$12 sps:$4 sm:$0xff]   ;;  %v91_v42 = vld [vmem:[%s1274_s2 + $0x40] sm:$0xff]  ;;  %v1006_v43 = vld [vmem:[%s1273_s0 + $0x48] ss:$12 sps:$4 sm:$0xff]  }
   0xf   :  { %862 = vmatpush3.bf16.msra.mxu0 %v975_v8  ;;  %960 = vmatpush3.bf16.msra.mxu1 %v975_v8  ;;  %v92_v41 = vld [vmem:[%s1274_s2 + $0x48] sm:$0xff]  ;;  %v1007_v44 = vld [vmem:[%s1273_s0 + $0x50] ss:$12 sps:$4 sm:$0xff]   ;;  %v95_v50 = vld [vmem:[%s1274_s2 + $0x60] sm:$0xff] }
  0x10   :  { %863 = vmatprep.subr.bf16.mxu0 %v976_v9  ;;  %953 = vmatprep.subr.bf16.mxu1 %v976_v9  ;;  %v94_v45 = vld [vmem:[%s1274_s2 + $0x58] sm:$0xff]  ;;  %v1008_v46 = vld [vmem:[%s1273_s0 + $0x64] ss:$12 sps:$4 sm:$0xff]   ;;  %v1010_v47 = vld [vmem:[%s1273_s0 + $0x68] ss:$12 sps:$4 sm:$0xff]  }
  0x11   :  { %121 = vperm.xlu0 %966, %v87_v34   ;;  %v93_v48 = vld [vmem:[%s1274_s2 + $0x50] sm:$0xff]  ;;  %v96_v49 = vld [vmem:[%s1274_s2 + $0x68] sm:$0xff]  ;;  %v98_v53 = vld [vmem:[%s1274_s2 + $0x78] sm:$0xff] }
  0x12   :  { %126 = vperm.xlu1 %967, %v88_v33   ;;  %v1011_v51 = vld [vmem:[%s1273_s0 + $0x60] ss:$12 sps:$4 sm:$0xff]   ;;  %v1013_v54 = vld [vmem:[%s1273_s0 + $0x7c] ss:$12 sps:$4 sm:$0xff]   ;;  %v1015_v55 = vld [vmem:[%s1273_s0 + $0x98] ss:$12 sps:$4 sm:$0xff]  }
  0x13   :  { %864 = vmatpush3.bf16.msra.mxu0 %v977_v10  ;;  %961 = vmatpush3.bf16.msra.mxu1 %v977_v10  ;;  %v1012_v52 = vld [vmem:[%s1273_s0 + $0x80] ss:$12 sps:$4 sm:$0xff]   ;;  %v97_v56 = vld [vmem:[%s1274_s2 + $0x70] sm:$0xff]  ;;  %v1016_v57 = vld [vmem:[%s1273_s0 + $0x78] ss:$12 sps:$4 sm:$0xff]  }
  0x14   :  { %865 = vmatprep.subr.bf16.mxu0 %v978_v11  ;;  %954 = vmatprep.subr.bf16.mxu1 %v978_v11  ;;  %v1017_v58 = vld [vmem:[%s1273_s0 + $0xb0] ss:$12 sps:$4 sm:$0xff]  }
  0x15   :  { %131 = vperm.xlu0 %966, %v89_v40  }
  0x16   :  { %136 = vperm.xlu1 %967, %v90_v37  }
  0x17   :  { %866 = vmatpush3.bf16.msra.mxu0 %v979_v14  ;;  %962 = vmatpush3.bf16.msra.mxu1 %v979_v14 }
  0x18   :  { %867 = vmatprep.subr.bf16.mxu0 %v980_v15  ;;  %955 = vmatprep.subr.bf16.mxu1 %v980_v15 }
  0x19   :  { %141 = vperm.xlu0 %966, %v91_v42  }
  0x1a   :  { %146 = vperm.xlu1 %967, %v92_v41  }
  0x1b   :  { %868 = vmatpush3.bf16.msra.mxu0 %v981_v16  ;;  %963 = vmatpush3.bf16.msra.mxu1 %v981_v16 }
  0x1c   :  { %869 = vmatprep.subr.bf16.mxu0 %v982_v17  ;;  %956 = vmatprep.subr.bf16.mxu1 %v982_v17 }
  0x1d   :  { %151 = vperm.xlu0 %966, %v93_v48  }
  0x1e   :  { %156 = vperm.xlu1 %967, %v94_v45  }
  0x1f   :  { %870 = vmatpush3.bf16.msra.mxu0 %v983_v18  ;;  %964 = vmatpush3.bf16.msra.mxu1 %v983_v18 }
  0x20   :  { %929 = vmatprep.subr.bf16.mxu1 %v990_v20 }
  0x21   :  { %161 = vperm.xlu0 %966, %v95_v50  }
  0x22   :  { %465 = vmatmul.mubr.bf16.vlgmr.msra.gmra.mrb[0].mxu0 %v984_v19  ;;  %513 = vmatmul.mubr.bf16.vlgmr.msra.gmra.mrb[0].mxu1 %v987_v21 }
  0x23   :  { %930 = vmatpush3.bf16.msra.mxu1 %v990_v20  ;;  %472 = vmatprep.mubr.bf16.mxu0 %v991_v22 }
  0x24   :  { %520 = vmatprep.mubr.bf16.mxu1 %v993_v23  ;;  %931 = vmatprep.subr.bf16.mxu1 %v997_v24 }
  0x25   :  { %166 = vperm.xlu1 %967, %v96_v49   ;;  %171 = vperm.xlu0 %966, %v97_v56  }
  0x27   :  { %932 = vmatpush3.bf16.msra.mxu1 %v997_v24 }
  0x29   :  { %176 = vperm.xlu1 %967, %v98_v53  }
  0x2a   :  { %473 = vmatmul.mubr.bf16.gmra.mrb[4].mxu0 %v995_v27  ;;  %521 = vmatmul.mubr.bf16.gmra.mrb[4].mxu1 %v996_v28 }
  0x2b   :  { %480 = vmatprep.mubr.bf16.mxu0 %v998_v30  ;;  %933 = vmatprep.mubr.msk.bf16.mxu1 %vm407_vm0, %v1000_v31 }
  0x32   :  { %481 = vmatmul.mubr.bf16.gmra.mrb[8].mxu0 %v1001_v35  ;;  %934 = vmatmul.mubr.msk.bf16.vlgmr.msra.gmra.mrb[8].mxu1 %vm407_vm0, %v1002_v36 }
  0x33   :  { %488 = vmatprep.mubr.bf16.mxu0 %v1003_v38  ;;  %937 = vmatprep.mubr.msk.bf16.mxu1 %vm407_vm0, %v1005_v39 }
  0x3a   :  { %489 = vmatmul.mubr.bf16.gmra.mrb[12].mxu0 %v1006_v43  ;;  %938 = vmatmul.mubr.msk.bf16.gmra.mrb[12].mxu1 %vm407_vm0, %v1007_v44 }
  0x3b   :  { %496 = vmatprep.mubr.bf16.mxu0 %v1008_v46  ;;  %941 = vmatprep.mubr.msk.bf16.mxu1 %vm407_vm0, %v1010_v47 }
  0x42   :  { %497 = vmatmul.mubr.bf16.gmra.mrb[16].mxu0 %v1011_v51  ;;  %942 = vmatmul.mubr.msk.bf16.gmra.mrb[16].mxu1 %vm407_vm0, %v1012_v52 }
  0x43   :  { %504 = vmatprep.mubr.bf16.mxu0 %v1013_v54  ;;  %945 = vmatprep.mubr.msk.bf16.mxu1 %vm407_vm0, %v1015_v55 }
  0x4a   :  { %505 = vmatmul.mubr.bf16.gmra.mrb[20].mxu0 %v1016_v57  ;;  %946 = vmatmul.mubr.msk.bf16.gmra.mrb[20].mxu1 %vm407_vm0, %v1017_v58 }
  0x88   :  { %v102_v60 = vpop.permute.xlu0 %101 }
  0x89   :  { %v112_v59 = vpop.permute.xlu1 %111 }
  0x8c   :  { %v107_v62 = vpop.permute.xlu0 %106 }
  0x8d   :  { %v117_v61 = vpop.permute.xlu1 %116 }
  0x90   :  { %v122_v0 = vpop.permute.xlu0 %121 }
  0x91   :  { %v1221_v63 = vpop.permute.xlu1 %126 }
  0x94   :  { %v132_v14 = vpop.permute.xlu0 %131 }
  0x95   :  { %v137_v13 = vpop.permute.xlu1 %136 }
  0x98   :  { %v1233_v28 = vpop.permute.xlu0 %141 }
  0x99   :  { %v1231_v27 = vpop.permute.xlu1 %146 }
  0x9c   :  { %v1237_v52 = vpop.permute.xlu0 %151 }
  0x9d   :  { %v1235_v51 = vpop.permute.xlu1 %156 }
  0xf5   :  { %v871_v1 = vpop.f32.mrb[0].mxu0  ;;  %v907_v2 = vpop.f32.mrb[0].mxu1 }
  0xf6   :  { %v872_v3 = vpop.f32.mrb[1].mxu0  ;;  %v908_v4 = vpop.f32.mrb[1].mxu1 }
  0xf7   :  { %v873_v5 = vadd.f32 %v872_v3, %v871_v1  ;;  %v874_v6 = vpop.f32.mrb[2].mxu0  ;;  %v1223_v7 = vadd.f32 %v908_v4, %v907_v2  ;;  %v910_v8 = vpop.f32.mrb[2].mxu1 }
  0xf8   :  { %v875_v9 = vpop.f32.mrb[3].mxu0  ;;  %v911_v10 = vpop.f32.mrb[3].mxu1 }
  0xf9   :  { %v876_v11 = vadd.f32 %v875_v9, %v874_v6  ;;  %v1225_v12 = vadd.f32 %v911_v10, %v910_v8  ;;  %v467_v32 = vadd.f32 %v873_v5, %v102_v60 }
  0xfb   :  { %v470_v41 = vadd.f32 %v876_v11, %v107_v62 }
  0xfd   :  { %v877_v15 = vpop.f32.mrb[4].mxu0  ;;  %v913_v16 = vpop.f32.mrb[4].mxu1 }
  0xfe   :  { %v878_v17 = vpop.f32.mrb[5].mxu0  ;;  %v914_v18 = vpop.f32.mrb[5].mxu1 }
  0xff   :  { %v879_v19 = vadd.f32 %v878_v17, %v877_v15  ;;  %v880_v20 = vpop.f32.mrb[6].mxu0  ;;  %v1227_v21 = vadd.f32 %v914_v18, %v913_v16  ;;  %v916_v22 = vpop.f32.mrb[6].mxu1 }
 0x100   :  { %v881_v23 = vpop.f32.mrb[7].mxu0  ;;  %v917_v24 = vpop.f32.mrb[7].mxu1 }
 0x101   :  { %v882_v25 = vadd.f32 %v881_v23, %v880_v20  ;;  %v1229_v26 = vadd.f32 %v917_v24, %v916_v22  ;;  %v475_v29 = vadd.f32 %v879_v19, %v112_v59  ;;  %v167_v15 = vpop.permute.xlu1 %166  ;;  %v162_v16 = vpop.permute.xlu0 %161 }
 0x103   :  { %v478_v36 = vadd.f32 %v882_v25, %v117_v61 }
 0x105   :  { %v883_v30 = vpop.f32.mrb[8].mxu0  ;;  %v935_v31 = vpop.f32.mrb[8].mxu1 }
 0x106   :  { %v572_v33 = vadd.f32 %v935_v31, %v475_v29  ;;  %v884_v34 = vpop.f32.mrb[9].mxu0  ;;  %v563_v35 = vpop.f32.mrb[9].mxu1 }
 0x107   :  { %v885_v37 = vadd.f32 %v884_v34, %v883_v30  ;;  %v564_v38 = vadd.f32 %v563_v35, %v467_v32  ;;  %v886_v39 = vpop.f32.mrb[10].mxu0  ;;  %v936_v40 = vpop.f32.mrb[10].mxu1 }
 0x108   :  { %v575_v42 = vadd.f32 %v936_v40, %v478_v36  ;;  %v887_v43 = vpop.f32.mrb[11].mxu0  ;;  %v566_v44 = vpop.f32.mrb[11].mxu1  ;;  %v628_v47 = vmax.f32 %v572_v33, 0.0 }
 0x109   :  { %v888_v45 = vadd.f32 %v887_v43, %v886_v39  ;;  %v567_v46 = vadd.f32 %v566_v44, %v470_v41  ;;  %v626_v49 = vmax.f32 %v564_v38, 0.0  ;;  %v483_v57 = vadd.f32 %v885_v37, %v122_v0  ;;  %v172_v31 = vpop.permute.xlu0 %171  ;;  %v177_v35 = vpop.permute.xlu1 %176 }
 0x10a   :  { %v629_v48 = vmax.f32 %v575_v42, 0.0  ;;  %v523_v38 = vadd.f32 %v1227_v21, %v172_v31  ;;  %v515_v39 = vadd.f32 %v1223_v7, %v162_v16  ;;  %v526_v43 = vadd.f32 %v1229_v26, %v177_v35 }
 0x10b   :  { %v627_v50 = vmax.f32 %v567_v46, 0.0  ;;  %v486_v2 = vadd.f32 %v888_v45, %v1221_v63 }
 0x10c   :  { %v816_v53 = vpack.c.bf16 %v629_v48, %v628_v47 }
 0x10d   :  { %v811_v54 = vpack.c.bf16 %v627_v50, %v626_v49  ;;  %v889_v55 = vpop.f32.mrb[12].mxu0  ;;  %v939_v56 = vpop.f32.mrb[12].mxu1 }
 0x10e   :  { %848 = vst [vmem:[%s1275_s3 + $0x8] sm:$0xff] %v816_v53   ;;  %v890_v58 = vpop.f32.mrb[13].mxu0  ;;  %v579_v59 = vpop.f32.mrb[13].mxu1 }
 0x10f   :  { %812 = vst [vmem:[%s1275_s3] sm:$0xff] %v811_v54   ;;  %v891_v60 = vadd.f32 %v890_v58, %v889_v55  ;;  %v580_v61 = vadd.f32 %v579_v59, %v483_v57  ;;  %v892_v62 = vpop.f32.mrb[14].mxu0  ;;  %v940_v1 = vpop.f32.mrb[14].mxu1 }
 0x110   :  { %v893_v3 = vpop.f32.mrb[15].mxu0  ;;  %v582_v4 = vpop.f32.mrb[15].mxu1 }
 0x111   :  { %v491_v5 = vadd.f32 %v891_v60, %v132_v14  ;;  %v894_v0 = vadd.f32 %v893_v3, %v892_v62  ;;  %v583_v6 = vadd.f32 %v582_v4, %v486_v2  ;;  %v630_v9 = vmax.f32 %v580_v61, 0.0 }
 0x113   :  { %v588_v8 = vadd.f32 %v939_v56, %v491_v5  ;;  %v494_v10 = vadd.f32 %v894_v0, %v137_v13  ;;  %v631_v11 = vmax.f32 %v583_v6, 0.0 }
 0x115   :  { %v591_v17 = vadd.f32 %v940_v1, %v494_v10  ;;  %v821_v18 = vpack.c.bf16 %v631_v11, %v630_v9  ;;  %v895_v19 = vpop.f32.mrb[16].mxu0  ;;  %v943_v20 = vpop.f32.mrb[16].mxu1  ;;  %v632_v24 = vmax.f32 %v588_v8, 0.0 }
 0x116   :  { %v896_v22 = vpop.f32.mrb[17].mxu0  ;;  %v595_v23 = vpop.f32.mrb[17].mxu1 }
 0x117   :  { %v633_v25 = vmax.f32 %v591_v17, 0.0  ;;  %849 = vst [vmem:[%s1275_s3 + $0x10] sm:$0xff] %v821_v18   ;;  %v897_v63 = vadd.f32 %v896_v22, %v895_v19  ;;  %v898_v14 = vpop.f32.mrb[18].mxu0  ;;  %v944_v29 = vpop.f32.mrb[18].mxu1 }
 0x118   :  { %v899_v30 = vpop.f32.mrb[19].mxu0  ;;  %v598_v13 = vpop.f32.mrb[19].mxu1 }
 0x119   :  { %v826_v32 = vpack.c.bf16 %v633_v25, %v632_v24  ;;  %v499_v33 = vadd.f32 %v897_v63, %v1233_v28  ;;  %v900_v34 = vadd.f32 %v899_v30, %v898_v14 }
 0x11b   :  { %850 = vst [vmem:[%s1275_s3 + $0x18] sm:$0xff] %v826_v32   ;;  %v596_v36 = vadd.f32 %v595_v23, %v499_v33  ;;  %v502_v37 = vadd.f32 %v900_v34, %v1231_v27  ;;  %v518_v27 = vadd.f32 %v1225_v12, %v167_v15 }
 0x11d   :  { %v599_v40 = vadd.f32 %v598_v13, %v502_v37  ;;  %v901_v41 = vpop.f32.mrb[20].mxu0  ;;  %v947_v42 = vpop.f32.mrb[20].mxu1  ;;  %v634_v46 = vmax.f32 %v596_v36, 0.0 }
 0x11e   :  { %v620_v44 = vadd.f32 %v947_v42, %v523_v38  ;;  %v902_v28 = vpop.f32.mrb[21].mxu0  ;;  %v611_v45 = vpop.f32.mrb[21].mxu1 }
 0x11f   :  { %v635_v47 = vmax.f32 %v599_v40, 0.0  ;;  %v903_v48 = vadd.f32 %v902_v28, %v901_v41  ;;  %v612_v49 = vadd.f32 %v611_v45, %v515_v39  ;;  %v904_v50 = vpop.f32.mrb[22].mxu0  ;;  %v948_v53 = vpop.f32.mrb[22].mxu1 }
 0x120   :  { %v623_v54 = vadd.f32 %v948_v53, %v526_v43  ;;  %v905_v21 = vpop.f32.mrb[23].mxu0  ;;  %v614_v55 = vpop.f32.mrb[23].mxu1  ;;  %v640_v58 = vmax.f32 %v620_v44, 0.0 }
 0x121   :  { %v831_v7 = vpack.c.bf16 %v635_v47, %v634_v46  ;;  %v507_v56 = vadd.f32 %v903_v48, %v1237_v52  ;;  %v906_v57 = vadd.f32 %v905_v21, %v904_v50  ;;  %v615_v59 = vadd.f32 %v614_v55, %v518_v27 }
 0x122   :  { %v641_v26 = vmax.f32 %v623_v54, 0.0  ;;  %v638_v62 = vmax.f32 %v612_v49, 0.0 }
 0x123   :  { %851 = vst [vmem:[%s1275_s3 + $0x20] sm:$0xff] %v831_v7   ;;  %v604_v60 = vadd.f32 %v943_v20, %v507_v56  ;;  %v510_v61 = vadd.f32 %v906_v57, %v1235_v51  ;;  %v639_v12 = vmax.f32 %v615_v59, 0.0 }
 0x124   :  { %v846_v1 = vpack.c.bf16 %v641_v26, %v640_v58 }
 0x125   :  { %v607_v2 = vadd.f32 %v944_v29, %v510_v61  ;;  %v841_v52 = vpack.c.bf16 %v639_v12, %v638_v62  ;;  %v636_v3 = vmax.f32 %v604_v60, 0.0 }
 0x126   :  { %854 = vst [vmem:[%s1275_s3 + $0x38] sm:$0xff] %v846_v1  }
 0x127   :  { %v637_v4 = vmax.f32 %v607_v2, 0.0  ;;  %853 = vst [vmem:[%s1275_s3 + $0x30] sm:$0xff] %v841_v52  }
 0x129   :  { %v836_v5 = vpack.c.bf16 %v637_v4, %v636_v3 }
 0x12b   :  { %852 = vst [vmem:[%s1275_s3 + $0x28] sm:$0xff] %v836_v5  }

// kernel: beta_vae_b_forward.14
= control target key start
LH: loop header
LB: loop body
LE: loop exit
PB: predicated region body
PF: predicated region fallthrough
CT: control target
= control target key end

     0   :  { %v1911_v1 = vmov 0   ;;  %vm695_vm0 = vcmask 261120   ;;  %s2398_s1 = inlined_call_operand.vmem [shape: bf16[288,512], index: 1, kind: input, shape index: {}]   ;;  %s2399_s0 = inlined_call_operand.vmem [shape: bf16[128,288], index: 0, kind: input, shape index: {}]   ;;  %s2400_s2 = inlined_call_operand.vmem [shape: f32[128,1], index: 2, kind: input, shape index: {}]   ;;  %s2401_s3 = inlined_call_operand.vmem [shape: bf16[128,512], index: 3, kind: output, shape index: {}]  }
   0x1   :  { %v1771_v0 = vld [vmem:[%s2398_s1 + $0x4] ss:$16 sps:$4 sm:$0xff]   ;;  %1769 = vset.pattern.permute.xlu0 %v1911_v1  ;;  %1770 = vset.pattern.permute.xlu1 %v1911_v1  ;;  %v1773_v2 = vld [vmem:[%s2398_s1 + $0xc] ss:$16 sps:$4 sm:$0xff]   ;;  %v1775_v3 = vld [vmem:[%s2398_s1] ss:$16 sps:$4 sm:$0xff]  }
   0x2   :  { %720 = vmatprep.subr.bf16.mxu0 %v1771_v0  ;;  %v1776_v4 = vld [vmem:[%s2398_s1 + $0x8] ss:$16 sps:$4 sm:$0xff]   ;;  %946 = vmatprep.subr.bf16.mxu1 %v1773_v2  ;;  %v1777_v5 = vld [vmem:[%s2398_s1 + $0x24] ss:$16 sps:$4 sm:$0xff]   ;;  %v1779_v6 = vld [vmem:[%s2398_s1 + $0x2c] ss:$16 sps:$4 sm:$0xff]  }
   0x3   :  { %721 = vmatpush1.bf16.msra.mxu0 %v1775_v3  ;;  %947 = vmatpush1.bf16.msra.mxu1 %v1776_v4  ;;  %v1781_v7 = vld [vmem:[%s2398_s1 + $0x20] ss:$16 sps:$4 sm:$0xff]   ;;  %v1782_v8 = vld [vmem:[%s2398_s1 + $0x28] ss:$16 sps:$4 sm:$0xff]   ;;  %v1783_v9 = vld [vmem:[%s2398_s1 + $0x44] ss:$16 sps:$4 sm:$0xff]  }
   0x4   :  { %722 = vmatprep.subr.bf16.mxu0 %v1777_v5  ;;  %948 = vmatprep.subr.bf16.mxu1 %v1779_v6  ;;  %v1785_v10 = vld [vmem:[%s2398_s1 + $0x4c] ss:$16 sps:$4 sm:$0xff]   ;;  %v1787_v11 = vld [vmem:[%s2398_s1 + $0x40] ss:$16 sps:$4 sm:$0xff]   ;;  %v1788_v12 = vld [vmem:[%s2398_s1 + $0x48] ss:$16 sps:$4 sm:$0xff]  }
   0x5   :  { %v1789_v13 = vld [vmem:[%s2398_s1 + $0x64] ss:$16 sps:$4 sm:$0xff]   ;;  %v1791_v14 = vld [vmem:[%s2398_s1 + $0x6c] ss:$16 sps:$4 sm:$0xff]   ;;  %v1793_v15 = vld [vmem:[%s2398_s1 + $0x60] ss:$16 sps:$4 sm:$0xff]  }
   0x6   :  { %v1794_v16 = vld [vmem:[%s2398_s1 + $0x68] ss:$16 sps:$4 sm:$0xff]   ;;  %v1795_v17 = vld [vmem:[%s2398_s1 + $0x84] ss:$16 sps:$4 sm:$0xff]   ;;  %v1797_v18 = vld [vmem:[%s2398_s1 + $0x8c] ss:$16 sps:$4 sm:$0xff]  }
   0x7   :  { %723 = vmatpush1.bf16.msra.mxu0 %v1781_v7  ;;  %949 = vmatpush1.bf16.msra.mxu1 %v1782_v8  ;;  %v1799_v19 = vld [vmem:[%s2398_s1 + $0x80] ss:$16 sps:$4 sm:$0xff]   ;;  %v1800_v20 = vld [vmem:[%s2398_s1 + $0x88] ss:$16 sps:$4 sm:$0xff]   ;;  %v1801_v21 = vld [vmem:[%s2398_s1 + $0xa4] ss:$16 sps:$4 sm:$0xff]  }
   0x8   :  { %724 = vmatprep.subr.bf16.mxu0 %v1783_v9  ;;  %950 = vmatprep.subr.bf16.mxu1 %v1785_v10  ;;  %v1803_v22 = vld [vmem:[%s2398_s1 + $0xac] ss:$16 sps:$4 sm:$0xff]   ;;  %v1805_v23 = vld [vmem:[%s2398_s1 + $0xa0] ss:$16 sps:$4 sm:$0xff]   ;;  %v1806_v24 = vld [vmem:[%s2398_s1 + $0xa8] ss:$16 sps:$4 sm:$0xff]  }
   0x9   :  { %v1807_v25 = vld [vmem:[%s2398_s1 + $0xc4] ss:$16 sps:$4 sm:$0xff]   ;;  %v1809_v26 = vld [vmem:[%s2398_s1 + $0xcc] ss:$16 sps:$4 sm:$0xff]   ;;  %v1811_v27 = vld [vmem:[%s2398_s1 + $0xc0] ss:$16 sps:$4 sm:$0xff]  }
   0xa   :  { %v1812_v28 = vld [vmem:[%s2398_s1 + $0xc8] ss:$16 sps:$4 sm:$0xff]   ;;  %v1813_v29 = vld [vmem:[%s2398_s1 + $0xe4] ss:$16 sps:$4 sm:$0xff]   ;;  %v1815_v30 = vld [vmem:[%s2398_s1 + $0xec] ss:$16 sps:$4 sm:$0xff]  }
   0xb   :  { %725 = vmatpush1.bf16.msra.mxu0 %v1787_v11  ;;  %951 = vmatpush1.bf16.msra.mxu1 %v1788_v12  ;;  %v1817_v31 = vld [vmem:[%s2398_s1 + $0xe0] ss:$16 sps:$4 sm:$0xff]   ;;  %v1818_v32 = vld [vmem:[%s2398_s1 + $0xe8] ss:$16 sps:$4 sm:$0xff]   ;;  %v1819_v33 = vld [vmem:[%s2398_s1 + $0x104] ss:$16 sps:$4 sm:$0xff]  }
   0xc   :  { %726 = vmatprep.subr.bf16.mxu0 %v1789_v13  ;;  %952 = vmatprep.subr.bf16.mxu1 %v1791_v14  ;;  %v1821_v34 = vld [vmem:[%s2398_s1 + $0x10c] ss:$16 sps:$4 sm:$0xff]   ;;  %v1823_v35 = vld [vmem:[%s2398_s1 + $0x100] ss:$16 sps:$4 sm:$0xff]   ;;  %v1824_v36 = vld [vmem:[%s2398_s1 + $0x108] ss:$16 sps:$4 sm:$0xff]  }
   0xd   :  { %v1825_v37 = vld [vmem:[%s2398_s1 + $0x124] ss:$16 sps:$4 sm:$0xff]   ;;  %v1827_v38 = vld [vmem:[%s2398_s1 + $0x12c] ss:$16 sps:$4 sm:$0xff]   ;;  %v1829_v39 = vld [vmem:[%s2398_s1 + $0x120] ss:$16 sps:$4 sm:$0xff]  }
   0xe   :  { %v1830_v40 = vld [vmem:[%s2398_s1 + $0x128] ss:$16 sps:$4 sm:$0xff]   ;;  %v1831_v41 = vld [vmem:[%s2398_s1 + $0x144] ss:$16 sps:$4 sm:$0xff]   ;;  %v1833_v42 = vld [vmem:[%s2398_s1 + $0x14c] ss:$16 sps:$4 sm:$0xff]  }
   0xf   :  { %727 = vmatpush1.bf16.msra.mxu0 %v1793_v15  ;;  %953 = vmatpush1.bf16.msra.mxu1 %v1794_v16  ;;  %v1835_v43 = vld [vmem:[%s2398_s1 + $0x140] ss:$16 sps:$4 sm:$0xff]   ;;  %v1836_v44 = vld [vmem:[%s2398_s1 + $0x148] ss:$16 sps:$4 sm:$0xff]   ;;  %v1837_v45 = vld [vmem:[%s2398_s1 + $0x164] ss:$16 sps:$4 sm:$0xff]  }
  0x10   :  { %728 = vmatprep.subr.bf16.mxu0 %v1795_v17  ;;  %954 = vmatprep.subr.bf16.mxu1 %v1797_v18  ;;  %v1839_v46 = vld [vmem:[%s2398_s1 + $0x16c] ss:$16 sps:$4 sm:$0xff]   ;;  %v1841_v47 = vld [vmem:[%s2398_s1 + $0x160] ss:$16 sps:$4 sm:$0xff]   ;;  %v1842_v48 = vld [vmem:[%s2398_s1 + $0x168] ss:$16 sps:$4 sm:$0xff]  }
  0x11   :  { %v1869_v49 = vld [vmem:[%s2399_s0 + $0x4] ss:$12 sps:$4 sm:$0xff]   ;;  %v1845_v51 = vld [vmem:[%s2398_s1 + $0x18c] ss:$16 sps:$4 sm:$0xff]   ;;  %v1848_v53 = vld [vmem:[%s2398_s1 + $0x188] ss:$16 sps:$4 sm:$0xff]  }
  0x12   :  { %v1843_v50 = vld [vmem:[%s2398_s1 + $0x184] ss:$16 sps:$4 sm:$0xff]   ;;  %752 = vmatprep.mubr.bf16.mxu0 %v1869_v49  ;;  %978 = vmatprep.mubr.bf16.mxu1 %v1869_v49  ;;  %v1847_v52 = vld [vmem:[%s2398_s1 + $0x180] ss:$16 sps:$4 sm:$0xff]   ;;  %v1851_v55 = vld [vmem:[%s2398_s1 + $0x1ac] ss:$16 sps:$4 sm:$0xff]  }
  0x13   :  { %729 = vmatpush1.bf16.msra.mxu0 %v1799_v19  ;;  %955 = vmatpush1.bf16.msra.mxu1 %v1800_v20  ;;  %v1849_v54 = vld [vmem:[%s2398_s1 + $0x1a4] ss:$16 sps:$4 sm:$0xff]   ;;  %v1853_v56 = vld [vmem:[%s2398_s1 + $0x1a0] ss:$16 sps:$4 sm:$0xff]   ;;  %v1854_v57 = vld [vmem:[%s2398_s1 + $0x1a8] ss:$16 sps:$4 sm:$0xff]  }
  0x14   :  { %730 = vmatprep.subr.bf16.mxu0 %v1801_v21  ;;  %956 = vmatprep.subr.bf16.mxu1 %v1803_v22  ;;  %v1855_v58 = vld [vmem:[%s2398_s1 + $0x1c4] ss:$16 sps:$4 sm:$0xff]   ;;  %v1857_v59 = vld [vmem:[%s2398_s1 + $0x1cc] ss:$16 sps:$4 sm:$0xff]   ;;  %v1859_v60 = vld [vmem:[%s2398_s1 + $0x1c0] ss:$16 sps:$4 sm:$0xff]  }
  0x15   :  { %v1860_v61 = vld [vmem:[%s2398_s1 + $0x1c8] ss:$16 sps:$4 sm:$0xff]   ;;  %v1861_v62 = vld [vmem:[%s2398_s1 + $0x1e4] ss:$16 sps:$4 sm:$0xff]   ;;  %v1863_v63 = vld [vmem:[%s2398_s1 + $0x1ec] ss:$16 sps:$4 sm:$0xff]  }
  0x16   :  { %v1865_v0 = vld [vmem:[%s2398_s1 + $0x1e0] ss:$16 sps:$4 sm:$0xff]   ;;  %v1866_v2 = vld [vmem:[%s2398_s1 + $0x1e8] ss:$16 sps:$4 sm:$0xff]   ;;  %v1872_v3 = vld [vmem:[%s2398_s1 + $0x204] ss:$16 sps:$4 sm:$0xff]  }
  0x17   :  { %731 = vmatpush1.bf16.msra.mxu0 %v1805_v23  ;;  %957 = vmatpush1.bf16.msra.mxu1 %v1806_v24  ;;  %v1875_v4 = vld [vmem:[%s2398_s1 + $0x20c] ss:$16 sps:$4 sm:$0xff]   ;;  %v1870_v6 = vld [vmem:[%s2398_s1 + $0x200] ss:$16 sps:$4 sm:$0xff]   ;;  %v1873_v7 = vld [vmem:[%s2398_s1 + $0x208] ss:$16 sps:$4 sm:$0xff]  }
  0x18   :  { %732 = vmatprep.subr.bf16.mxu0 %v1807_v25  ;;  %958 = vmatprep.subr.bf16.mxu1 %v1809_v26  ;;  %v1867_v5 = vld [vmem:[%s2399_s0] ss:$12 sps:$4 sm:$0xff]   ;;  %v1876_v8 = vld [vmem:[%s2399_s0 + $0x1c] ss:$12 sps:$4 sm:$0xff]   ;;  %v1890_v9 = vld [vmem:[%s2398_s1 + $0x224] ss:$16 sps:$4 sm:$0xff]  }
  0x19   :  { %v1893_v10 = vld [vmem:[%s2398_s1 + $0x22c] ss:$16 sps:$4 sm:$0xff]   ;;  %v1888_v11 = vld [vmem:[%s2398_s1 + $0x220] ss:$16 sps:$4 sm:$0xff]   ;;  %v1891_v12 = vld [vmem:[%s2398_s1 + $0x228] ss:$16 sps:$4 sm:$0xff]  }
  0x1a   :  { %v119_v13 = vld [vmem:[%s2400_s2] sm:$0xff]  ;;  %v121_v14 = vld [vmem:[%s2400_s2 + $0x10] sm:$0xff]  ;;  %v120_v17 = vld [vmem:[%s2400_s2 + $0x8] sm:$0xff] }
  0x1b   :  { %733 = vmatpush1.bf16.msra.mxu0 %v1811_v27  ;;  %959 = vmatpush1.bf16.msra.mxu1 %v1812_v28  ;;  %v1878_v15 = vld [vmem:[%s2399_s0 + $0x18] ss:$12 sps:$4 sm:$0xff]   ;;  %v1879_v16 = vld [vmem:[%s2399_s0 + $0x34] ss:$12 sps:$4 sm:$0xff]   ;;  %v124_v19 = vld [vmem:[%s2400_s2 + $0x28] sm:$0xff] }
  0x1c   :  { %734 = vmatprep.subr.bf16.mxu0 %v1813_v29  ;;  %960 = vmatprep.subr.bf16.mxu1 %v1815_v30  ;;  %v122_v18 = vld [vmem:[%s2400_s2 + $0x18] sm:$0xff]  ;;  %v123_v20 = vld [vmem:[%s2400_s2 + $0x20] sm:$0xff]  ;;  %v125_v24 = vld [vmem:[%s2400_s2 + $0x30] sm:$0xff] }
  0x1d   :  { %137 = vperm.xlu0 %1769, %v119_v13   ;;  %147 = vperm.xlu1 %1770, %v121_v14   ;;  %v1881_v21 = vld [vmem:[%s2399_s0 + $0x30] ss:$12 sps:$4 sm:$0xff]   ;;  %v1882_v22 = vld [vmem:[%s2399_s0 + $0x4c] ss:$12 sps:$4 sm:$0xff]   ;;  %v127_v26 = vld [vmem:[%s2400_s2 + $0x40] sm:$0xff] }
  0x1e   :  { %v126_v23 = vld [vmem:[%s2400_s2 + $0x38] sm:$0xff]  ;;  %v128_v25 = vld [vmem:[%s2400_s2 + $0x48] sm:$0xff]  ;;  %v1885_v28 = vld [vmem:[%s2399_s0 + $0x64] ss:$12 sps:$4 sm:$0xff]  }
  0x1f   :  { %735 = vmatpush1.bf16.msra.mxu0 %v1817_v31  ;;  %961 = vmatpush1.bf16.msra.mxu1 %v1818_v32  ;;  %v1884_v27 = vld [vmem:[%s2399_s0 + $0x48] ss:$12 sps:$4 sm:$0xff]   ;;  %v130_v29 = vld [vmem:[%s2400_s2 + $0x58] sm:$0xff]  ;;  %v131_v32 = vld [vmem:[%s2400_s2 + $0x60] sm:$0xff] }
  0x20   :  { %736 = vmatprep.subr.bf16.mxu0 %v1819_v33  ;;  %962 = vmatprep.subr.bf16.mxu1 %v1821_v34  ;;  %v129_v30 = vld [vmem:[%s2400_s2 + $0x50] sm:$0xff]  ;;  %v132_v31 = vld [vmem:[%s2400_s2 + $0x68] sm:$0xff] }
  0x21   :  { %142 = vperm.xlu0 %1769, %v120_v17   ;;  %152 = vperm.xlu1 %1770, %v122_v18   ;;  %v1887_v33 = vld [vmem:[%s2399_s0 + $0x60] ss:$12 sps:$4 sm:$0xff]   ;;  %v1894_v34 = vld [vmem:[%s2399_s0 + $0x7c] ss:$12 sps:$4 sm:$0xff]  }
  0x22   :  { %v1910_v49 = vld [vmem:[%s2399_s0 + $0xb0] ss:$12 sps:$4 sm:$0xff]  }
  0x23   :  { %737 = vmatpush1.bf16.msra.mxu0 %v1823_v35  ;;  %963 = vmatpush1.bf16.msra.mxu1 %v1824_v36  ;;  %v134_v35 = vld [vmem:[%s2400_s2 + $0x78] sm:$0xff]  ;;  %v133_v36 = vld [vmem:[%s2400_s2 + $0x70] sm:$0xff] }
  0x24   :  { %738 = vmatprep.subr.bf16.mxu0 %v1825_v37  ;;  %964 = vmatprep.subr.bf16.mxu1 %v1827_v38  ;;  %v1896_v37 = vld [vmem:[%s2399_s0 + $0x78] ss:$12 sps:$4 sm:$0xff]   ;;  %v1897_v38 = vld [vmem:[%s2399_s0 + $0x94] ss:$12 sps:$4 sm:$0xff]  }
  0x25   :  { %162 = vperm.xlu1 %1770, %v124_v19   ;;  %157 = vperm.xlu0 %1769, %v123_v20  }
  0x27   :  { %739 = vmatpush1.bf16.msra.mxu0 %v1829_v39  ;;  %965 = vmatpush1.bf16.msra.mxu1 %v1830_v40  ;;  %v1899_v39 = vld [vmem:[%s2399_s0 + $0x90] ss:$12 sps:$4 sm:$0xff]   ;;  %v1900_v40 = vld [vmem:[%s2399_s0 + $0xac] ss:$12 sps:$4 sm:$0xff]  }
  0x28   :  { %740 = vmatprep.subr.bf16.mxu0 %v1831_v41  ;;  %966 = vmatprep.subr.bf16.mxu1 %v1833_v42  ;;  %v1902_v41 = vld [vmem:[%s2399_s0 + $0xa8] ss:$12 sps:$4 sm:$0xff]  }
  0x29   :  { %172 = vperm.xlu1 %1770, %v126_v23   ;;  %167 = vperm.xlu0 %1769, %v125_v24   ;;  %v1903_v42 = vld [vmem:[%s2399_s0 + $0x8] ss:$12 sps:$4 sm:$0xff]  }
  0x2b   :  { %741 = vmatpush1.bf16.msra.mxu0 %v1835_v43  ;;  %967 = vmatpush1.bf16.msra.mxu1 %v1836_v44  ;;  %v1904_v43 = vld [vmem:[%s2399_s0 + $0x20] ss:$12 sps:$4 sm:$0xff]   ;;  %v1905_v44 = vld [vmem:[%s2399_s0 + $0x38] ss:$12 sps:$4 sm:$0xff]  }
  0x2c   :  { %742 = vmatprep.subr.bf16.mxu0 %v1837_v45  ;;  %968 = vmatprep.subr.bf16.mxu1 %v1839_v46  ;;  %v1906_v45 = vld [vmem:[%s2399_s0 + $0x50] ss:$12 sps:$4 sm:$0xff]   ;;  %v1907_v46 = vld [vmem:[%s2399_s0 + $0x68] ss:$12 sps:$4 sm:$0xff]  }
  0x2d   :  { %182 = vperm.xlu1 %1770, %v128_v25   ;;  %177 = vperm.xlu0 %1769, %v127_v26  }
  0x2f   :  { %743 = vmatpush1.bf16.msra.mxu0 %v1841_v47  ;;  %969 = vmatpush1.bf16.msra.mxu1 %v1842_v48  ;;  %v1908_v47 = vld [vmem:[%s2399_s0 + $0x80] ss:$12 sps:$4 sm:$0xff]   ;;  %v1909_v48 = vld [vmem:[%s2399_s0 + $0x98] ss:$12 sps:$4 sm:$0xff]  }
  0x30   :  { %744 = vmatprep.subr.bf16.mxu0 %v1843_v50  ;;  %970 = vmatprep.subr.bf16.mxu1 %v1845_v51 }
  0x31   :  { %192 = vperm.xlu1 %1770, %v130_v29   ;;  %187 = vperm.xlu0 %1769, %v129_v30  }
  0x33   :  { %745 = vmatpush1.bf16.msra.mxu0 %v1847_v52  ;;  %971 = vmatpush1.bf16.msra.mxu1 %v1848_v53 }
  0x34   :  { %746 = vmatprep.subr.bf16.mxu0 %v1849_v54  ;;  %972 = vmatprep.subr.bf16.mxu1 %v1851_v55 }
  0x35   :  { %202 = vperm.xlu1 %1770, %v132_v31   ;;  %197 = vperm.xlu0 %1769, %v131_v32  }
  0x37   :  { %747 = vmatpush1.bf16.msra.mxu0 %v1853_v56  ;;  %973 = vmatpush1.bf16.msra.mxu1 %v1854_v57 }
  0x38   :  { %748 = vmatprep.subr.bf16.mxu0 %v1855_v58  ;;  %974 = vmatprep.subr.bf16.mxu1 %v1857_v59 }
  0x39   :  { %212 = vperm.xlu1 %1770, %v134_v35   ;;  %207 = vperm.xlu0 %1769, %v133_v36  }
  0x3b   :  { %749 = vmatpush1.bf16.msra.mxu0 %v1859_v60  ;;  %975 = vmatpush1.bf16.msra.mxu1 %v1860_v61 }
  0x3c   :  { %750 = vmatprep.subr.bf16.mxu0 %v1861_v62  ;;  %976 = vmatprep.subr.bf16.mxu1 %v1863_v63 }
  0x3f   :  { %751 = vmatpush1.bf16.msra.mxu0 %v1865_v0  ;;  %977 = vmatpush1.bf16.msra.mxu1 %v1866_v2 }
  0x40   :  { %833 = vmatprep.subr.bf16.mxu0 %v1872_v3  ;;  %1059 = vmatprep.subr.bf16.mxu1 %v1875_v4 }
  0x42   :  { %753 = vmatmul.mubr.bf16.vlgmr.msra.gmra.mrb[0].mxu0 %v1867_v5  ;;  %979 = vmatmul.mubr.bf16.vlgmr.msra.gmra.mrb[0].mxu1 %v1867_v5 }
  0x43   :  { %834 = vmatpush1.bf16.msra.mxu0 %v1870_v6  ;;  %1060 = vmatpush1.bf16.msra.mxu1 %v1873_v7 }
  0x44   :  { %762 = vmatprep.mubr.bf16.mxu0 %v1876_v8  ;;  %988 = vmatprep.mubr.bf16.mxu1 %v1876_v8 }
  0x45   :  { %835 = vmatprep.subr.bf16.mxu0 %v1890_v9  ;;  %1061 = vmatprep.subr.bf16.mxu1 %v1893_v10 }
  0x47   :  { %836 = vmatpush1.bf16.msra.mxu0 %v1888_v11  ;;  %1062 = vmatpush1.bf16.msra.mxu1 %v1891_v12 }
  0x4a   :  { %763 = vmatmul.mubr.bf16.gmra.mrb[4].mxu0 %v1878_v15  ;;  %989 = vmatmul.mubr.bf16.gmra.mrb[4].mxu1 %v1878_v15 }
  0x4b   :  { %772 = vmatprep.mubr.bf16.mxu0 %v1879_v16  ;;  %998 = vmatprep.mubr.bf16.mxu1 %v1879_v16 }
  0x52   :  { %773 = vmatmul.mubr.bf16.gmra.mrb[8].mxu0 %v1881_v21  ;;  %999 = vmatmul.mubr.bf16.gmra.mrb[8].mxu1 %v1881_v21 }
  0x53   :  { %782 = vmatprep.mubr.bf16.mxu0 %v1882_v22  ;;  %1008 = vmatprep.mubr.bf16.mxu1 %v1882_v22 }
  0x5a   :  { %783 = vmatmul.mubr.bf16.gmra.mrb[12].mxu0 %v1884_v27  ;;  %1009 = vmatmul.mubr.bf16.gmra.mrb[12].mxu1 %v1884_v27 }
  0x5b   :  { %792 = vmatprep.mubr.bf16.mxu0 %v1885_v28  ;;  %1018 = vmatprep.mubr.bf16.mxu1 %v1885_v28 }
  0x62   :  { %793 = vmatmul.mubr.bf16.gmra.mrb[16].mxu0 %v1887_v33  ;;  %1019 = vmatmul.mubr.bf16.gmra.mrb[16].mxu1 %v1887_v33 }
  0x63   :  { %802 = vmatprep.mubr.bf16.mxu0 %v1894_v34  ;;  %1028 = vmatprep.mubr.bf16.mxu1 %v1894_v34 }
  0x6a   :  { %803 = vmatmul.mubr.bf16.gmra.mrb[20].mxu0 %v1896_v37  ;;  %1029 = vmatmul.mubr.bf16.gmra.mrb[20].mxu1 %v1896_v37 }
  0x6b   :  { %812 = vmatprep.mubr.bf16.mxu0 %v1897_v38  ;;  %1038 = vmatprep.mubr.bf16.mxu1 %v1897_v38 }
  0x72   :  { %813 = vmatmul.mubr.bf16.gmra.mrb[24].mxu0 %v1899_v39  ;;  %1039 = vmatmul.mubr.bf16.gmra.mrb[24].mxu1 %v1899_v39 }
  0x73   :  { %822 = vmatprep.mubr.bf16.mxu0 %v1900_v40  ;;  %1048 = vmatprep.mubr.bf16.mxu1 %v1900_v40 }
  0x7a   :  { %823 = vmatmul.mubr.bf16.gmra.mrb[28].mxu0 %v1902_v41  ;;  %1049 = vmatmul.mubr.bf16.gmra.mrb[28].mxu1 %v1902_v41 }
  0x7b   :  { %865 = vmatprep.mubr.bf16.mxu0 %v1911_v1  ;;  %1091 = vmatprep.mubr.bf16.mxu1 %v1911_v1 }
  0x82   :  { %1560 = vmatmul.mubr.msk.bf16.vlgmr.msra.gmra.mrb[0].mxu0 %vm695_vm0, %v1903_v42  ;;  %1568 = vmatmul.mubr.msk.bf16.vlgmr.msra.gmra.mrb[0].mxu1 %vm695_vm0, %v1903_v42 }
  0x83   :  { %875 = vmatprep.mubr.bf16.mxu0 %v1911_v1  ;;  %1101 = vmatprep.mubr.bf16.mxu1 %v1911_v1 }
  0x8a   :  { %1561 = vmatmul.mubr.msk.bf16.gmra.mrb[4].mxu0 %vm695_vm0, %v1904_v43  ;;  %1569 = vmatmul.mubr.msk.bf16.gmra.mrb[4].mxu1 %vm695_vm0, %v1904_v43 }
  0x8b   :  { %885 = vmatprep.mubr.bf16.mxu0 %v1911_v1  ;;  %1111 = vmatprep.mubr.bf16.mxu1 %v1911_v1 }
  0x92   :  { %1562 = vmatmul.mubr.msk.bf16.gmra.mrb[8].mxu0 %vm695_vm0, %v1905_v44  ;;  %1570 = vmatmul.mubr.msk.bf16.gmra.mrb[8].mxu1 %vm695_vm0, %v1905_v44 }
  0x93   :  { %895 = vmatprep.mubr.bf16.mxu0 %v1911_v1  ;;  %1121 = vmatprep.mubr.bf16.mxu1 %v1911_v1 }
  0x9a   :  { %1563 = vmatmul.mubr.msk.bf16.gmra.mrb[12].mxu0 %vm695_vm0, %v1906_v45  ;;  %1571 = vmatmul.mubr.msk.bf16.gmra.mrb[12].mxu1 %vm695_vm0, %v1906_v45 }
  0x9b   :  { %905 = vmatprep.mubr.bf16.mxu0 %v1911_v1  ;;  %1131 = vmatprep.mubr.bf16.mxu1 %v1911_v1 }
  0x9c   :  { %v138_v50 = vpop.permute.xlu0 %137  ;;  %v148_v52 = vpop.permute.xlu1 %147 }
  0xa0   :  { %v143_v51 = vpop.permute.xlu0 %142  ;;  %v153_v15 = vpop.permute.xlu1 %152 }
  0xa2   :  { %1564 = vmatmul.mubr.msk.bf16.gmra.mrb[16].mxu0 %vm695_vm0, %v1907_v46  ;;  %1572 = vmatmul.mubr.msk.bf16.gmra.mrb[16].mxu1 %vm695_vm0, %v1907_v46 }
  0xa3   :  { %915 = vmatprep.mubr.bf16.mxu0 %v1911_v1  ;;  %1141 = vmatprep.mubr.bf16.mxu1 %v1911_v1 }
  0xa4   :  { %v163_v44 = vpop.permute.xlu1 %162  ;;  %v158_v45 = vpop.permute.xlu0 %157 }
  0xaa   :  { %1565 = vmatmul.mubr.msk.bf16.gmra.mrb[20].mxu0 %vm695_vm0, %v1908_v47  ;;  %1573 = vmatmul.mubr.msk.bf16.gmra.mrb[20].mxu1 %vm695_vm0, %v1908_v47 }
  0xab   :  { %925 = vmatprep.mubr.bf16.mxu0 %v1911_v1  ;;  %1151 = vmatprep.mubr.bf16.mxu1 %v1911_v1 }
  0xb2   :  { %1566 = vmatmul.mubr.msk.bf16.gmra.mrb[24].mxu0 %vm695_vm0, %v1909_v48  ;;  %1574 = vmatmul.mubr.msk.bf16.gmra.mrb[24].mxu1 %vm695_vm0, %v1909_v48 }
  0xb3   :  { %935 = vmatprep.mubr.bf16.mxu0 %v1911_v1  ;;  %1161 = vmatprep.mubr.bf16.mxu1 %v1911_v1 }
  0xba   :  { %1567 = vmatmul.mubr.msk.bf16.gmra.mrb[28].mxu0 %vm695_vm0, %v1910_v49  ;;  %1575 = vmatmul.mubr.msk.bf16.gmra.mrb[28].mxu1 %vm695_vm0, %v1910_v49 }
 0x155   :  { %v867_v53 = vpop.f32.mrb[0].mxu0  ;;  %v1093_v54 = vpop.f32.mrb[0].mxu1 }
 0x156   :  { %v1640_v55 = vadd.f32 %v867_v53, %v138_v50  ;;  %v1672_v56 = vadd.f32 %v1093_v54, %v138_v50  ;;  %v869_v57 = vpop.f32.mrb[1].mxu0  ;;  %v1095_v58 = vpop.f32.mrb[1].mxu1 }
 0x157   :  { %v1641_v59 = vadd.f32 %v869_v57, %v138_v50  ;;  %v1673_v60 = vadd.f32 %v1095_v58, %v138_v50  ;;  %v871_v1 = vpop.f32.mrb[2].mxu0  ;;  %v1097_v61 = vpop.f32.mrb[2].mxu1 }
 0x158   :  { %v1172_v62 = vmax.f32 %v1640_v55, 0.0  ;;  %v1174_v63 = vmax.f32 %v1672_v56, 0.0  ;;  %v1642_v0 = vadd.f32 %v871_v1, %v143_v51  ;;  %v1674_v2 = vadd.f32 %v1097_v61, %v143_v51  ;;  %v873_v3 = vpop.f32.mrb[3].mxu0  ;;  %v1099_v4 = vpop.f32.mrb[3].mxu1 }
 0x159   :  { %v1173_v5 = vmax.f32 %v1641_v59, 0.0  ;;  %v1175_v6 = vmax.f32 %v1673_v60, 0.0  ;;  %v1643_v7 = vadd.f32 %v873_v3, %v143_v51  ;;  %v1675_v8 = vadd.f32 %v1099_v4, %v143_v51 }
 0x15a   :  { %v1176_v9 = vmax.f32 %v1642_v0, 0.0  ;;  %v1178_v10 = vmax.f32 %v1674_v2, 0.0 }
 0x15b   :  { %v1608_v11 = vpack.c.bf16 %v1173_v5, %v1172_v62  ;;  %v1609_v12 = vpack.c.bf16 %v1175_v6, %v1174_v63  ;;  %v1177_v13 = vmax.f32 %v1643_v7, 0.0  ;;  %v1179_v14 = vmax.f32 %v1675_v8, 0.0 }
 0x15d   :  { %1428 = vst [vmem:[%s2401_s3] sm:$0xff] %v1608_v11  ;;  %1429 = vst [vmem:[%s2401_s3 + $0x8] sm:$0xff] %v1609_v12  ;;  %v1610_v16 = vpack.c.bf16 %v1177_v13, %v1176_v9  ;;  %v1611_v17 = vpack.c.bf16 %v1179_v14, %v1178_v10  ;;  %v877_v18 = vpop.f32.mrb[4].mxu0  ;;  %v1103_v19 = vpop.f32.mrb[4].mxu1 }
 0x15e   :  { %v1644_v20 = vadd.f32 %v877_v18, %v148_v52  ;;  %v1676_v21 = vadd.f32 %v1103_v19, %v148_v52  ;;  %v879_v22 = vpop.f32.mrb[5].mxu0  ;;  %v1105_v23 = vpop.f32.mrb[5].mxu1 }
 0x15f   :  { %1430 = vst [vmem:[%s2401_s3 + $0x10] sm:$0xff] %v1610_v16  ;;  %1431 = vst [vmem:[%s2401_s3 + $0x18] sm:$0xff] %v1611_v17  ;;  %v1645_v24 = vadd.f32 %v879_v22, %v148_v52  ;;  %v1677_v25 = vadd.f32 %v1105_v23, %v148_v52  ;;  %v881_v26 = vpop.f32.mrb[6].mxu0  ;;  %v1107_v27 = vpop.f32.mrb[6].mxu1 }
 0x160   :  { %v1180_v28 = vmax.f32 %v1644_v20, 0.0  ;;  %v1182_v29 = vmax.f32 %v1676_v21, 0.0  ;;  %v1646_v30 = vadd.f32 %v881_v26, %v153_v15  ;;  %v1678_v31 = vadd.f32 %v1107_v27, %v153_v15  ;;  %v883_v32 = vpop.f32.mrb[7].mxu0  ;;  %v1109_v33 = vpop.f32.mrb[7].mxu1 }
 0x161   :  { %v1181_v34 = vmax.f32 %v1645_v24, 0.0  ;;  %v1183_v35 = vmax.f32 %v1677_v25, 0.0  ;;  %v1647_v36 = vadd.f32 %v883_v32, %v153_v15  ;;  %v1679_v37 = vadd.f32 %v1109_v33, %v153_v15  ;;  %v173_v10 = vpop.permute.xlu1 %172  ;;  %v168_v11 = vpop.permute.xlu0 %167 }
 0x162   :  { %v1184_v38 = vmax.f32 %v1646_v30, 0.0  ;;  %v1186_v39 = vmax.f32 %v1678_v31, 0.0 }
 0x163   :  { %v1612_v40 = vpack.c.bf16 %v1181_v34, %v1180_v28  ;;  %v1613_v41 = vpack.c.bf16 %v1183_v35, %v1182_v29  ;;  %v1185_v42 = vmax.f32 %v1647_v36, 0.0  ;;  %v1187_v43 = vmax.f32 %v1679_v37, 0.0 }
 0x165   :  { %1432 = vst [vmem:[%s2401_s3 + $0x20] sm:$0xff] %v1612_v40  ;;  %1433 = vst [vmem:[%s2401_s3 + $0x28] sm:$0xff] %v1613_v41  ;;  %v1614_v46 = vpack.c.bf16 %v1185_v42, %v1184_v38  ;;  %v1615_v47 = vpack.c.bf16 %v1187_v43, %v1186_v39  ;;  %v887_v48 = vpop.f32.mrb[8].mxu0  ;;  %v1113_v49 = vpop.f32.mrb[8].mxu1 }
 0x166   :  { %v1648_v50 = vadd.f32 %v887_v48, %v158_v45  ;;  %v1680_v51 = vadd.f32 %v1113_v49, %v158_v45  ;;  %v889_v52 = vpop.f32.mrb[9].mxu0  ;;  %v1115_v53 = vpop.f32.mrb[9].mxu1 }
 0x167   :  { %1434 = vst [vmem:[%s2401_s3 + $0x30] sm:$0xff] %v1614_v46  ;;  %1435 = vst [vmem:[%s2401_s3 + $0x38] sm:$0xff] %v1615_v47  ;;  %v1649_v54 = vadd.f32 %v889_v52, %v158_v45  ;;  %v1681_v55 = vadd.f32 %v1115_v53, %v158_v45  ;;  %v891_v56 = vpop.f32.mrb[10].mxu0  ;;  %v1117_v57 = vpop.f32.mrb[10].mxu1 }
 0x168   :  { %v1188_v58 = vmax.f32 %v1648_v50, 0.0  ;;  %v1190_v59 = vmax.f32 %v1680_v51, 0.0  ;;  %v1650_v60 = vadd.f32 %v891_v56, %v163_v44  ;;  %v1682_v1 = vadd.f32 %v1117_v57, %v163_v44  ;;  %v893_v61 = vpop.f32.mrb[11].mxu0  ;;  %v1119_v62 = vpop.f32.mrb[11].mxu1 }
 0x169   :  { %v1189_v63 = vmax.f32 %v1649_v54, 0.0  ;;  %v1191_v0 = vmax.f32 %v1681_v55, 0.0  ;;  %v1651_v2 = vadd.f32 %v893_v61, %v163_v44  ;;  %v1683_v3 = vadd.f32 %v1119_v62, %v163_v44  ;;  %v183_v40 = vpop.permute.xlu1 %182  ;;  %v178_v41 = vpop.permute.xlu0 %177 }
 0x16a   :  { %v1192_v4 = vmax.f32 %v1650_v60, 0.0  ;;  %v1194_v5 = vmax.f32 %v1682_v1, 0.0 }
 0x16b   :  { %v1616_v6 = vpack.c.bf16 %v1189_v63, %v1188_v58  ;;  %v1617_v7 = vpack.c.bf16 %v1191_v0, %v1190_v59  ;;  %v1193_v8 = vmax.f32 %v1651_v2, 0.0  ;;  %v1195_v9 = vmax.f32 %v1683_v3, 0.0 }
 0x16d   :  { %1436 = vst [vmem:[%s2401_s3 + $0x40] sm:$0xff] %v1616_v6  ;;  %1437 = vst [vmem:[%s2401_s3 + $0x48] sm:$0xff] %v1617_v7  ;;  %v1618_v12 = vpack.c.bf16 %v1193_v8, %v1192_v4  ;;  %v1619_v13 = vpack.c.bf16 %v1195_v9, %v1194_v5  ;;  %v897_v14 = vpop.f32.mrb[12].mxu0  ;;  %v1123_v15 = vpop.f32.mrb[12].mxu1 }
 0x16e   :  { %v1652_v16 = vadd.f32 %v897_v14, %v168_v11  ;;  %v1684_v17 = vadd.f32 %v1123_v15, %v168_v11  ;;  %v899_v18 = vpop.f32.mrb[13].mxu0  ;;  %v1125_v19 = vpop.f32.mrb[13].mxu1 }
 0x16f   :  { %1438 = vst [vmem:[%s2401_s3 + $0x50] sm:$0xff] %v1618_v12  ;;  %1439 = vst [vmem:[%s2401_s3 + $0x58] sm:$0xff] %v1619_v13  ;;  %v1653_v20 = vadd.f32 %v899_v18, %v168_v11  ;;  %v1685_v21 = vadd.f32 %v1125_v19, %v168_v11  ;;  %v901_v22 = vpop.f32.mrb[14].mxu0  ;;  %v1127_v23 = vpop.f32.mrb[14].mxu1 }
 0x170   :  { %v1196_v24 = vmax.f32 %v1652_v16, 0.0  ;;  %v1198_v25 = vmax.f32 %v1684_v17, 0.0  ;;  %v1654_v26 = vadd.f32 %v901_v22, %v173_v10  ;;  %v1686_v27 = vadd.f32 %v1127_v23, %v173_v10  ;;  %v903_v28 = vpop.f32.mrb[15].mxu0  ;;  %v1129_v29 = vpop.f32.mrb[15].mxu1 }
 0x171   :  { %v1197_v30 = vmax.f32 %v1653_v20, 0.0  ;;  %v1199_v31 = vmax.f32 %v1685_v21, 0.0  ;;  %v1655_v32 = vadd.f32 %v903_v28, %v173_v10  ;;  %v1687_v33 = vadd.f32 %v1129_v29, %v173_v10  ;;  %v193_v6 = vpop.permute.xlu1 %192  ;;  %v188_v7 = vpop.permute.xlu0 %187 }
 0x172   :  { %v1200_v34 = vmax.f32 %v1654_v26, 0.0  ;;  %v1202_v35 = vmax.f32 %v1686_v27, 0.0 }
 0x173   :  { %v1620_v36 = vpack.c.bf16 %v1197_v30, %v1196_v24  ;;  %v1621_v37 = vpack.c.bf16 %v1199_v31, %v1198_v25  ;;  %v1201_v38 = vmax.f32 %v1655_v32, 0.0  ;;  %v1203_v39 = vmax.f32 %v1687_v33, 0.0 }
 0x175   :  { %1440 = vst [vmem:[%s2401_s3 + $0x60] sm:$0xff] %v1620_v36  ;;  %1441 = vst [vmem:[%s2401_s3 + $0x68] sm:$0xff] %v1621_v37  ;;  %v1622_v42 = vpack.c.bf16 %v1201_v38, %v1200_v34  ;;  %v1623_v43 = vpack.c.bf16 %v1203_v39, %v1202_v35  ;;  %v907_v44 = vpop.f32.mrb[16].mxu0  ;;  %v1133_v45 = vpop.f32.mrb[16].mxu1 }
 0x176   :  { %v1656_v46 = vadd.f32 %v907_v44, %v178_v41  ;;  %v1688_v47 = vadd.f32 %v1133_v45, %v178_v41  ;;  %v909_v48 = vpop.f32.mrb[17].mxu0  ;;  %v1135_v49 = vpop.f32.mrb[17].mxu1 }
 0x177   :  { %1442 = vst [vmem:[%s2401_s3 + $0x70] sm:$0xff] %v1622_v42  ;;  %1443 = vst [vmem:[%s2401_s3 + $0x78] sm:$0xff] %v1623_v43  ;;  %v1657_v50 = vadd.f32 %v909_v48, %v178_v41  ;;  %v1689_v51 = vadd.f32 %v1135_v49, %v178_v41  ;;  %v911_v52 = vpop.f32.mrb[18].mxu0  ;;  %v1137_v53 = vpop.f32.mrb[18].mxu1 }
 0x178   :  { %v1204_v54 = vmax.f32 %v1656_v46, 0.0  ;;  %v1206_v55 = vmax.f32 %v1688_v47, 0.0  ;;  %v1658_v56 = vadd.f32 %v911_v52, %v183_v40  ;;  %v1690_v57 = vadd.f32 %v1137_v53, %v183_v40  ;;  %v913_v58 = vpop.f32.mrb[19].mxu0  ;;  %v1139_v59 = vpop.f32.mrb[19].mxu1 }
 0x179   :  { %v1205_v60 = vmax.f32 %v1657_v50, 0.0  ;;  %v1207_v1 = vmax.f32 %v1689_v51, 0.0  ;;  %v1659_v61 = vadd.f32 %v913_v58, %v183_v40  ;;  %v1691_v62 = vadd.f32 %v1139_v59, %v183_v40  ;;  %v203_v36 = vpop.permute.xlu1 %202  ;;  %v198_v37 = vpop.permute.xlu0 %197 }
 0x17a   :  { %v1208_v63 = vmax.f32 %v1658_v56, 0.0  ;;  %v1210_v0 = vmax.f32 %v1690_v57, 0.0 }
 0x17b   :  { %v1624_v2 = vpack.c.bf16 %v1205_v60, %v1204_v54  ;;  %v1625_v3 = vpack.c.bf16 %v1207_v1, %v1206_v55  ;;  %v1209_v4 = vmax.f32 %v1659_v61, 0.0  ;;  %v1211_v5 = vmax.f32 %v1691_v62, 0.0 }
 0x17d   :  { %1444 = vst [vmem:[%s2401_s3 + $0x80] sm:$0xff] %v1624_v2  ;;  %1445 = vst [vmem:[%s2401_s3 + $0x88] sm:$0xff] %v1625_v3  ;;  %v1626_v8 = vpack.c.bf16 %v1209_v4, %v1208_v63  ;;  %v1627_v9 = vpack.c.bf16 %v1211_v5, %v1210_v0  ;;  %v917_v10 = vpop.f32.mrb[20].mxu0  ;;  %v1143_v11 = vpop.f32.mrb[20].mxu1 }
 0x17e   :  { %v1660_v12 = vadd.f32 %v917_v10, %v188_v7  ;;  %v1692_v13 = vadd.f32 %v1143_v11, %v188_v7  ;;  %v919_v14 = vpop.f32.mrb[21].mxu0  ;;  %v1145_v15 = vpop.f32.mrb[21].mxu1 }
 0x17f   :  { %1446 = vst [vmem:[%s2401_s3 + $0x90] sm:$0xff] %v1626_v8  ;;  %1447 = vst [vmem:[%s2401_s3 + $0x98] sm:$0xff] %v1627_v9  ;;  %v1661_v16 = vadd.f32 %v919_v14, %v188_v7  ;;  %v1693_v17 = vadd.f32 %v1145_v15, %v188_v7  ;;  %v921_v18 = vpop.f32.mrb[22].mxu0  ;;  %v1147_v19 = vpop.f32.mrb[22].mxu1 }
 0x180   :  { %v1212_v20 = vmax.f32 %v1660_v12, 0.0  ;;  %v1214_v21 = vmax.f32 %v1692_v13, 0.0  ;;  %v1662_v22 = vadd.f32 %v921_v18, %v193_v6  ;;  %v1694_v23 = vadd.f32 %v1147_v19, %v193_v6  ;;  %v923_v24 = vpop.f32.mrb[23].mxu0  ;;  %v1149_v25 = vpop.f32.mrb[23].mxu1 }
 0x181   :  { %v1213_v26 = vmax.f32 %v1661_v16, 0.0  ;;  %v1215_v27 = vmax.f32 %v1693_v17, 0.0  ;;  %v1663_v28 = vadd.f32 %v923_v24, %v193_v6  ;;  %v1695_v29 = vadd.f32 %v1149_v25, %v193_v6  ;;  %v213_v2 = vpop.permute.xlu1 %212  ;;  %v208_v3 = vpop.permute.xlu0 %207 }
 0x182   :  { %v1216_v30 = vmax.f32 %v1662_v22, 0.0  ;;  %v1218_v31 = vmax.f32 %v1694_v23, 0.0 }
 0x183   :  { %v1628_v32 = vpack.c.bf16 %v1213_v26, %v1212_v20  ;;  %v1629_v33 = vpack.c.bf16 %v1215_v27, %v1214_v21  ;;  %v1217_v34 = vmax.f32 %v1663_v28, 0.0  ;;  %v1219_v35 = vmax.f32 %v1695_v29, 0.0 }
 0x185   :  { %1448 = vst [vmem:[%s2401_s3 + $0xa0] sm:$0xff] %v1628_v32  ;;  %1449 = vst [vmem:[%s2401_s3 + $0xa8] sm:$0xff] %v1629_v33  ;;  %v1630_v38 = vpack.c.bf16 %v1217_v34, %v1216_v30  ;;  %v1631_v39 = vpack.c.bf16 %v1219_v35, %v1218_v31  ;;  %v927_v40 = vpop.f32.mrb[24].mxu0  ;;  %v1153_v41 = vpop.f32.mrb[24].mxu1 }
 0x186   :  { %v1664_v42 = vadd.f32 %v927_v40, %v198_v37  ;;  %v1696_v43 = vadd.f32 %v1153_v41, %v198_v37  ;;  %v929_v44 = vpop.f32.mrb[25].mxu0  ;;  %v1155_v45 = vpop.f32.mrb[25].mxu1 }
 0x187   :  { %1450 = vst [vmem:[%s2401_s3 + $0xb0] sm:$0xff] %v1630_v38  ;;  %1451 = vst [vmem:[%s2401_s3 + $0xb8] sm:$0xff] %v1631_v39  ;;  %v1665_v46 = vadd.f32 %v929_v44, %v198_v37  ;;  %v1697_v47 = vadd.f32 %v1155_v45, %v198_v37  ;;  %v931_v48 = vpop.f32.mrb[26].mxu0  ;;  %v1157_v49 = vpop.f32.mrb[26].mxu1 }
 0x188   :  { %v1220_v50 = vmax.f32 %v1664_v42, 0.0  ;;  %v1222_v51 = vmax.f32 %v1696_v43, 0.0  ;;  %v1666_v52 = vadd.f32 %v931_v48, %v203_v36  ;;  %v1698_v53 = vadd.f32 %v1157_v49, %v203_v36  ;;  %v933_v54 = vpop.f32.mrb[27].mxu0  ;;  %v1159_v55 = vpop.f32.mrb[27].mxu1 }
 0x189   :  { %v1221_v56 = vmax.f32 %v1665_v46, 0.0  ;;  %v1223_v57 = vmax.f32 %v1697_v47, 0.0  ;;  %v1667_v58 = vadd.f32 %v933_v54, %v203_v36  ;;  %v1699_v59 = vadd.f32 %v1159_v55, %v203_v36 }
 0x18a   :  { %v1224_v60 = vmax.f32 %v1666_v52, 0.0  ;;  %v1226_v1 = vmax.f32 %v1698_v53, 0.0 }
 0x18b   :  { %v1632_v61 = vpack.c.bf16 %v1221_v56, %v1220_v50  ;;  %v1633_v62 = vpack.c.bf16 %v1223_v57, %v1222_v51  ;;  %v1225_v63 = vmax.f32 %v1667_v58, 0.0  ;;  %v1227_v0 = vmax.f32 %v1699_v59, 0.0 }
 0x18d   :  { %1452 = vst [vmem:[%s2401_s3 + $0xc0] sm:$0xff] %v1632_v61  ;;  %1453 = vst [vmem:[%s2401_s3 + $0xc8] sm:$0xff] %v1633_v62  ;;  %v1634_v4 = vpack.c.bf16 %v1225_v63, %v1224_v60  ;;  %v1635_v5 = vpack.c.bf16 %v1227_v0, %v1226_v1  ;;  %v937_v6 = vpop.f32.mrb[28].mxu0  ;;  %v1163_v7 = vpop.f32.mrb[28].mxu1 }
 0x18e   :  { %v1668_v8 = vadd.f32 %v937_v6, %v208_v3  ;;  %v1700_v9 = vadd.f32 %v1163_v7, %v208_v3  ;;  %v939_v10 = vpop.f32.mrb[29].mxu0  ;;  %v1165_v11 = vpop.f32.mrb[29].mxu1 }
 0x18f   :  { %1454 = vst [vmem:[%s2401_s3 + $0xd0] sm:$0xff] %v1634_v4  ;;  %1455 = vst [vmem:[%s2401_s3 + $0xd8] sm:$0xff] %v1635_v5  ;;  %v1669_v12 = vadd.f32 %v939_v10, %v208_v3  ;;  %v1701_v13 = vadd.f32 %v1165_v11, %v208_v3  ;;  %v941_v14 = vpop.f32.mrb[30].mxu0  ;;  %v1167_v15 = vpop.f32.mrb[30].mxu1 }
 0x190   :  { %v1228_v16 = vmax.f32 %v1668_v8, 0.0  ;;  %v1230_v17 = vmax.f32 %v1700_v9, 0.0  ;;  %v1670_v18 = vadd.f32 %v941_v14, %v213_v2  ;;  %v1702_v19 = vadd.f32 %v1167_v15, %v213_v2  ;;  %v943_v20 = vpop.f32.mrb[31].mxu0  ;;  %v1169_v21 = vpop.f32.mrb[31].mxu1 }
 0x191   :  { %v1229_v22 = vmax.f32 %v1669_v12, 0.0  ;;  %v1231_v23 = vmax.f32 %v1701_v13, 0.0  ;;  %v1671_v24 = vadd.f32 %v943_v20, %v213_v2  ;;  %v1703_v25 = vadd.f32 %v1169_v21, %v213_v2 }
 0x192   :  { %v1232_v26 = vmax.f32 %v1670_v18, 0.0  ;;  %v1234_v27 = vmax.f32 %v1702_v19, 0.0 }
 0x193   :  { %v1636_v28 = vpack.c.bf16 %v1229_v22, %v1228_v16  ;;  %v1637_v29 = vpack.c.bf16 %v1231_v23, %v1230_v17  ;;  %v1233_v30 = vmax.f32 %v1671_v24, 0.0  ;;  %v1235_v31 = vmax.f32 %v1703_v25, 0.0 }
 0x195   :  { %1456 = vst [vmem:[%s2401_s3 + $0xe0] sm:$0xff] %v1636_v28  ;;  %1457 = vst [vmem:[%s2401_s3 + $0xe8] sm:$0xff] %v1637_v29  ;;  %v1638_v32 = vpack.c.bf16 %v1233_v30, %v1232_v26  ;;  %v1639_v33 = vpack.c.bf16 %v1235_v31, %v1234_v27 }
 0x197   :  { %1458 = vst [vmem:[%s2401_s3 + $0xf0] sm:$0xff] %v1638_v32  ;;  %1459 = vst [vmem:[%s2401_s3 + $0xf8] sm:$0xff] %v1639_v33 }

// kernel: beta_vae_b_forward.15
= control target key start
LH: loop header
LB: loop body
LE: loop exit
PB: predicated region body
PF: predicated region fallthrough
CT: control target
= control target key end

     0   :  { %v2821_v3 = vmov 0   ;;  %v2822_v33 = vmov 1983009808   ;;  %v315_v35 = vlaneseq  ;;  %vm1769_vm0 = vcmask 261120   ;;  %s3813_s1 = inlined_call_operand.vmem [shape: bf16[288,2048], index: 1, kind: input, shape index: {}]   ;;  %s3814_s0 = inlined_call_operand.vmem [shape: bf16[4,288], index: 0, kind: input, shape index: {}]   ;;  %s3815_s2 = inlined_call_operand.vmem [shape: f32[4,1], index: 2, kind: input, shape index: {}]   ;;  %s3816_s3 = inlined_call_operand.vmem [shape: f32[4,2048], index: 3, kind: output, shape index: {}]  }
   0x1   :  { %v16_v0 = vld [vmem:[%s3813_s1] sm:$0xff]  ;;  %v17_v2 = vld [vmem:[%s3813_s1 + $0x8] sm:$0xff]  ;;  %2819 = vset.pattern.permute.xlu0 %v2821_v3  ;;  %v313_v34 = vunpack.c.l.s4 %v2822_v33 }
   0x2   :  { %v24_v1 = vld [vmem:[%s3813_s1 + $0x40] sm:$0xff]  ;;  %v25_v5 = vld [vmem:[%s3813_s1 + $0x48] sm:$0xff]  ;;  %v316_v45 = vshrl.u32 %v315_v35, 7 }
   0x3   :  { %v2474_v4 = vcombine.high %v16_v0, %v24_v1  ;;  %v2473_v6 = vcombine.low %v16_v0, %v24_v1  ;;  %v32_v7 = vld [vmem:[%s3813_s1 + $0x80] sm:$0xff]  ;;  %v2476_v9 = vcombine.high %v17_v2, %v25_v5  ;;  %v2475_v10 = vcombine.low %v17_v2, %v25_v5  ;;  %v33_v12 = vld [vmem:[%s3813_s1 + $0x88] sm:$0xff] }
   0x4   :  { %v40_v8 = vld [vmem:[%s3813_s1 + $0xc0] sm:$0xff]  ;;  %v41_v13 = vld [vmem:[%s3813_s1 + $0xc8] sm:$0xff]  ;;  %v314_v44 = vunpack.c.0.s8 %v313_v34 }
   0x5   :  { %v2490_v11 = vcombine.high %v32_v7, %v40_v8  ;;  %v48_v14 = vld [vmem:[%s3813_s1 + $0x100] sm:$0xff]  ;;  %1773 = vmatprep.subr.bf16.mxu0 %v2474_v4  ;;  %v2492_v15 = vcombine.high %v33_v12, %v41_v13  ;;  %v49_v17 = vld [vmem:[%s3813_s1 + $0x108] sm:$0xff]  ;;  %1855 = vmatprep.subr.bf16.mxu1 %v2476_v9  ;;  %v2489_v19 = vcombine.low %v32_v7, %v40_v8 }
   0x6   :  { %v56_v16 = vld [vmem:[%s3813_s1 + $0x140] sm:$0xff]  ;;  %v57_v18 = vld [vmem:[%s3813_s1 + $0x148] sm:$0xff]  ;;  %1774 = vmatpush1.bf16.msra.mxu0 %v2473_v6  ;;  %1856 = vmatpush1.bf16.msra.mxu1 %v2475_v10  ;;  %v2491_v20 = vcombine.low %v33_v12, %v41_v13  ;;  %v2922_v54 = vsub.s32 %v314_v44, %v316_v45 }
   0x7   :  { %1775 = vmatprep.subr.bf16.mxu0 %v2490_v11  ;;  %v2506_v21 = vcombine.high %v48_v14, %v56_v16  ;;  %1857 = vmatprep.subr.bf16.mxu1 %v2492_v15  ;;  %v2508_v22 = vcombine.high %v49_v17, %v57_v18  ;;  %v64_v23 = vld [vmem:[%s3813_s1 + $0x180] sm:$0xff]  ;;  %v65_v25 = vld [vmem:[%s3813_s1 + $0x188] sm:$0xff]  ;;  %v2505_v27 = vcombine.low %v48_v14, %v56_v16 }
   0x8   :  { %v72_v24 = vld [vmem:[%s3813_s1 + $0x1c0] sm:$0xff]  ;;  %v73_v26 = vld [vmem:[%s3813_s1 + $0x1c8] sm:$0xff]  ;;  %v2507_v28 = vcombine.low %v49_v17, %v57_v18 }
   0x9   :  { %v2522_v29 = vcombine.high %v64_v23, %v72_v24  ;;  %v2524_v30 = vcombine.high %v65_v25, %v73_v26  ;;  %v80_v31 = vld [vmem:[%s3813_s1 + $0x200] sm:$0xff]  ;;  %v81_v36 = vld [vmem:[%s3813_s1 + $0x208] sm:$0xff]  ;;  %v2521_v38 = vcombine.low %v64_v23, %v72_v24  ;;  %v2523_v39 = vcombine.low %v65_v25, %v73_v26 }
   0xa   :  { %1776 = vmatpush1.bf16.msra.mxu0 %v2489_v19  ;;  %1858 = vmatpush1.bf16.msra.mxu1 %v2491_v20  ;;  %v88_v32 = vld [vmem:[%s3813_s1 + $0x240] sm:$0xff]  ;;  %v89_v37 = vld [vmem:[%s3813_s1 + $0x248] sm:$0xff] }
   0xb   :  { %1777 = vmatprep.subr.bf16.mxu0 %v2506_v21  ;;  %1859 = vmatprep.subr.bf16.mxu1 %v2508_v22  ;;  %v2538_v40 = vcombine.high %v80_v31, %v88_v32  ;;  %v2540_v41 = vcombine.high %v81_v36, %v89_v37  ;;  %v96_v42 = vld [vmem:[%s3813_s1 + $0x280] sm:$0xff]  ;;  %v97_v46 = vld [vmem:[%s3813_s1 + $0x288] sm:$0xff]  ;;  %v2537_v48 = vcombine.low %v80_v31, %v88_v32 }
   0xc   :  { %v104_v43 = vld [vmem:[%s3813_s1 + $0x2c0] sm:$0xff]  ;;  %v105_v47 = vld [vmem:[%s3813_s1 + $0x2c8] sm:$0xff]  ;;  %v2539_v49 = vcombine.low %v81_v36, %v89_v37 }
   0xd   :  { %v2554_v50 = vcombine.high %v96_v42, %v104_v43  ;;  %v2556_v51 = vcombine.high %v97_v46, %v105_v47  ;;  %v112_v52 = vld [vmem:[%s3813_s1 + $0x300] sm:$0xff]  ;;  %v113_v55 = vld [vmem:[%s3813_s1 + $0x308] sm:$0xff]  ;;  %v2553_v57 = vcombine.low %v96_v42, %v104_v43  ;;  %v2555_v58 = vcombine.low %v97_v46, %v105_v47 }
   0xe   :  { %1778 = vmatpush1.bf16.msra.mxu0 %v2505_v27  ;;  %1860 = vmatpush1.bf16.msra.mxu1 %v2507_v28  ;;  %v120_v53 = vld [vmem:[%s3813_s1 + $0x340] sm:$0xff]  ;;  %v121_v56 = vld [vmem:[%s3813_s1 + $0x348] sm:$0xff] }
   0xf   :  { %1779 = vmatprep.subr.bf16.mxu0 %v2522_v29  ;;  %1861 = vmatprep.subr.bf16.mxu1 %v2524_v30  ;;  %v2570_v59 = vcombine.high %v112_v52, %v120_v53  ;;  %v2933_v60 = vld [vmem:[%s3814_s0] sm:$0x3f]  ;;  %v2572_v61 = vcombine.high %v113_v55, %v121_v56  ;;  %v129_v1 = vld [vmem:[%s3813_s1 + $0x388] sm:$0xff]  ;;  %v2569_v4 = vcombine.low %v112_v52, %v120_v53 }
  0x10   :  { %v128_v62 = vld [vmem:[%s3813_s1 + $0x380] sm:$0xff]  ;;  %v2943_v0 = vrot.slane %v2933_v60, %v2922_v54  ;;  %v137_v2 = vld [vmem:[%s3813_s1 + $0x3c8] sm:$0xff]  ;;  %v2571_v6 = vcombine.low %v113_v55, %v121_v56 }
  0x11   :  { %v136_v63 = vld [vmem:[%s3813_s1 + $0x3c0] sm:$0xff]  ;;  %v2588_v8 = vcombine.high %v129_v1, %v137_v2  ;;  %v145_v11 = vld [vmem:[%s3813_s1 + $0x408] sm:$0xff]  ;;  %v2587_v14 = vcombine.low %v129_v1, %v137_v2 }
  0x12   :  { %1780 = vmatpush1.bf16.msra.mxu0 %v2521_v38  ;;  %1862 = vmatpush1.bf16.msra.mxu1 %v2523_v39  ;;  %v2953_v5 = vcombine.high %v2943_v0, %v2943_v0  ;;  %v2586_v7 = vcombine.high %v128_v62, %v136_v63  ;;  %v144_v9 = vld [vmem:[%s3813_s1 + $0x400] sm:$0xff]  ;;  %v153_v12 = vld [vmem:[%s3813_s1 + $0x448] sm:$0xff]  ;;  %v2585_v13 = vcombine.low %v128_v62, %v136_v63 }
  0x13   :  { %1781 = vmatprep.subr.bf16.mxu0 %v2538_v40  ;;  %1863 = vmatprep.subr.bf16.mxu1 %v2540_v41  ;;  %v152_v10 = vld [vmem:[%s3813_s1 + $0x440] sm:$0xff]  ;;  %v2604_v16 = vcombine.high %v145_v11, %v153_v12  ;;  %v161_v19 = vld [vmem:[%s3813_s1 + $0x488] sm:$0xff]  ;;  %v2603_v22 = vcombine.low %v145_v11, %v153_v12 }
  0x14   :  { %1805 = vmatprep.mubr.bf16.mxu0 %v2953_v5  ;;  %1887 = vmatprep.mubr.bf16.mxu1 %v2953_v5  ;;  %v2602_v15 = vcombine.high %v144_v9, %v152_v10  ;;  %v160_v17 = vld [vmem:[%s3813_s1 + $0x480] sm:$0xff]  ;;  %v169_v20 = vld [vmem:[%s3813_s1 + $0x4c8] sm:$0xff]  ;;  %v2601_v21 = vcombine.low %v144_v9, %v152_v10 }
  0x15   :  { %v168_v18 = vld [vmem:[%s3813_s1 + $0x4c0] sm:$0xff]  ;;  %v2620_v24 = vcombine.high %v161_v19, %v169_v20  ;;  %v177_v27 = vld [vmem:[%s3813_s1 + $0x508] sm:$0xff]  ;;  %v2619_v30 = vcombine.low %v161_v19, %v169_v20 }
  0x16   :  { %1782 = vmatpush1.bf16.msra.mxu0 %v2537_v48  ;;  %1864 = vmatpush1.bf16.msra.mxu1 %v2539_v49  ;;  %v2618_v23 = vcombine.high %v160_v17, %v168_v18  ;;  %v176_v25 = vld [vmem:[%s3813_s1 + $0x500] sm:$0xff]  ;;  %v185_v28 = vld [vmem:[%s3813_s1 + $0x548] sm:$0xff]  ;;  %v2617_v29 = vcombine.low %v160_v17, %v168_v18 }
  0x17   :  { %1783 = vmatprep.subr.bf16.mxu0 %v2554_v50  ;;  %1865 = vmatprep.subr.bf16.mxu1 %v2556_v51  ;;  %v184_v26 = vld [vmem:[%s3813_s1 + $0x540] sm:$0xff]  ;;  %v2636_v32 = vcombine.high %v177_v27, %v185_v28  ;;  %v193_v35 = vld [vmem:[%s3813_s1 + $0x588] sm:$0xff]  ;;  %v2635_v38 = vcombine.low %v177_v27, %v185_v28 }
  0x18   :  { %v2634_v31 = vcombine.high %v176_v25, %v184_v26  ;;  %v192_v33 = vld [vmem:[%s3813_s1 + $0x580] sm:$0xff]  ;;  %v201_v36 = vld [vmem:[%s3813_s1 + $0x5c8] sm:$0xff]  ;;  %v2633_v37 = vcombine.low %v176_v25, %v184_v26 }
  0x19   :  { %v200_v34 = vld [vmem:[%s3813_s1 + $0x5c0] sm:$0xff]  ;;  %v2652_v40 = vcombine.high %v193_v35, %v201_v36  ;;  %v209_v43 = vld [vmem:[%s3813_s1 + $0x608] sm:$0xff]  ;;  %v2651_v46 = vcombine.low %v193_v35, %v201_v36 }
  0x1a   :  { %1784 = vmatpush1.bf16.msra.mxu0 %v2553_v57  ;;  %1866 = vmatpush1.bf16.msra.mxu1 %v2555_v58  ;;  %v2650_v39 = vcombine.high %v192_v33, %v200_v34  ;;  %v208_v41 = vld [vmem:[%s3813_s1 + $0x600] sm:$0xff]  ;;  %v217_v44 = vld [vmem:[%s3813_s1 + $0x648] sm:$0xff]  ;;  %v2649_v45 = vcombine.low %v192_v33, %v200_v34  ;;  %v19_v33 = vld [vmem:[%s3813_s1 + $0x18] sm:$0xff] }
  0x1b   :  { %1785 = vmatprep.subr.bf16.mxu0 %v2570_v59  ;;  %1867 = vmatprep.subr.bf16.mxu1 %v2572_v61  ;;  %v216_v42 = vld [vmem:[%s3813_s1 + $0x640] sm:$0xff]  ;;  %v2668_v48 = vcombine.high %v209_v43, %v217_v44  ;;  %v225_v51 = vld [vmem:[%s3813_s1 + $0x688] sm:$0xff]  ;;  %v2667_v55 = vcombine.low %v209_v43, %v217_v44  ;;  %v27_v34 = vld [vmem:[%s3813_s1 + $0x58] sm:$0xff] }
  0x1c   :  { %v2666_v47 = vcombine.high %v208_v41, %v216_v42  ;;  %v224_v49 = vld [vmem:[%s3813_s1 + $0x680] sm:$0xff]  ;;  %v233_v52 = vld [vmem:[%s3813_s1 + $0x6c8] sm:$0xff]  ;;  %v2665_v53 = vcombine.low %v208_v41, %v216_v42  ;;  %v42_v41 = vld [vmem:[%s3813_s1 + $0xd0] sm:$0xff] }
  0x1d   :  { %v232_v50 = vld [vmem:[%s3813_s1 + $0x6c0] sm:$0xff]  ;;  %v2684_v57 = vcombine.high %v225_v51, %v233_v52  ;;  %v241_v61 = vld [vmem:[%s3813_s1 + $0x708] sm:$0xff]  ;;  %v2683_v2 = vcombine.low %v225_v51, %v233_v52  ;;  %v35_v43 = vld [vmem:[%s3813_s1 + $0x98] sm:$0xff] }
  0x1e   :  { %1786 = vmatpush1.bf16.msra.mxu0 %v2569_v4  ;;  %1868 = vmatpush1.bf16.msra.mxu1 %v2571_v6  ;;  %v2682_v56 = vcombine.high %v224_v49, %v232_v50  ;;  %v240_v58 = vld [vmem:[%s3813_s1 + $0x700] sm:$0xff]  ;;  %v249_v62 = vld [vmem:[%s3813_s1 + $0x748] sm:$0xff]  ;;  %v2681_v63 = vcombine.low %v224_v49, %v232_v50  ;;  %v51_v49 = vld [vmem:[%s3813_s1 + $0x118] sm:$0xff] }
  0x1f   :  { %1787 = vmatprep.subr.bf16.mxu0 %v2586_v7  ;;  %1869 = vmatprep.subr.bf16.mxu1 %v2588_v8  ;;  %v248_v59 = vld [vmem:[%s3813_s1 + $0x740] sm:$0xff]  ;;  %v2700_v6 = vcombine.high %v241_v61, %v249_v62  ;;  %v257_v9 = vld [vmem:[%s3813_s1 + $0x788] sm:$0xff]  ;;  %v2699_v12 = vcombine.low %v241_v61, %v249_v62  ;;  %v59_v50 = vld [vmem:[%s3813_s1 + $0x158] sm:$0xff] }
  0x20   :  { %v304_v1 = vld [vmem:[%s3815_s2] sm:$0xf]  ;;  %v2698_v4 = vcombine.high %v240_v58, %v248_v59  ;;  %v265_v10 = vld [vmem:[%s3813_s1 + $0x7c8] sm:$0xff]  ;;  %v2697_v11 = vcombine.low %v240_v58, %v248_v59  ;;  %v67_v58 = vld [vmem:[%s3813_s1 + $0x198] sm:$0xff]  ;;  %v2511_v62 = vcombine.low %v51_v49, %v59_v50 }
  0x21   :  { %v256_v7 = vld [vmem:[%s3813_s1 + $0x780] sm:$0xff]  ;;  %307 = vperm.xlu0 %2819, %v304_v1   ;;  %v273_v17 = vld [vmem:[%s3813_s1 + $0x808] sm:$0xff]  ;;  %v2715_v20 = vcombine.low %v257_v9, %v265_v10  ;;  %v75_v59 = vld [vmem:[%s3813_s1 + $0x1d8] sm:$0xff] }
  0x22   :  { %1788 = vmatpush1.bf16.msra.mxu0 %v2585_v13  ;;  %1870 = vmatpush1.bf16.msra.mxu1 %v2587_v14  ;;  %v264_v8 = vld [vmem:[%s3813_s1 + $0x7c0] sm:$0xff]  ;;  %v2716_v14 = vcombine.high %v257_v9, %v265_v10  ;;  %v281_v18 = vld [vmem:[%s3813_s1 + $0x848] sm:$0xff]  ;;  %v2528_v1 = vcombine.high %v67_v58, %v75_v59  ;;  %v2527_v9 = vcombine.low %v67_v58, %v75_v59 }
  0x23   :  { %1789 = vmatprep.subr.bf16.mxu0 %v2602_v15  ;;  %1871 = vmatprep.subr.bf16.mxu1 %v2604_v16  ;;  %v2714_v13 = vcombine.high %v256_v7, %v264_v8  ;;  %v272_v15 = vld [vmem:[%s3813_s1 + $0x800] sm:$0xff]  ;;  %v2713_v19 = vcombine.low %v256_v7, %v264_v8  ;;  %v289_v25 = vld [vmem:[%s3813_s1 + $0x888] sm:$0xff]  ;;  %v2731_v28 = vcombine.low %v273_v17, %v281_v18  ;;  %v91_v7 = vld [vmem:[%s3813_s1 + $0x258] sm:$0xff] }
  0x24   :  { %v280_v16 = vld [vmem:[%s3813_s1 + $0x840] sm:$0xff]  ;;  %v297_v26 = vld [vmem:[%s3813_s1 + $0x8c8] sm:$0xff] }
  0x25   :  { %v2729_v27 = vcombine.low %v272_v15, %v280_v16  ;;  %v2747_v36 = vcombine.low %v289_v25, %v297_v26 }
  0x26   :  { %1790 = vmatpush1.bf16.msra.mxu0 %v2601_v21  ;;  %1872 = vmatpush1.bf16.msra.mxu1 %v2603_v22  ;;  %v2730_v21 = vcombine.high %v272_v15, %v280_v16  ;;  %v2732_v22 = vcombine.high %v273_v17, %v281_v18  ;;  %v107_v15 = vld [vmem:[%s3813_s1 + $0x2d8] sm:$0xff] }
  0x27   :  { %1791 = vmatprep.subr.bf16.mxu0 %v2618_v23  ;;  %1873 = vmatprep.subr.bf16.mxu1 %v2620_v24  ;;  %v288_v23 = vld [vmem:[%s3813_s1 + $0x880] sm:$0xff] }
  0x28   :  { %v296_v24 = vld [vmem:[%s3813_s1 + $0x8c0] sm:$0xff] }
  0x29   :  { %v2745_v35 = vcombine.low %v288_v23, %v296_v24 }
  0x2a   :  { %1792 = vmatpush1.bf16.msra.mxu0 %v2617_v29  ;;  %1874 = vmatpush1.bf16.msra.mxu1 %v2619_v30  ;;  %v2746_v29 = vcombine.high %v288_v23, %v296_v24  ;;  %v2748_v30 = vcombine.high %v289_v25, %v297_v26  ;;  %v123_v23 = vld [vmem:[%s3813_s1 + $0x358] sm:$0xff] }
  0x2b   :  { %1793 = vmatprep.subr.bf16.mxu0 %v2634_v31  ;;  %1875 = vmatprep.subr.bf16.mxu1 %v2636_v32  ;;  %v18_v31 = vld [vmem:[%s3813_s1 + $0x10] sm:$0xff] }
  0x2c   :  { %v26_v32 = vld [vmem:[%s3813_s1 + $0x50] sm:$0xff] }
  0x2d   :  { %v2477_v44 = vcombine.low %v18_v31, %v26_v32 }
  0x2e   :  { %1794 = vmatpush1.bf16.msra.mxu0 %v2633_v37  ;;  %1876 = vmatpush1.bf16.msra.mxu1 %v2635_v38  ;;  %v2478_v37 = vcombine.high %v18_v31, %v26_v32  ;;  %v2480_v38 = vcombine.high %v19_v33, %v27_v34  ;;  %v139_v31 = vld [vmem:[%s3813_s1 + $0x3d8] sm:$0xff] }
  0x2f   :  { %1795 = vmatprep.subr.bf16.mxu0 %v2650_v39  ;;  %1877 = vmatprep.subr.bf16.mxu1 %v2652_v40  ;;  %v311_v39 = vcombine.high %v2933_v60, %v2933_v60  ;;  %v34_v40 = vld [vmem:[%s3813_s1 + $0x90] sm:$0xff]  ;;  %v43_v60 = vld [vmem:[%s3813_s1 + $0xd8] sm:$0xff] }
  0x30   :  { %v2493_v51 = vcombine.low %v34_v40, %v42_v41  ;;  %v2495_v52 = vcombine.low %v35_v43, %v43_v60 }
  0x31   :  { %v3105_v42 = vrot.slane %v311_v39, %v2922_v54  ;;  %v58_v54 = vld [vmem:[%s3813_s1 + $0x150] sm:$0xff]  ;;  %v155_v39 = vld [vmem:[%s3813_s1 + $0x458] sm:$0xff] }
  0x32   :  { %1796 = vmatpush1.bf16.msra.mxu0 %v2649_v45  ;;  %1878 = vmatpush1.bf16.msra.mxu1 %v2651_v46  ;;  %v2479_v45 = vcombine.low %v19_v33, %v27_v34  ;;  %v2494_v46 = vcombine.high %v34_v40, %v42_v41 }
  0x33   :  { %1797 = vmatprep.subr.bf16.mxu0 %v2666_v47  ;;  %1879 = vmatprep.subr.bf16.mxu1 %v2668_v48  ;;  %v2496_v47 = vcombine.high %v35_v43, %v43_v60  ;;  %v50_v48 = vld [vmem:[%s3813_s1 + $0x110] sm:$0xff] }
  0x34   :  { %v2509_v61 = vcombine.low %v50_v48, %v58_v54 }
  0x36   :  { %1798 = vmatpush1.bf16.msra.mxu0 %v2665_v53  ;;  %1880 = vmatpush1.bf16.msra.mxu1 %v2667_v55  ;;  %v2510_v53 = vcombine.high %v50_v48, %v58_v54  ;;  %v2512_v55 = vcombine.high %v51_v49, %v59_v50 }
  0x37   :  { %1799 = vmatprep.subr.bf16.mxu0 %v2682_v56  ;;  %1881 = vmatprep.subr.bf16.mxu1 %v2684_v57  ;;  %v66_v56 = vld [vmem:[%s3813_s1 + $0x190] sm:$0xff] }
  0x38   :  { %v74_v57 = vld [vmem:[%s3813_s1 + $0x1d0] sm:$0xff] }
  0x39   :  { %v2525_v8 = vcombine.low %v66_v56, %v74_v57 }
  0x3a   :  { %1800 = vmatpush1.bf16.msra.mxu0 %v2681_v63  ;;  %1882 = vmatpush1.bf16.msra.mxu1 %v2683_v2  ;;  %v2526_v63 = vcombine.high %v66_v56, %v74_v57  ;;  %v82_v2 = vld [vmem:[%s3813_s1 + $0x210] sm:$0xff] }
  0x3b   :  { %1801 = vmatprep.subr.bf16.mxu0 %v2698_v4  ;;  %1883 = vmatprep.subr.bf16.mxu1 %v2700_v6  ;;  %v90_v4 = vld [vmem:[%s3813_s1 + $0x250] sm:$0xff]  ;;  %v83_v6 = vld [vmem:[%s3813_s1 + $0x218] sm:$0xff] }
  0x3c   :  { %v2542_v10 = vcombine.high %v82_v2, %v90_v4  ;;  %v2541_v16 = vcombine.low %v82_v2, %v90_v4  ;;  %v2543_v17 = vcombine.low %v83_v6, %v91_v7 }
  0x3e   :  { %1802 = vmatpush1.bf16.msra.mxu0 %v2697_v11  ;;  %1884 = vmatpush1.bf16.msra.mxu1 %v2699_v12  ;;  %v2544_v11 = vcombine.high %v83_v6, %v91_v7  ;;  %v98_v12 = vld [vmem:[%s3813_s1 + $0x290] sm:$0xff] }
  0x3f   :  { %1803 = vmatprep.subr.bf16.mxu0 %v2714_v13  ;;  %1885 = vmatprep.subr.bf16.mxu1 %v2716_v14  ;;  %v106_v13 = vld [vmem:[%s3813_s1 + $0x2d0] sm:$0xff]  ;;  %v99_v14 = vld [vmem:[%s3813_s1 + $0x298] sm:$0xff] }
  0x40   :  { %v2558_v18 = vcombine.high %v98_v12, %v106_v13  ;;  %v2557_v24 = vcombine.low %v98_v12, %v106_v13  ;;  %v2559_v25 = vcombine.low %v99_v14, %v107_v15 }
  0x42   :  { %1804 = vmatpush1.bf16.msra.mxu0 %v2713_v19  ;;  %1886 = vmatpush1.bf16.msra.mxu1 %v2715_v20  ;;  %v2560_v19 = vcombine.high %v99_v14, %v107_v15  ;;  %v114_v20 = vld [vmem:[%s3813_s1 + $0x310] sm:$0xff] }
  0x43   :  { %1814 = vmatprep.subr.bf16.mxu0 %v2730_v21  ;;  %1896 = vmatprep.subr.bf16.mxu1 %v2732_v22  ;;  %v122_v21 = vld [vmem:[%s3813_s1 + $0x350] sm:$0xff]  ;;  %v115_v22 = vld [vmem:[%s3813_s1 + $0x318] sm:$0xff] }
  0x44   :  { %v2574_v26 = vcombine.high %v114_v20, %v122_v21  ;;  %v2573_v32 = vcombine.low %v114_v20, %v122_v21  ;;  %v2575_v33 = vcombine.low %v115_v22, %v123_v23 }
  0x45   :  { %1806 = vmatmul.mubr.bf16.vlgmr.msra.gmra.mrb[0].mxu0 %v2943_v0  ;;  %1888 = vmatmul.mubr.bf16.vlgmr.msra.gmra.mrb[0].mxu1 %v2943_v0 }
  0x46   :  { %1815 = vmatpush1.bf16.msra.mxu0 %v2729_v27  ;;  %1897 = vmatpush1.bf16.msra.mxu1 %v2731_v28  ;;  %v2576_v27 = vcombine.high %v115_v22, %v123_v23  ;;  %v130_v28 = vld [vmem:[%s3813_s1 + $0x390] sm:$0xff] }
  0x47   :  { %1816 = vmatprep.subr.bf16.mxu0 %v2746_v29  ;;  %1898 = vmatprep.subr.bf16.mxu1 %v2748_v30  ;;  %v138_v29 = vld [vmem:[%s3813_s1 + $0x3d0] sm:$0xff]  ;;  %v131_v30 = vld [vmem:[%s3813_s1 + $0x398] sm:$0xff] }
  0x48   :  { %1846 = vmatprep.mubr.bf16.mxu0 %v2821_v3  ;;  %1928 = vmatprep.mubr.bf16.mxu1 %v2821_v3  ;;  %v2590_v34 = vcombine.high %v130_v28, %v138_v29  ;;  %v2589_v40 = vcombine.low %v130_v28, %v138_v29  ;;  %v2591_v41 = vcombine.low %v131_v30, %v139_v31 }
  0x4a   :  { %1817 = vmatpush1.bf16.msra.mxu0 %v2745_v35  ;;  %1899 = vmatpush1.bf16.msra.mxu1 %v2747_v36  ;;  %v2592_v35 = vcombine.high %v131_v30, %v139_v31  ;;  %v146_v36 = vld [vmem:[%s3813_s1 + $0x410] sm:$0xff] }
  0x4b   :  { %1937 = vmatprep.subr.bf16.mxu0 %v2478_v37  ;;  %2019 = vmatprep.subr.bf16.mxu1 %v2480_v38  ;;  %v154_v37 = vld [vmem:[%s3813_s1 + $0x450] sm:$0xff]  ;;  %v147_v38 = vld [vmem:[%s3813_s1 + $0x418] sm:$0xff] }
  0x4c   :  { %v2606_v43 = vcombine.high %v146_v36, %v154_v37  ;;  %v2608_v60 = vcombine.high %v147_v38, %v155_v39  ;;  %v2605_v48 = vcombine.low %v146_v36, %v154_v37  ;;  %v2607_v54 = vcombine.low %v147_v38, %v155_v39 }
  0x51   :  { %2761 = vmatmul.mubr.msk.bf16.vlgmr.msra.gmra.mrb[0].mxu0 %vm1769_vm0, %v3105_v42  ;;  %2762 = vmatmul.mubr.msk.bf16.vlgmr.msra.gmra.mrb[0].mxu1 %vm1769_vm0, %v3105_v42 }
  0x52   :  { %1938 = vmatpush1.bf16.msra.mxu0 %v2477_v44  ;;  %2020 = vmatpush1.bf16.msra.mxu1 %v2479_v45  ;;  %v162_v44 = vld [vmem:[%s3813_s1 + $0x490] sm:$0xff] }
  0x53   :  { %1939 = vmatprep.subr.bf16.mxu0 %v2494_v46  ;;  %2021 = vmatprep.subr.bf16.mxu1 %v2496_v47  ;;  %v170_v45 = vld [vmem:[%s3813_s1 + $0x4d0] sm:$0xff]  ;;  %v163_v46 = vld [vmem:[%s3813_s1 + $0x498] sm:$0xff] }
  0x54   :  { %1969 = vmatprep.mubr.bf16.mxu0 %v2953_v5  ;;  %2051 = vmatprep.mubr.bf16.mxu1 %v2953_v5  ;;  %v171_v47 = vld [vmem:[%s3813_s1 + $0x4d8] sm:$0xff]  ;;  %v2622_v49 = vcombine.high %v162_v44, %v170_v45  ;;  %v2621_v56 = vcombine.low %v162_v44, %v170_v45 }
  0x55   :  { %v2624_v50 = vcombine.high %v163_v46, %v171_v47  ;;  %v2623_v57 = vcombine.low %v163_v46, %v171_v47 }
  0x56   :  { %1940 = vmatpush1.bf16.msra.mxu0 %v2493_v51  ;;  %2022 = vmatpush1.bf16.msra.mxu1 %v2495_v52  ;;  %v178_v51 = vld [vmem:[%s3813_s1 + $0x510] sm:$0xff] }
  0x57   :  { %1941 = vmatprep.subr.bf16.mxu0 %v2510_v53  ;;  %2023 = vmatprep.subr.bf16.mxu1 %v2512_v55  ;;  %v186_v52 = vld [vmem:[%s3813_s1 + $0x550] sm:$0xff]  ;;  %v179_v53 = vld [vmem:[%s3813_s1 + $0x518] sm:$0xff] }
  0x58   :  { %v187_v55 = vld [vmem:[%s3813_s1 + $0x558] sm:$0xff]  ;;  %v2638_v58 = vcombine.high %v178_v51, %v186_v52  ;;  %v2637_v2 = vcombine.low %v178_v51, %v186_v52 }
  0x59   :  { %v2640_v59 = vcombine.high %v179_v53, %v187_v55  ;;  %v2639_v4 = vcombine.low %v179_v53, %v187_v55 }
  0x5a   :  { %1942 = vmatpush1.bf16.msra.mxu0 %v2509_v61  ;;  %2024 = vmatpush1.bf16.msra.mxu1 %v2511_v62  ;;  %v194_v61 = vld [vmem:[%s3813_s1 + $0x590] sm:$0xff] }
  0x5b   :  { %1943 = vmatprep.subr.bf16.mxu0 %v2526_v63  ;;  %2025 = vmatprep.subr.bf16.mxu1 %v2528_v1  ;;  %v202_v62 = vld [vmem:[%s3813_s1 + $0x5d0] sm:$0xff]  ;;  %v195_v63 = vld [vmem:[%s3813_s1 + $0x598] sm:$0xff] }
  0x5c   :  { %v203_v1 = vld [vmem:[%s3813_s1 + $0x5d8] sm:$0xff]  ;;  %v2654_v6 = vcombine.high %v194_v61, %v202_v62  ;;  %v2653_v12 = vcombine.low %v194_v61, %v202_v62 }
  0x5d   :  { %v2656_v7 = vcombine.high %v195_v63, %v203_v1  ;;  %v2655_v13 = vcombine.low %v195_v63, %v203_v1 }
  0x5e   :  { %1944 = vmatpush1.bf16.msra.mxu0 %v2525_v8  ;;  %2026 = vmatpush1.bf16.msra.mxu1 %v2527_v9  ;;  %v210_v8 = vld [vmem:[%s3813_s1 + $0x610] sm:$0xff] }
  0x5f   :  { %1945 = vmatprep.subr.bf16.mxu0 %v2542_v10  ;;  %2027 = vmatprep.subr.bf16.mxu1 %v2544_v11  ;;  %v218_v9 = vld [vmem:[%s3813_s1 + $0x650] sm:$0xff]  ;;  %v211_v10 = vld [vmem:[%s3813_s1 + $0x618] sm:$0xff] }
  0x60   :  { %v219_v11 = vld [vmem:[%s3813_s1 + $0x658] sm:$0xff]  ;;  %v2670_v14 = vcombine.high %v210_v8, %v218_v9  ;;  %v2669_v20 = vcombine.low %v210_v8, %v218_v9 }
  0x61   :  { %v2672_v15 = vcombine.high %v211_v10, %v219_v11  ;;  %v2671_v21 = vcombine.low %v211_v10, %v219_v11 }
  0x62   :  { %1946 = vmatpush1.bf16.msra.mxu0 %v2541_v16  ;;  %2028 = vmatpush1.bf16.msra.mxu1 %v2543_v17  ;;  %v226_v16 = vld [vmem:[%s3813_s1 + $0x690] sm:$0xff] }
  0x63   :  { %1947 = vmatprep.subr.bf16.mxu0 %v2558_v18  ;;  %2029 = vmatprep.subr.bf16.mxu1 %v2560_v19  ;;  %v234_v17 = vld [vmem:[%s3813_s1 + $0x6d0] sm:$0xff]  ;;  %v227_v18 = vld [vmem:[%s3813_s1 + $0x698] sm:$0xff] }
  0x64   :  { %v235_v19 = vld [vmem:[%s3813_s1 + $0x6d8] sm:$0xff]  ;;  %v2686_v22 = vcombine.high %v226_v16, %v234_v17  ;;  %v2685_v28 = vcombine.low %v226_v16, %v234_v17 }
  0x65   :  { %v2688_v23 = vcombine.high %v227_v18, %v235_v19  ;;  %v2687_v29 = vcombine.low %v227_v18, %v235_v19 }
  0x66   :  { %1948 = vmatpush1.bf16.msra.mxu0 %v2557_v24  ;;  %2030 = vmatpush1.bf16.msra.mxu1 %v2559_v25  ;;  %v242_v24 = vld [vmem:[%s3813_s1 + $0x710] sm:$0xff] }
  0x67   :  { %1949 = vmatprep.subr.bf16.mxu0 %v2574_v26  ;;  %2031 = vmatprep.subr.bf16.mxu1 %v2576_v27  ;;  %v250_v25 = vld [vmem:[%s3813_s1 + $0x750] sm:$0xff]  ;;  %v243_v26 = vld [vmem:[%s3813_s1 + $0x718] sm:$0xff] }
  0x68   :  { %v251_v27 = vld [vmem:[%s3813_s1 + $0x758] sm:$0xff]  ;;  %v2702_v30 = vcombine.high %v242_v24, %v250_v25  ;;  %v2701_v36 = vcombine.low %v242_v24, %v250_v25 }
  0x69   :  { %v2704_v31 = vcombine.high %v243_v26, %v251_v27  ;;  %v2703_v37 = vcombine.low %v243_v26, %v251_v27 }
  0x6a   :  { %1950 = vmatpush1.bf16.msra.mxu0 %v2573_v32  ;;  %2032 = vmatpush1.bf16.msra.mxu1 %v2575_v33  ;;  %v258_v32 = vld [vmem:[%s3813_s1 + $0x790] sm:$0xff] }
  0x6b   :  { %1951 = vmatprep.subr.bf16.mxu0 %v2590_v34  ;;  %2033 = vmatprep.subr.bf16.mxu1 %v2592_v35  ;;  %v266_v33 = vld [vmem:[%s3813_s1 + $0x7d0] sm:$0xff]  ;;  %v259_v34 = vld [vmem:[%s3813_s1 + $0x798] sm:$0xff] }
  0x6c   :  { %v267_v35 = vld [vmem:[%s3813_s1 + $0x7d8] sm:$0xff]  ;;  %v2718_v38 = vcombine.high %v258_v32, %v266_v33  ;;  %v2717_v44 = vcombine.low %v258_v32, %v266_v33 }
  0x6d   :  { %v2720_v39 = vcombine.high %v259_v34, %v267_v35  ;;  %v2719_v45 = vcombine.low %v259_v34, %v267_v35 }
  0x6e   :  { %1952 = vmatpush1.bf16.msra.mxu0 %v2589_v40  ;;  %2034 = vmatpush1.bf16.msra.mxu1 %v2591_v41  ;;  %v274_v40 = vld [vmem:[%s3813_s1 + $0x810] sm:$0xff] }
  0x6f   :  { %1953 = vmatprep.subr.bf16.mxu0 %v2606_v43  ;;  %2035 = vmatprep.subr.bf16.mxu1 %v2608_v60  ;;  %v282_v41 = vld [vmem:[%s3813_s1 + $0x850] sm:$0xff]  ;;  %v275_v43 = vld [vmem:[%s3813_s1 + $0x818] sm:$0xff] }
  0x70   :  { %v283_v60 = vld [vmem:[%s3813_s1 + $0x858] sm:$0xff]  ;;  %v2734_v46 = vcombine.high %v274_v40, %v282_v41  ;;  %v2733_v51 = vcombine.low %v274_v40, %v282_v41 }
  0x71   :  { %v2736_v47 = vcombine.high %v275_v43, %v283_v60  ;;  %v2735_v52 = vcombine.low %v275_v43, %v283_v60 }
  0x72   :  { %1954 = vmatpush1.bf16.msra.mxu0 %v2605_v48  ;;  %2036 = vmatpush1.bf16.msra.mxu1 %v2607_v54  ;;  %v290_v48 = vld [vmem:[%s3813_s1 + $0x890] sm:$0xff] }
  0x73   :  { %1955 = vmatprep.subr.bf16.mxu0 %v2622_v49  ;;  %2037 = vmatprep.subr.bf16.mxu1 %v2624_v50  ;;  %v298_v54 = vld [vmem:[%s3813_s1 + $0x8d0] sm:$0xff]  ;;  %v291_v49 = vld [vmem:[%s3813_s1 + $0x898] sm:$0xff] }
  0x74   :  { %v299_v50 = vld [vmem:[%s3813_s1 + $0x8d8] sm:$0xff]  ;;  %v2750_v53 = vcombine.high %v290_v48, %v298_v54  ;;  %v2749_v61 = vcombine.low %v290_v48, %v298_v54 }
  0x75   :  { %v2752_v55 = vcombine.high %v291_v49, %v299_v50  ;;  %v2751_v62 = vcombine.low %v291_v49, %v299_v50 }
  0x76   :  { %1956 = vmatpush1.bf16.msra.mxu0 %v2621_v56  ;;  %2038 = vmatpush1.bf16.msra.mxu1 %v2623_v57  ;;  %v20_v56 = vld [vmem:[%s3813_s1 + $0x20] sm:$0xff] }
  0x77   :  { %1957 = vmatprep.subr.bf16.mxu0 %v2638_v58  ;;  %2039 = vmatprep.subr.bf16.mxu1 %v2640_v59  ;;  %v28_v57 = vld [vmem:[%s3813_s1 + $0x60] sm:$0xff]  ;;  %v21_v58 = vld [vmem:[%s3813_s1 + $0x28] sm:$0xff] }
  0x78   :  { %v29_v59 = vld [vmem:[%s3813_s1 + $0x68] sm:$0xff]  ;;  %v2482_v63 = vcombine.high %v20_v56, %v28_v57  ;;  %v2481_v8 = vcombine.low %v20_v56, %v28_v57 }
  0x79   :  { %v2484_v1 = vcombine.high %v21_v58, %v29_v59  ;;  %v2483_v9 = vcombine.low %v21_v58, %v29_v59 }
  0x7a   :  { %1958 = vmatpush1.bf16.msra.mxu0 %v2637_v2  ;;  %2040 = vmatpush1.bf16.msra.mxu1 %v2639_v4  ;;  %v36_v2 = vld [vmem:[%s3813_s1 + $0xa0] sm:$0xff] }
  0x7b   :  { %1959 = vmatprep.subr.bf16.mxu0 %v2654_v6  ;;  %2041 = vmatprep.subr.bf16.mxu1 %v2656_v7  ;;  %v44_v4 = vld [vmem:[%s3813_s1 + $0xe0] sm:$0xff]  ;;  %v37_v6 = vld [vmem:[%s3813_s1 + $0xa8] sm:$0xff] }
  0x7c   :  { %v45_v7 = vld [vmem:[%s3813_s1 + $0xe8] sm:$0xff]  ;;  %v2498_v10 = vcombine.high %v36_v2, %v44_v4  ;;  %v2497_v16 = vcombine.low %v36_v2, %v44_v4 }
  0x7d   :  { %v2500_v11 = vcombine.high %v37_v6, %v45_v7  ;;  %v2499_v17 = vcombine.low %v37_v6, %v45_v7 }
  0x7e   :  { %1960 = vmatpush1.bf16.msra.mxu0 %v2653_v12  ;;  %2042 = vmatpush1.bf16.msra.mxu1 %v2655_v13  ;;  %v52_v12 = vld [vmem:[%s3813_s1 + $0x120] sm:$0xff] }
  0x7f   :  { %1961 = vmatprep.subr.bf16.mxu0 %v2670_v14  ;;  %2043 = vmatprep.subr.bf16.mxu1 %v2672_v15  ;;  %v60_v13 = vld [vmem:[%s3813_s1 + $0x160] sm:$0xff]  ;;  %v53_v14 = vld [vmem:[%s3813_s1 + $0x128] sm:$0xff] }
  0x80   :  { %v61_v15 = vld [vmem:[%s3813_s1 + $0x168] sm:$0xff]  ;;  %v2514_v18 = vcombine.high %v52_v12, %v60_v13  ;;  %v2513_v24 = vcombine.low %v52_v12, %v60_v13 }
  0x81   :  { %v2516_v19 = vcombine.high %v53_v14, %v61_v15  ;;  %v2515_v25 = vcombine.low %v53_v14, %v61_v15 }
  0x82   :  { %1962 = vmatpush1.bf16.msra.mxu0 %v2669_v20  ;;  %2044 = vmatpush1.bf16.msra.mxu1 %v2671_v21  ;;  %v68_v20 = vld [vmem:[%s3813_s1 + $0x1a0] sm:$0xff] }
  0x83   :  { %1963 = vmatprep.subr.bf16.mxu0 %v2686_v22  ;;  %2045 = vmatprep.subr.bf16.mxu1 %v2688_v23  ;;  %v76_v21 = vld [vmem:[%s3813_s1 + $0x1e0] sm:$0xff]  ;;  %v69_v22 = vld [vmem:[%s3813_s1 + $0x1a8] sm:$0xff] }
  0x84   :  { %v77_v23 = vld [vmem:[%s3813_s1 + $0x1e8] sm:$0xff]  ;;  %v2530_v26 = vcombine.high %v68_v20, %v76_v21  ;;  %v2529_v32 = vcombine.low %v68_v20, %v76_v21 }
  0x85   :  { %v2532_v27 = vcombine.high %v69_v22, %v77_v23  ;;  %v2531_v33 = vcombine.low %v69_v22, %v77_v23 }
  0x86   :  { %1964 = vmatpush1.bf16.msra.mxu0 %v2685_v28  ;;  %2046 = vmatpush1.bf16.msra.mxu1 %v2687_v29  ;;  %v84_v28 = vld [vmem:[%s3813_s1 + $0x220] sm:$0xff] }
  0x87   :  { %1965 = vmatprep.subr.bf16.mxu0 %v2702_v30  ;;  %2047 = vmatprep.subr.bf16.mxu1 %v2704_v31  ;;  %v92_v29 = vld [vmem:[%s3813_s1 + $0x260] sm:$0xff]  ;;  %v85_v30 = vld [vmem:[%s3813_s1 + $0x228] sm:$0xff] }
  0x88   :  { %v93_v31 = vld [vmem:[%s3813_s1 + $0x268] sm:$0xff]  ;;  %v2546_v34 = vcombine.high %v84_v28, %v92_v29  ;;  %v2545_v40 = vcombine.low %v84_v28, %v92_v29 }
  0x89   :  { %v2548_v35 = vcombine.high %v85_v30, %v93_v31  ;;  %v2547_v41 = vcombine.low %v85_v30, %v93_v31 }
  0x8a   :  { %1966 = vmatpush1.bf16.msra.mxu0 %v2701_v36  ;;  %2048 = vmatpush1.bf16.msra.mxu1 %v2703_v37  ;;  %v100_v36 = vld [vmem:[%s3813_s1 + $0x2a0] sm:$0xff] }
  0x8b   :  { %1967 = vmatprep.subr.bf16.mxu0 %v2718_v38  ;;  %2049 = vmatprep.subr.bf16.mxu1 %v2720_v39  ;;  %v108_v37 = vld [vmem:[%s3813_s1 + $0x2e0] sm:$0xff]  ;;  %v101_v38 = vld [vmem:[%s3813_s1 + $0x2a8] sm:$0xff] }
  0x8c   :  { %v109_v39 = vld [vmem:[%s3813_s1 + $0x2e8] sm:$0xff]  ;;  %v2562_v43 = vcombine.high %v100_v36, %v108_v37  ;;  %v2561_v48 = vcombine.low %v100_v36, %v108_v37 }
  0x8d   :  { %v2564_v60 = vcombine.high %v101_v38, %v109_v39  ;;  %v2563_v54 = vcombine.low %v101_v38, %v109_v39 }
  0x8e   :  { %1968 = vmatpush1.bf16.msra.mxu0 %v2717_v44  ;;  %2050 = vmatpush1.bf16.msra.mxu1 %v2719_v45  ;;  %v116_v44 = vld [vmem:[%s3813_s1 + $0x320] sm:$0xff] }
  0x8f   :  { %1978 = vmatprep.subr.bf16.mxu0 %v2734_v46  ;;  %2060 = vmatprep.subr.bf16.mxu1 %v2736_v47  ;;  %v124_v45 = vld [vmem:[%s3813_s1 + $0x360] sm:$0xff]  ;;  %v117_v46 = vld [vmem:[%s3813_s1 + $0x328] sm:$0xff] }
  0x90   :  { %v125_v47 = vld [vmem:[%s3813_s1 + $0x368] sm:$0xff]  ;;  %v2578_v49 = vcombine.high %v116_v44, %v124_v45  ;;  %v2577_v56 = vcombine.low %v116_v44, %v124_v45 }
  0x91   :  { %1970 = vmatmul.mubr.bf16.vlgmr.msra.gmra.mrb[4].mxu0 %v2943_v0  ;;  %2052 = vmatmul.mubr.bf16.vlgmr.msra.gmra.mrb[4].mxu1 %v2943_v0  ;;  %v2580_v50 = vcombine.high %v117_v46, %v125_v47  ;;  %v2579_v57 = vcombine.low %v117_v46, %v125_v47 }
  0x92   :  { %1979 = vmatpush1.bf16.msra.mxu0 %v2733_v51  ;;  %2061 = vmatpush1.bf16.msra.mxu1 %v2735_v52  ;;  %v132_v51 = vld [vmem:[%s3813_s1 + $0x3a0] sm:$0xff] }
  0x93   :  { %1980 = vmatprep.subr.bf16.mxu0 %v2750_v53  ;;  %2062 = vmatprep.subr.bf16.mxu1 %v2752_v55  ;;  %v140_v52 = vld [vmem:[%s3813_s1 + $0x3e0] sm:$0xff]  ;;  %v133_v53 = vld [vmem:[%s3813_s1 + $0x3a8] sm:$0xff] }
  0x94   :  { %2010 = vmatprep.mubr.bf16.mxu0 %v2821_v3  ;;  %2092 = vmatprep.mubr.bf16.mxu1 %v2821_v3  ;;  %v141_v55 = vld [vmem:[%s3813_s1 + $0x3e8] sm:$0xff]  ;;  %v2594_v58 = vcombine.high %v132_v51, %v140_v52  ;;  %v2593_v2 = vcombine.low %v132_v51, %v140_v52 }
  0x95   :  { %v2596_v59 = vcombine.high %v133_v53, %v141_v55  ;;  %v2595_v4 = vcombine.low %v133_v53, %v141_v55 }
  0x96   :  { %1981 = vmatpush1.bf16.msra.mxu0 %v2749_v61  ;;  %2063 = vmatpush1.bf16.msra.mxu1 %v2751_v62  ;;  %v148_v61 = vld [vmem:[%s3813_s1 + $0x420] sm:$0xff] }
  0x97   :  { %2101 = vmatprep.subr.bf16.mxu0 %v2482_v63  ;;  %2183 = vmatprep.subr.bf16.mxu1 %v2484_v1  ;;  %v156_v62 = vld [vmem:[%s3813_s1 + $0x460] sm:$0xff]  ;;  %v149_v63 = vld [vmem:[%s3813_s1 + $0x428] sm:$0xff] }
  0x98   :  { %v157_v1 = vld [vmem:[%s3813_s1 + $0x468] sm:$0xff]  ;;  %v2610_v6 = vcombine.high %v148_v61, %v156_v62  ;;  %v2609_v12 = vcombine.low %v148_v61, %v156_v62 }
  0x99   :  { %v2612_v7 = vcombine.high %v149_v63, %v157_v1  ;;  %v2611_v13 = vcombine.low %v149_v63, %v157_v1 }
  0x9d   :  { %2763 = vmatmul.mubr.msk.bf16.vlgmr.msra.gmra.mrb[4].mxu0 %vm1769_vm0, %v3105_v42  ;;  %2764 = vmatmul.mubr.msk.bf16.vlgmr.msra.gmra.mrb[4].mxu1 %vm1769_vm0, %v3105_v42 }
  0x9e   :  { %2102 = vmatpush1.bf16.msra.mxu0 %v2481_v8  ;;  %2184 = vmatpush1.bf16.msra.mxu1 %v2483_v9  ;;  %v164_v8 = vld [vmem:[%s3813_s1 + $0x4a0] sm:$0xff] }
  0x9f   :  { %2103 = vmatprep.subr.bf16.mxu0 %v2498_v10  ;;  %2185 = vmatprep.subr.bf16.mxu1 %v2500_v11  ;;  %v172_v9 = vld [vmem:[%s3813_s1 + $0x4e0] sm:$0xff]  ;;  %v165_v10 = vld [vmem:[%s3813_s1 + $0x4a8] sm:$0xff] }
  0xa0   :  { %2133 = vmatprep.mubr.bf16.mxu0 %v2953_v5  ;;  %2215 = vmatprep.mubr.bf16.mxu1 %v2953_v5  ;;  %v173_v11 = vld [vmem:[%s3813_s1 + $0x4e8] sm:$0xff]  ;;  %v2626_v14 = vcombine.high %v164_v8, %v172_v9  ;;  %v2625_v20 = vcombine.low %v164_v8, %v172_v9 }
  0xa1   :  { %v2628_v15 = vcombine.high %v165_v10, %v173_v11  ;;  %v2627_v21 = vcombine.low %v165_v10, %v173_v11 }
  0xa2   :  { %2104 = vmatpush1.bf16.msra.mxu0 %v2497_v16  ;;  %2186 = vmatpush1.bf16.msra.mxu1 %v2499_v17  ;;  %v180_v16 = vld [vmem:[%s3813_s1 + $0x520] sm:$0xff] }
  0xa3   :  { %2105 = vmatprep.subr.bf16.mxu0 %v2514_v18  ;;  %2187 = vmatprep.subr.bf16.mxu1 %v2516_v19  ;;  %v188_v17 = vld [vmem:[%s3813_s1 + $0x560] sm:$0xff]  ;;  %v181_v18 = vld [vmem:[%s3813_s1 + $0x528] sm:$0xff] }
  0xa4   :  { %v189_v19 = vld [vmem:[%s3813_s1 + $0x568] sm:$0xff]  ;;  %v2642_v22 = vcombine.high %v180_v16, %v188_v17  ;;  %v2641_v28 = vcombine.low %v180_v16, %v188_v17 }
  0xa5   :  { %v2644_v23 = vcombine.high %v181_v18, %v189_v19  ;;  %v2643_v29 = vcombine.low %v181_v18, %v189_v19 }
  0xa6   :  { %2106 = vmatpush1.bf16.msra.mxu0 %v2513_v24  ;;  %2188 = vmatpush1.bf16.msra.mxu1 %v2515_v25  ;;  %v196_v24 = vld [vmem:[%s3813_s1 + $0x5a0] sm:$0xff] }
  0xa7   :  { %2107 = vmatprep.subr.bf16.mxu0 %v2530_v26  ;;  %2189 = vmatprep.subr.bf16.mxu1 %v2532_v27  ;;  %v204_v25 = vld [vmem:[%s3813_s1 + $0x5e0] sm:$0xff]  ;;  %v197_v26 = vld [vmem:[%s3813_s1 + $0x5a8] sm:$0xff] }
  0xa8   :  { %v205_v27 = vld [vmem:[%s3813_s1 + $0x5e8] sm:$0xff]  ;;  %v2658_v30 = vcombine.high %v196_v24, %v204_v25  ;;  %v2657_v36 = vcombine.low %v196_v24, %v204_v25 }
  0xa9   :  { %v2660_v31 = vcombine.high %v197_v26, %v205_v27  ;;  %v2659_v37 = vcombine.low %v197_v26, %v205_v27 }
  0xaa   :  { %2108 = vmatpush1.bf16.msra.mxu0 %v2529_v32  ;;  %2190 = vmatpush1.bf16.msra.mxu1 %v2531_v33  ;;  %v212_v32 = vld [vmem:[%s3813_s1 + $0x620] sm:$0xff] }
  0xab   :  { %2109 = vmatprep.subr.bf16.mxu0 %v2546_v34  ;;  %2191 = vmatprep.subr.bf16.mxu1 %v2548_v35  ;;  %v220_v33 = vld [vmem:[%s3813_s1 + $0x660] sm:$0xff]  ;;  %v213_v34 = vld [vmem:[%s3813_s1 + $0x628] sm:$0xff] }
  0xac   :  { %v221_v35 = vld [vmem:[%s3813_s1 + $0x668] sm:$0xff]  ;;  %v2674_v38 = vcombine.high %v212_v32, %v220_v33  ;;  %v2673_v44 = vcombine.low %v212_v32, %v220_v33 }
  0xad   :  { %v2676_v39 = vcombine.high %v213_v34, %v221_v35  ;;  %v2675_v45 = vcombine.low %v213_v34, %v221_v35 }
  0xae   :  { %2110 = vmatpush1.bf16.msra.mxu0 %v2545_v40  ;;  %2192 = vmatpush1.bf16.msra.mxu1 %v2547_v41  ;;  %v228_v40 = vld [vmem:[%s3813_s1 + $0x6a0] sm:$0xff] }
  0xaf   :  { %2111 = vmatprep.subr.bf16.mxu0 %v2562_v43  ;;  %2193 = vmatprep.subr.bf16.mxu1 %v2564_v60  ;;  %v236_v41 = vld [vmem:[%s3813_s1 + $0x6e0] sm:$0xff]  ;;  %v229_v43 = vld [vmem:[%s3813_s1 + $0x6a8] sm:$0xff] }
  0xb0   :  { %v237_v60 = vld [vmem:[%s3813_s1 + $0x6e8] sm:$0xff]  ;;  %v2690_v46 = vcombine.high %v228_v40, %v236_v41  ;;  %v2689_v51 = vcombine.low %v228_v40, %v236_v41 }
  0xb1   :  { %v2692_v47 = vcombine.high %v229_v43, %v237_v60  ;;  %v2691_v52 = vcombine.low %v229_v43, %v237_v60 }
  0xb2   :  { %2112 = vmatpush1.bf16.msra.mxu0 %v2561_v48  ;;  %2194 = vmatpush1.bf16.msra.mxu1 %v2563_v54  ;;  %v244_v48 = vld [vmem:[%s3813_s1 + $0x720] sm:$0xff] }
  0xb3   :  { %2113 = vmatprep.subr.bf16.mxu0 %v2578_v49  ;;  %2195 = vmatprep.subr.bf16.mxu1 %v2580_v50  ;;  %v252_v54 = vld [vmem:[%s3813_s1 + $0x760] sm:$0xff]  ;;  %v245_v49 = vld [vmem:[%s3813_s1 + $0x728] sm:$0xff] }
  0xb4   :  { %v253_v50 = vld [vmem:[%s3813_s1 + $0x768] sm:$0xff]  ;;  %v2706_v53 = vcombine.high %v244_v48, %v252_v54  ;;  %v2705_v61 = vcombine.low %v244_v48, %v252_v54 }
  0xb5   :  { %v2708_v55 = vcombine.high %v245_v49, %v253_v50  ;;  %v2707_v62 = vcombine.low %v245_v49, %v253_v50 }
  0xb6   :  { %2114 = vmatpush1.bf16.msra.mxu0 %v2577_v56  ;;  %2196 = vmatpush1.bf16.msra.mxu1 %v2579_v57  ;;  %v260_v56 = vld [vmem:[%s3813_s1 + $0x7a0] sm:$0xff] }
  0xb7   :  { %2115 = vmatprep.subr.bf16.mxu0 %v2594_v58  ;;  %2197 = vmatprep.subr.bf16.mxu1 %v2596_v59  ;;  %v268_v57 = vld [vmem:[%s3813_s1 + $0x7e0] sm:$0xff]  ;;  %v261_v58 = vld [vmem:[%s3813_s1 + $0x7a8] sm:$0xff] }
  0xb8   :  { %v269_v59 = vld [vmem:[%s3813_s1 + $0x7e8] sm:$0xff]  ;;  %v2722_v63 = vcombine.high %v260_v56, %v268_v57  ;;  %v2721_v8 = vcombine.low %v260_v56, %v268_v57 }
  0xb9   :  { %v2724_v1 = vcombine.high %v261_v58, %v269_v59  ;;  %v2723_v9 = vcombine.low %v261_v58, %v269_v59  ;;  %v102_v59 = vld [vmem:[%s3813_s1 + $0x2b0] sm:$0xff] }
  0xba   :  { %2116 = vmatpush1.bf16.msra.mxu0 %v2593_v2  ;;  %2198 = vmatpush1.bf16.msra.mxu1 %v2595_v4  ;;  %v276_v2 = vld [vmem:[%s3813_s1 + $0x820] sm:$0xff] }
  0xbb   :  { %2117 = vmatprep.subr.bf16.mxu0 %v2610_v6  ;;  %2199 = vmatprep.subr.bf16.mxu1 %v2612_v7  ;;  %v284_v4 = vld [vmem:[%s3813_s1 + $0x860] sm:$0xff]  ;;  %v277_v6 = vld [vmem:[%s3813_s1 + $0x828] sm:$0xff] }
  0xbc   :  { %v285_v7 = vld [vmem:[%s3813_s1 + $0x868] sm:$0xff]  ;;  %v2738_v10 = vcombine.high %v276_v2, %v284_v4  ;;  %v2737_v16 = vcombine.low %v276_v2, %v284_v4 }
  0xbd   :  { %v2740_v11 = vcombine.high %v277_v6, %v285_v7  ;;  %v2739_v17 = vcombine.low %v277_v6, %v285_v7  ;;  %v118_v7 = vld [vmem:[%s3813_s1 + $0x330] sm:$0xff] }
  0xbe   :  { %2118 = vmatpush1.bf16.msra.mxu0 %v2609_v12  ;;  %2200 = vmatpush1.bf16.msra.mxu1 %v2611_v13  ;;  %v292_v12 = vld [vmem:[%s3813_s1 + $0x8a0] sm:$0xff] }
  0xbf   :  { %2119 = vmatprep.subr.bf16.mxu0 %v2626_v14  ;;  %2201 = vmatprep.subr.bf16.mxu1 %v2628_v15  ;;  %v300_v13 = vld [vmem:[%s3813_s1 + $0x8e0] sm:$0xff]  ;;  %v293_v14 = vld [vmem:[%s3813_s1 + $0x8a8] sm:$0xff] }
  0xc0   :  { %v301_v15 = vld [vmem:[%s3813_s1 + $0x8e8] sm:$0xff]  ;;  %v2754_v18 = vcombine.high %v292_v12, %v300_v13  ;;  %v2753_v24 = vcombine.low %v292_v12, %v300_v13 }
  0xc1   :  { %v2756_v19 = vcombine.high %v293_v14, %v301_v15  ;;  %v2755_v25 = vcombine.low %v293_v14, %v301_v15  ;;  %v134_v15 = vld [vmem:[%s3813_s1 + $0x3b0] sm:$0xff] }
  0xc2   :  { %2120 = vmatpush1.bf16.msra.mxu0 %v2625_v20  ;;  %2202 = vmatpush1.bf16.msra.mxu1 %v2627_v21  ;;  %v22_v20 = vld [vmem:[%s3813_s1 + $0x30] sm:$0xff] }
  0xc3   :  { %2121 = vmatprep.subr.bf16.mxu0 %v2642_v22  ;;  %2203 = vmatprep.subr.bf16.mxu1 %v2644_v23  ;;  %v30_v21 = vld [vmem:[%s3813_s1 + $0x70] sm:$0xff]  ;;  %v23_v22 = vld [vmem:[%s3813_s1 + $0x38] sm:$0xff] }
  0xc4   :  { %v31_v23 = vld [vmem:[%s3813_s1 + $0x78] sm:$0xff]  ;;  %v2486_v26 = vcombine.high %v22_v20, %v30_v21  ;;  %v2485_v32 = vcombine.low %v22_v20, %v30_v21 }
  0xc5   :  { %v2488_v27 = vcombine.high %v23_v22, %v31_v23  ;;  %v2487_v33 = vcombine.low %v23_v22, %v31_v23  ;;  %v150_v23 = vld [vmem:[%s3813_s1 + $0x430] sm:$0xff] }
  0xc6   :  { %2122 = vmatpush1.bf16.msra.mxu0 %v2641_v28  ;;  %2204 = vmatpush1.bf16.msra.mxu1 %v2643_v29  ;;  %v38_v28 = vld [vmem:[%s3813_s1 + $0xb0] sm:$0xff] }
  0xc7   :  { %2123 = vmatprep.subr.bf16.mxu0 %v2658_v30  ;;  %2205 = vmatprep.subr.bf16.mxu1 %v2660_v31  ;;  %v46_v29 = vld [vmem:[%s3813_s1 + $0xf0] sm:$0xff]  ;;  %v39_v30 = vld [vmem:[%s3813_s1 + $0xb8] sm:$0xff] }
  0xc8   :  { %v47_v31 = vld [vmem:[%s3813_s1 + $0xf8] sm:$0xff]  ;;  %v2502_v34 = vcombine.high %v38_v28, %v46_v29  ;;  %v2501_v40 = vcombine.low %v38_v28, %v46_v29 }
  0xc9   :  { %v2504_v35 = vcombine.high %v39_v30, %v47_v31  ;;  %v2503_v41 = vcombine.low %v39_v30, %v47_v31  ;;  %v166_v31 = vld [vmem:[%s3813_s1 + $0x4b0] sm:$0xff] }
  0xca   :  { %2124 = vmatpush1.bf16.msra.mxu0 %v2657_v36  ;;  %2206 = vmatpush1.bf16.msra.mxu1 %v2659_v37  ;;  %v54_v36 = vld [vmem:[%s3813_s1 + $0x130] sm:$0xff] }
  0xcb   :  { %2125 = vmatprep.subr.bf16.mxu0 %v2674_v38  ;;  %2207 = vmatprep.subr.bf16.mxu1 %v2676_v39  ;;  %v62_v37 = vld [vmem:[%s3813_s1 + $0x170] sm:$0xff]  ;;  %v55_v38 = vld [vmem:[%s3813_s1 + $0x138] sm:$0xff] }
  0xcc   :  { %v63_v39 = vld [vmem:[%s3813_s1 + $0x178] sm:$0xff]  ;;  %v2518_v43 = vcombine.high %v54_v36, %v62_v37  ;;  %v2517_v48 = vcombine.low %v54_v36, %v62_v37 }
  0xcd   :  { %v2520_v60 = vcombine.high %v55_v38, %v63_v39  ;;  %v2519_v54 = vcombine.low %v55_v38, %v63_v39  ;;  %v182_v39 = vld [vmem:[%s3813_s1 + $0x530] sm:$0xff] }
  0xce   :  { %2126 = vmatpush1.bf16.msra.mxu0 %v2673_v44  ;;  %2208 = vmatpush1.bf16.msra.mxu1 %v2675_v45  ;;  %v70_v44 = vld [vmem:[%s3813_s1 + $0x1b0] sm:$0xff] }
  0xcf   :  { %2127 = vmatprep.subr.bf16.mxu0 %v2690_v46  ;;  %2209 = vmatprep.subr.bf16.mxu1 %v2692_v47  ;;  %v78_v45 = vld [vmem:[%s3813_s1 + $0x1f0] sm:$0xff]  ;;  %v71_v46 = vld [vmem:[%s3813_s1 + $0x1b8] sm:$0xff] }
  0xd0   :  { %v79_v47 = vld [vmem:[%s3813_s1 + $0x1f8] sm:$0xff]  ;;  %v2534_v49 = vcombine.high %v70_v44, %v78_v45 }
  0xd1   :  { %v2536_v50 = vcombine.high %v71_v46, %v79_v47  ;;  %v2535_v56 = vcombine.low %v71_v46, %v79_v47  ;;  %v198_v47 = vld [vmem:[%s3813_s1 + $0x5b0] sm:$0xff] }
  0xd2   :  { %2128 = vmatpush1.bf16.msra.mxu0 %v2689_v51  ;;  %2210 = vmatpush1.bf16.msra.mxu1 %v2691_v52  ;;  %v86_v51 = vld [vmem:[%s3813_s1 + $0x230] sm:$0xff] }
  0xd3   :  { %2129 = vmatprep.subr.bf16.mxu0 %v2706_v53  ;;  %2211 = vmatprep.subr.bf16.mxu1 %v2708_v55  ;;  %v94_v52 = vld [vmem:[%s3813_s1 + $0x270] sm:$0xff]  ;;  %v95_v53 = vld [vmem:[%s3813_s1 + $0x278] sm:$0xff]  ;;  %v2533_v55 = vcombine.low %v70_v44, %v78_v45 }
  0xd4   :  { %v2550_v57 = vcombine.high %v86_v51, %v94_v52 }
  0xd6   :  { %2130 = vmatpush1.bf16.msra.mxu0 %v2705_v61  ;;  %2212 = vmatpush1.bf16.msra.mxu1 %v2707_v62  ;;  %v110_v61 = vld [vmem:[%s3813_s1 + $0x2f0] sm:$0xff]  ;;  %v103_v62 = vld [vmem:[%s3813_s1 + $0x2b8] sm:$0xff] }
  0xd7   :  { %2131 = vmatprep.subr.bf16.mxu0 %v2722_v63  ;;  %2213 = vmatprep.subr.bf16.mxu1 %v2724_v1  ;;  %v111_v63 = vld [vmem:[%s3813_s1 + $0x2f8] sm:$0xff]  ;;  %v2549_v1 = vcombine.low %v86_v51, %v94_v52  ;;  %v2566_v4 = vcombine.high %v102_v59, %v110_v61 }
  0xd8   :  { %v2568_v6 = vcombine.high %v103_v62, %v111_v63  ;;  %v2567_v12 = vcombine.low %v103_v62, %v111_v63  ;;  %v230_v63 = vld [vmem:[%s3813_s1 + $0x6b0] sm:$0xff] }
  0xda   :  { %2132 = vmatpush1.bf16.msra.mxu0 %v2721_v8  ;;  %2214 = vmatpush1.bf16.msra.mxu1 %v2723_v9  ;;  %v126_v8 = vld [vmem:[%s3813_s1 + $0x370] sm:$0xff]  ;;  %v119_v9 = vld [vmem:[%s3813_s1 + $0x338] sm:$0xff] }
  0xdb   :  { %2142 = vmatprep.subr.bf16.mxu0 %v2738_v10  ;;  %2224 = vmatprep.subr.bf16.mxu1 %v2740_v11  ;;  %v127_v10 = vld [vmem:[%s3813_s1 + $0x378] sm:$0xff]  ;;  %v2565_v11 = vcombine.low %v102_v59, %v110_v61  ;;  %v2582_v13 = vcombine.high %v118_v7, %v126_v8 }
  0xdc   :  { %v2584_v14 = vcombine.high %v119_v9, %v127_v10  ;;  %v2583_v20 = vcombine.low %v119_v9, %v127_v10  ;;  %v246_v10 = vld [vmem:[%s3813_s1 + $0x730] sm:$0xff] }
  0xdd   :  { %2134 = vmatmul.mubr.bf16.vlgmr.msra.gmra.mrb[8].mxu0 %v2943_v0  ;;  %2216 = vmatmul.mubr.bf16.vlgmr.msra.gmra.mrb[8].mxu1 %v2943_v0 }
  0xde   :  { %2143 = vmatpush1.bf16.msra.mxu0 %v2737_v16  ;;  %2225 = vmatpush1.bf16.msra.mxu1 %v2739_v17  ;;  %v142_v16 = vld [vmem:[%s3813_s1 + $0x3f0] sm:$0xff]  ;;  %v135_v17 = vld [vmem:[%s3813_s1 + $0x3b8] sm:$0xff] }
  0xdf   :  { %2144 = vmatprep.subr.bf16.mxu0 %v2754_v18  ;;  %2226 = vmatprep.subr.bf16.mxu1 %v2756_v19  ;;  %v143_v18 = vld [vmem:[%s3813_s1 + $0x3f8] sm:$0xff]  ;;  %v2581_v19 = vcombine.low %v118_v7, %v126_v8  ;;  %v2598_v21 = vcombine.high %v134_v15, %v142_v16 }
  0xe0   :  { %2174 = vmatprep.mubr.bf16.mxu0 %v2821_v3  ;;  %2256 = vmatprep.mubr.bf16.mxu1 %v2821_v3  ;;  %v2600_v22 = vcombine.high %v135_v17, %v143_v18  ;;  %v2599_v28 = vcombine.low %v135_v17, %v143_v18  ;;  %v262_v18 = vld [vmem:[%s3813_s1 + $0x7b0] sm:$0xff] }
  0xe2   :  { %2145 = vmatpush1.bf16.msra.mxu0 %v2753_v24  ;;  %2227 = vmatpush1.bf16.msra.mxu1 %v2755_v25  ;;  %v158_v24 = vld [vmem:[%s3813_s1 + $0x470] sm:$0xff]  ;;  %v151_v25 = vld [vmem:[%s3813_s1 + $0x438] sm:$0xff] }
  0xe3   :  { %2265 = vmatprep.subr.bf16.mxu0 %v2486_v26  ;;  %2347 = vmatprep.subr.bf16.mxu1 %v2488_v27  ;;  %v159_v26 = vld [vmem:[%s3813_s1 + $0x478] sm:$0xff]  ;;  %v2597_v27 = vcombine.low %v134_v15, %v142_v16  ;;  %v2614_v29 = vcombine.high %v150_v23, %v158_v24 }
  0xe4   :  { %v2616_v30 = vcombine.high %v151_v25, %v159_v26  ;;  %v2615_v36 = vcombine.low %v151_v25, %v159_v26  ;;  %v278_v26 = vld [vmem:[%s3813_s1 + $0x830] sm:$0xff] }
  0xe9   :  { %2765 = vmatmul.mubr.msk.bf16.vlgmr.msra.gmra.mrb[8].mxu0 %vm1769_vm0, %v3105_v42  ;;  %2766 = vmatmul.mubr.msk.bf16.vlgmr.msra.gmra.mrb[8].mxu1 %vm1769_vm0, %v3105_v42 }
  0xea   :  { %2266 = vmatpush1.bf16.msra.mxu0 %v2485_v32  ;;  %2348 = vmatpush1.bf16.msra.mxu1 %v2487_v33  ;;  %v174_v32 = vld [vmem:[%s3813_s1 + $0x4f0] sm:$0xff]  ;;  %v167_v33 = vld [vmem:[%s3813_s1 + $0x4b8] sm:$0xff] }
  0xeb   :  { %2267 = vmatprep.subr.bf16.mxu0 %v2502_v34  ;;  %2349 = vmatprep.subr.bf16.mxu1 %v2504_v35  ;;  %v175_v34 = vld [vmem:[%s3813_s1 + $0x4f8] sm:$0xff]  ;;  %v2613_v35 = vcombine.low %v150_v23, %v158_v24  ;;  %v2630_v37 = vcombine.high %v166_v31, %v174_v32 }
  0xec   :  { %2297 = vmatprep.mubr.bf16.mxu0 %v2953_v5  ;;  %2379 = vmatprep.mubr.bf16.mxu1 %v2953_v5  ;;  %v87_v5 = vld [vmem:[%s3813_s1 + $0x238] sm:$0xff]  ;;  %v2632_v38 = vcombine.high %v167_v33, %v175_v34  ;;  %v2631_v44 = vcombine.low %v167_v33, %v175_v34 }
  0xed   :  { %v2552_v58 = vcombine.high %v87_v5, %v95_v53  ;;  %v2551_v2 = vcombine.low %v87_v5, %v95_v53  ;;  %v214_v53 = vld [vmem:[%s3813_s1 + $0x630] sm:$0xff] }
  0xee   :  { %2268 = vmatpush1.bf16.msra.mxu0 %v2501_v40  ;;  %2350 = vmatpush1.bf16.msra.mxu1 %v2503_v41  ;;  %v190_v40 = vld [vmem:[%s3813_s1 + $0x570] sm:$0xff]  ;;  %v183_v41 = vld [vmem:[%s3813_s1 + $0x538] sm:$0xff] }
  0xef   :  { %2269 = vmatprep.subr.bf16.mxu0 %v2518_v43  ;;  %2351 = vmatprep.subr.bf16.mxu1 %v2520_v60  ;;  %v191_v43 = vld [vmem:[%s3813_s1 + $0x578] sm:$0xff]  ;;  %v2629_v60 = vcombine.low %v166_v31, %v174_v32  ;;  %v2646_v45 = vcombine.high %v182_v39, %v190_v40  ;;  %v3751_v31 = vpop.permute.xlu0 %307 }
  0xf0   :  { %v2648_v46 = vcombine.high %v183_v41, %v191_v43  ;;  %v2647_v51 = vcombine.low %v183_v41, %v191_v43  ;;  %v295_v41 = vld [vmem:[%s3813_s1 + $0x8b8] sm:$0xff] }
  0xf1   :  { %v303_v43 = vld [vmem:[%s3813_s1 + $0x8f8] sm:$0xff] }
  0xf2   :  { %2270 = vmatpush1.bf16.msra.mxu0 %v2517_v48  ;;  %2352 = vmatpush1.bf16.msra.mxu1 %v2519_v54  ;;  %v206_v48 = vld [vmem:[%s3813_s1 + $0x5f0] sm:$0xff]  ;;  %v199_v54 = vld [vmem:[%s3813_s1 + $0x5b8] sm:$0xff] }
  0xf3   :  { %2271 = vmatprep.subr.bf16.mxu0 %v2534_v49  ;;  %2353 = vmatprep.subr.bf16.mxu1 %v2536_v50  ;;  %v207_v49 = vld [vmem:[%s3813_s1 + $0x5f8] sm:$0xff]  ;;  %v2645_v50 = vcombine.low %v182_v39, %v190_v40  ;;  %v2662_v52 = vcombine.high %v198_v47, %v206_v48 }
  0xf4   :  { %v2664_v5 = vcombine.high %v199_v54, %v207_v49  ;;  %v2663_v59 = vcombine.low %v199_v54, %v207_v49 }
  0xf6   :  { %2272 = vmatpush1.bf16.msra.mxu0 %v2533_v55  ;;  %2354 = vmatpush1.bf16.msra.mxu1 %v2535_v56  ;;  %v222_v55 = vld [vmem:[%s3813_s1 + $0x670] sm:$0xff]  ;;  %v215_v56 = vld [vmem:[%s3813_s1 + $0x638] sm:$0xff] }
  0xf7   :  { %2273 = vmatprep.subr.bf16.mxu0 %v2550_v57  ;;  %2355 = vmatprep.subr.bf16.mxu1 %v2552_v58  ;;  %v223_v57 = vld [vmem:[%s3813_s1 + $0x678] sm:$0xff]  ;;  %v2661_v58 = vcombine.low %v198_v47, %v206_v48  ;;  %v2678_v61 = vcombine.high %v214_v53, %v222_v55 }
  0xf8   :  { %v2680_v62 = vcombine.high %v215_v56, %v223_v57  ;;  %v2679_v7 = vcombine.low %v215_v56, %v223_v57  ;;  %v2759_v57 = vcombine.low %v295_v41, %v303_v43 }
  0xfa   :  { %2274 = vmatpush1.bf16.msra.mxu0 %v2549_v1  ;;  %2356 = vmatpush1.bf16.msra.mxu1 %v2551_v2  ;;  %v238_v1 = vld [vmem:[%s3813_s1 + $0x6f0] sm:$0xff]  ;;  %v231_v2 = vld [vmem:[%s3813_s1 + $0x6b8] sm:$0xff] }
  0xfb   :  { %2275 = vmatprep.subr.bf16.mxu0 %v2566_v4  ;;  %2357 = vmatprep.subr.bf16.mxu1 %v2568_v6  ;;  %v239_v4 = vld [vmem:[%s3813_s1 + $0x6f8] sm:$0xff]  ;;  %v2677_v6 = vcombine.low %v214_v53, %v222_v55  ;;  %v2694_v8 = vcombine.high %v230_v63, %v238_v1  ;;  %v2760_v53 = vcombine.high %v295_v41, %v303_v43 }
  0xfc   :  { %v2696_v9 = vcombine.high %v231_v2, %v239_v4  ;;  %v2695_v15 = vcombine.low %v231_v2, %v239_v4 }
  0xfe   :  { %2276 = vmatpush1.bf16.msra.mxu0 %v2565_v11  ;;  %2358 = vmatpush1.bf16.msra.mxu1 %v2567_v12  ;;  %v254_v11 = vld [vmem:[%s3813_s1 + $0x770] sm:$0xff]  ;;  %v247_v12 = vld [vmem:[%s3813_s1 + $0x738] sm:$0xff] }
  0xff   :  { %2277 = vmatprep.subr.bf16.mxu0 %v2582_v13  ;;  %2359 = vmatprep.subr.bf16.mxu1 %v2584_v14  ;;  %v255_v13 = vld [vmem:[%s3813_s1 + $0x778] sm:$0xff]  ;;  %v2693_v14 = vcombine.low %v230_v63, %v238_v1  ;;  %v2710_v16 = vcombine.high %v246_v10, %v254_v11 }
 0x100   :  { %v2712_v17 = vcombine.high %v247_v12, %v255_v13  ;;  %v2711_v23 = vcombine.low %v247_v12, %v255_v13 }
 0x102   :  { %2278 = vmatpush1.bf16.msra.mxu0 %v2581_v19  ;;  %2360 = vmatpush1.bf16.msra.mxu1 %v2583_v20  ;;  %v270_v19 = vld [vmem:[%s3813_s1 + $0x7f0] sm:$0xff]  ;;  %v263_v20 = vld [vmem:[%s3813_s1 + $0x7b8] sm:$0xff] }
 0x103   :  { %2279 = vmatprep.subr.bf16.mxu0 %v2598_v21  ;;  %2361 = vmatprep.subr.bf16.mxu1 %v2600_v22  ;;  %v271_v21 = vld [vmem:[%s3813_s1 + $0x7f8] sm:$0xff]  ;;  %v2709_v22 = vcombine.low %v246_v10, %v254_v11  ;;  %v2726_v24 = vcombine.high %v262_v18, %v270_v19 }
 0x104   :  { %v2728_v25 = vcombine.high %v263_v20, %v271_v21  ;;  %v2727_v32 = vcombine.low %v263_v20, %v271_v21 }
 0x106   :  { %2280 = vmatpush1.bf16.msra.mxu0 %v2597_v27  ;;  %2362 = vmatpush1.bf16.msra.mxu1 %v2599_v28  ;;  %v286_v27 = vld [vmem:[%s3813_s1 + $0x870] sm:$0xff]  ;;  %v279_v28 = vld [vmem:[%s3813_s1 + $0x838] sm:$0xff] }
 0x107   :  { %2281 = vmatprep.subr.bf16.mxu0 %v2614_v29  ;;  %2363 = vmatprep.subr.bf16.mxu1 %v2616_v30  ;;  %v287_v29 = vld [vmem:[%s3813_s1 + $0x878] sm:$0xff]  ;;  %v2725_v30 = vcombine.low %v262_v18, %v270_v19  ;;  %v2742_v33 = vcombine.high %v278_v26, %v286_v27  ;;  %v2741_v47 = vcombine.low %v278_v26, %v286_v27 }
 0x108   :  { %v2743_v49 = vcombine.low %v279_v28, %v287_v29 }
 0x10a   :  { %2282 = vmatpush1.bf16.msra.mxu0 %v2613_v35  ;;  %2364 = vmatpush1.bf16.msra.mxu1 %v2615_v36  ;;  %v2744_v35 = vcombine.high %v279_v28, %v287_v29  ;;  %v294_v36 = vld [vmem:[%s3813_s1 + $0x8b0] sm:$0xff] }
 0x10b   :  { %2283 = vmatprep.subr.bf16.mxu0 %v2630_v37  ;;  %2365 = vmatprep.subr.bf16.mxu1 %v2632_v38  ;;  %v302_v37 = vld [vmem:[%s3813_s1 + $0x8f0] sm:$0xff] }
 0x10c   :  { %v2757_v56 = vcombine.low %v294_v36, %v302_v37 }
 0x10e   :  { %2284 = vmatpush1.bf16.msra.mxu0 %v2629_v60  ;;  %2366 = vmatpush1.bf16.msra.mxu1 %v2631_v44 }
 0x10f   :  { %2285 = vmatprep.subr.bf16.mxu0 %v2646_v45  ;;  %2367 = vmatprep.subr.bf16.mxu1 %v2648_v46 }
 0x112   :  { %2286 = vmatpush1.bf16.msra.mxu0 %v2645_v50  ;;  %2368 = vmatpush1.bf16.msra.mxu1 %v2647_v51  ;;  %v2758_v51 = vcombine.high %v294_v36, %v302_v37 }
 0x113   :  { %2287 = vmatprep.subr.bf16.mxu0 %v2662_v52  ;;  %2369 = vmatprep.subr.bf16.mxu1 %v2664_v5 }
 0x116   :  { %2288 = vmatpush1.bf16.msra.mxu0 %v2661_v58  ;;  %2370 = vmatpush1.bf16.msra.mxu1 %v2663_v59 }
 0x117   :  { %2289 = vmatprep.subr.bf16.mxu0 %v2678_v61  ;;  %2371 = vmatprep.subr.bf16.mxu1 %v2680_v62 }
 0x11a   :  { %2290 = vmatpush1.bf16.msra.mxu0 %v2677_v6  ;;  %2372 = vmatpush1.bf16.msra.mxu1 %v2679_v7 }
 0x11b   :  { %2291 = vmatprep.subr.bf16.mxu0 %v2694_v8  ;;  %2373 = vmatprep.subr.bf16.mxu1 %v2696_v9 }
 0x11e   :  { %2292 = vmatpush1.bf16.msra.mxu0 %v2693_v14  ;;  %2374 = vmatpush1.bf16.msra.mxu1 %v2695_v15 }
 0x11f   :  { %2293 = vmatprep.subr.bf16.mxu0 %v2710_v16  ;;  %2375 = vmatprep.subr.bf16.mxu1 %v2712_v17 }
 0x122   :  { %2294 = vmatpush1.bf16.msra.mxu0 %v2709_v22  ;;  %2376 = vmatpush1.bf16.msra.mxu1 %v2711_v23 }
 0x123   :  { %2295 = vmatprep.subr.bf16.mxu0 %v2726_v24  ;;  %2377 = vmatprep.subr.bf16.mxu1 %v2728_v25 }
 0x124   :  { %v1848_v34 = vpop.f32.mrb[0].mxu0  ;;  %v1930_v39 = vpop.f32.mrb[0].mxu1 }
 0x125   :  { %v2769_v38 = vadd.f32 %v1848_v34, %v3751_v31  ;;  %v1850_v40 = vpop.f32.mrb[1].mxu0  ;;  %v2771_v60 = vadd.f32 %v1930_v39, %v3751_v31  ;;  %v1932_v45 = vpop.f32.mrb[1].mxu1 }
 0x126   :  { %2296 = vmatpush1.bf16.msra.mxu0 %v2725_v30  ;;  %v2770_v44 = vadd.f32 %v1850_v40, %v3751_v31  ;;  %v1852_v46 = vpop.f32.mrb[2].mxu0  ;;  %2378 = vmatpush1.bf16.msra.mxu1 %v2727_v32  ;;  %v2772_v48 = vadd.f32 %v1932_v45, %v3751_v31  ;;  %v1934_v54 = vpop.f32.mrb[2].mxu1 }
 0x127   :  { %2306 = vmatprep.subr.bf16.mxu0 %v2742_v33  ;;  %v1853_v50 = vpop.f32.mrb[3].mxu0  ;;  %2388 = vmatprep.subr.bf16.mxu1 %v2744_v35  ;;  %v1935_v5 = vpop.f32.mrb[3].mxu1 }
 0x128   :  { %v2445_v52 = vcombine.low %v2769_v38, %v2770_v44  ;;  %v2446_v55 = vcombine.low %v2771_v60, %v2772_v48 }
 0x129   :  { %2298 = vmatmul.mubr.bf16.vlgmr.msra.gmra.mrb[12].mxu0 %v2943_v0  ;;  %2380 = vmatmul.mubr.bf16.vlgmr.msra.gmra.mrb[12].mxu1 %v2943_v0 }
 0x12a   :  { %2461 = vst [vmem:[%s3816_s3] sm:$0xff] %v2445_v52  ;;  %2307 = vmatpush1.bf16.msra.mxu0 %v2741_v47  ;;  %2462 = vst [vmem:[%s3816_s3 + $0x8] sm:$0xff] %v2446_v55  ;;  %2389 = vmatpush1.bf16.msra.mxu1 %v2743_v49 }
 0x12b   :  { %2308 = vmatprep.subr.bf16.mxu0 %v2758_v51  ;;  %2390 = vmatprep.subr.bf16.mxu1 %v2760_v53 }
 0x12c   :  { %2338 = vmatprep.mubr.bf16.mxu0 %v2821_v3  ;;  %2420 = vmatprep.mubr.bf16.mxu1 %v2821_v3 }
 0x12e   :  { %2309 = vmatpush1.bf16.msra.mxu0 %v2757_v56  ;;  %2391 = vmatpush1.bf16.msra.mxu1 %v2759_v57 }
 0x135   :  { %2767 = vmatmul.mubr.msk.bf16.vlgmr.msra.gmra.mrb[12].mxu0 %vm1769_vm0, %v3105_v42  ;;  %2768 = vmatmul.mubr.msk.bf16.vlgmr.msra.gmra.mrb[12].mxu1 %vm1769_vm0, %v3105_v42 }
 0x170   :  { %v2012_v0 = vpop.f32.mrb[4].mxu0  ;;  %v2094_v59 = vpop.f32.mrb[4].mxu1 }
 0x171   :  { %v2773_v58 = vadd.f32 %v2012_v0, %v3751_v31  ;;  %v2014_v61 = vpop.f32.mrb[5].mxu0  ;;  %v2775_v62 = vadd.f32 %v2094_v59, %v3751_v31  ;;  %v2096_v1 = vpop.f32.mrb[5].mxu1 }
 0x172   :  { %v2774_v63 = vadd.f32 %v2014_v61, %v3751_v31  ;;  %v2016_v2 = vpop.f32.mrb[6].mxu0  ;;  %v2776_v3 = vadd.f32 %v2096_v1, %v3751_v31  ;;  %v2098_v4 = vpop.f32.mrb[6].mxu1 }
 0x173   :  { %v2017_v6 = vpop.f32.mrb[7].mxu0  ;;  %v2099_v8 = vpop.f32.mrb[7].mxu1 }
 0x174   :  { %v2447_v7 = vcombine.low %v2773_v58, %v2774_v63  ;;  %v2448_v9 = vcombine.low %v2775_v62, %v2776_v3 }
 0x176   :  { %2463 = vst [vmem:[%s3816_s3 + $0x10] sm:$0xff] %v2447_v7  ;;  %2464 = vst [vmem:[%s3816_s3 + $0x18] sm:$0xff] %v2448_v9 }
 0x1bc   :  { %v2176_v42 = vpop.f32.mrb[8].mxu0  ;;  %v2258_v11 = vpop.f32.mrb[8].mxu1 }
 0x1bd   :  { %v2777_v10 = vadd.f32 %v2176_v42, %v3751_v31  ;;  %v2178_v12 = vpop.f32.mrb[9].mxu0  ;;  %v2779_v13 = vadd.f32 %v2258_v11, %v3751_v31  ;;  %v2260_v15 = vpop.f32.mrb[9].mxu1 }
 0x1be   :  { %v2778_v14 = vadd.f32 %v2178_v12, %v3751_v31  ;;  %v2180_v16 = vpop.f32.mrb[10].mxu0  ;;  %v2780_v17 = vadd.f32 %v2260_v15, %v3751_v31  ;;  %v2262_v18 = vpop.f32.mrb[10].mxu1 }
 0x1bf   :  { %v2181_v19 = vpop.f32.mrb[11].mxu0  ;;  %v2263_v21 = vpop.f32.mrb[11].mxu1 }
 0x1c0   :  { %v2449_v20 = vcombine.low %v2777_v10, %v2778_v14  ;;  %v2450_v22 = vcombine.low %v2779_v13, %v2780_v17 }
 0x1c2   :  { %2465 = vst [vmem:[%s3816_s3 + $0x20] sm:$0xff] %v2449_v20  ;;  %2466 = vst [vmem:[%s3816_s3 + $0x28] sm:$0xff] %v2450_v22 }
 0x208   :  { %v2340_v23 = vpop.f32.mrb[12].mxu0  ;;  %v2422_v25 = vpop.f32.mrb[12].mxu1 }
 0x209   :  { %v2781_v24 = vadd.f32 %v2340_v23, %v3751_v31  ;;  %v2342_v26 = vpop.f32.mrb[13].mxu0  ;;  %v2783_v27 = vadd.f32 %v2422_v25, %v3751_v31  ;;  %v2424_v29 = vpop.f32.mrb[13].mxu1 }
 0x20a   :  { %v2782_v28 = vadd.f32 %v2342_v26, %v3751_v31  ;;  %v2344_v30 = vpop.f32.mrb[14].mxu0  ;;  %v2784_v32 = vadd.f32 %v2424_v29, %v3751_v31  ;;  %v2426_v33 = vpop.f32.mrb[14].mxu1 }
 0x20b   :  { %v2345_v34 = vpop.f32.mrb[15].mxu0  ;;  %v2427_v36 = vpop.f32.mrb[15].mxu1 }
 0x20c   :  { %v2451_v35 = vcombine.low %v2781_v24, %v2782_v28  ;;  %v2452_v37 = vcombine.low %v2783_v27, %v2784_v32 }
 0x20e   :  { %2467 = vst [vmem:[%s3816_s3 + $0x30] sm:$0xff] %v2451_v35  ;;  %2468 = vst [vmem:[%s3816_s3 + $0x38] sm:$0xff] %v2452_v37 }

</bundles_post_ra>
